<compile_context>
chip_gen: v7x
topology: tpu7x:2x2x1
jax: 0.10.0
libtpu: 0.0.40
codegen_flags: <defaults>
</compile_context>

<pallas_src>
import functools
import math

import numpy as np
import jax
import jax.numpy as jnp
from jax.experimental import pallas as pl
from jax.experimental.pallas import tpu as pltpu

HIDDEN = 64  # hard-coded hidden width of PWDWPWConv in the PyTorch module


def _gelu(x):
    # Exact (erf-based) GELU matching torch.nn.GELU() default.
    # erf via Abramowitz-Stegun 7.1.26 (|abs err| < 1.5e-7); the divide goes to
    # the EUP via an approximate reciprocal (error negligible at test tolerance).
    z = x * (1.0 / math.sqrt(2.0))
    sign = jnp.where(z >= 0.0, 1.0, -1.0)
    az = jnp.abs(z)
    t = pl.reciprocal(1.0 + 0.3275911 * az, approx=True)
    poly = t * (0.254829592 + t * (-0.284496736 + t * (1.421413741
              + t * (-1.453152027 + t * 1.061405429))))
    erf = sign * (1.0 - poly * jnp.exp(-az * az))
    return 0.5 * x * (1.0 + erf)


def _dwconv3x3(t, ktap, masks, W):
    """Depthwise 3x3 conv (stride 1, zero pad 1) in (channels, H*W) layout.

    t:     (CH, HW) f32, spatial flattened row-major on the lane axis.
    ktap:  (CH, 9)  per-channel tap weights (tap index = dh*3 + dw).
    masks: list of 9 (1, HW) f32 masks, 1 where the tap's source pixel is
           in-bounds for the zero-padded conv (kills circular-roll wraparound).
    """
    hw = t.shape[1]
    acc = None
    for dh in range(3):
        for dw in range(3):
            tap = dh * 3 + dw
            off = (dh - 1) * W + (dw - 1)
            kvec = ktap[:, tap:tap + 1]                        # (CH, 1)
            if off == 0:
                term = t * kvec                                # centre tap: no shift/mask
            else:
                # shifted[p] = t[p + off]  (lane rotation on the XLU)
                shifted = pltpu.roll(t, shift=(-off) % hw, axis=1)
                term = (shifted * masks[tap]) * kvec
            acc = term if acc is None else acc + term
    return acc


def rdlgd_kernel(y_ref, phi_ref, x_ref, dwm_ref,
                 w1y_ref, w1p_ref, dwa_ref, wmid_ref, dwb_ref, w2b_ref,
                 r_ref, vk_ref, *, H, W, C):
    y = y_ref[0]                       # (1, HW)
    phi = phi_ref[0]                   # (C, HW)
    x = x_ref[0]                       # (C, HW)
    dwm = dwm_ref[...]                 # (9, HW) boundary masks (shared by both DW convs)
    masks = [dwm[i:i + 1, :] for i in range(9)]

    # ---- DL block 1: PW(1x1) -> GELU -> DW(3x3) -> GELU ----
    h = jnp.dot(w1p_ref[...], phi.astype(jnp.bfloat16),
                preferred_element_type=jnp.float32)            # (64, HW)
    h = h + w1y_ref[...] * y           # y-channel column of the first 1x1 conv
    h = _gelu(h)
    h = _dwconv3x3(h, dwa_ref[...], masks, W)
    h = _gelu(h)

    # ---- fused PW2(block 1) @ PW1(block 2): single (64,64)@(64,HW) matmul ----
    h = jnp.dot(wmid_ref[...], h.astype(jnp.bfloat16),
                preferred_element_type=jnp.float32)            # (64, HW)

    # ---- DL block 2: GELU -> DW(3x3) -> GELU -> PW(1x1) ----
    h = _gelu(h)
    h = _dwconv3x3(h, dwb_ref[...], masks, W)
    h = _gelu(h)
    dl = jnp.dot(w2b_ref[...], h.astype(jnp.bfloat16),
                 preferred_element_type=jnp.float32)           # (C, HW)

    # ---- GD step: Phi' = DL + Phi ; vk = x - r * At(A(x, Phi') - y, Phi') ----
    phi_new = dl + phi
    ax = jnp.sum(x * phi_new, axis=0, keepdims=True) * (2.0 / C)   # (1, HW)
    phixsy = ax - y
    vk_ref[0] = x - r_ref[0] * (phixsy * phi_new)


def rdlgd_forward(y, xk_1, Phi, params):
    """y: (B, H, W); xk_1, Phi: (B, C, H, W) (PyTorch NCHW convention)."""
    B, C, H, W = xk_1.shape
    HW = H * W
    w1a, dwa, w2a, w1b, dwb, w2b, r = params

    # Transposed / fused / bf16 weights for the (channels, HW) kernel layout.
    w1aT = w1a.T                                       # (HIDDEN, C+1)
    w1y = w1aT[:, 0:1]                                 # (HIDDEN, 1)  y column, f32
    w1p = w1aT[:, 1:].astype(jnp.bfloat16)             # (HIDDEN, C)
    wmid = jnp.dot(w2a, w1b).T.astype(jnp.bfloat16)    # (HIDDEN, HIDDEN) fused PW2a@PW1b
    w2bT = w2b.T.astype(jnp.bfloat16)                  # (C, HIDDEN)
    dwaT = dwa.T                                       # (HIDDEN, 9) f32
    dwbT = dwb.T                                       # (HIDDEN, 9) f32

    # NCHW is already channels-major: a reshape is all the layout prep needed.
    y3 = y.reshape(B, 1, HW)
    phi3 = Phi.reshape(B, C, HW)
    x3 = xk_1.reshape(B, C, HW)

    # Host-precomputed boundary masks for the 9 depthwise taps (1 = in-bounds).
    lane = np.arange(HW)
    col, row = lane % W, lane // W
    dwm = np.stack([((col + dw >= 0) & (col + dw < W) &
                     (row + dh >= 0) & (row + dh < H))
                    for dh in (-1, 0, 1) for dw in (-1, 0, 1)]).astype(np.float32)
    dwm = jnp.asarray(dwm)                             # (9, HW)

    kernel = functools.partial(rdlgd_kernel, H=H, W=W, C=C)
    vk_flat = pl.pallas_call(
        kernel,
        out_shape=jax.ShapeDtypeStruct((B, C, HW), jnp.float32),
        grid=(B,),
        in_specs=[
            pl.BlockSpec((1, 1, HW), lambda b: (b, 0, 0)),
            pl.BlockSpec((1, C, HW), lambda b: (b, 0, 0)),
            pl.BlockSpec((1, C, HW), lambda b: (b, 0, 0)),
            pl.BlockSpec((9, HW), lambda b: (0, 0)),
            pl.BlockSpec((HIDDEN, 1), lambda b: (0, 0)),
            pl.BlockSpec((HIDDEN, C), lambda b: (0, 0)),
            pl.BlockSpec((HIDDEN, 9), lambda b: (0, 0)),
            pl.BlockSpec((HIDDEN, HIDDEN), lambda b: (0, 0)),
            pl.BlockSpec((HIDDEN, 9), lambda b: (0, 0)),
            pl.BlockSpec((C, HIDDEN), lambda b: (0, 0)),
            pl.BlockSpec(memory_space=pltpu.MemorySpace.SMEM),
        ],
        out_specs=pl.BlockSpec((1, C, HW), lambda b: (b, 0, 0)),
        compiler_params=pltpu.CompilerParams(
            dimension_semantics=("parallel",)),
    )(y3, phi3, x3, dwm, w1y, w1p, dwaT, wmid, dwbT, w2bT, r)

    return vk_flat.reshape(B, C, H, W)


def rdlgd_reference(y, xk_1, Phi, params):
    """Pure-JAX reference of the PyTorch forward (NCHW, f32, exact erf GELU)."""
    w1a, dwa, w2a, w1b, dwb, w2b, r = params
    B, C, H, W = xk_1.shape
    hp = jax.lax.Precision.HIGHEST

    def pw(x, w):  # x: (B, Cin, H, W), w: (Cin, Cout)
        return jnp.einsum('bihw,io->bohw', x, w, precision=hp)

    def dwc(x, k):  # x: (B, CH, H, W), k: (9, CH)
        kk = jnp.transpose(k.reshape(3, 3, -1), (2, 0, 1))   # (CH, 3, 3)
        xp = jnp.pad(x, ((0, 0), (0, 0), (1, 1), (1, 1)))
        out = jnp.zeros_like(x)
        for dh in range(3):
            for dw in range(3):
                out = out + xp[:, :, dh:dh + H, dw:dw + W] * kk[None, :, dh, dw, None, None]
        return out

    def gelu_exact(x):
        return 0.5 * x * (1.0 + jax.scipy.special.erf(x / np.sqrt(2.0)))

    t = jnp.concatenate([y[:, None], Phi], axis=1)
    t = pw(t, w1a); t = gelu_exact(t); t = dwc(t, dwa); t = gelu_exact(t); t = pw(t, w2a)
    t = pw(t, w1b); t = gelu_exact(t); t = dwc(t, dwb); t = gelu_exact(t); t = pw(t, w2b)
    Phi2 = t + Phi
    phi = jnp.sum(xk_1 * Phi2, axis=1) / C * 2
    phixsy = phi - y
    phit = phixsy[:, None] * Phi2
    return xk_1 - r[0] * phit


def make_params(key, C):
    ks = jax.random.split(key, 6)
    # Pointwise convs at scale 0.1, depthwise convs at scale 1.0 so the DL path
    # contributes visibly to vk (validates the roll/mask dwconv) while bf16 MXU
    # rounding stays well inside the test tolerance.
    w1a = 0.1 * jax.random.normal(ks[0], (C + 1, HIDDEN), jnp.float32)  # PW1 of block 1
    dwa = 1.0 * jax.random.normal(ks[1], (9, HIDDEN), jnp.float32)      # DW 3x3 of block 1
    w2a = 0.1 * jax.random.normal(ks[2], (HIDDEN, C), jnp.float32)      # PW2 of block 1
    w1b = 0.1 * jax.random.normal(ks[3], (C, HIDDEN), jnp.float32)      # PW1 of block 2
    dwb = 1.0 * jax.random.normal(ks[4], (9, HIDDEN), jnp.float32)      # DW 3x3 of block 2
    w2b = 0.1 * jax.random.normal(ks[5], (HIDDEN, C), jnp.float32)      # PW2 of block 2
    r = jnp.array([0.5], jnp.float32)                                   # self.r
    return (w1a, dwa, w2a, w1b, dwb, w2b, r)


if __name__ == "__main__":
    B, C, H, W = 2, 4, 16, 16   # WAVE_LENS = 4; bias = False, act_fn = 'gelu'
    key = jax.random.PRNGKey(0)
    kp, ky, kx, kphi = jax.random.split(key, 4)

    params = make_params(kp, C)
    # NOTE: the PyTorch docstring says y is (B,1,H,W'), but the code (y.unsqueeze(1),
    # phi - y) implies y is (B, H, W'); we follow the code semantics.
    y = jax.random.normal(ky, (B, H, W), jnp.float32)
    xk_1 = jax.random.normal(kx, (B, C, H, W), jnp.float32)
    Phi = jax.random.normal(kphi, (B, C, H, W), jnp.float32)

    vk = rdlgd_forward(y, xk_1, Phi, params)
    jax.block_until_ready(vk)

    vk_ref = rdlgd_reference(y, xk_1, Phi, params)
    jax.block_until_ready(vk_ref)

    assert vk.shape == (B, C, H, W)
    np.testing.assert_allclose(np.asarray(vk), np.asarray(vk_ref),
                               rtol=1e-2, atol=1e-2)
    print("KERNEL_OK")
</pallas_src>

<mosaic_0001>
module attributes {stable_mosaic.version = 11 : i64} {
  func.func @rdlgd_kernel(%arg0: i32, %arg1: memref<1x1x256xf32, #tpu.memory_space<vmem>>, %arg2: memref<1x4x256xf32, #tpu.memory_space<vmem>>, %arg3: memref<1x4x256xf32, #tpu.memory_space<vmem>>, %arg4: memref<9x256xf32, #tpu.memory_space<vmem>>, %arg5: memref<64x1xf32, #tpu.memory_space<vmem>>, %arg6: memref<64x4xbf16, #tpu.memory_space<vmem>>, %arg7: memref<64x9xf32, #tpu.memory_space<vmem>>, %arg8: memref<64x64xbf16, #tpu.memory_space<vmem>>, %arg9: memref<64x9xf32, #tpu.memory_space<vmem>>, %arg10: memref<4x64xbf16, #tpu.memory_space<vmem>>, %arg11: memref<1xf32, #tpu.memory_space<smem>>, %arg12: memref<1x4x256xf32, #tpu.memory_space<vmem>>) attributes {dimension_semantics = [#tpu.dimension_semantics<parallel>], iteration_bounds = array<i64: 2>, scalar_prefetch = 0 : i64, scratch_operands = 0 : i64, tpu.core_type = #tpu.core_type<tc>, window_params = [{transform_indices = @transform_0, window_bounds = array<i64: 1, 1, 256>}, {transform_indices = @transform_1, window_bounds = array<i64: 1, 4, 256>}, {transform_indices = @transform_2, window_bounds = array<i64: 1, 4, 256>}, {pipeline_mode = #tpu.pipeline_mode<synchronous>, transform_indices = @transform_3, window_bounds = array<i64: 9, 256>}, {pipeline_mode = #tpu.pipeline_mode<synchronous>, transform_indices = @transform_4, window_bounds = array<i64: 64, 1>}, {pipeline_mode = #tpu.pipeline_mode<synchronous>, transform_indices = @transform_5, window_bounds = array<i64: 64, 4>}, {pipeline_mode = #tpu.pipeline_mode<synchronous>, transform_indices = @transform_6, window_bounds = array<i64: 64, 9>}, {pipeline_mode = #tpu.pipeline_mode<synchronous>, transform_indices = @transform_7, window_bounds = array<i64: 64, 64>}, {pipeline_mode = #tpu.pipeline_mode<synchronous>, transform_indices = @transform_8, window_bounds = array<i64: 64, 9>}, {pipeline_mode = #tpu.pipeline_mode<synchronous>, transform_indices = @transform_9, window_bounds = array<i64: 4, 64>}, {transform_indices = @transform_10, window_bounds = array<i64: 1>}, {transform_indices = @transform_11, window_bounds = array<i64: 1, 4, 256>}]} {
    %c0 = arith.constant 0 : index
    %c0_0 = arith.constant 0 : index
    %c0_1 = arith.constant 0 : index
    %0 = vector.load %arg1[%c0, %c0_0, %c0_1] : memref<1x1x256xf32, #tpu.memory_space<vmem>>, vector<1x1x256xf32>
    %1 = vector.shape_cast %0 : vector<1x1x256xf32> to vector<1x256xf32>
    %c0_2 = arith.constant 0 : index
    %c0_3 = arith.constant 0 : index
    %c0_4 = arith.constant 0 : index
    %2 = vector.load %arg2[%c0_2, %c0_3, %c0_4] : memref<1x4x256xf32, #tpu.memory_space<vmem>>, vector<1x4x256xf32>
    %3 = vector.shape_cast %2 : vector<1x4x256xf32> to vector<4x256xf32>
    %c0_5 = arith.constant 0 : index
    %c0_6 = arith.constant 0 : index
    %c0_7 = arith.constant 0 : index
    %4 = vector.load %arg3[%c0_5, %c0_6, %c0_7] : memref<1x4x256xf32, #tpu.memory_space<vmem>>, vector<1x4x256xf32>
    %5 = vector.shape_cast %4 : vector<1x4x256xf32> to vector<4x256xf32>
    %c0_8 = arith.constant 0 : index
    %c0_9 = arith.constant 0 : index
    %6 = vector.load %arg4[%c0_8, %c0_9] : memref<9x256xf32, #tpu.memory_space<vmem>>, vector<9x256xf32>
    %7 = vector.extract_strided_slice %6 {offsets = [0, 0], sizes = [1, 256], strides = [1, 1]} : vector<9x256xf32> to vector<1x256xf32>
    %8 = vector.extract_strided_slice %6 {offsets = [1, 0], sizes = [1, 256], strides = [1, 1]} : vector<9x256xf32> to vector<1x256xf32>
    %9 = vector.extract_strided_slice %6 {offsets = [2, 0], sizes = [1, 256], strides = [1, 1]} : vector<9x256xf32> to vector<1x256xf32>
    %10 = vector.extract_strided_slice %6 {offsets = [3, 0], sizes = [1, 256], strides = [1, 1]} : vector<9x256xf32> to vector<1x256xf32>
    %11 = vector.extract_strided_slice %6 {offsets = [5, 0], sizes = [1, 256], strides = [1, 1]} : vector<9x256xf32> to vector<1x256xf32>
    %12 = vector.extract_strided_slice %6 {offsets = [6, 0], sizes = [1, 256], strides = [1, 1]} : vector<9x256xf32> to vector<1x256xf32>
    %13 = vector.extract_strided_slice %6 {offsets = [7, 0], sizes = [1, 256], strides = [1, 1]} : vector<9x256xf32> to vector<1x256xf32>
    %14 = vector.extract_strided_slice %6 {offsets = [8, 0], sizes = [1, 256], strides = [1, 1]} : vector<9x256xf32> to vector<1x256xf32>
    %c0_10 = arith.constant 0 : index
    %c0_11 = arith.constant 0 : index
    %15 = vector.load %arg6[%c0_10, %c0_11] : memref<64x4xbf16, #tpu.memory_space<vmem>>, vector<64x4xbf16>
    %16 = arith.truncf %3 : vector<4x256xf32> to vector<4x256xbf16>
    %cst = arith.constant dense<0.000000e+00> : vector<64x256xf32>
    %17 = tpu.matmul %15, %16, %cst {dimension_numbers = #tpu.dot_dimension_numbers<[1], [0], [0], [1], [0, 0, 1, 1], [], []>} : vector<64x4xbf16>, vector<4x256xbf16>, vector<64x256xf32> -> vector<64x256xf32>
    %c0_12 = arith.constant 0 : index
    %c0_13 = arith.constant 0 : index
    %18 = vector.load %arg5[%c0_12, %c0_13] : memref<64x1xf32, #tpu.memory_space<vmem>>, vector<64x1xf32>
    %19 = vector.broadcast %18 : vector<64x1xf32> to vector<64x256xf32>
    %20 = vector.broadcast %1 : vector<1x256xf32> to vector<64x256xf32>
    %21 = arith.mulf %19, %20 : vector<64x256xf32>
    %22 = arith.addf %17, %21 : vector<64x256xf32>
    %cst_14 = arith.constant 0.707106769 : f32
    %23 = vector.broadcast %cst_14 : f32 to vector<64x256xf32>
    %24 = arith.mulf %22, %23 : vector<64x256xf32>
    %cst_15 = arith.constant 0.000000e+00 : f32
    %25 = vector.broadcast %cst_15 : f32 to vector<64x256xf32>
    %26 = arith.cmpf oge, %24, %25 : vector<64x256xf32>
    %cst_16 = arith.constant 1.000000e+00 : f32
    %cst_17 = arith.constant -1.000000e+00 : f32
    %27 = vector.broadcast %cst_16 : f32 to vector<64x256xf32>
    %28 = vector.broadcast %cst_17 : f32 to vector<64x256xf32>
    %29 = arith.select %26, %27, %28 : vector<64x256xi1>, vector<64x256xf32>
    %30 = math.absf %24 : vector<64x256xf32>
    %cst_18 = arith.constant 0.327591091 : f32
    %31 = vector.broadcast %cst_18 : f32 to vector<64x256xf32>
    %32 = arith.mulf %31, %30 : vector<64x256xf32>
    %cst_19 = arith.constant 1.000000e+00 : f32
    %33 = vector.broadcast %cst_19 : f32 to vector<64x256xf32>
    %34 = arith.addf %33, %32 : vector<64x256xf32>
    %35 = tpu.reciprocal %34 {approx = true} : vector<64x256xf32> -> vector<64x256xf32>
    %cst_20 = arith.constant 1.06140542 : f32
    %36 = vector.broadcast %cst_20 : f32 to vector<64x256xf32>
    %37 = arith.mulf %35, %36 : vector<64x256xf32>
    %cst_21 = arith.constant -1.45315206 : f32
    %38 = vector.broadcast %cst_21 : f32 to vector<64x256xf32>
    %39 = arith.addf %38, %37 : vector<64x256xf32>
    %40 = arith.mulf %35, %39 : vector<64x256xf32>
    %cst_22 = arith.constant 1.42141378 : f32
    %41 = vector.broadcast %cst_22 : f32 to vector<64x256xf32>
    %42 = arith.addf %41, %40 : vector<64x256xf32>
    %43 = arith.mulf %35, %42 : vector<64x256xf32>
    %cst_23 = arith.constant -0.284496725 : f32
    %44 = vector.broadcast %cst_23 : f32 to vector<64x256xf32>
    %45 = arith.addf %44, %43 : vector<64x256xf32>
    %46 = arith.mulf %35, %45 : vector<64x256xf32>
    %cst_24 = arith.constant 0.254829586 : f32
    %47 = vector.broadcast %cst_24 : f32 to vector<64x256xf32>
    %48 = arith.addf %47, %46 : vector<64x256xf32>
    %49 = arith.mulf %35, %48 : vector<64x256xf32>
    %cst_25 = arith.constant 0.000000e+00 : f32
    %50 = vector.broadcast %cst_25 : f32 to vector<64x256xf32>
    %51 = arith.subf %50, %30 : vector<64x256xf32>
    %52 = arith.mulf %51, %30 : vector<64x256xf32>
    %53 = math.exp %52 : vector<64x256xf32>
    %54 = arith.mulf %49, %53 : vector<64x256xf32>
    %cst_26 = arith.constant 1.000000e+00 : f32
    %55 = vector.broadcast %cst_26 : f32 to vector<64x256xf32>
    %56 = arith.subf %55, %54 : vector<64x256xf32>
    %57 = arith.mulf %29, %56 : vector<64x256xf32>
    %cst_27 = arith.constant 5.000000e-01 : f32
    %58 = vector.broadcast %cst_27 : f32 to vector<64x256xf32>
    %59 = arith.mulf %58, %22 : vector<64x256xf32>
    %cst_28 = arith.constant 1.000000e+00 : f32
    %60 = vector.broadcast %cst_28 : f32 to vector<64x256xf32>
    %61 = arith.addf %60, %57 : vector<64x256xf32>
    %62 = arith.mulf %59, %61 : vector<64x256xf32>
    %c0_29 = arith.constant 0 : index
    %c0_30 = arith.constant 0 : index
    %63 = vector.load %arg7[%c0_29, %c0_30] : memref<64x9xf32, #tpu.memory_space<vmem>>, vector<64x9xf32>
    %64 = vector.extract_strided_slice %63 {offsets = [0, 0], sizes = [64, 1], strides = [1, 1]} : vector<64x9xf32> to vector<64x1xf32>
    %c17_i32 = arith.constant 17 : i32
    %65 = tpu.dynamic_rotate %62 by %c17_i32 dim 1 : vector<64x256xf32>, i32 -> vector<64x256xf32>
    %66 = vector.broadcast %7 : vector<1x256xf32> to vector<64x256xf32>
    %67 = arith.mulf %65, %66 : vector<64x256xf32>
    %68 = vector.broadcast %64 : vector<64x1xf32> to vector<64x256xf32>
    %69 = arith.mulf %67, %68 : vector<64x256xf32>
    %70 = vector.extract_strided_slice %63 {offsets = [0, 1], sizes = [64, 1], strides = [1, 1]} : vector<64x9xf32> to vector<64x1xf32>
    %c16_i32 = arith.constant 16 : i32
    %71 = tpu.dynamic_rotate %62 by %c16_i32 dim 1 : vector<64x256xf32>, i32 -> vector<64x256xf32>
    %72 = vector.broadcast %8 : vector<1x256xf32> to vector<64x256xf32>
    %73 = arith.mulf %71, %72 : vector<64x256xf32>
    %74 = vector.broadcast %70 : vector<64x1xf32> to vector<64x256xf32>
    %75 = arith.mulf %73, %74 : vector<64x256xf32>
    %76 = arith.addf %69, %75 : vector<64x256xf32>
    %77 = vector.extract_strided_slice %63 {offsets = [0, 2], sizes = [64, 1], strides = [1, 1]} : vector<64x9xf32> to vector<64x1xf32>
    %c15_i32 = arith.constant 15 : i32
    %78 = tpu.dynamic_rotate %62 by %c15_i32 dim 1 : vector<64x256xf32>, i32 -> vector<64x256xf32>
    %79 = vector.broadcast %9 : vector<1x256xf32> to vector<64x256xf32>
    %80 = arith.mulf %78, %79 : vector<64x256xf32>
    %81 = vector.broadcast %77 : vector<64x1xf32> to vector<64x256xf32>
    %82 = arith.mulf %80, %81 : vector<64x256xf32>
    %83 = arith.addf %76, %82 : vector<64x256xf32>
    %84 = vector.extract_strided_slice %63 {offsets = [0, 3], sizes = [64, 1], strides = [1, 1]} : vector<64x9xf32> to vector<64x1xf32>
    %c1_i32 = arith.constant 1 : i32
    %85 = tpu.dynamic_rotate %62 by %c1_i32 dim 1 : vector<64x256xf32>, i32 -> vector<64x256xf32>
    %86 = vector.broadcast %10 : vector<1x256xf32> to vector<64x256xf32>
    %87 = arith.mulf %85, %86 : vector<64x256xf32>
    %88 = vector.broadcast %84 : vector<64x1xf32> to vector<64x256xf32>
    %89 = arith.mulf %87, %88 : vector<64x256xf32>
    %90 = arith.addf %83, %89 : vector<64x256xf32>
    %91 = vector.extract_strided_slice %63 {offsets = [0, 4], sizes = [64, 1], strides = [1, 1]} : vector<64x9xf32> to vector<64x1xf32>
    %92 = vector.broadcast %91 : vector<64x1xf32> to vector<64x256xf32>
    %93 = arith.mulf %62, %92 : vector<64x256xf32>
    %94 = arith.addf %90, %93 : vector<64x256xf32>
    %95 = vector.extract_strided_slice %63 {offsets = [0, 5], sizes = [64, 1], strides = [1, 1]} : vector<64x9xf32> to vector<64x1xf32>
    %c255_i32 = arith.constant 255 : i32
    %96 = tpu.dynamic_rotate %62 by %c255_i32 dim 1 : vector<64x256xf32>, i32 -> vector<64x256xf32>
    %97 = vector.broadcast %11 : vector<1x256xf32> to vector<64x256xf32>
    %98 = arith.mulf %96, %97 : vector<64x256xf32>
    %99 = vector.broadcast %95 : vector<64x1xf32> to vector<64x256xf32>
    %100 = arith.mulf %98, %99 : vector<64x256xf32>
    %101 = arith.addf %94, %100 : vector<64x256xf32>
    %102 = vector.extract_strided_slice %63 {offsets = [0, 6], sizes = [64, 1], strides = [1, 1]} : vector<64x9xf32> to vector<64x1xf32>
    %c241_i32 = arith.constant 241 : i32
    %103 = tpu.dynamic_rotate %62 by %c241_i32 dim 1 : vector<64x256xf32>, i32 -> vector<64x256xf32>
    %104 = vector.broadcast %12 : vector<1x256xf32> to vector<64x256xf32>
    %105 = arith.mulf %103, %104 : vector<64x256xf32>
    %106 = vector.broadcast %102 : vector<64x1xf32> to vector<64x256xf32>
    %107 = arith.mulf %105, %106 : vector<64x256xf32>
    %108 = arith.addf %101, %107 : vector<64x256xf32>
    %109 = vector.extract_strided_slice %63 {offsets = [0, 7], sizes = [64, 1], strides = [1, 1]} : vector<64x9xf32> to vector<64x1xf32>
    %c240_i32 = arith.constant 240 : i32
    %110 = tpu.dynamic_rotate %62 by %c240_i32 dim 1 : vector<64x256xf32>, i32 -> vector<64x256xf32>
    %111 = vector.broadcast %13 : vector<1x256xf32> to vector<64x256xf32>
    %112 = arith.mulf %110, %111 : vector<64x256xf32>
    %113 = vector.broadcast %109 : vector<64x1xf32> to vector<64x256xf32>
    %114 = arith.mulf %112, %113 : vector<64x256xf32>
    %115 = arith.addf %108, %114 : vector<64x256xf32>
    %116 = vector.extract_strided_slice %63 {offsets = [0, 8], sizes = [64, 1], strides = [1, 1]} : vector<64x9xf32> to vector<64x1xf32>
    %c239_i32 = arith.constant 239 : i32
    %117 = tpu.dynamic_rotate %62 by %c239_i32 dim 1 : vector<64x256xf32>, i32 -> vector<64x256xf32>
    %118 = vector.broadcast %14 : vector<1x256xf32> to vector<64x256xf32>
    %119 = arith.mulf %117, %118 : vector<64x256xf32>
    %120 = vector.broadcast %116 : vector<64x1xf32> to vector<64x256xf32>
    %121 = arith.mulf %119, %120 : vector<64x256xf32>
    %122 = arith.addf %115, %121 : vector<64x256xf32>
    %cst_31 = arith.constant 0.707106769 : f32
    %123 = vector.broadcast %cst_31 : f32 to vector<64x256xf32>
    %124 = arith.mulf %122, %123 : vector<64x256xf32>
    %cst_32 = arith.constant 0.000000e+00 : f32
    %125 = vector.broadcast %cst_32 : f32 to vector<64x256xf32>
    %126 = arith.cmpf oge, %124, %125 : vector<64x256xf32>
    %cst_33 = arith.constant 1.000000e+00 : f32
    %cst_34 = arith.constant -1.000000e+00 : f32
    %127 = vector.broadcast %cst_33 : f32 to vector<64x256xf32>
    %128 = vector.broadcast %cst_34 : f32 to vector<64x256xf32>
    %129 = arith.select %126, %127, %128 : vector<64x256xi1>, vector<64x256xf32>
    %130 = math.absf %124 : vector<64x256xf32>
    %cst_35 = arith.constant 0.327591091 : f32
    %131 = vector.broadcast %cst_35 : f32 to vector<64x256xf32>
    %132 = arith.mulf %131, %130 : vector<64x256xf32>
    %cst_36 = arith.constant 1.000000e+00 : f32
    %133 = vector.broadcast %cst_36 : f32 to vector<64x256xf32>
    %134 = arith.addf %133, %132 : vector<64x256xf32>
    %135 = tpu.reciprocal %134 {approx = true} : vector<64x256xf32> -> vector<64x256xf32>
    %cst_37 = arith.constant 1.06140542 : f32
    %136 = vector.broadcast %cst_37 : f32 to vector<64x256xf32>
    %137 = arith.mulf %135, %136 : vector<64x256xf32>
    %cst_38 = arith.constant -1.45315206 : f32
    %138 = vector.broadcast %cst_38 : f32 to vector<64x256xf32>
    %139 = arith.addf %138, %137 : vector<64x256xf32>
    %140 = arith.mulf %135, %139 : vector<64x256xf32>
    %cst_39 = arith.constant 1.42141378 : f32
    %141 = vector.broadcast %cst_39 : f32 to vector<64x256xf32>
    %142 = arith.addf %141, %140 : vector<64x256xf32>
    %143 = arith.mulf %135, %142 : vector<64x256xf32>
    %cst_40 = arith.constant -0.284496725 : f32
    %144 = vector.broadcast %cst_40 : f32 to vector<64x256xf32>
    %145 = arith.addf %144, %143 : vector<64x256xf32>
    %146 = arith.mulf %135, %145 : vector<64x256xf32>
    %cst_41 = arith.constant 0.254829586 : f32
    %147 = vector.broadcast %cst_41 : f32 to vector<64x256xf32>
    %148 = arith.addf %147, %146 : vector<64x256xf32>
    %149 = arith.mulf %135, %148 : vector<64x256xf32>
    %cst_42 = arith.constant 0.000000e+00 : f32
    %150 = vector.broadcast %cst_42 : f32 to vector<64x256xf32>
    %151 = arith.subf %150, %130 : vector<64x256xf32>
    %152 = arith.mulf %151, %130 : vector<64x256xf32>
    %153 = math.exp %152 : vector<64x256xf32>
    %154 = arith.mulf %149, %153 : vector<64x256xf32>
    %cst_43 = arith.constant 1.000000e+00 : f32
    %155 = vector.broadcast %cst_43 : f32 to vector<64x256xf32>
    %156 = arith.subf %155, %154 : vector<64x256xf32>
    %157 = arith.mulf %129, %156 : vector<64x256xf32>
    %cst_44 = arith.constant 5.000000e-01 : f32
    %158 = vector.broadcast %cst_44 : f32 to vector<64x256xf32>
    %159 = arith.mulf %158, %122 : vector<64x256xf32>
    %cst_45 = arith.constant 1.000000e+00 : f32
    %160 = vector.broadcast %cst_45 : f32 to vector<64x256xf32>
    %161 = arith.addf %160, %157 : vector<64x256xf32>
    %162 = arith.mulf %159, %161 : vector<64x256xf32>
    %c0_46 = arith.constant 0 : index
    %c0_47 = arith.constant 0 : index
    %163 = vector.load %arg8[%c0_46, %c0_47] : memref<64x64xbf16, #tpu.memory_space<vmem>>, vector<64x64xbf16>
    %164 = arith.truncf %162 : vector<64x256xf32> to vector<64x256xbf16>
    %cst_48 = arith.constant dense<0.000000e+00> : vector<64x256xf32>
    %165 = tpu.matmul %163, %164, %cst_48 {dimension_numbers = #tpu.dot_dimension_numbers<[1], [0], [0], [1], [0, 0, 1, 1], [], []>} : vector<64x64xbf16>, vector<64x256xbf16>, vector<64x256xf32> -> vector<64x256xf32>
    %cst_49 = arith.constant 0.707106769 : f32
    %166 = vector.broadcast %cst_49 : f32 to vector<64x256xf32>
    %167 = arith.mulf %165, %166 : vector<64x256xf32>
    %cst_50 = arith.constant 0.000000e+00 : f32
    %168 = vector.broadcast %cst_50 : f32 to vector<64x256xf32>
    %169 = arith.cmpf oge, %167, %168 : vector<64x256xf32>
    %cst_51 = arith.constant 1.000000e+00 : f32
    %cst_52 = arith.constant -1.000000e+00 : f32
    %170 = vector.broadcast %cst_51 : f32 to vector<64x256xf32>
    %171 = vector.broadcast %cst_52 : f32 to vector<64x256xf32>
    %172 = arith.select %169, %170, %171 : vector<64x256xi1>, vector<64x256xf32>
    %173 = math.absf %167 : vector<64x256xf32>
    %cst_53 = arith.constant 0.327591091 : f32
    %174 = vector.broadcast %cst_53 : f32 to vector<64x256xf32>
    %175 = arith.mulf %174, %173 : vector<64x256xf32>
    %cst_54 = arith.constant 1.000000e+00 : f32
    %176 = vector.broadcast %cst_54 : f32 to vector<64x256xf32>
    %177 = arith.addf %176, %175 : vector<64x256xf32>
    %178 = tpu.reciprocal %177 {approx = true} : vector<64x256xf32> -> vector<64x256xf32>
    %cst_55 = arith.constant 1.06140542 : f32
    %179 = vector.broadcast %cst_55 : f32 to vector<64x256xf32>
    %180 = arith.mulf %178, %179 : vector<64x256xf32>
    %cst_56 = arith.constant -1.45315206 : f32
    %181 = vector.broadcast %cst_56 : f32 to vector<64x256xf32>
    %182 = arith.addf %181, %180 : vector<64x256xf32>
    %183 = arith.mulf %178, %182 : vector<64x256xf32>
    %cst_57 = arith.constant 1.42141378 : f32
    %184 = vector.broadcast %cst_57 : f32 to vector<64x256xf32>
    %185 = arith.addf %184, %183 : vector<64x256xf32>
    %186 = arith.mulf %178, %185 : vector<64x256xf32>
    %cst_58 = arith.constant -0.284496725 : f32
    %187 = vector.broadcast %cst_58 : f32 to vector<64x256xf32>
    %188 = arith.addf %187, %186 : vector<64x256xf32>
    %189 = arith.mulf %178, %188 : vector<64x256xf32>
    %cst_59 = arith.constant 0.254829586 : f32
    %190 = vector.broadcast %cst_59 : f32 to vector<64x256xf32>
    %191 = arith.addf %190, %189 : vector<64x256xf32>
    %192 = arith.mulf %178, %191 : vector<64x256xf32>
    %cst_60 = arith.constant 0.000000e+00 : f32
    %193 = vector.broadcast %cst_60 : f32 to vector<64x256xf32>
    %194 = arith.subf %193, %173 : vector<64x256xf32>
    %195 = arith.mulf %194, %173 : vector<64x256xf32>
    %196 = math.exp %195 : vector<64x256xf32>
    %197 = arith.mulf %192, %196 : vector<64x256xf32>
    %cst_61 = arith.constant 1.000000e+00 : f32
    %198 = vector.broadcast %cst_61 : f32 to vector<64x256xf32>
    %199 = arith.subf %198, %197 : vector<64x256xf32>
    %200 = arith.mulf %172, %199 : vector<64x256xf32>
    %cst_62 = arith.constant 5.000000e-01 : f32
    %201 = vector.broadcast %cst_62 : f32 to vector<64x256xf32>
    %202 = arith.mulf %201, %165 : vector<64x256xf32>
    %cst_63 = arith.constant 1.000000e+00 : f32
    %203 = vector.broadcast %cst_63 : f32 to vector<64x256xf32>
    %204 = arith.addf %203, %200 : vector<64x256xf32>
    %205 = arith.mulf %202, %204 : vector<64x256xf32>
    %c0_64 = arith.constant 0 : index
    %c0_65 = arith.constant 0 : index
    %206 = vector.load %arg9[%c0_64, %c0_65] : memref<64x9xf32, #tpu.memory_space<vmem>>, vector<64x9xf32>
    %207 = vector.extract_strided_slice %206 {offsets = [0, 0], sizes = [64, 1], strides = [1, 1]} : vector<64x9xf32> to vector<64x1xf32>
    %c17_i32_66 = arith.constant 17 : i32
    %208 = tpu.dynamic_rotate %205 by %c17_i32_66 dim 1 : vector<64x256xf32>, i32 -> vector<64x256xf32>
    %209 = vector.broadcast %7 : vector<1x256xf32> to vector<64x256xf32>
    %210 = arith.mulf %208, %209 : vector<64x256xf32>
    %211 = vector.broadcast %207 : vector<64x1xf32> to vector<64x256xf32>
    %212 = arith.mulf %210, %211 : vector<64x256xf32>
    %213 = vector.extract_strided_slice %206 {offsets = [0, 1], sizes = [64, 1], strides = [1, 1]} : vector<64x9xf32> to vector<64x1xf32>
    %c16_i32_67 = arith.constant 16 : i32
    %214 = tpu.dynamic_rotate %205 by %c16_i32_67 dim 1 : vector<64x256xf32>, i32 -> vector<64x256xf32>
    %215 = vector.broadcast %8 : vector<1x256xf32> to vector<64x256xf32>
    %216 = arith.mulf %214, %215 : vector<64x256xf32>
    %217 = vector.broadcast %213 : vector<64x1xf32> to vector<64x256xf32>
    %218 = arith.mulf %216, %217 : vector<64x256xf32>
    %219 = arith.addf %212, %218 : vector<64x256xf32>
    %220 = vector.extract_strided_slice %206 {offsets = [0, 2], sizes = [64, 1], strides = [1, 1]} : vector<64x9xf32> to vector<64x1xf32>
    %c15_i32_68 = arith.constant 15 : i32
    %221 = tpu.dynamic_rotate %205 by %c15_i32_68 dim 1 : vector<64x256xf32>, i32 -> vector<64x256xf32>
    %222 = vector.broadcast %9 : vector<1x256xf32> to vector<64x256xf32>
    %223 = arith.mulf %221, %222 : vector<64x256xf32>
    %224 = vector.broadcast %220 : vector<64x1xf32> to vector<64x256xf32>
    %225 = arith.mulf %223, %224 : vector<64x256xf32>
    %226 = arith.addf %219, %225 : vector<64x256xf32>
    %227 = vector.extract_strided_slice %206 {offsets = [0, 3], sizes = [64, 1], strides = [1, 1]} : vector<64x9xf32> to vector<64x1xf32>
    %c1_i32_69 = arith.constant 1 : i32
    %228 = tpu.dynamic_rotate %205 by %c1_i32_69 dim 1 : vector<64x256xf32>, i32 -> vector<64x256xf32>
    %229 = vector.broadcast %10 : vector<1x256xf32> to vector<64x256xf32>
    %230 = arith.mulf %228, %229 : vector<64x256xf32>
    %231 = vector.broadcast %227 : vector<64x1xf32> to vector<64x256xf32>
    %232 = arith.mulf %230, %231 : vector<64x256xf32>
    %233 = arith.addf %226, %232 : vector<64x256xf32>
    %234 = vector.extract_strided_slice %206 {offsets = [0, 4], sizes = [64, 1], strides = [1, 1]} : vector<64x9xf32> to vector<64x1xf32>
    %235 = vector.broadcast %234 : vector<64x1xf32> to vector<64x256xf32>
    %236 = arith.mulf %205, %235 : vector<64x256xf32>
    %237 = arith.addf %233, %236 : vector<64x256xf32>
    %238 = vector.extract_strided_slice %206 {offsets = [0, 5], sizes = [64, 1], strides = [1, 1]} : vector<64x9xf32> to vector<64x1xf32>
    %c255_i32_70 = arith.constant 255 : i32
    %239 = tpu.dynamic_rotate %205 by %c255_i32_70 dim 1 : vector<64x256xf32>, i32 -> vector<64x256xf32>
    %240 = vector.broadcast %11 : vector<1x256xf32> to vector<64x256xf32>
    %241 = arith.mulf %239, %240 : vector<64x256xf32>
    %242 = vector.broadcast %238 : vector<64x1xf32> to vector<64x256xf32>
    %243 = arith.mulf %241, %242 : vector<64x256xf32>
    %244 = arith.addf %237, %243 : vector<64x256xf32>
    %245 = vector.extract_strided_slice %206 {offsets = [0, 6], sizes = [64, 1], strides = [1, 1]} : vector<64x9xf32> to vector<64x1xf32>
    %c241_i32_71 = arith.constant 241 : i32
    %246 = tpu.dynamic_rotate %205 by %c241_i32_71 dim 1 : vector<64x256xf32>, i32 -> vector<64x256xf32>
    %247 = vector.broadcast %12 : vector<1x256xf32> to vector<64x256xf32>
    %248 = arith.mulf %246, %247 : vector<64x256xf32>
    %249 = vector.broadcast %245 : vector<64x1xf32> to vector<64x256xf32>
    %250 = arith.mulf %248, %249 : vector<64x256xf32>
    %251 = arith.addf %244, %250 : vector<64x256xf32>
    %252 = vector.extract_strided_slice %206 {offsets = [0, 7], sizes = [64, 1], strides = [1, 1]} : vector<64x9xf32> to vector<64x1xf32>
    %c240_i32_72 = arith.constant 240 : i32
    %253 = tpu.dynamic_rotate %205 by %c240_i32_72 dim 1 : vector<64x256xf32>, i32 -> vector<64x256xf32>
    %254 = vector.broadcast %13 : vector<1x256xf32> to vector<64x256xf32>
    %255 = arith.mulf %253, %254 : vector<64x256xf32>
    %256 = vector.broadcast %252 : vector<64x1xf32> to vector<64x256xf32>
    %257 = arith.mulf %255, %256 : vector<64x256xf32>
    %258 = arith.addf %251, %257 : vector<64x256xf32>
    %259 = vector.extract_strided_slice %206 {offsets = [0, 8], sizes = [64, 1], strides = [1, 1]} : vector<64x9xf32> to vector<64x1xf32>
    %c239_i32_73 = arith.constant 239 : i32
    %260 = tpu.dynamic_rotate %205 by %c239_i32_73 dim 1 : vector<64x256xf32>, i32 -> vector<64x256xf32>
    %261 = vector.broadcast %14 : vector<1x256xf32> to vector<64x256xf32>
    %262 = arith.mulf %260, %261 : vector<64x256xf32>
    %263 = vector.broadcast %259 : vector<64x1xf32> to vector<64x256xf32>
    %264 = arith.mulf %262, %263 : vector<64x256xf32>
    %265 = arith.addf %258, %264 : vector<64x256xf32>
    %cst_74 = arith.constant 0.707106769 : f32
    %266 = vector.broadcast %cst_74 : f32 to vector<64x256xf32>
    %267 = arith.mulf %265, %266 : vector<64x256xf32>
    %cst_75 = arith.constant 0.000000e+00 : f32
    %268 = vector.broadcast %cst_75 : f32 to vector<64x256xf32>
    %269 = arith.cmpf oge, %267, %268 : vector<64x256xf32>
    %cst_76 = arith.constant 1.000000e+00 : f32
    %cst_77 = arith.constant -1.000000e+00 : f32
    %270 = vector.broadcast %cst_76 : f32 to vector<64x256xf32>
    %271 = vector.broadcast %cst_77 : f32 to vector<64x256xf32>
    %272 = arith.select %269, %270, %271 : vector<64x256xi1>, vector<64x256xf32>
    %273 = math.absf %267 : vector<64x256xf32>
    %cst_78 = arith.constant 0.327591091 : f32
    %274 = vector.broadcast %cst_78 : f32 to vector<64x256xf32>
    %275 = arith.mulf %274, %273 : vector<64x256xf32>
    %cst_79 = arith.constant 1.000000e+00 : f32
    %276 = vector.broadcast %cst_79 : f32 to vector<64x256xf32>
    %277 = arith.addf %276, %275 : vector<64x256xf32>
    %278 = tpu.reciprocal %277 {approx = true} : vector<64x256xf32> -> vector<64x256xf32>
    %cst_80 = arith.constant 1.06140542 : f32
    %279 = vector.broadcast %cst_80 : f32 to vector<64x256xf32>
    %280 = arith.mulf %278, %279 : vector<64x256xf32>
    %cst_81 = arith.constant -1.45315206 : f32
    %281 = vector.broadcast %cst_81 : f32 to vector<64x256xf32>
    %282 = arith.addf %281, %280 : vector<64x256xf32>
    %283 = arith.mulf %278, %282 : vector<64x256xf32>
    %cst_82 = arith.constant 1.42141378 : f32
    %284 = vector.broadcast %cst_82 : f32 to vector<64x256xf32>
    %285 = arith.addf %284, %283 : vector<64x256xf32>
    %286 = arith.mulf %278, %285 : vector<64x256xf32>
    %cst_83 = arith.constant -0.284496725 : f32
    %287 = vector.broadcast %cst_83 : f32 to vector<64x256xf32>
    %288 = arith.addf %287, %286 : vector<64x256xf32>
    %289 = arith.mulf %278, %288 : vector<64x256xf32>
    %cst_84 = arith.constant 0.254829586 : f32
    %290 = vector.broadcast %cst_84 : f32 to vector<64x256xf32>
    %291 = arith.addf %290, %289 : vector<64x256xf32>
    %292 = arith.mulf %278, %291 : vector<64x256xf32>
    %cst_85 = arith.constant 0.000000e+00 : f32
    %293 = vector.broadcast %cst_85 : f32 to vector<64x256xf32>
    %294 = arith.subf %293, %273 : vector<64x256xf32>
    %295 = arith.mulf %294, %273 : vector<64x256xf32>
    %296 = math.exp %295 : vector<64x256xf32>
    %297 = arith.mulf %292, %296 : vector<64x256xf32>
    %cst_86 = arith.constant 1.000000e+00 : f32
    %298 = vector.broadcast %cst_86 : f32 to vector<64x256xf32>
    %299 = arith.subf %298, %297 : vector<64x256xf32>
    %300 = arith.mulf %272, %299 : vector<64x256xf32>
    %cst_87 = arith.constant 5.000000e-01 : f32
    %301 = vector.broadcast %cst_87 : f32 to vector<64x256xf32>
    %302 = arith.mulf %301, %265 : vector<64x256xf32>
    %cst_88 = arith.constant 1.000000e+00 : f32
    %303 = vector.broadcast %cst_88 : f32 to vector<64x256xf32>
    %304 = arith.addf %303, %300 : vector<64x256xf32>
    %305 = arith.mulf %302, %304 : vector<64x256xf32>
    %c0_89 = arith.constant 0 : index
    %c0_90 = arith.constant 0 : index
    %306 = vector.load %arg10[%c0_89, %c0_90] : memref<4x64xbf16, #tpu.memory_space<vmem>>, vector<4x64xbf16>
    %307 = arith.truncf %305 : vector<64x256xf32> to vector<64x256xbf16>
    %cst_91 = arith.constant dense<0.000000e+00> : vector<4x256xf32>
    %308 = tpu.matmul %306, %307, %cst_91 {dimension_numbers = #tpu.dot_dimension_numbers<[1], [0], [0], [1], [0, 0, 1, 1], [], []>} : vector<4x64xbf16>, vector<64x256xbf16>, vector<4x256xf32> -> vector<4x256xf32>
    %309 = arith.addf %308, %3 : vector<4x256xf32>
    %310 = arith.mulf %5, %309 : vector<4x256xf32>
    %cst_92 = arith.constant dense<0.000000e+00> : vector<256xf32>
    %311 = vector.multi_reduction <add>, %310, %cst_92 [0] : vector<4x256xf32> to vector<256xf32>
    %312 = vector.shape_cast %311 : vector<256xf32> to vector<1x256xf32>
    %cst_93 = arith.constant 5.000000e-01 : f32
    %313 = vector.broadcast %cst_93 : f32 to vector<1x256xf32>
    %314 = arith.mulf %312, %313 : vector<1x256xf32>
    %315 = arith.subf %314, %1 : vector<1x256xf32>
    %c0_94 = arith.constant 0 : index
    %316 = memref.load %arg11[%c0_94] : memref<1xf32, #tpu.memory_space<smem>>
    %317 = vector.broadcast %315 : vector<1x256xf32> to vector<4x256xf32>
    %318 = arith.mulf %317, %309 : vector<4x256xf32>
    %319 = vector.broadcast %316 : f32 to vector<4x256xf32>
    %320 = arith.mulf %319, %318 : vector<4x256xf32>
    %321 = arith.subf %5, %320 : vector<4x256xf32>
    %c0_95 = arith.constant 0 : index
    %c0_96 = arith.constant 0 : index
    %c0_97 = arith.constant 0 : index
    %322 = vector.load %arg12[%c0_95, %c0_96, %c0_97] : memref<1x4x256xf32, #tpu.memory_space<vmem>>, vector<1x4x256xf32>
    %323 = vector.shape_cast %322 : vector<1x4x256xf32> to vector<4x256xf32>
    %324 = vector.shape_cast %321 : vector<4x256xf32> to vector<1x4x256xf32>
    tpu.vector_store %arg12[%c0_95, %c0_96, %c0_97], %324 {strides = array<i32>} : memref<1x4x256xf32, #tpu.memory_space<vmem>>, vector<1x4x256xf32>,
    return
  }
  func.func @transform_0(%arg0: i32) -> (i32, i32, i32) {
    %c0_i32 = arith.constant 0 : i32
    %c0_i32_0 = arith.constant 0 : i32
    %c0_i32_1 = arith.constant 0 : i32
    return %arg0, %c0_i32, %c0_i32_0 : i32, i32, i32
  }
  func.func @transform_1(%arg0: i32) -> (i32, i32, i32) {
    %c0_i32 = arith.constant 0 : i32
    %c0_i32_0 = arith.constant 0 : i32
    %c0_i32_1 = arith.constant 0 : i32
    return %arg0, %c0_i32, %c0_i32_0 : i32, i32, i32
  }
  func.func @transform_2(%arg0: i32) -> (i32, i32, i32) {
    %c0_i32 = arith.constant 0 : i32
    %c0_i32_0 = arith.constant 0 : i32
    %c0_i32_1 = arith.constant 0 : i32
    return %arg0, %c0_i32, %c0_i32_0 : i32, i32, i32
  }
  func.func @transform_3(%arg0: i32) -> (i32, i32) {
    %c0_i32 = arith.constant 0 : i32
    %c0_i32_0 = arith.constant 0 : i32
    %c0_i32_1 = arith.constant 0 : i32
    return %c0_i32, %c0_i32_0 : i32, i32
  }
  func.func @transform_4(%arg0: i32) -> (i32, i32) {
    %c0_i32 = arith.constant 0 : i32
    %c0_i32_0 = arith.constant 0 : i32
    %c0_i32_1 = arith.constant 0 : i32
    return %c0_i32, %c0_i32_0 : i32, i32
  }
  func.func @transform_5(%arg0: i32) -> (i32, i32) {
    %c0_i32 = arith.constant 0 : i32
    %c0_i32_0 = arith.constant 0 : i32
    %c0_i32_1 = arith.constant 0 : i32
    return %c0_i32, %c0_i32_0 : i32, i32
  }
  func.func @transform_6(%arg0: i32) -> (i32, i32) {
    %c0_i32 = arith.constant 0 : i32
    %c0_i32_0 = arith.constant 0 : i32
    %c0_i32_1 = arith.constant 0 : i32
    return %c0_i32, %c0_i32_0 : i32, i32
  }
  func.func @transform_7(%arg0: i32) -> (i32, i32) {
    %c0_i32 = arith.constant 0 : i32
    %c0_i32_0 = arith.constant 0 : i32
    %c0_i32_1 = arith.constant 0 : i32
    return %c0_i32, %c0_i32_0 : i32, i32
  }
  func.func @transform_8(%arg0: i32) -> (i32, i32) {
    %c0_i32 = arith.constant 0 : i32
    %c0_i32_0 = arith.constant 0 : i32
    %c0_i32_1 = arith.constant 0 : i32
    return %c0_i32, %c0_i32_0 : i32, i32
  }
  func.func @transform_9(%arg0: i32) -> (i32, i32) {
    %c0_i32 = arith.constant 0 : i32
    %c0_i32_0 = arith.constant 0 : i32
    %c0_i32_1 = arith.constant 0 : i32
    return %c0_i32, %c0_i32_0 : i32, i32
  }
  func.func @transform_10(%arg0: i32) -> i32 {
    %c0_i32 = arith.constant 0 : i32
    %c0_i32_0 = arith.constant 0 : i32
    return %c0_i32 : i32
  }
  func.func @transform_11(%arg0: i32) -> (i32, i32, i32) {
    %c0_i32 = arith.constant 0 : i32
    %c0_i32_0 = arith.constant 0 : i32
    %c0_i32_1 = arith.constant 0 : i32
    return %arg0, %c0_i32, %c0_i32_0 : i32, i32, i32
  }
}

</mosaic_0001>

<bundles_post_ra>
// kernel: tpu_custom_call.1
= control target key start
LH: loop header
LB: loop body
LE: loop exit
PB: predicated region body
PF: predicated region fallthrough
CT: control target
= control target key end

     0   :  { %s10478_s0 = inlined_call_operand.vmem [shape: f32[2,1,256], index: 0, kind: input, shape index: {}]   ;;  %s10479_s1 = inlined_call_operand.vmem [shape: f32[2,4,256], index: 1, kind: input, shape index: {}]   ;;  %s10480_s2 = inlined_call_operand.vmem [shape: f32[2,4,256], index: 2, kind: input, shape index: {}]   ;;  %s10481_s3 = inlined_call_operand.vmem [shape: f32[9,256], index: 3, kind: input, shape index: {}]   ;;  %s10482_s4 = inlined_call_operand.vmem [shape: f32[64,1], index: 4, kind: input, shape index: {}]   ;;  %s10483_s5 = inlined_call_operand.vmem [shape: bf16[64,4], index: 5, kind: input, shape index: {}]   ;;  %s10484_s6 = inlined_call_operand.vmem [shape: f32[64,9], index: 6, kind: input, shape index: {}]   ;;  %s10485_s7 = inlined_call_operand.vmem [shape: bf16[64,64], index: 7, kind: input, shape index: {}]   ;;  %s10486_s8 = inlined_call_operand.vmem [shape: f32[64,9], index: 8, kind: input, shape index: {}]   ;;  %s10487_s9 = inlined_call_operand.vmem [shape: bf16[4,64], index: 9, kind: input, shape index: {}]   ;;  %s10488_s10 = inlined_call_operand.<no memory space> [shape: f32[1], index: 10, kind: input, shape index: {}]   ;;  %s10489_s11 = inlined_call_operand.hbm [shape: f32[2,4,256], index: 11, kind: output, shape index: {}]  }
   0x1   :  { %10802 = sst [smem:[#allocation128_spill]] %s10478_s0 }
   0x2   :  { %16 = sst [smem:[#allocation2]] %s10488_s10 }
   0x3   :  { %17 = vsyncpa [#allocation4], 0 }
   0x4   :  { %19 = vsyncpa [#allocation4 + $0x1], 0  ;;  %s5470_s19 = smov 0   ;;  %s5472_s20 = smov 0  }
   0x5   :  { %s5474_s21 = smov 0   ;;  %s5476_s22 = smov 0  }
   0x6 LB: > { %s5491_s10 = sadd.s32 4294967295, %s5386_s22   ;;  %s4866_s23 = sadd.s32 4294967294, %s5386_s22   ;;  %s5386_s22 = sphi %s5476_s22, %s11411_s22   ;;  %s5382_s21 = sphi %s5474_s21, %s11410_s21   ;;  %s5378_s20 = sphi %s5472_s20, %s11409_s20   ;;  %s5374_s19 = sphi %s5470_s19, %s11408_s19  }
   0x7   : > { %s5495_s24 = sadd.s32 1, %s5386_s22   ;;  %s278_s25 = sadd.s32 1, %s5382_s21 }
   0x8   : > { %s275_s26 = ssub.s32 %s5386_s22, %s5495_s24  ;;  %p288_p0 = scmp.ne.s32.totalorder %s5382_s21, %s5378_s20 }
   0x9   : > { %p276_p1 = scmp.eq.s32.totalorder %s275_s26, 0  ;;  %p289_p2 = scmp.eq.s32.totalorder %s5491_s10, 1 }
   0xa   : > { %p294_p3 = scmp.ne.s32.totalorder %s5378_s20, %s5374_s19  ;;  %p295_p4 = scmp.eq.s32.totalorder %s4866_s23, 1 }
   0xb   : > { %s5506_s27 = scalar_select %p276_p1, %s5382_s21, %s278_s25  }
   0xc   : > { %p5508_p5 = por %p289_p2, %p288_p0  ;;  %p5512_p6 = por %p295_p4, %p294_p3 }
   0xd   : > { %p4869_p7 = scmp.ge.s32.totalorder %s5386_s22, 1  ;;  %p360_p8 = scmp.lt.s32.totalorder %s5386_s22, 3 }
   0xf   : > { %p361_p9 = pnand %p4869_p7, %p360_p8 }
  0x11   : > { %364 = sbr.rel (%p361_p9) target bundleno = 1820 (0x71c), region = 64 }
  0x18   : > { %p409_p10 = scmp.lt.s32.totalorder %s5491_s10, 1  ;;  %v10498_v0 = vmov 0   ;;  %v446_v1 = vld [vmem:[%s10482_s4 + $0x10] sm:$0xff]  ;;  %v447_v2 = vld [vmem:[%s10482_s4 + $0x18] sm:$0xff]  ;;  %vm552_vm0 = vcmask 1041408   ;;  %v449_v6 = vld [vmem:[%s10482_s4 + $0x28] sm:$0xff]  ;;  %v10500_v40 = vlaneseq }
  0x19   : > { %591 = vmatprep.mubr.bf16.mxu0 %v10498_v0  ;;  %4962 = vset.pattern.permute.xlu1 %v10498_v0  ;;  %v5032_v9 = vld [vmem:[%s10483_s5] sm:$0xff]   ;;  %vm539_vm1 = vcmask 31744   ;;  %v451_v11 = vld [vmem:[%s10482_s4 + $0x38] sm:$0xff]  ;;  %v445_v12 = vld [vmem:[%s10482_s4 + $0x8] sm:$0xff]  ;;  %v10496_v23 = vmov 1   ;;  %v10494_v27 = vmov 2  }
  0x1a   : > { %s5525_s13 = scalar_select %p409_p10, %s5491_s10, 1  ;;  %464 = vperm.xlu1 %4962, %v446_v1   ;;  %4961 = vset.pattern.permute.xlu0 %v10498_v0  ;;  %v444_v10 = vld [vmem:[%s10482_s4] sm:$0xff]  ;;  %v5564_v13 = vld [vmem:[%s10484_s6 + $0x8] sm:$0xff]  ;;  %v5577_v16 = vld [vmem:[%s10484_s6 + $0x18] sm:$0xff]  ;;  %v10492_v28 = vmov 3   ;;  %v10490_v29 = vmov 4  }
  0x1b   : > { %2707 = vmatprep.mubr.bf16.mxu1 %v10498_v0  ;;  %454 = vperm.xlu0 %4961, %v444_v10   ;;  %v448_v14 = vld [vmem:[%s10482_s4 + $0x20] sm:$0xff]  ;;  %v5033_v15 = vld [vmem:[%s10483_s5 + $0x8] sm:$0xff]   ;;  %v450_v17 = vld [vmem:[%s10482_s4 + $0x30] sm:$0xff]  ;;  %v10503_v30 = vmov 5   ;;  %v10505_v31 = vmov 6   ;;  %v10501_v32 = vmov 7  }
  0x1c   : > { %s10551_s16 = sshll.u32 %s5525_s13, 3  ;;  %v5587_v18 = vld [vmem:[%s10484_s6 + $0x28] sm:$0xff]  ;;  %v5594_v19 = vld [vmem:[%s10484_s6] sm:$0xff]  ;;  %v5034_v20 = vld [vmem:[%s10483_s5 + $0x10] sm:$0xff]   ;;  %v10507_v33 = vmov 8   ;;  %s4871_s14 = sshll.u32 %s5525_s13, 1 }
  0x1d   : > { %s5538_s23 = scalar_lea.vmem %s10479_s1, %s10551_s16  ;;  %v5602_v21 = vld [vmem:[%s10484_s6 + $0x38] sm:$0xff]  ;;  %v5609_v22 = vld [vmem:[%s10484_s6 + $0x10] sm:$0xff]  ;;  %v1052_v24 = vld [vmem:[%s10484_s6 + $0x20] sm:$0xff]  ;;  %v5692_v41 = vshrl.u32 %v10500_v40, 7  ;;  %s10809_s0 = sld [smem:[#allocation128_spill]] }
  0x1e   : > { %v425_v3 = vld [vmem:[%s5538_s23] sm:$0xff]  ;;  %469 = vperm.xlu1 %4962, %v447_v2   ;;  %v5035_v25 = vld [vmem:[%s10483_s5 + $0x18] sm:$0xff]   ;;  %v1054_v26 = vld [vmem:[%s10484_s6 + $0x30] sm:$0xff]  ;;  %s10565_s25 = smov 15   ;;  %s10567_s26 = smov 17  }
  0x1f   : > { %v5541_v4 = vcombine.high %v425_v3, %v425_v3  ;;  %v442_v5 = vpack.c.bf16 %v425_v3, %v425_v3  ;;  %459 = vperm.xlu0 %4961, %v445_v12   ;;  %v5700_v43 = vsub.s32 0, %v5692_v41  ;;  %v5703_v45 = vsub.s32 1, %v5692_v41  ;;  %s10729_s30 = smov 113   ;;  %s5401_s12 = smov 16  }
  0x20   : > { %s10553_s15 = smov 1   ;;  %s10731_s17 = smov 127  }
  0x21   : > { %10805 = vst [vmem:[#allocation6_spill] sm:$0xff] %v5541_v4  ;;  %v443_v7 = vpack.c.bf16 %v5541_v4, %v5541_v4  ;;  %v554_v8 = vsel %vm552_vm0, %v442_v5, 0  ;;  %10810 = vst [vmem:[#allocation10_spill] sm:$0xff] %v5700_v43  ;;  %s11157_s16 = smov 1  }
  0x22   : > { %479 = vperm.xlu1 %4962, %v449_v6  }
  0x23   : > { %4880 = vmatprep.subr.msk.bf16.mxu0 %vm552_vm0, %v443_v7  ;;  %474 = vperm.xlu0 %4961, %v448_v14   ;;  %s412_s18 = scalar_lea.vmem %s10809_s0, %s4871_s14  ;;  %s10687_s14 = smov 112  }
  0x24   : > { %560 = vmatpush1.bf16.msra.mxu0 %v554_v8  ;;  %v424_v44 = vld [vmem:[%s412_s18] sm:$0x3]  ;;  %s11162_s18 = smov 112  }
  0x25   : > { %v5708_v47 = vrot.slane %v424_v44, %v5700_v43  ;;  %v5711_v48 = vrot.slane %v424_v44, %v5703_v45 }
  0x26   : > { %489 = vperm.xlu1 %4962, %v451_v11  }
  0x27   : > { %4881 = vmatmul.mubr.msk.bf16.vlgmr.msra.gmra.mrb[0].mxu0 %vm539_vm1, %v5032_v9  ;;  %484 = vperm.xlu0 %4961, %v450_v17   ;;  %10812 = vst [vmem:[#allocation12_spill] sm:$0xff] %v5708_v47  ;;  %10813 = vst [vmem:[#allocation13_spill] sm:$0xff] %v5711_v48 }
  0x28   : > { %601 = vmatprep.mubr.bf16.mxu0 %v10498_v0 }
  0x2a   : > { %1138 = vperm.xlu1 %4962, %v5564_v13  }
  0x2b   : > { %1133 = vperm.xlu0 %4961, %v5594_v19  }
  0x2e   : > { %1148 = vperm.xlu1 %4962, %v5577_v16  }
  0x2f   : > { %4882 = vmatmul.mubr.msk.bf16.gmra.mrb[4].mxu0 %vm539_vm1, %v5033_v15  ;;  %1143 = vperm.xlu0 %4961, %v5609_v22  }
  0x30   : > { %611 = vmatprep.mubr.bf16.mxu0 %v10498_v0 }
  0x32   : > { %1158 = vperm.xlu1 %4962, %v5587_v18  }
  0x33   : > { %1153 = vperm.xlu0 %4961, %v1052_v24  }
  0x36   : > { %1168 = vperm.xlu1 %4962, %v5602_v21  }
  0x37   : > { %4883 = vmatmul.mubr.msk.bf16.gmra.mrb[8].mxu0 %vm539_vm1, %v5034_v20  ;;  %1163 = vperm.xlu0 %4961, %v1054_v26  }
  0x38   : > { %621 = vmatprep.mubr.bf16.mxu0 %v10498_v0 }
  0x3a   : > { %4964 = vset.pattern.permute.xlu1 %v10496_v23 }
  0x3b   : > { %1265 = vperm.xlu1 %4964, %v5564_v13   ;;  %4963 = vset.pattern.permute.xlu0 %v10496_v23 }
  0x3c   : > { %1261 = vperm.xlu0 %4963, %v5594_v19  }
  0x3f   : > { %4884 = vmatmul.mubr.msk.bf16.gmra.mrb[12].mxu0 %vm539_vm1, %v5035_v25  ;;  %1269 = vperm.xlu1 %4964, %v5609_v22  }
  0x40   : > { %4712 = vmatprep.mubr.bf16.mxu0 %v10498_v0  ;;  %1273 = vperm.xlu0 %4963, %v5577_v16  }
  0x43   : > { %1277 = vperm.xlu1 %4964, %v1052_v24  }
  0x44   : > { %1281 = vperm.xlu0 %4963, %v5587_v18  }
  0x47   : > { %1285 = vperm.xlu1 %4964, %v1054_v26  }
  0x48   : > { %1289 = vperm.xlu0 %4963, %v5602_v21  }
  0x4b   : > { %4965 = vset.pattern.permute.xlu1 %v10494_v27 }
  0x4c   : > { %1398 = vperm.xlu1 %4965, %v5594_v19   ;;  %4966 = vset.pattern.permute.xlu0 %v10494_v27 }
  0x4d   : > { %1402 = vperm.xlu0 %4966, %v5564_v13  }
  0x50   : > { %1406 = vperm.xlu1 %4965, %v5609_v22  }
  0x51   : > { %1414 = vperm.xlu0 %4966, %v1052_v24  }
  0x54   : > { %1410 = vperm.xlu1 %4965, %v5577_v16  }
  0x55   : > { %1422 = vperm.xlu0 %4966, %v1054_v26  }
  0x58   : > { %1418 = vperm.xlu1 %4965, %v5587_v18  }
  0x59   : > { %4967 = vset.pattern.permute.xlu0 %v10492_v28 }
  0x5a   : > { %1535 = vperm.xlu0 %4967, %v5594_v19  }
  0x5c   : > { %1426 = vperm.xlu1 %4965, %v5602_v21  }
  0x5e   : > { %1547 = vperm.xlu0 %4967, %v5577_v16  }
  0x60   : > { %4968 = vset.pattern.permute.xlu1 %v10492_v28 }
  0x61   : > { %1539 = vperm.xlu1 %4968, %v5564_v13  }
  0x62   : > { %1555 = vperm.xlu0 %4967, %v5587_v18  }
  0x65   : > { %1543 = vperm.xlu1 %4968, %v5609_v22  }
  0x66   : > { %1563 = vperm.xlu0 %4967, %v5602_v21  }
  0x69   : > { %1551 = vperm.xlu1 %4968, %v1052_v24  }
  0x6a   : > { %4970 = vset.pattern.permute.xlu0 %v10490_v29 }
  0x6b   : > { %1603 = vperm.xlu0 %4970, %v5564_v13  }
  0x6d   : > { %1559 = vperm.xlu1 %4968, %v1054_v26  }
  0x6f   : > { %1615 = vperm.xlu0 %4970, %v1052_v24  }
  0x71   : > { %4969 = vset.pattern.permute.xlu1 %v10490_v29 }
  0x72   : > { %1599 = vperm.xlu1 %4969, %v5594_v19  }
  0x73   : > { %1623 = vperm.xlu0 %4970, %v1054_v26  }
  0x76   : > { %1607 = vperm.xlu1 %4969, %v5609_v22  }
  0x77   : > { %4972 = vset.pattern.permute.xlu0 %v10503_v30 }
  0x78   : > { %1740 = vperm.xlu0 %4972, %v5564_v13  }
  0x7a   : > { %1611 = vperm.xlu1 %4969, %v5577_v16  }
  0x7c   : > { %1744 = vperm.xlu0 %4972, %v5609_v22  }
  0x7e   : > { %1619 = vperm.xlu1 %4969, %v5587_v18  }
  0x80   : > { %1752 = vperm.xlu0 %4972, %v1052_v24  }
  0x82   : > { %4971 = vset.pattern.permute.xlu1 %v10503_v30 }
  0x83   : > { %1736 = vperm.xlu1 %4971, %v5594_v19  }
  0x87   : > { %4973 = vset.pattern.permute.xlu1 %v10505_v31 }
  0x88   : > { %1873 = vperm.xlu1 %4973, %v5594_v19  }
  0x8c   : > { %1877 = vperm.xlu1 %4973, %v5564_v13  }
  0x90   : > { %4974 = vset.pattern.permute.xlu1 %v10503_v30 }
  0x91   : > { %1748 = vperm.xlu1 %4974, %v5577_v16  }
  0x95   : > { %4975 = vset.pattern.permute.xlu1 %v10501_v32 }
  0x96   : > { %2014 = vperm.xlu1 %4975, %v5564_v13  }
  0x99   : > { %v465_v34 = vpop.permute.xlu1 %464 }
  0x9a   : > { %4976 = vset.pattern.permute.xlu1 %v10505_v31  ;;  %v455_v49 = vpop.permute.xlu0 %454 }
  0x9b   : > { %1881 = vperm.xlu1 %4976, %v5609_v22   ;;  %v503_v50 = vmul.f32 %v5708_v47, %v455_v49  ;;  %v504_v52 = vmul.f32 %v5711_v48, %v455_v49  ;;  %v508_v49 = vmul.f32 %v5711_v48, %v465_v34 }
  0x9d   : > { %v5680_v35 = vpop.permute.xlu1 %469 }
  0x9e   : > { %v460_v53 = vpop.permute.xlu0 %459 }
  0x9f   : > { %4977 = vset.pattern.permute.xlu1 %v10507_v33  ;;  %v505_v57 = vmul.f32 %v5708_v47, %v460_v53  ;;  %v506_v60 = vmul.f32 %v5711_v48, %v460_v53 }
  0xa0   : > { %2147 = vperm.xlu1 %4977, %v5594_v19  }
  0xa1   : > { %v5682_v36 = vpop.permute.xlu1 %479 }
  0xa4   : > { %2151 = vperm.xlu1 %4977, %v5564_v13  }
  0xa5   : > { %v5684_v37 = vpop.permute.xlu1 %489 }
  0xa8   : > { %4978 = vset.pattern.permute.xlu1 %v10503_v30 }
  0xa9   : > { %1756 = vperm.xlu1 %4978, %v5587_v18   ;;  %v5686_v38 = vpop.permute.xlu1 %1138 }
  0xaa   : > { %10806 = vst [vmem:[#allocation7_spill] sm:$0xff] %v5686_v38 }
  0xad   : > { %4979 = vset.pattern.permute.xlu1 %v10501_v32  ;;  %v5688_v39 = vpop.permute.xlu1 %1148 }
  0xae   : > { %2018 = vperm.xlu1 %4979, %v5609_v22   ;;  %10807 = vst [vmem:[#allocation8_spill] sm:$0xff] %v5688_v39  ;;  %v507_v22 = vmul.f32 %v5708_v47, %v465_v34 }
  0xb1   : > { %v5694_v42 = vpop.permute.xlu1 %1158 }
  0xb2   : > { %4980 = vset.pattern.permute.xlu1 %v10490_v29  ;;  %10808 = vst [vmem:[#allocation9_spill] sm:$0xff] %v5694_v42 }
  0xb3   : > { %1627 = vperm.xlu1 %4980, %v5602_v21  }
  0xb5   : > { %v5705_v46 = vpop.permute.xlu1 %1168 }
  0xb6   : > { %10811 = vst [vmem:[#allocation11_spill] sm:$0xff] %v5705_v46 }
  0xb7   : > { %4981 = vset.pattern.permute.xlu1 %v10505_v31 }
  0xba   : > { %v5714_v51 = vpop.permute.xlu1 %1265 }
  0xbb   : > { %10814 = vst [vmem:[#allocation14_spill] sm:$0xff] %v5714_v51 }
  0xbe   : > { %v5728_v1 = vpop.permute.xlu1 %1269 }
  0xbf   : > { %10815 = vst [vmem:[#allocation15_spill] sm:$0xff] %v5728_v1 }
  0xc2   : > { %v5746_v14 = vpop.permute.xlu1 %1277 }
  0xc3   : > { %10816 = vst [vmem:[#allocation16_spill] sm:$0xff] %v5746_v14 }
  0xc6   : > { %v5756_v25 = vpop.permute.xlu1 %1285 }
  0xc7   : > { %10817 = vst [vmem:[#allocation17_spill] sm:$0xff] %v5756_v25 }
  0xfa   : > { %v593_v54 = vpop.f32.mrb[0].mxu0 }
  0xfb   : > { %v5717_v55 = vadd.f32 %v593_v54, %v503_v50  ;;  %v595_v56 = vpop.f32.mrb[1].mxu0 }
  0xfc   : > { %v5720_v58 = vadd.f32 %v595_v56, %v504_v52  ;;  %v597_v59 = vpop.f32.mrb[2].mxu0 }
  0xfd   : > { %v5724_v61 = vmul.f32 0.70710677, %v5717_v55  ;;  %v5726_v62 = vadd.f32 %v597_v59, %v505_v57  ;;  %v599_v63 = vpop.f32.mrb[3].mxu0 }
  0xfe   : > { %v5731_v2 = vmul.f32 0.70710677, %v5720_v58  ;;  %v5733_v3 = vadd.f32 %v599_v63, %v506_v60 }
  0xff   : > { %v680_v5 = vand.u32 2147483647, %v5724_v61  ;;  %v5737_v6 = vmul.f32 0.70710677, %v5726_v62  ;;  %vm648_vm2 = vcmp.ge.f32.partialorder %v5724_v61, 0.0 }
 0x100   : > { %v681_v7 = vand.u32 2147483647, %v5731_v2  ;;  %v5741_v9 = vmul.f32 0.70710677, %v5733_v3  ;;  %vm649_vm3 = vcmp.ge.f32.partialorder %v5731_v2, 0.0 }
 0x101   : > { %v696_v8 = vmul.f32 0.3275911, %v680_v5  ;;  %v5744_v11 = vand.u32 2147483647, %v5737_v6  ;;  %v888_v26 = vsub.f32 0.0, %v680_v5  ;;  %vm650_vm4 = vcmp.ge.f32.partialorder %v5737_v6, 0.0 }
 0x102   : > { %v697_v10 = vmul.f32 0.3275911, %v681_v7  ;;  %v603_v13 = vpop.f32.mrb[4].mxu0  ;;  %v5750_v18 = vand.u32 2147483647, %v5741_v9  ;;  %v889_v59 = vsub.f32 0.0, %v681_v7 }
 0x103   : > { %v712_v12 = vadd.f32 1.0, %v696_v8  ;;  %v698_v16 = vmul.f32 0.3275911, %v5744_v11  ;;  %v605_v17 = vpop.f32.mrb[5].mxu0  ;;  %v5763_v52 = vadd.f32 %v603_v13, %v507_v22  ;;  %v904_v56 = vmul.f32 %v888_v26, %v680_v5  ;;  %v5771_v8 = vpop.permute.xlu1 %1398 }
 0x104   : > { %v713_v15 = vadd.f32 1.0, %v697_v10  ;;  %v607_v19 = vpop.f32.mrb[6].mxu0  ;;  %v699_v24 = vmul.f32 0.3275911, %v5750_v18  ;;  %v5767_v60 = vadd.f32 %v605_v17, %v508_v49  ;;  %10818 = vst [vmem:[#allocation18_spill] sm:$0xff] %v5771_v8  ;;  %v509_v5 = vmul.f32 %v5708_v47, %v5680_v35 }
 0x105   : > { %5040 = vrcp.f32 %v712_v12  ;;  %v714_v20 = vadd.f32 1.0, %v698_v16  ;;  %v5752_v21 = vpop.f32.mrb[7].mxu0  ;;  %v5774_v12 = vmul.f32 0.70710677, %v5763_v52  ;;  %v920_v16 = vmul.f32 1.442695, %v904_v56 }
 0x106   : > { %5042 = vrcp.f32 %v713_v15  ;;  %v715_v53 = vadd.f32 1.0, %v699_v24  ;;  %v905_v24 = vmul.f32 %v889_v59, %v681_v7  ;;  %v5786_v26 = vmul.f32 0.70710677, %v5767_v60 }
 0x107   : > { %5044 = vrcp.f32 %v714_v20  ;;  %v5801_v7 = vpop.permute.xlu1 %1406  ;;  %vm651_vm5 = vcmp.ge.f32.partialorder %v5741_v9, 0.0  ;;  %vm652_vm6 = vcmp.ge.f32.partialorder %v5774_v12, 0.0 }
 0x108   : > { %5046 = vrcp.f32 %v715_v53  ;;  %v5792_v53 = vand.u32 2147483647, %v5774_v12  ;;  %10819 = vst [vmem:[#allocation19_spill] sm:$0xff] %v5801_v7  ;;  %v5806_v31 = vand.u32 2147483647, %v5786_v26  ;;  %vm653_vm7 = vcmp.ge.f32.partialorder %v5786_v26, 0.0 }
 0x109   : > { %5048 = vpow2.f32 %v920_v16  ;;  %v890_v16 = vsub.f32 0.0, %v5744_v11 }
 0x10a   : > { %v5758_v44 = vpop.f32.mrb[8].mxu0  ;;  %v700_v30 = vmul.f32 0.3275911, %v5792_v53  ;;  %v701_v4 = vmul.f32 0.3275911, %v5806_v31 }
 0x10b   : > { %v5761_v50 = vpop.f32.mrb[9].mxu0  ;;  %v906_v25 = vmul.f32 %v890_v16, %v5744_v11 }
 0x10c   : > { %v5765_v54 = vpop.f32.mrb[10].mxu0  ;;  %v717_v14 = vadd.f32 1.0, %v701_v4 }
 0x10d   : > { %v5776_v34 = vpop.f32.mrb[11].mxu0 }
 0x10f   : > { %v5041_v57 = vpop.eup %5040 }
 0x110   : > { %v5769_v63 = vpop.eup %5042  ;;  %v744_v10 = vmul.f32 1.0614054, %v5041_v57 }
 0x111   : > { %v745_v13 = vmul.f32 1.0614054, %v5769_v63  ;;  %v5783_v20 = vpop.eup %5044 }
 0x112   : > { %v760_v15 = vadd.f32 -1.4531521, %v744_v10  ;;  %v5781_v17 = vpop.f32.mrb[12].mxu0  ;;  %v746_v28 = vmul.f32 1.0614054, %v5783_v20  ;;  %v5797_v10 = vadd.f32 %v607_v19, %v509_v5 }
 0x113   : > { %v761_v22 = vadd.f32 -1.4531521, %v745_v13  ;;  %v5788_v49 = vpop.f32.mrb[13].mxu0 }
 0x114   : > { %v776_v29 = vmul.f32 %v5041_v57, %v760_v15  ;;  %v5794_v27 = vpop.f32.mrb[14].mxu0  ;;  %v762_v13 = vadd.f32 -1.4531521, %v746_v28  ;;  %v922_v15 = vmul.f32 1.442695, %v905_v24  ;;  %v5815_v24 = vpop.permute.xlu0 %474 }
 0x115   : > { %v777_v56 = vmul.f32 %v5769_v63, %v761_v22  ;;  %v5799_v23 = vpop.f32.mrb[15].mxu0  ;;  %v5810_v5 = vmul.f32 0.70710677, %v5797_v10 }
 0x116   : > { %v792_v59 = vadd.f32 1.4214138, %v776_v29  ;;  %v778_v32 = vmul.f32 %v5783_v20, %v762_v13  ;;  %v5812_v29 = vpop.eup %5046  ;;  %5050 = vpow2.f32 %v922_v15  ;;  %v716_v13 = vadd.f32 1.0, %v700_v30 }
 0x117   : > { %v793_v0 = vadd.f32 1.4214138, %v777_v56  ;;  %v5817_v56 = vpop.permute.xlu1 %1410  ;;  %v5822_v46 = vand.u32 2147483647, %v5810_v5  ;;  %v747_v15 = vmul.f32 1.0614054, %v5812_v29  ;;  %v510_v30 = vmul.f32 %v5711_v48, %v5680_v35 }
 0x118   : > { %v808_v40 = vmul.f32 %v5041_v57, %v792_v59  ;;  %v794_v33 = vadd.f32 1.4214138, %v778_v32  ;;  %10820 = vst [vmem:[#allocation20_spill] sm:$0xff] %v5817_v56  ;;  %5052 = vrcp.f32 %v716_v13  ;;  %v5831_v56 = vpop.permute.xlu0 %484  ;;  %v10519_v13 = vmov -1.0  }
 0x119   : > { %v809_v19 = vmul.f32 %v5769_v63, %v793_v0  ;;  %v763_v11 = vadd.f32 -1.4531521, %v747_v15  ;;  %5054 = vrcp.f32 %v717_v14  ;;  %v5837_v4 = vadd.f32 %v5752_v21, %v510_v30 }
 0x11a   : > { %v824_v22 = vadd.f32 -0.28449672, %v808_v40  ;;  %v810_v40 = vmul.f32 %v5783_v20, %v794_v33  ;;  %v664_v61 = vsel %vm648_vm2, 1.0, %v10519_v13  ;;  %v1000_v14 = vmul.f32 0.5, %v5717_v55 }
 0x11b   : > { %v825_v28 = vadd.f32 -0.28449672, %v809_v19  ;;  %v665_v55 = vsel %vm649_vm3, 1.0, %v10519_v13  ;;  %vm654_vm8 = vcmp.ge.f32.partialorder %v5810_v5, 0.0 }
 0x11c   : > { %v840_v59 = vmul.f32 %v5041_v57, %v824_v22  ;;  %v5049_v22 = vpop.eup %5048  ;;  %v826_v39 = vadd.f32 -0.28449672, %v810_v40  ;;  %v5848_v40 = vmul.f32 0.70710677, %v5837_v4 }
 0x11d   : > { %v841_v0 = vmul.f32 %v5769_v63, %v825_v28  ;;  %v702_v28 = vmul.f32 0.3275911, %v5822_v46 }
 0x11e   : > { %v856_v32 = vadd.f32 0.2548296, %v840_v59  ;;  %v5833_v59 = vpop.permute.xlu1 %1418  ;;  %vm655_vm9 = vcmp.ge.f32.partialorder %v5848_v40, 0.0 }
 0x11f   : > { %v857_v19 = vadd.f32 0.2548296, %v841_v0  ;;  %10821 = vst [vmem:[#allocation21_spill] sm:$0xff] %v5833_v59  ;;  %v842_v59 = vmul.f32 %v5783_v20, %v826_v39 }
 0x120   : > { %v872_v42 = vmul.f32 %v5041_v57, %v856_v32  ;;  %v924_v57 = vmul.f32 1.442695, %v906_v25  ;;  %v5051_v35 = vpop.eup %5050  ;;  %v718_v32 = vadd.f32 1.0, %v702_v28  ;;  %v891_v28 = vsub.f32 0.0, %v5750_v18 }
 0x121   : > { %v873_v0 = vmul.f32 %v5769_v63, %v857_v19  ;;  %v5842_v63 = vpop.permute.xlu0 %1133  ;;  %v858_v30 = vadd.f32 0.2548296, %v842_v59 }
 0x122   : > { %v952_v33 = vmul.f32 %v5049_v22, %v872_v42  ;;  %v779_v42 = vmul.f32 %v5812_v29, %v763_v11  ;;  %5056 = vpow2.f32 %v924_v57  ;;  %10822 = vst [vmem:[#allocation22_spill] sm:$0xff] %v5842_v63  ;;  %v5844_v25 = vpop.permute.xlu1 %1426  ;;  %v5851_v15 = vpop.eup %5052 }
 0x123   : > { %v953_v1 = vmul.f32 %v5051_v35, %v873_v0  ;;  %10823 = vst [vmem:[#allocation23_spill] sm:$0xff] %v5844_v25  ;;  %5058 = vrcp.f32 %v718_v32  ;;  %v748_v2 = vmul.f32 1.0614054, %v5851_v15  ;;  %v874_v0 = vmul.f32 %v5783_v20, %v858_v30 }
 0x124   : > { %v968_v16 = vsub.f32 1.0, %v952_v33  ;;  %v795_v22 = vadd.f32 1.4214138, %v779_v42  ;;  %v5857_v33 = vand.u32 2147483647, %v5848_v40  ;;  %v511_v42 = vmul.f32 %v5708_v47, %v5815_v24 }
 0x125   : > { %v969_v39 = vsub.f32 1.0, %v953_v1  ;;  %v5865_v1 = vpop.eup %5054  ;;  %v764_v32 = vadd.f32 -1.4531521, %v748_v2 }
 0x126   : > { %v984_v7 = vmul.f32 %v968_v16, %v664_v61  ;;  %v5870_v11 = vpop.permute.xlu1 %1539  ;;  %v811_v57 = vmul.f32 %v5812_v29, %v795_v22  ;;  %v907_v16 = vmul.f32 %v891_v28, %v5750_v18  ;;  %v703_v35 = vmul.f32 0.3275911, %v5857_v33 }
 0x127   : > { %v985_v59 = vmul.f32 %v969_v39, %v665_v55  ;;  %10825 = vst [vmem:[#allocation25_spill] sm:$0xff] %v5870_v11  ;;  %v749_v20 = vmul.f32 1.0614054, %v5865_v1  ;;  %v5885_v22 = vadd.f32 %v5758_v44, %v511_v42  ;;  %v1001_v55 = vmul.f32 0.5, %v5720_v58 }
 0x128   : > { %v1016_v21 = vadd.f32 1.0, %v984_v7  ;;  %v5867_v7 = vpop.permute.xlu0 %1143  ;;  %v827_v18 = vadd.f32 -0.28449672, %v811_v57  ;;  %v926_v30 = vmul.f32 1.442695, %v907_v16  ;;  %v719_v2 = vadd.f32 1.0, %v703_v35 }
 0x129   : > { %10824 = vst [vmem:[#allocation24_spill] sm:$0xff] %v5867_v7  ;;  %v780_v44 = vmul.f32 %v5851_v15, %v764_v32  ;;  %v1002_v7 = vmul.f32 0.5, %v5726_v62  ;;  %v894_v11 = vsub.f32 0.0, %v5822_v46 }
 0x12a   : > { %v5853_v19 = vmul.f32 %v1016_v21, %v1000_v14  ;;  %v1017_v14 = vadd.f32 1.0, %v985_v59  ;;  %v5890_v13 = vpop.permute.xlu1 %1543  ;;  %v765_v59 = vadd.f32 -1.4531521, %v749_v20  ;;  %v843_v16 = vmul.f32 %v5812_v29, %v827_v18 }
 0x12b   : > { %10827 = vst [vmem:[#allocation27_spill] sm:$0xff] %v5890_v13  ;;  %5060 = vpow2.f32 %v926_v30  ;;  %v892_v20 = vsub.f32 0.0, %v5792_v53  ;;  %v796_v30 = vadd.f32 1.4214138, %v780_v44 }
 0x12c   : > { %1324 = vrot.lane.b32.xlu1 %v5853_v19, %s10565_s25  ;;  %1056 = vrot.lane.b32.xlu0 %v5853_v19, %s10567_s26  ;;  %v5057_v61 = vpop.eup %5056  ;;  %v5887_v28 = vpop.permute.xlu0 %1153  ;;  %v5900_v58 = vmul.f32 %v1017_v14, %v1001_v55  ;;  %5062 = vrcp.f32 %v719_v2  ;;  %v781_v42 = vmul.f32 %v5865_v1, %v765_v59  ;;  %v513_v14 = vmul.f32 %v5708_v47, %v5682_v36 }
 0x12d   : > { %v954_v21 = vmul.f32 %v5057_v61, %v874_v0  ;;  %v5882_v39 = vpop.eup %5058  ;;  %10826 = vst [vmem:[#allocation26_spill] sm:$0xff] %v5887_v28  ;;  %v512_v0 = vmul.f32 %v5711_v48, %v5815_v24  ;;  %v5905_v61 = vmul.f32 0.70710677, %v5885_v22  ;;  %v10828_v24 = vmov -1.0  }
 0x12e   : > { %v750_v35 = vmul.f32 1.0614054, %v5882_v39  ;;  %v666_v32 = vsel %vm650_vm4, 1.0, %v10828_v24  ;;  %v859_v18 = vadd.f32 0.2548296, %v843_v16  ;;  %v5921_v2 = vpop.permute.xlu1 %1551  ;;  %v908_v59 = vmul.f32 %v892_v20, %v5792_v53 }
 0x12f   : > { %v970_v57 = vsub.f32 1.0, %v954_v21  ;;  %v5908_v6 = vadd.f32 %v5761_v50, %v512_v0  ;;  %10830 = vst [vmem:[#allocation29_spill] sm:$0xff] %v5921_v2  ;;  %v5924_v0 = vand.u32 2147483647, %v5905_v61  ;;  %v5935_v44 = vadd.f32 %v5765_v54, %v513_v14 }
 0x130   : > { %1799 = vrot.lane.b32.xlu1 %v5853_v19, %s10729_s30  ;;  %1187 = vrot.lane.b32.xlu0 %v5853_v19, %s5401_s12  ;;  %v5919_v21 = vpop.permute.xlu0 %1163  ;;  %v766_v55 = vadd.f32 -1.4531521, %v750_v35  ;;  %v875_v35 = vmul.f32 %v5812_v29, %v859_v18  ;;  %v893_v28 = vsub.f32 0.0, %v5806_v31  ;;  %v928_v20 = vmul.f32 1.442695, %v908_v59 }
 0x131   : > { %10829 = vst [vmem:[#allocation28_spill] sm:$0xff] %v5919_v21  ;;  %v986_v50 = vmul.f32 %v970_v57, %v666_v32  ;;  %v5927_v25 = vmul.f32 0.70710677, %v5908_v6  ;;  %v797_v57 = vadd.f32 1.4214138, %v781_v42  ;;  %v812_v21 = vmul.f32 %v5851_v15, %v796_v30 }
 0x132   : > { %v782_v2 = vmul.f32 %v5882_v39, %v766_v55  ;;  %v704_v13 = vmul.f32 0.3275911, %v5924_v0  ;;  %v5945_v53 = vpop.permute.xlu1 %1559  ;;  %v5956_v14 = vmul.f32 0.70710677, %v5935_v44  ;;  %5064 = vpow2.f32 %v928_v20 }
 0x133   : > { %v1018_v16 = vadd.f32 1.0, %v986_v50  ;;  %10832 = vst [vmem:[#allocation31_spill] sm:$0xff] %v5945_v53  ;;  %v5948_v54 = vand.u32 2147483647, %v5927_v25  ;;  %v813_v42 = vmul.f32 %v5865_v1, %v797_v57  ;;  %v828_v30 = vadd.f32 -0.28449672, %v812_v21 }
 0x134   : > { %1936 = vrot.lane.b32.xlu1 %v5853_v19, %s10687_s14  ;;  %1461 = vrot.lane.b32.xlu0 %v5853_v19, %s10553_s15  ;;  %v5938_v32 = vpop.permute.xlu0 %1261  ;;  %v798_v55 = vadd.f32 1.4214138, %v782_v2  ;;  %v909_v53 = vmul.f32 %v893_v28, %v5806_v31  ;;  %v720_v38 = vadd.f32 1.0, %v704_v13  ;;  %v514_v57 = vmul.f32 %v5711_v48, %v5682_v36 }
 0x135   : > { %10831 = vst [vmem:[#allocation30_spill] sm:$0xff] %v5938_v32  ;;  %v5061_v29 = vpop.eup %5060  ;;  %v5960_v62 = vmul.f32 %v1018_v16, %v1002_v7  ;;  %v705_v59 = vmul.f32 0.3275911, %v5948_v54  ;;  %v5976_v13 = vand.u32 2147483647, %v5956_v14  ;;  %v844_v28 = vmul.f32 %v5851_v15, %v828_v30 }
 0x136   : > { %v5958_v50 = vpop.eup %5062  ;;  %v955_v18 = vmul.f32 %v5061_v29, %v875_v35  ;;  %v829_v21 = vadd.f32 -0.28449672, %v813_v42  ;;  %v814_v36 = vmul.f32 %v5882_v39, %v798_v55  ;;  %v5980_v2 = vpop.permute.xlu1 %1599  ;;  %v930_v16 = vmul.f32 1.442695, %v909_v53 }
 0x137   : > { %v751_v31 = vmul.f32 1.0614054, %v5958_v50  ;;  %v910_v35 = vmul.f32 %v894_v11, %v5822_v46  ;;  %5066 = vrcp.f32 %v720_v38  ;;  %v721_v29 = vadd.f32 1.0, %v705_v59 }
 0x138   : > { %1340 = vrot.lane.b32.xlu1 %v5900_v58, %s10565_s25  ;;  %1662 = vrot.lane.b32.xlu0 %v5853_v19, %s10731_s17  ;;  %v5964_v51 = vpop.permute.xlu0 %1273  ;;  %v971_v7 = vsub.f32 1.0, %v955_v18  ;;  %v667_v9 = vsel %vm651_vm5, 1.0, %v10828_v24  ;;  %v706_v42 = vmul.f32 0.3275911, %v5976_v13  ;;  %v5990_v18 = vadd.f32 %v5776_v34, %v514_v57 }
 0x139   : > { %10833 = vst [vmem:[#allocation32_spill] sm:$0xff] %v5964_v51  ;;  %v767_v20 = vadd.f32 -1.4531521, %v751_v31  ;;  %v860_v53 = vadd.f32 0.2548296, %v844_v28  ;;  %v845_v46 = vmul.f32 %v5865_v1, %v829_v21  ;;  %5068 = vpow2.f32 %v930_v16 }
 0x13a   : > { %v987_v30 = vmul.f32 %v971_v7, %v667_v9  ;;  %v830_v38 = vadd.f32 -0.28449672, %v814_v36  ;;  %v932_v55 = vmul.f32 1.442695, %v910_v35  ;;  %5070 = vrcp.f32 %v721_v29  ;;  %v5995_v59 = vpop.permute.xlu1 %1607 }
 0x13b   : > { %v783_v34 = vmul.f32 %v5958_v50, %v767_v20  ;;  %v722_v57 = vadd.f32 1.0, %v706_v42  ;;  %v6003_v31 = vmul.f32 0.70710677, %v5990_v18  ;;  %v876_v28 = vmul.f32 %v5851_v15, %v860_v53 }
 0x13c   : > { %1815 = vrot.lane.b32.xlu1 %v5900_v58, %s10729_s30  ;;  %1072 = vrot.lane.b32.xlu0 %v5900_v58, %s10567_s26  ;;  %v5993_v11 = vpop.permute.xlu0 %1281  ;;  %v1019_v7 = vadd.f32 1.0, %v987_v30  ;;  %v861_v21 = vadd.f32 0.2548296, %v845_v46  ;;  %v846_v36 = vmul.f32 %v5882_v39, %v830_v38  ;;  %v5065_v16 = vpop.eup %5064  ;;  %5072 = vpow2.f32 %v932_v55 }
 0x13d   : > { %10834 = vst [vmem:[#allocation33_spill] sm:$0xff] %v5993_v11  ;;  %v1003_v35 = vmul.f32 0.5, %v5733_v3  ;;  %v799_v20 = vadd.f32 1.4214138, %v783_v34  ;;  %5074 = vrcp.f32 %v722_v57  ;;  %v6017_v15 = vand.u32 2147483647, %v6003_v31 }
 0x13e   : > { %v515_v42 = vmul.f32 %v5708_v47, %v5831_v56  ;;  %v956_v3 = vmul.f32 %v5065_v16, %v876_v28  ;;  %v877_v53 = vmul.f32 %v5865_v1, %v861_v21  ;;  %v862_v46 = vadd.f32 0.2548296, %v846_v36  ;;  %v6024_v38 = vpop.permute.xlu1 %1611 }
 0x13f   : > { %v6021_v30 = vmul.f32 %v1019_v7, %v1003_v35  ;;  %v895_v55 = vsub.f32 0.0, %v5857_v33  ;;  %v815_v7 = vmul.f32 %v5958_v50, %v799_v20  ;;  %v707_v1 = vmul.f32 0.3275911, %v6017_v15 }
 0x140   : > { %1952 = vrot.lane.b32.xlu1 %v5900_v58, %s10687_s14  ;;  %1203 = vrot.lane.b32.xlu0 %v5900_v58, %s5401_s12  ;;  %v6008_v29 = vpop.permute.xlu0 %1289  ;;  %v6029_v34 = vadd.f32 %v5781_v17, %v515_v42  ;;  %v516_v28 = vmul.f32 %v5711_v48, %v5831_v56  ;;  %v972_v17 = vsub.f32 1.0, %v956_v3  ;;  %v878_v16 = vmul.f32 %v5882_v39, %v862_v46 }
 0x141   : > { %10835 = vst [vmem:[#allocation34_spill] sm:$0xff] %v6008_v29  ;;  %v6014_v9 = vpop.eup %5066  ;;  %v911_v42 = vmul.f32 %v895_v55, %v5857_v33  ;;  %v668_v33 = vsel %vm652_vm6, 1.0, %v10828_v24  ;;  %v831_v39 = vadd.f32 -0.28449672, %v815_v7  ;;  %v723_v3 = vadd.f32 1.0, %v707_v1 }
 0x142   : > { %v752_v29 = vmul.f32 1.0614054, %v6014_v9  ;;  %v6048_v11 = vmul.f32 0.70710677, %v6029_v34  ;;  %v6051_v56 = vadd.f32 %v5788_v49, %v516_v28  ;;  %v6053_v51 = vpop.permute.xlu1 %1619  ;;  %v896_v8 = vsub.f32 0.0, %v5924_v0 }
 0x143   : > { %v5069_v57 = vpop.eup %5068  ;;  %10837 = vst [vmem:[#allocation36_spill] sm:$0xff] %v6053_v51  ;;  %v934_v28 = vmul.f32 1.442695, %v911_v42  ;;  %v847_v26 = vmul.f32 %v5958_v50, %v831_v39  ;;  %5076 = vrcp.f32 %v723_v3  ;;  %vm656_vm10 = vcmp.ge.f32.partialorder %v5905_v61, 0.0 }
 0x144   : > { %1058 = vrot.lane.b32.xlu1 %v5960_v62, %s10567_s26  ;;  %1477 = vrot.lane.b32.xlu0 %v5900_v58, %s10553_s15  ;;  %v6039_v21 = vpop.eup %5070  ;;  %v957_v36 = vmul.f32 %v5069_v57, %v877_v53  ;;  %v6043_v35 = vpop.permute.xlu0 %1402  ;;  %v768_v20 = vadd.f32 -1.4531521, %v752_v29  ;;  %v988_v53 = vmul.f32 %v972_v17, %v668_v33  ;;  %v669_v57 = vsel %vm653_vm7, 1.0, %v10828_v24 }
 0x145   : > { %10836 = vst [vmem:[#allocation35_spill] sm:$0xff] %v6043_v35  ;;  %v753_v29 = vmul.f32 1.0614054, %v6039_v21  ;;  %v517_v35 = vmul.f32 %v5708_v47, %v5684_v37  ;;  %v6071_v63 = vand.u32 2147483647, %v6048_v11  ;;  %5078 = vpow2.f32 %v934_v28 }
 0x146   : > { %v5073_v12 = vpop.eup %5072  ;;  %v973_v46 = vsub.f32 1.0, %v957_v36  ;;  %v784_v7 = vmul.f32 %v6014_v9, %v768_v20  ;;  %v6074_v1 = vmul.f32 0.70710677, %v6051_v56  ;;  %v1020_v42 = vadd.f32 1.0, %v988_v53  ;;  %v6087_v47 = vpop.permute.xlu1 %1736 }
 0x147   : > { %v958_v55 = vmul.f32 %v5073_v12, %v878_v16  ;;  %v6061_v49 = vpop.eup %5074  ;;  %v769_v36 = vadd.f32 -1.4531521, %v753_v29  ;;  %v6084_v16 = vadd.f32 %v5794_v27, %v517_v35  ;;  %10839 = vst [vmem:[#allocation38_spill] sm:$0xff] %v6087_v47  ;;  %v708_v39 = vmul.f32 0.3275911, %v6071_v63 }
 0x148   : > { %1189 = vrot.lane.b32.xlu1 %v5960_v62, %s5401_s12  ;;  %1678 = vrot.lane.b32.xlu0 %v5900_v58, %s10731_s17  ;;  %v6076_v17 = vpop.permute.xlu0 %1414  ;;  %v989_v20 = vmul.f32 %v973_v46, %v669_v57  ;;  %v754_v33 = vmul.f32 1.0614054, %v6061_v49  ;;  %v800_v32 = vadd.f32 1.4214138, %v784_v7  ;;  %v6093_v29 = vand.u32 2147483647, %v6074_v1 }
 0x149   : > { %10838 = vst [vmem:[#allocation37_spill] sm:$0xff] %v6076_v17  ;;  %v974_v12 = vsub.f32 1.0, %v958_v55  ;;  %v1004_v17 = vmul.f32 0.5, %v5763_v52  ;;  %v670_v27 = vsel %vm654_vm8, 1.0, %v10828_v24  ;;  %v863_v52 = vadd.f32 0.2548296, %v847_v26 }
 0x14a   : > { %v785_v35 = vmul.f32 %v6039_v21, %v769_v36  ;;  %v6104_v3 = vmul.f32 0.70710677, %v6084_v16  ;;  %v1021_v46 = vadd.f32 1.0, %v989_v20  ;;  %v770_v57 = vadd.f32 -1.4531521, %v754_v33  ;;  %v6114_v36 = vpop.permute.xlu1 %1873 }
 0x14b   : > { %v6106_v53 = vmul.f32 %v1020_v42, %v1004_v17  ;;  %v990_v55 = vmul.f32 %v974_v12, %v670_v27  ;;  %v1005_v7 = vmul.f32 0.5, %v5767_v60  ;;  %v816_v47 = vmul.f32 %v6014_v9, %v800_v32  ;;  %10841 = vst [vmem:[#allocation40_spill] sm:$0xff] %v6114_v36 }
 0x14c   : > { %1463 = vrot.lane.b32.xlu1 %v5960_v62, %s10553_s15  ;;  %1326 = vrot.lane.b32.xlu0 %v5960_v62, %s10565_s25  ;;  %v6108_v28 = vpop.permute.xlu0 %1422  ;;  %v912_v5 = vmul.f32 %v896_v8, %v5924_v0  ;;  %v724_v51 = vadd.f32 1.0, %v708_v39  ;;  %v709_v26 = vmul.f32 0.3275911, %v6093_v29  ;;  %v801_v17 = vadd.f32 1.4214138, %v785_v35 }
 0x14d   : > { %10840 = vst [vmem:[#allocation39_spill] sm:$0xff] %v6108_v28  ;;  %v897_v42 = vsub.f32 0.0, %v5948_v54  ;;  %v6122_v60 = vand.u32 2147483647, %v6104_v3  ;;  %v6124_v32 = vmul.f32 %v1021_v46, %v1005_v7  ;;  %v1022_v8 = vadd.f32 1.0, %v990_v55  ;;  %v6128_v12 = vpop.eup %5076 }
 0x14e   : > { %v879_v0 = vmul.f32 %v5958_v50, %v863_v52  ;;  %v786_v20 = vmul.f32 %v6061_v49, %v770_v57  ;;  %v1006_v33 = vmul.f32 0.5, %v5797_v10  ;;  %v518_v39 = vmul.f32 %v5711_v48, %v5684_v37  ;;  %v6148_v7 = vpop.permute.xlu1 %1877 }
 0x14f   : > { %v832_v27 = vadd.f32 -0.28449672, %v816_v47  ;;  %v936_v35 = vmul.f32 1.442695, %v912_v5  ;;  %5080 = vrcp.f32 %v724_v51  ;;  %v725_v28 = vadd.f32 1.0, %v709_v26  ;;  %v5079_v50 = vpop.eup %5078  ;;  %10842 = vst [vmem:[#allocation41_spill] sm:$0xff] %v6148_v7 }
 0x150   : > { %1664 = vrot.lane.b32.xlu1 %v5960_v62, %s10731_s17  ;;  %1801 = vrot.lane.b32.xlu0 %v5960_v62, %s10729_s30  ;;  %v6133_v36 = vpop.permute.xlu0 %1535  ;;  %v817_v52 = vmul.f32 %v6039_v21, %v801_v17  ;;  %v913_v10 = vmul.f32 %v897_v42, %v5948_v54  ;;  %v710_v46 = vmul.f32 0.3275911, %v6122_v60  ;;  %v6143_v37 = vadd.f32 %v5799_v23, %v518_v39 }
 0x151   : > { %v6145_v47 = vmul.f32 %v1022_v8, %v1006_v33  ;;  %v959_v51 = vmul.f32 %v5079_v50, %v879_v0  ;;  %v802_v55 = vadd.f32 1.4214138, %v786_v20  ;;  %v755_v57 = vmul.f32 1.0614054, %v6128_v12 }
 0x152   : > { %v898_v5 = vsub.f32 0.0, %v5976_v13  ;;  %v848_v26 = vmul.f32 %v6014_v9, %v832_v27  ;;  %5082 = vrcp.f32 %v725_v28  ;;  %v833_v23 = vadd.f32 -0.28449672, %v817_v52  ;;  %v6164_v27 = vpop.permute.xlu1 %1748 }
 0x153   : > { %5084 = vpow2.f32 %v936_v35  ;;  %v726_v54 = vadd.f32 1.0, %v710_v46  ;;  %v6158_v17 = vmul.f32 0.70710677, %v6143_v37  ;;  %v975_v42 = vsub.f32 1.0, %v959_v51  ;;  %10844 = vst [vmem:[#allocation43_spill] sm:$0xff] %v6164_v27 }
 0x154   : > { %1074 = vrot.lane.b32.xlu1 %v6021_v30, %s10567_s26  ;;  %1938 = vrot.lane.b32.xlu0 %v5960_v62, %s10687_s14  ;;  %v938_v8 = vmul.f32 1.442695, %v913_v10  ;;  %v818_v0 = vmul.f32 %v6061_v49, %v802_v55  ;;  %v771_v20 = vadd.f32 -1.4531521, %v755_v57  ;;  %v6161_v33 = vpop.permute.xlu0 %1547  ;;  %v914_v28 = vmul.f32 %v898_v5, %v5976_v13 }
 0x155   : > { %10843 = vst [vmem:[#allocation42_spill] sm:$0xff] %v6161_v33  ;;  %v864_v39 = vadd.f32 0.2548296, %v848_v26  ;;  %v671_v35 = vsel %vm655_vm9, 1.0, %v10828_v24  ;;  %v849_v50 = vmul.f32 %v6039_v21, %v833_v23  ;;  %5086 = vrcp.f32 %v726_v54 }
 0x156   : > { %v6175_v52 = vand.u32 2147483647, %v6158_v17  ;;  %v991_v10 = vmul.f32 %v975_v42, %v671_v35  ;;  %5088 = vpow2.f32 %v938_v8  ;;  %v834_v46 = vadd.f32 -0.28449672, %v818_v0 }
 0x157   : > { %v787_v51 = vmul.f32 %v6128_v12, %v771_v20  ;;  %v940_v55 = vmul.f32 1.442695, %v914_v28  ;;  %v880_v57 = vmul.f32 %v6014_v9, %v864_v39  ;;  %v865_v40 = vadd.f32 0.2548296, %v849_v50  ;;  %v6192_v9 = vpop.permute.xlu1 %2014 }
 0x158   : > { %1205 = vrot.lane.b32.xlu1 %v6021_v30, %s5401_s12  ;;  %1342 = vrot.lane.b32.xlu0 %v6021_v30, %s10565_s25  ;;  %v6181_v5 = vpop.permute.xlu0 %1555  ;;  %v711_v23 = vmul.f32 0.3275911, %v6175_v52  ;;  %v1023_v42 = vadd.f32 1.0, %v991_v10  ;;  %v850_v8 = vmul.f32 %v6061_v49, %v834_v46  ;;  %10846 = vst [vmem:[#allocation45_spill] sm:$0xff] %v6192_v9  ;;  %v899_v28 = vsub.f32 0.0, %v6017_v15 }
 0x159   : > { %v6177_v13 = vpop.eup %5080  ;;  %10845 = vst [vmem:[#allocation44_spill] sm:$0xff] %v6181_v5  ;;  %v803_v0 = vadd.f32 1.4214138, %v787_v51  ;;  %5090 = vpow2.f32 %v940_v55  ;;  %v1007_v39 = vmul.f32 0.5, %v5837_v4  ;;  %v881_v50 = vmul.f32 %v6039_v21, %v865_v40 }
 0x15a   : > { %v756_v26 = vmul.f32 1.0614054, %v6177_v13  ;;  %v727_v51 = vadd.f32 1.0, %v711_v23  ;;  %v866_v55 = vadd.f32 0.2548296, %v850_v8  ;;  %vm657_vm11 = vcmp.ge.f32.partialorder %v5927_v25, 0.0 }
 0x15b   : > { %v6202_v48 = vmul.f32 %v1023_v42, %v1007_v39  ;;  %v819_v5 = vmul.f32 %v6128_v12, %v803_v0  ;;  %v6211_v21 = vpop.permute.xlu1 %1881  ;;  %v672_v0 = vsel %vm656_vm10, 1.0, %v10828_v24  ;;  %vm658_vm12 = vcmp.ge.f32.partialorder %v5956_v14, 0.0 }
 0x15c   : > { %1479 = vrot.lane.b32.xlu1 %v6021_v30, %s10553_s15  ;;  %1817 = vrot.lane.b32.xlu0 %v6021_v30, %s10729_s30  ;;  %v6189_v54 = vpop.eup %5082  ;;  %v772_v10 = vadd.f32 -1.4531521, %v756_v26  ;;  %v6205_v27 = vpop.permute.xlu0 %1563  ;;  %10848 = vst [vmem:[#allocation47_spill] sm:$0xff] %v6211_v21  ;;  %5092 = vrcp.f32 %v727_v51  ;;  %v882_v42 = vmul.f32 %v6061_v49, %v866_v55  ;;  %vm659_vm13 = vcmp.ge.f32.partialorder %v6003_v31, 0.0 }
 0x15d   : > { %v5085_v20 = vpop.eup %5084  ;;  %v757_v46 = vmul.f32 1.0614054, %v6189_v54  ;;  %10847 = vst [vmem:[#allocation46_spill] sm:$0xff] %v6205_v27  ;;  %v902_v27 = vsub.f32 0.0, %v6122_v60  ;;  %v675_v31 = vsel %vm659_vm13, 1.0, %v10828_v24  ;;  %vm660_vm14 = vcmp.ge.f32.partialorder %v6048_v11, 0.0 }
 0x15e   : > { %v960_v35 = vmul.f32 %v5085_v20, %v880_v57  ;;  %v915_v57 = vmul.f32 %v899_v28, %v6017_v15  ;;  %v788_v26 = vmul.f32 %v6177_v13, %v772_v10  ;;  %v835_v15 = vadd.f32 -0.28449672, %v819_v5 }
 0x15f   : > { %v6207_v4 = vpop.eup %5086  ;;  %v773_v23 = vadd.f32 -1.4531521, %v757_v46  ;;  %v900_v28 = vsub.f32 0.0, %v6071_v63  ;;  %v6231_v55 = vpop.permute.xlu1 %2147  ;;  %v676_v11 = vsel %vm660_vm14, 1.0, %v10828_v24  ;;  %vm661_vm15 = vcmp.ge.f32.partialorder %v6074_v1, 0.0 }
 0x160   : > { %1680 = vrot.lane.b32.xlu1 %v6021_v30, %s10731_s17  ;;  %1954 = vrot.lane.b32.xlu0 %v6021_v30, %s10687_s14  ;;  %v5089_v20 = vpop.eup %5088  ;;  %v976_v33 = vsub.f32 1.0, %v960_v35  ;;  %v758_v8 = vmul.f32 1.0614054, %v6207_v4  ;;  %v942_v61 = vmul.f32 1.442695, %v915_v57  ;;  %v6223_v39 = vpop.permute.xlu0 %1603  ;;  %v851_v51 = vmul.f32 %v6128_v12, %v835_v15  ;;  %10849 = vst [vmem:[#allocation48_spill] sm:$0xff] %v6231_v55 }
 0x161   : > { %v961_v40 = vmul.f32 %v5089_v20, %v881_v50  ;;  %v804_v50 = vadd.f32 1.4214138, %v788_v26  ;;  %v789_v10 = vmul.f32 %v6189_v54, %v773_v23  ;;  %v673_v57 = vsel %vm657_vm11, 1.0, %v10828_v24 }
 0x162   : > { %v992_v49 = vmul.f32 %v976_v33, %v672_v0  ;;  %v774_v25 = vadd.f32 -1.4531521, %v758_v8  ;;  %5094 = vpow2.f32 %v942_v61  ;;  %v916_v20 = vmul.f32 %v900_v28, %v6071_v63 }
 0x163   : > { %v5091_v35 = vpop.eup %5090  ;;  %v977_v5 = vsub.f32 1.0, %v961_v40  ;;  %v820_v26 = vmul.f32 %v6177_v13, %v804_v50  ;;  %v805_v23 = vadd.f32 1.4214138, %v789_v10  ;;  %v867_v15 = vadd.f32 0.2548296, %v851_v51 }
 0x164   : > { %1328 = vrot.lane.b32.xlu1 %v6106_v53, %s10565_s25  ;;  %1060 = vrot.lane.b32.xlu0 %v6106_v53, %s10567_s26  ;;  %v962_v46 = vmul.f32 %v5091_v35, %v882_v42  ;;  %v6236_v21 = vpop.permute.xlu0 %1615  ;;  %v1024_v33 = vadd.f32 1.0, %v992_v49  ;;  %v790_v8 = vmul.f32 %v6207_v4, %v774_v25  ;;  %v1008_v63 = vmul.f32 0.5, %v5885_v22  ;;  %v6249_v35 = vpop.permute.xlu1 %2151 }
 0x165   : > { %v993_v40 = vmul.f32 %v977_v5, %v673_v57  ;;  %v901_v61 = vsub.f32 0.0, %v6093_v29  ;;  %v674_v0 = vsel %vm658_vm12, 1.0, %v10828_v24  ;;  %v944_v28 = vmul.f32 1.442695, %v916_v20  ;;  %10850 = vst [vmem:[#allocation49_spill] sm:$0xff] %v6249_v35 }
 0x166   : > { %v978_v42 = vsub.f32 1.0, %v962_v46  ;;  %v6244_v14 = vpop.eup %5092  ;;  %v6257_v5 = vmul.f32 %v1024_v33, %v1008_v63  ;;  %v836_v10 = vadd.f32 -0.28449672, %v820_v26  ;;  %v821_v22 = vmul.f32 %v6189_v54, %v805_v23 }
 0x167   : > { %v1025_v50 = vadd.f32 1.0, %v993_v40  ;;  %v883_v51 = vmul.f32 %v6128_v12, %v867_v15  ;;  %v806_v25 = vadd.f32 1.4214138, %v790_v8  ;;  %v759_v57 = vmul.f32 1.0614054, %v6244_v14 }
 0x168   : > { %1344 = vrot.lane.b32.xlu1 %v6124_v32, %s10565_s25  ;;  %1191 = vrot.lane.b32.xlu0 %v6106_v53, %s5401_s12  ;;  %v6251_v49 = vpop.permute.xlu0 %1623  ;;  %v994_v46 = vmul.f32 %v978_v42, %v674_v0  ;;  %v1009_v20 = vmul.f32 0.5, %v5908_v6  ;;  %v917_v55 = vmul.f32 %v901_v61, %v6093_v29  ;;  %v852_v12 = vmul.f32 %v6177_v13, %v836_v10  ;;  %v6275_v8 = vpop.permute.xlu1 %1756 }
 0x169   : > { %5096 = vpow2.f32 %v944_v28  ;;  %v837_v23 = vadd.f32 -0.28449672, %v821_v22  ;;  %v822_v29 = vmul.f32 %v6207_v4, %v806_v25  ;;  %v775_v15 = vadd.f32 -1.4531521, %v759_v57  ;;  %10852 = vst [vmem:[#allocation51_spill] sm:$0xff] %v6275_v8 }
 0x16a   : > { %v6271_v26 = vmul.f32 %v1025_v50, %v1009_v20  ;;  %v1026_v6 = vadd.f32 1.0, %v994_v46  ;;  %v946_v63 = vmul.f32 1.442695, %v917_v55  ;;  %v918_v61 = vmul.f32 %v902_v27, %v6122_v60 }
 0x16b   : > { %v1010_v0 = vmul.f32 0.5, %v5935_v44  ;;  %v868_v28 = vadd.f32 0.2548296, %v852_v12  ;;  %v853_v50 = vmul.f32 %v6189_v54, %v837_v23  ;;  %v838_v46 = vadd.f32 -0.28449672, %v822_v29 }
 0x16c   : > { %1062 = vrot.lane.b32.xlu1 %v6145_v47, %s10567_s26  ;;  %1465 = vrot.lane.b32.xlu0 %v6106_v53, %s10553_s15  ;;  %v6269_v33 = vpop.permute.xlu0 %1740  ;;  %v5095_v40 = vpop.eup %5094  ;;  %v791_v55 = vmul.f32 %v6244_v14, %v775_v15  ;;  %5098 = vpow2.f32 %v946_v63  ;;  %v948_v44 = vmul.f32 1.442695, %v918_v61  ;;  %v903_v23 = vsub.f32 0.0, %v6175_v52 }
 0x16d   : > { %10851 = vst [vmem:[#allocation50_spill] sm:$0xff] %v6269_v33  ;;  %v963_v42 = vmul.f32 %v5095_v40, %v883_v51  ;;  %v6285_v10 = vmul.f32 %v1026_v6, %v1010_v0  ;;  %v6290_v27 = vpop.permute.xlu1 %2018  ;;  %v884_v51 = vmul.f32 %v6177_v13, %v868_v28  ;;  %v869_v57 = vadd.f32 0.2548296, %v853_v50 }
 0x16e   : > { %10854 = vst [vmem:[#allocation53_spill] sm:$0xff] %v6290_v27  ;;  %v854_v20 = vmul.f32 %v6207_v4, %v838_v46  ;;  %v807_v40 = vadd.f32 1.4214138, %v791_v55  ;;  %5100 = vpow2.f32 %v948_v44  ;;  %v919_v0 = vmul.f32 %v903_v23, %v6175_v52 }
 0x16f   : > { %v979_v22 = vsub.f32 1.0, %v963_v42  ;;  %v885_v13 = vmul.f32 %v6189_v54, %v869_v57  ;;  %v1011_v28 = vmul.f32 0.5, %v5990_v18  ;;  %v677_v23 = vsel %vm661_vm15, 1.0, %v10828_v24 }
 0x170   : > { %1193 = vrot.lane.b32.xlu1 %v6145_v47, %s5401_s12  ;;  %1666 = vrot.lane.b32.xlu0 %v6106_v53, %s10731_s17  ;;  %v6288_v60 = vpop.permute.xlu0 %1744  ;;  %v870_v15 = vadd.f32 0.2548296, %v854_v20  ;;  %v823_v63 = vmul.f32 %v6244_v14, %v807_v40  ;;  %v950_v18 = vmul.f32 1.442695, %v919_v0  ;;  %vm662_vm0 = vcmp.ge.f32.partialorder %v6104_v3, 0.0 }
 0x171   : > { %10853 = vst [vmem:[#allocation52_spill] sm:$0xff] %v6288_v60  ;;  %v995_v25 = vmul.f32 %v979_v22, %v675_v31  ;;  %v6308_v61 = vpop.permute.xlu1 %1627  ;;  %v1012_v0 = vmul.f32 0.5, %v6029_v34  ;;  %v1013_v34 = vmul.f32 0.5, %v6051_v56  ;;  %vm663_vm1 = vcmp.ge.f32.partialorder %v6158_v17, 0.0 }
 0x172   : > { %v886_v55 = vmul.f32 %v6207_v4, %v870_v15  ;;  %v839_v44 = vadd.f32 -0.28449672, %v823_v63  ;;  %5102 = vpow2.f32 %v950_v18  ;;  %v10867_v8 = vmov 8  }
 0x173   : > { %v5097_v12 = vpop.eup %5096  ;;  %v1027_v29 = vadd.f32 1.0, %v995_v25 }
 0x174   : > { %1467 = vrot.lane.b32.xlu1 %v6145_v47, %s10553_s15  ;;  %1076 = vrot.lane.b32.xlu0 %v6124_v32, %s10567_s26  ;;  %v6304_v6 = vpop.permute.xlu0 %1752  ;;  %v964_v42 = vmul.f32 %v5097_v12, %v884_v51  ;;  %v855_v20 = vmul.f32 %v6244_v14, %v839_v44 }
 0x175   : > { %10855 = vst [vmem:[#allocation54_spill] sm:$0xff] %v6304_v6  ;;  %v6317_v54 = vmul.f32 %v1027_v29, %v1011_v28  ;;  %v678_v28 = vsel %vm662_vm0, 1.0, %v10828_v24 }
 0x176   : > { %v5099_v50 = vpop.eup %5098  ;;  %v980_v22 = vsub.f32 1.0, %v964_v42 }
 0x177   : > { %v965_v46 = vmul.f32 %v5099_v50, %v885_v13  ;;  %v871_v13 = vadd.f32 0.2548296, %v855_v20 }
 0x178   : > { %1668 = vrot.lane.b32.xlu1 %v6145_v47, %s10731_s17  ;;  %1207 = vrot.lane.b32.xlu0 %v6124_v32, %s5401_s12  ;;  %v5101_v51 = vpop.eup %5100  ;;  %v996_v25 = vmul.f32 %v980_v22, %v676_v11 }
 0x179   : > { %v981_v57 = vsub.f32 1.0, %v965_v46  ;;  %v966_v4 = vmul.f32 %v5101_v51, %v886_v55  ;;  %v887_v46 = vmul.f32 %v6244_v14, %v871_v13 }
 0x17a   : > { %v1028_v1 = vadd.f32 1.0, %v996_v25 }
 0x17b   : > { %v997_v42 = vmul.f32 %v981_v57, %v677_v23  ;;  %v982_v29 = vsub.f32 1.0, %v966_v4  ;;  %v1014_v4 = vmul.f32 0.5, %v6084_v16  ;;  %v679_v16 = vsel %vm663_vm1, 1.0, %v10828_v24  ;;  %v6452_v24 = vld [vmem:[%s10484_s6 + $0x20] sm:$0xff] }
 0x17c   : > { %1078 = vrot.lane.b32.xlu1 %v6202_v48, %s10567_s26  ;;  %1481 = vrot.lane.b32.xlu0 %v6124_v32, %s10553_s15  ;;  %v6351_v50 = vmul.f32 %v1028_v1, %v1012_v0  ;;  %v5103_v18 = vpop.eup %5102 }
 0x17d   : > { %v1029_v3 = vadd.f32 1.0, %v997_v42  ;;  %v998_v22 = vmul.f32 %v982_v29, %v678_v28  ;;  %v967_v25 = vmul.f32 %v5103_v18, %v887_v46 }
 0x17f   : > { %v6363_v51 = vmul.f32 %v1029_v3, %v1013_v34  ;;  %v1030_v11 = vadd.f32 1.0, %v998_v22  ;;  %v983_v20 = vsub.f32 1.0, %v967_v25  ;;  %v1015_v3 = vmul.f32 0.5, %v6143_v37 }
 0x180   : > { %1209 = vrot.lane.b32.xlu1 %v6202_v48, %s5401_s12  ;;  %1682 = vrot.lane.b32.xlu0 %v6124_v32, %s10731_s17 }
 0x181   : > { %v6374_v56 = vmul.f32 %v1030_v11, %v1014_v4  ;;  %v999_v42 = vmul.f32 %v983_v20, %v679_v16 }
 0x183   : > { %v1031_v17 = vadd.f32 1.0, %v999_v42 }
 0x184   : > { %1483 = vrot.lane.b32.xlu1 %v6202_v48, %s10553_s15  ;;  %1330 = vrot.lane.b32.xlu0 %v6145_v47, %s10565_s25 }
 0x185   : > { %v6403_v22 = vmul.f32 %v1031_v17, %v1015_v3 }
 0x187   : > { %10858 = vst [vmem:[#allocation57_spill] sm:$0xff] %v6403_v22 }
 0x188   : > { %1684 = vrot.lane.b32.xlu1 %v6202_v48, %s10731_s17  ;;  %1346 = vrot.lane.b32.xlu0 %v6202_v48, %s10565_s25 }
 0x18c   : > { %1332 = vrot.lane.b32.xlu1 %v6257_v5, %s10565_s25  ;;  %1064 = vrot.lane.b32.xlu0 %v6257_v5, %s10567_s26 }
 0x190   : > { %1348 = vrot.lane.b32.xlu1 %v6271_v26, %s10565_s25  ;;  %1195 = vrot.lane.b32.xlu0 %v6257_v5, %s5401_s12 }
 0x194   : > { %1066 = vrot.lane.b32.xlu1 %v6285_v10, %s10567_s26  ;;  %1469 = vrot.lane.b32.xlu0 %v6257_v5, %s10553_s15 }
 0x198   : > { %1197 = vrot.lane.b32.xlu1 %v6285_v10, %s5401_s12  ;;  %1080 = vrot.lane.b32.xlu0 %v6271_v26, %s10567_s26 }
 0x19c   : > { %1471 = vrot.lane.b32.xlu1 %v6285_v10, %s10553_s15  ;;  %1211 = vrot.lane.b32.xlu0 %v6271_v26, %s5401_s12 }
 0x19e   : > { %v6320_v31 = vpop.permute.xlu1 %1324  ;;  %v6322_v52 = vpop.permute.xlu0 %1056 }
 0x1a0   : > { %1082 = vrot.lane.b32.xlu1 %v6317_v54, %s10567_s26  ;;  %1485 = vrot.lane.b32.xlu0 %v6271_v26, %s10553_s15 }
 0x1a2   : > { %v6331_v40 = vpop.permute.xlu1 %1799  ;;  %v6333_v12 = vpop.permute.xlu0 %1187 }
 0x1a4   : > { %1213 = vrot.lane.b32.xlu1 %v6317_v54, %s5401_s12  ;;  %1334 = vrot.lane.b32.xlu0 %v6285_v10, %s10565_s25 }
 0x1a6   : > { %v6341_v15 = vpop.permute.xlu1 %1936  ;;  %v6343_v63 = vpop.permute.xlu0 %1461 }
 0x1a7   : > { %10856 = vst [vmem:[#allocation55_spill] sm:$0xff] %v6341_v15  ;;  %v6647_v15 = vmul.f32 %v5995_v59, %v6106_v53 }
 0x1a8   : > { %1487 = vrot.lane.b32.xlu1 %v6317_v54, %s10553_s15  ;;  %1350 = vrot.lane.b32.xlu0 %v6317_v54, %s10565_s25 }
 0x1aa   : > { %v6354_v55 = vpop.permute.xlu1 %1340  ;;  %v6356_v44 = vpop.permute.xlu0 %1662 }
 0x1ac   : > { %1336 = vrot.lane.b32.xlu1 %v6351_v50, %s10565_s25  ;;  %1068 = vrot.lane.b32.xlu0 %v6351_v50, %s10567_s26 }
 0x1ae   : > { %v6365_v57 = vpop.permute.xlu1 %1815  ;;  %v6367_v14 = vpop.permute.xlu0 %1072 }
 0x1b0   : > { %1352 = vrot.lane.b32.xlu1 %v6363_v51, %s10565_s25  ;;  %1199 = vrot.lane.b32.xlu0 %v6351_v50, %s5401_s12 }
 0x1b2   : > { %v6377_v23 = vpop.permute.xlu1 %1952  ;;  %v6379_v1 = vpop.permute.xlu0 %1203 }
 0x1b3   : > { %10857 = vst [vmem:[#allocation56_spill] sm:$0xff] %v6377_v23  ;;  %v1987_v23 = vsub.s32 7, %v5692_v41 }
 0x1b4   : > { %1070 = vrot.lane.b32.xlu1 %v6374_v56, %s10567_s26  ;;  %1473 = vrot.lane.b32.xlu0 %v6351_v50, %s10553_s15 }
 0x1b6   : > { %v6386_v29 = vpop.permute.xlu1 %1058  ;;  %v6388_v13 = vpop.permute.xlu0 %1477 }
 0x1b8   : > { %1201 = vrot.lane.b32.xlu1 %v6374_v56, %s5401_s12  ;;  %1084 = vrot.lane.b32.xlu0 %v6363_v51, %s10567_s26 }
 0x1ba   : > { %v6394_v0 = vpop.permute.xlu1 %1189  ;;  %v6396_v28 = vpop.permute.xlu0 %1678 }
 0x1bc   : > { %1475 = vrot.lane.b32.xlu1 %v6374_v56, %s10553_s15  ;;  %1215 = vrot.lane.b32.xlu0 %v6363_v51, %s5401_s12 }
 0x1be   : > { %v6405_v46 = vpop.permute.xlu1 %1463  ;;  %v6407_v34 = vpop.permute.xlu0 %1326 }
 0x1c0   : > { %1086 = vrot.lane.b32.xlu1 %v6403_v22, %s10567_s26  ;;  %1489 = vrot.lane.b32.xlu0 %v6363_v51, %s10553_s15  ;;  %s11156_s26 = smov 15  }
 0x1c2   : > { %v6413_v18 = vpop.permute.xlu1 %1664  ;;  %v6415_v37 = vpop.permute.xlu0 %1801 }
 0x1c3   : > { %10859 = vst [vmem:[#allocation58_spill] sm:$0xff] %v6413_v18  ;;  %10860 = vst [vmem:[#allocation59_spill] sm:$0xff] %v6415_v37  ;;  %v10877_v37 = vmov 5  }
 0x1c4   : > { %1217 = vrot.lane.b32.xlu1 %v6403_v22, %s5401_s12  ;;  %1338 = vrot.lane.b32.xlu0 %v6374_v56, %s10565_s25 }
 0x1c6   : > { %v6421_v11 = vpop.permute.xlu1 %1074  ;;  %v6423_v25 = vpop.permute.xlu0 %1938 }
 0x1c7   : > { %10861 = vst [vmem:[#allocation60_spill] sm:$0xff] %v6423_v25  ;;  %v6483_v25 = vld [vmem:[%s10484_s6 + $0x38] sm:$0xff] }
 0x1c8   : > { %1491 = vrot.lane.b32.xlu1 %v6403_v22, %s10553_s15  ;;  %1354 = vrot.lane.b32.xlu0 %v6403_v22, %s10565_s25  ;;  %s10685_s15 = smov 111   ;;  %s11152_s25 = smov 17  }
 0x1ca   : > { %v6429_v4 = vpop.permute.xlu1 %1205  ;;  %v6431_v20 = vpop.permute.xlu0 %1342 }
 0x1cc   : > { %1803 = vrot.lane.b32.xlu1 %v6106_v53, %s10729_s30  ;;  %1805 = vrot.lane.b32.xlu0 %v6145_v47, %s10729_s30 }
 0x1ce   : > { %v6437_v16 = vpop.permute.xlu1 %1479  ;;  %v6439_v42 = vpop.permute.xlu0 %1817 }
 0x1cf   : > { %10862 = vst [vmem:[#allocation61_spill] sm:$0xff] %v6439_v42 }
 0x1d0   : > { %1819 = vrot.lane.b32.xlu1 %v6124_v32, %s10729_s30  ;;  %1821 = vrot.lane.b32.xlu0 %v6202_v48, %s10729_s30 }
 0x1d2   : > { %v6445_v17 = vpop.permute.xlu1 %1680  ;;  %v6447_v3 = vpop.permute.xlu0 %1954 }
 0x1d3   : > { %10863 = vst [vmem:[#allocation62_spill] sm:$0xff] %v6445_v17  ;;  %10864 = vst [vmem:[#allocation63_spill] sm:$0xff] %v6447_v3 }
 0x1d4   : > { %1889 = vperm.xlu1 %4981, %v6452_v24   ;;  %2089 = vrot.lane.b32.xlu0 %v5900_v58, %s10685_s15 }
 0x1d6   : > { %v6457_v27 = vpop.permute.xlu1 %1328  ;;  %v6459_v6 = vpop.permute.xlu0 %1060 }
 0x1d7   : > { %10865 = vst [vmem:[#allocation64_spill] sm:$0xff] %v6457_v27  ;;  %10866 = vst [vmem:[#allocation65_spill] sm:$0xff] %v6459_v6 }
 0x1d8   : > { %2073 = vrot.lane.b32.xlu1 %v5853_v19, %s10685_s15  ;;  %1672 = vrot.lane.b32.xlu0 %v6285_v10, %s10731_s17 }
 0x1d9   : > { %4982 = vset.pattern.permute.xlu1 %v10867_v8 }
 0x1da   : > { %v6466_v35 = vpop.permute.xlu1 %1344  ;;  %v6468_v60 = vpop.permute.xlu0 %1191 }
 0x1db   : > { %10868 = vst [vmem:[#allocation66_spill] sm:$0xff] %v6466_v35  ;;  %10869 = vst [vmem:[#allocation67_spill] sm:$0xff] %v6468_v60 }
 0x1dc   : > { %2075 = vrot.lane.b32.xlu1 %v5960_v62, %s10685_s15  ;;  %1688 = vrot.lane.b32.xlu0 %v6317_v54, %s10731_s17 }
 0x1de   : > { %v6474_v9 = vpop.permute.xlu1 %1062  ;;  %v6476_v7 = vpop.permute.xlu0 %1465 }
 0x1df   : > { %10870 = vst [vmem:[#allocation68_spill] sm:$0xff] %v6474_v9  ;;  %10871 = vst [vmem:[#allocation69_spill] sm:$0xff] %v6476_v7  ;;  %v5298_v9 = vld [vmem:[%s10484_s6 + $0x18] sm:$0xff]  ;;  %v10874_v7 = vmov 6  }
 0x1e0   : > { %2091 = vrot.lane.b32.xlu1 %v6021_v30, %s10685_s15  ;;  %1764 = vperm.xlu0 %4972, %v6483_v25  }
 0x1e2   : > { %v6486_v3 = vpop.permute.xlu1 %1193  ;;  %v6488_v35 = vpop.permute.xlu0 %1666 }
 0x1e3   : > { %10872 = vst [vmem:[#allocation70_spill] sm:$0xff] %v6486_v3  ;;  %10873 = vst [vmem:[#allocation71_spill] sm:$0xff] %v6488_v35  ;;  %v6504_v35 = vld [vmem:[%s10484_s6 + $0x28] sm:$0xff] }
 0x1e4   : > { %2159 = vperm.xlu1 %4982, %v5298_v9   ;;  %4984 = vset.pattern.permute.xlu0 %v10874_v7 }
 0x1e5   : > { %1885 = vperm.xlu0 %4984, %v5298_v9  }
 0x1e6   : > { %v6494_v27 = vpop.permute.xlu1 %1467  ;;  %v6496_v33 = vpop.permute.xlu0 %1076 }
 0x1e7   : > { %10875 = vst [vmem:[#allocation72_spill] sm:$0xff] %v6494_v27  ;;  %10876 = vst [vmem:[#allocation73_spill] sm:$0xff] %v6496_v33  ;;  %v6522_v33 = vld [vmem:[%s10484_s6 + $0x30] sm:$0xff] }
 0x1e8   : > { %1670 = vrot.lane.b32.xlu1 %v6257_v5, %s10731_s17 }
 0x1e9   : > { %4983 = vset.pattern.permute.xlu1 %v10877_v37  ;;  %1893 = vperm.xlu0 %4984, %v6504_v35  }
 0x1ea   : > { %v6507_v3 = vpop.permute.xlu1 %1668  ;;  %v6509_v42 = vpop.permute.xlu0 %1207 }
 0x1eb   : > { %10878 = vst [vmem:[#allocation74_spill] sm:$0xff] %v6507_v3  ;;  %10879 = vst [vmem:[#allocation75_spill] sm:$0xff] %v6509_v42 }
 0x1ec   : > { %1686 = vrot.lane.b32.xlu1 %v6271_v26, %s10731_s17 }
 0x1ed   : > { %1956 = vrot.lane.b32.xlu0 %v6124_v32, %s10687_s14 }
 0x1ee   : > { %v6515_v27 = vpop.permute.xlu1 %1078  ;;  %v6517_v37 = vpop.permute.xlu0 %1481 }
 0x1ef   : > { %10880 = vst [vmem:[#allocation76_spill] sm:$0xff] %v6515_v27  ;;  %10881 = vst [vmem:[#allocation77_spill] sm:$0xff] %v6517_v37  ;;  %v10884_v27 = vmov 7  }
 0x1f0   : > { %1760 = vperm.xlu1 %4983, %v6522_v33  }
 0x1f1   : > { %1809 = vrot.lane.b32.xlu0 %v6285_v10, %s10729_s30 }
 0x1f2   : > { %v6527_v3 = vpop.permute.xlu1 %1209  ;;  %v6529_v6 = vpop.permute.xlu0 %1682 }
 0x1f3   : > { %10882 = vst [vmem:[#allocation78_spill] sm:$0xff] %v6527_v3  ;;  %10883 = vst [vmem:[#allocation79_spill] sm:$0xff] %v6529_v6 }
 0x1f4   : > { %1940 = vrot.lane.b32.xlu1 %v6106_v53, %s10687_s14 }
 0x1f5   : > { %4985 = vset.pattern.permute.xlu1 %v10884_v27  ;;  %1825 = vrot.lane.b32.xlu0 %v6317_v54, %s10729_s30 }
 0x1f6   : > { %v6536_v37 = vpop.permute.xlu1 %1483  ;;  %v6538_v42 = vpop.permute.xlu0 %1330 }
 0x1f7   : > { %10885 = vst [vmem:[#allocation80_spill] sm:$0xff] %v6536_v37  ;;  %10886 = vst [vmem:[#allocation81_spill] sm:$0xff] %v6538_v42  ;;  %v5301_v37 = vld [vmem:[%s10484_s6] sm:$0xff] }
 0x1f8   : > { %1942 = vrot.lane.b32.xlu1 %v6145_v47, %s10687_s14 }
 0x1f9   : > { %1901 = vperm.xlu0 %4984, %v6483_v25  }
 0x1fa   : > { %v6543_v3 = vpop.permute.xlu1 %1684  ;;  %v6545_v6 = vpop.permute.xlu0 %1346 }
 0x1fb   : > { %10887 = vst [vmem:[#allocation82_spill] sm:$0xff] %v6543_v3  ;;  %10888 = vst [vmem:[#allocation83_spill] sm:$0xff] %v6545_v6 }
 0x1fc   : > { %1958 = vrot.lane.b32.xlu1 %v6202_v48, %s10687_s14 }
 0x1fd   : > { %4987 = vset.pattern.permute.xlu0 %v10884_v27 }
 0x1fe   : > { %v6550_v60 = vpop.permute.xlu1 %1332  ;;  %v6552_v18 = vpop.permute.xlu0 %1064  ;;  %2010 = vperm.xlu0 %4987, %v5301_v37  }
 0x1ff   : > { %10889 = vst [vmem:[#allocation84_spill] sm:$0xff] %v6550_v60  ;;  %10890 = vst [vmem:[#allocation85_spill] sm:$0xff] %v6552_v18 }
 0x200   : > { %2030 = vperm.xlu1 %4985, %v6504_v35  }
 0x202   : > { %v6558_v42 = vpop.permute.xlu1 %1348  ;;  %v6560_v3 = vpop.permute.xlu0 %1195  ;;  %2022 = vperm.xlu0 %4987, %v5298_v9  }
 0x203   : > { %10891 = vst [vmem:[#allocation86_spill] sm:$0xff] %v6558_v42  ;;  %10892 = vst [vmem:[#allocation87_spill] sm:$0xff] %v6560_v3 }
 0x204   : > { %1807 = vrot.lane.b32.xlu1 %v6257_v5, %s10729_s30 }
 0x205   : > { %4986 = vset.pattern.permute.xlu1 %v10874_v7 }
 0x206   : > { %v6565_v60 = vpop.permute.xlu1 %1066  ;;  %v6567_v18 = vpop.permute.xlu0 %1469  ;;  %2026 = vperm.xlu0 %4987, %v6452_v24  }
 0x207   : > { %10893 = vst [vmem:[#allocation88_spill] sm:$0xff] %v6565_v60  ;;  %10894 = vst [vmem:[#allocation89_spill] sm:$0xff] %v6567_v18 }
 0x208   : > { %1823 = vrot.lane.b32.xlu1 %v6271_v26, %s10729_s30 }
 0x20a   : > { %v6572_v37 = vpop.permute.xlu1 %1197  ;;  %v6574_v42 = vpop.permute.xlu0 %1080  ;;  %2093 = vrot.lane.b32.xlu0 %v6124_v32, %s10685_s15 }
 0x20b   : > { %10895 = vst [vmem:[#allocation90_spill] sm:$0xff] %v6572_v37  ;;  %10896 = vst [vmem:[#allocation91_spill] sm:$0xff] %v6574_v42  ;;  %v10903_v42 = vlaneseq }
 0x20c   : > { %1897 = vperm.xlu1 %4986, %v6522_v33  }
 0x20e   : > { %v6579_v9 = vpop.permute.xlu1 %1471  ;;  %v6581_v7 = vpop.permute.xlu0 %1211  ;;  %1676 = vrot.lane.b32.xlu0 %v6374_v56, %s10731_s17 }
 0x20f   : > { %10897 = vst [vmem:[#allocation92_spill] sm:$0xff] %v6579_v9  ;;  %10898 = vst [vmem:[#allocation93_spill] sm:$0xff] %v6581_v7  ;;  %v6603_v7 = vand.u32 127, %v10903_v42 }
 0x210   : > { %2077 = vrot.lane.b32.xlu1 %v6106_v53, %s10685_s15 }
 0x211   : > { %4988 = vset.pattern.permute.xlu1 %v10867_v8  ;;  %vm1090_vm2 = vcmp.lt.s32.totalorder %v6603_v7, 17  ;;  %vm1219_vm3 = vcmp.lt.s32.totalorder %v6603_v7, 16  ;;  %vm1356_vm4 = vcmp.lt.s32.totalorder %v6603_v7, 15  ;;  %vm1493_vm5 = vcmp.lt.s32.totalorder %v6603_v7, 1 }
 0x212   : > { %v6588_v18 = vpop.permute.xlu1 %1082  ;;  %v6590_v60 = vpop.permute.xlu0 %1485  ;;  %1692 = vrot.lane.b32.xlu0 %v6403_v22, %s10731_s17  ;;  %v6652_v22 = vmul.f32 %v5995_v59, %v6124_v32  ;;  %v6672_v59 = vmul.f32 %v6223_v39, %v6021_v30  ;;  %v6676_v32 = vmul.f32 %v6236_v21, %v6257_v5  ;;  %v1228_v30 = vsel %vm1219_vm3, %v6379_v1, %v6333_v12 }
 0x213   : > { %10899 = vst [vmem:[#allocation94_spill] sm:$0xff] %v6588_v18  ;;  %10900 = vst [vmem:[#allocation95_spill] sm:$0xff] %v6590_v60  ;;  %v427_v60 = vld [vmem:[%s10481_s3] sm:$0xff]  ;;  %v428_v18 = vld [vmem:[%s10481_s3 + $0x8] sm:$0xff]  ;;  %vm1831_vm6 = vcmp.lt.s32.totalorder %v6603_v7, 113  ;;  %vm1694_vm7 = vcmp.lt.s32.totalorder %v6603_v7, 127 }
 0x214   : > { %2079 = vrot.lane.b32.xlu1 %v6145_v47, %s10685_s15  ;;  %v6621_v42 = vrot.slane %v428_v18, %v5700_v43  ;;  %v6624_v6 = vrot.slane %v427_v60, %v5703_v45  ;;  %v6627_v17 = vrot.slane %v428_v18, %v5703_v45  ;;  %v6643_v45 = vmul.f32 %v5980_v2, %v5900_v58 }
 0x215   : > { %10910 = vst [vmem:[#allocation104_spill] sm:$0xff] %v6652_v22  ;;  %v6664_v58 = vmul.f32 %v6223_v39, %v5960_v62  ;;  %10915 = vst [vmem:[#allocation109_spill] sm:$0xff] %v6676_v32  ;;  %v6695_v39 = vmul.f32 %v6236_v21, %v6271_v26  ;;  %v6699_v32 = vrot.slane %v427_v60, %v1987_v23  ;;  %vm1968_vm8 = vcmp.lt.s32.totalorder %v6603_v7, 112 }
 0x216   : > { %v6596_v9 = vpop.permute.xlu1 %1213  ;;  %v6598_v37 = vpop.permute.xlu0 %1334  ;;  %1946 = vrot.lane.b32.xlu0 %v6285_v10, %s10687_s14  ;;  %10907 = vst [vmem:[#allocation101_spill] sm:$0xff] %v6621_v42  ;;  %10908 = vst [vmem:[#allocation102_spill] sm:$0xff] %v6624_v6  ;;  %v1099_v21 = vsel %vm1090_vm2, %v6367_v14, %v6322_v52  ;;  %vm2105_vm9 = vcmp.lt.s32.totalorder %v6603_v7, 111 }
 0x217   : > { %10901 = vst [vmem:[#allocation96_spill] sm:$0xff] %v6596_v9  ;;  %10902 = vst [vmem:[#allocation97_spill] sm:$0xff] %v6598_v37  ;;  %v6614_v9 = vrot.slane %v427_v60, %v5700_v43  ;;  %v1850_v43 = vsub.s32 6, %v5692_v41 }
 0x218   : > { %2095 = vrot.lane.b32.xlu1 %v6202_v48, %s10685_s15  ;;  %10909 = vst [vmem:[#allocation103_spill] sm:$0xff] %v6627_v17  ;;  %10919 = vst [vmem:[#allocation113_spill] sm:$0xff] %v6695_v39  ;;  %v6718_v39 = vrot.slane %v428_v18, %v1987_v23 }
 0x219   : > { %10904 = vst [vmem:[#allocation98_spill] sm:$0xff] %v6614_v9  ;;  %10921 = vst [vmem:[#allocation115_spill] sm:$0xff] %v6699_v32 }
 0x21a   : > { %v6616_v37 = vpop.permute.xlu1 %1487  ;;  %v6618_v3 = vpop.permute.xlu0 %1350  ;;  %1962 = vrot.lane.b32.xlu0 %v6317_v54, %s10687_s14  ;;  %10922 = vst [vmem:[#allocation116_spill] sm:$0xff] %v6718_v39 }
 0x21b   : > { %10905 = vst [vmem:[#allocation99_spill] sm:$0xff] %v6616_v37  ;;  %10906 = vst [vmem:[#allocation100_spill] sm:$0xff] %v6618_v3  ;;  %v1375_v37 = vsub.s32 2, %v5692_v41  ;;  %v6639_v3 = vmul.f32 %v5980_v2, %v5853_v19  ;;  %v6660_v19 = vmul.f32 %v6024_v38, %v6202_v48  ;;  %v1713_v48 = vsub.s32 5, %v5692_v41 }
 0x21c   : > { %2167 = vperm.xlu1 %4988, %v6504_v35   ;;  %v6656_v35 = vmul.f32 %v6024_v38, %v6145_v47  ;;  %v1512_v47 = vsub.s32 3, %v5692_v41  ;;  %v6697_v41 = vrot.slane %v428_v18, %v1850_v43 }
 0x21d   : > { %10912 = vst [vmem:[#allocation106_spill] sm:$0xff] %v6660_v19  ;;  %v6681_v62 = vrot.slane %v427_v60, %v1375_v37  ;;  %v6683_v38 = vrot.slane %v428_v18, %v1375_v37  ;;  %v6685_v19 = vrot.slane %v427_v60, %v1850_v43  ;;  %v1220_v37 = vsel %vm1219_vm3, %v6333_v12, %v6379_v1 }
 0x21e   : > { %10911 = vst [vmem:[#allocation105_spill] sm:$0xff] %v6656_v35  ;;  %v6666_v2 = vpop.permute.xlu1 %1336  ;;  %v6668_v53 = vpop.permute.xlu0 %1068  ;;  %2038 = vperm.xlu0 %4987, %v6483_v25   ;;  %10920 = vst [vmem:[#allocation114_spill] sm:$0xff] %v6697_v41  ;;  %v1091_v43 = vsel %vm1090_vm2, %v6322_v52, %v6367_v14  ;;  %v1244_v1 = vmul.f32 %v6624_v6, %v1228_v30  ;;  %v6727_v35 = vrot.slane %v427_v60, %v1713_v48  ;;  %v10928_v52 = vld [vmem:[#allocation36_spill] sm:$0xff] }
 0x21f   : > { %10913 = vst [vmem:[#allocation107_spill] sm:$0xff] %v6666_v2  ;;  %10914 = vst [vmem:[#allocation108_spill] sm:$0xff] %v6668_v53  ;;  %v1365_v2 = vsel %vm1356_vm4, %v6354_v55, %v6320_v31  ;;  %v6725_v53 = vrot.slane %v428_v18, %v1512_v47  ;;  %v6735_v14 = vmul.f32 %v10928_v52, %v6285_v10 }
 0x220   : > { %10916 = vst [vmem:[#allocation110_spill] sm:$0xff] %v6681_v62  ;;  %10917 = vst [vmem:[#allocation111_spill] sm:$0xff] %v6683_v38  ;;  %1674 = vrot.lane.b32.xlu1 %v6351_v50, %s10731_s17  ;;  %v1245_v23 = vmul.f32 %v6627_v17, %v1220_v37  ;;  %v1115_v30 = vmul.f32 %v6614_v9, %v1099_v21  ;;  %v6758_v37 = vmul.f32 %v6251_v49, %v6351_v50 }
 0x221   : > { %10918 = vst [vmem:[#allocation112_spill] sm:$0xff] %v6685_v19  ;;  %4989 = vset.pattern.permute.xlu1 %v10884_v27  ;;  %v6723_v27 = vrot.slane %v427_v60, %v1512_v47  ;;  %10925 = vst [vmem:[#allocation119_spill] sm:$0xff] %v6725_v53  ;;  %v5302_v47 = vld [vmem:[%s10484_s6 + $0x10] sm:$0xff]  ;;  %v1381_v60 = vmul.f32 %v6681_v62, %v1365_v2  ;;  %v6762_v2 = vmul.f32 %v6251_v49, %v6363_v51 }
 0x222   : > { %v6720_v12 = vpop.permute.xlu1 %1352  ;;  %10926 = vst [vmem:[#allocation120_spill] sm:$0xff] %v6727_v35  ;;  %4990 = vset.pattern.permute.xlu0 %v10867_v8  ;;  %v6730_v22 = vpop.permute.xlu0 %1199  ;;  %10929 = vst [vmem:[#allocation36_spill] sm:$0xff] %v6735_v14  ;;  %v1221_v49 = vsel %vm1219_vm3, %v6394_v0, %v6429_v4  ;;  %v10939_v14 = vld [vmem:[#allocation22_spill] sm:$0xff] }
 0x223   : > { %10923 = vst [vmem:[#allocation117_spill] sm:$0xff] %v6720_v12  ;;  %10924 = vst [vmem:[#allocation118_spill] sm:$0xff] %v6723_v27  ;;  %v6738_v12 = vrot.slane %v428_v18, %v1713_v48  ;;  %2155 = vperm.xlu0 %4990, %v5302_v47   ;;  %v1229_v18 = vsel %vm1219_vm3, %v6429_v4, %v6394_v0  ;;  %v6754_v48 = vmul.f32 %v10928_v52, %v6317_v54  ;;  %v10936_v52 = vld [vmem:[#allocation30_spill] sm:$0xff] }
 0x224   : > { %10927 = vst [vmem:[#allocation121_spill] sm:$0xff] %v6730_v22  ;;  %1690 = vrot.lane.b32.xlu1 %v6363_v51, %s10731_s17  ;;  %v1116_v22 = vmul.f32 %v6621_v42, %v1091_v43  ;;  %10932 = vst [vmem:[#allocation124_spill] sm:$0xff] %v6758_v37  ;;  %v1357_v43 = vsel %vm1356_vm4, %v6320_v31, %v6354_v55  ;;  %v6772_v47 = vmul.f32 %v6308_v61, %v6374_v56  ;;  %v10938_v4 = vld [vmem:[#allocation18_spill] sm:$0xff] }
 0x225   : > { %10930 = vst [vmem:[#allocation122_spill] sm:$0xff] %v6738_v12  ;;  %10931 = vst [vmem:[#allocation123_spill] sm:$0xff] %v6754_v48  ;;  %v1292_v48 = vmul.f32 %v10936_v52, %v1244_v1  ;;  %v1100_v37 = vsel %vm1090_vm2, %v6421_v11, %v6386_v29  ;;  %v1293_v31 = vmul.f32 %v10936_v52, %v1245_v23  ;;  %v10941_v52 = vld [vmem:[#allocation14_spill] sm:$0xff] }
 0x226   : > { %10933 = vst [vmem:[#allocation125_spill] sm:$0xff] %v6762_v2  ;;  %v6768_v21 = vpop.permute.xlu1 %1070  ;;  %10935 = vst [vmem:[#allocation127_spill] sm:$0xff] %v6772_v47  ;;  %v6783_v2 = vpop.permute.xlu0 %1473  ;;  %v1092_v55 = vsel %vm1090_vm2, %v6386_v29, %v6421_v11  ;;  %v1246_v1 = vmul.f32 %v6624_v6, %v1229_v18  ;;  %v1382_v0 = vmul.f32 %v6683_v38, %v1357_v43 }
 0x227   : > { %10934 = vst [vmem:[#allocation126_spill] sm:$0xff] %v6768_v21  ;;  %10937 = vst [vmem:[#allocation30_spill] sm:$0xff] %v6783_v2  ;;  %2163 = vperm.xlu0 %4990, %v6452_v24   ;;  %v1429_v47 = vmul.f32 %v10938_v4, %v1381_v60  ;;  %v1171_v2 = vmul.f32 %v10939_v14, %v1115_v30  ;;  %v1172_v23 = vmul.f32 %v10939_v14, %v1116_v22 }
 0x228   : > { %1944 = vrot.lane.b32.xlu1 %v6257_v5, %s10687_s14  ;;  %v1494_v29 = vsel %vm1493_vm5, %v6343_v63, %v6388_v13  ;;  %v1502_v24 = vsel %vm1493_vm5, %v6388_v13, %v6343_v63  ;;  %v1117_v11 = vmul.f32 %v6614_v9, %v1100_v37  ;;  %v1247_v18 = vmul.f32 %v6627_v17, %v1221_v49 }
 0x229   : > { %v1832_v60 = vsel %vm1831_vm6, %v6331_v40, %v6365_v57  ;;  %v1840_v22 = vsel %vm1831_vm6, %v6365_v57, %v6331_v40  ;;  %v1118_v14 = vmul.f32 %v6621_v42, %v1092_v55  ;;  %v1366_v63 = vsel %vm1356_vm4, %v6431_v20, %v6407_v34 }
 0x22a   : > { %v6822_v13 = vpop.permute.xlu1 %1201  ;;  %v6824_v30 = vpop.permute.xlu0 %1084  ;;  %v1308_v37 = vadd.f32 %v1292_v48, %v1171_v2  ;;  %v1309_v43 = vadd.f32 %v1293_v31, %v1172_v23  ;;  %v1294_v49 = vmul.f32 %v10941_v52, %v1246_v1  ;;  %v1518_v40 = vmul.f32 %v6723_v27, %v1502_v24  ;;  %v10942_v31 = vld [vmem:[#allocation7_spill] sm:$0xff] }
 0x22b   : > { %10940 = vst [vmem:[#allocation18_spill] sm:$0xff] %v6822_v13  ;;  %1827 = vrot.lane.b32.xlu0 %v6363_v51, %s10729_s30  ;;  %v1519_v57 = vmul.f32 %v6725_v53, %v1494_v29  ;;  %v1358_v55 = vsel %vm1356_vm4, %v6407_v34, %v6431_v20  ;;  %v1503_v48 = vsel %vm1493_vm5, %v6437_v16, %v6405_v46 }
 0x22c   : > { %1960 = vrot.lane.b32.xlu1 %v6271_v26, %s10687_s14  ;;  %v1430_v2 = vmul.f32 %v10938_v4, %v1382_v0  ;;  %v1173_v1 = vmul.f32 %v10942_v31, %v1117_v11  ;;  %v1295_v23 = vmul.f32 %v10941_v52, %v1247_v18  ;;  %v1383_v24 = vmul.f32 %v6681_v62, %v1366_v63  ;;  %v10943_v52 = vld [vmem:[#allocation35_spill] sm:$0xff] }
 0x22d   : > { %v1856_v29 = vmul.f32 %v6685_v19, %v1832_v60  ;;  %v1857_v13 = vmul.f32 %v6697_v41, %v1840_v22  ;;  %v1174_v21 = vmul.f32 %v10942_v31, %v1118_v14  ;;  %v1495_v34 = vsel %vm1493_vm5, %v6405_v46, %v6437_v16 }
 0x22e   : > { %v6853_v20 = vpop.permute.xlu0 %1215  ;;  %v1310_v0 = vadd.f32 %v1294_v49, %v1173_v1  ;;  %v1384_v4 = vmul.f32 %v6683_v38, %v1358_v55  ;;  %v1520_v11 = vmul.f32 %v6723_v27, %v1503_v48  ;;  %v1445_v18 = vadd.f32 %v1429_v47, %v1308_v37  ;;  %v6863_v16 = vpop.permute.xlu1 %1475  ;;  %v10944_v55 = vld [vmem:[#allocation57_spill] sm:$0xff]  ;;  %v10946_v37 = vld [vmem:[#allocation40_spill] sm:$0xff] }
 0x22f   : > { %2081 = vrot.lane.b32.xlu0 %v6257_v5, %s10685_s15  ;;  %v1446_v60 = vadd.f32 %v1430_v2, %v1309_v43  ;;  %v1566_v22 = vmul.f32 %v6133_v36, %v1518_v40  ;;  %v1567_v46 = vmul.f32 %v6133_v36, %v1519_v57  ;;  %v1703_v14 = vsel %vm1694_vm7, %v6396_v28, %v6356_v44  ;;  %v10947_v36 = vld [vmem:[#allocation56_spill] sm:$0xff]  ;;  %v10948_v40 = vld [vmem:[#allocation55_spill] sm:$0xff]  ;;  %v10949_v1 = vld [vmem:[#allocation25_spill] sm:$0xff] }
 0x230   : > { %2034 = vperm.xlu1 %4989, %v6522_v33   ;;  %v1311_v63 = vadd.f32 %v1295_v23, %v1174_v21  ;;  %v1431_v49 = vmul.f32 %v10943_v52, %v1383_v24  ;;  %v1521_v5 = vmul.f32 %v6725_v53, %v1495_v34  ;;  %v6873_v47 = vmul.f32 %v6308_v61, %v10944_v55 }
 0x231   : > { %v6876_v43 = vmul.f32 %v10946_v37, %v1856_v29  ;;  %v1969_v57 = vsel %vm1968_vm8, %v10948_v40, %v10947_v36  ;;  %v1977_v21 = vsel %vm1968_vm8, %v10947_v36, %v10948_v40  ;;  %v1695_v61 = vsel %vm1694_vm7, %v6356_v44, %v6396_v28  ;;  %v10950_v36 = vld [vmem:[#allocation62_spill] sm:$0xff] }
 0x232   : > { %10945 = vst [vmem:[#allocation22_spill] sm:$0xff] %v6873_v47  ;;  %v6886_v48 = vpop.permute.xlu0 %1489  ;;  %v1432_v2 = vmul.f32 %v10943_v52, %v1384_v4  ;;  %v1447_v31 = vadd.f32 %v1431_v49, %v1310_v0  ;;  %v1568_v23 = vmul.f32 %v10949_v1, %v1520_v11  ;;  %v6897_v24 = vmul.f32 %v10946_v37, %v1857_v13  ;;  %v10951_v40 = vld [vmem:[#allocation58_spill] sm:$0xff]  ;;  %v10952_v4 = vld [vmem:[#allocation67_spill] sm:$0xff]  ;;  %v10956_v49 = vld [vmem:[#allocation65_spill] sm:$0xff] }
 0x233   : > { %2097 = vrot.lane.b32.xlu0 %v6271_v26, %s10685_s15  ;;  %v1583_v29 = vadd.f32 %v1567_v46, %v1446_v60  ;;  %v1720_v34 = vmul.f32 %v6738_v12, %v1703_v14  ;;  %v1696_v47 = vsel %vm1694_vm7, %v10951_v40, %v10950_v36  ;;  %v1582_v44 = vadd.f32 %v1566_v22, %v1445_v18  ;;  %v10953_v26 = vld [vmem:[#allocation75_spill] sm:$0xff]  ;;  %v6923_v22 = vpop.permute.xlu1 %1086 }
 0x234   : > { %1811 = vrot.lane.b32.xlu1 %v6351_v50, %s10729_s30  ;;  %v1448_v28 = vadd.f32 %v1432_v2, %v1311_v63  ;;  %v1569_v0 = vmul.f32 %v10949_v1, %v1521_v5  ;;  %v1230_v13 = vsel %vm1219_vm3, %v10953_v26, %v10952_v4  ;;  %v6913_v11 = vmul.f32 %v6699_v32, %v1969_v57  ;;  %v10957_v5 = vld [vmem:[#allocation73_spill] sm:$0xff] }
 0x235   : > { %4991 = vset.pattern.permute.xlu1 %v10867_v8  ;;  %v6916_v60 = vmul.f32 %v6718_v39, %v1977_v21  ;;  %v1719_v46 = vmul.f32 %v6727_v35, %v1695_v61  ;;  %v1222_v18 = vsel %vm1219_vm3, %v10952_v4, %v10953_v26  ;;  %v1584_v14 = vadd.f32 %v1568_v23, %v1447_v31  ;;  %v10958_v61 = vld [vmem:[#allocation38_spill] sm:$0xff] }
 0x236   : > { %10954 = vst [vmem:[#allocation14_spill] sm:$0xff] %v6913_v11  ;;  %v1704_v63 = vsel %vm1694_vm7, %v10950_v36, %v10951_v40  ;;  %v1721_v52 = vmul.f32 %v6727_v35, %v1696_v47  ;;  %v1101_v37 = vsel %vm1090_vm2, %v10957_v5, %v10956_v49  ;;  %v6934_v57 = vpop.permute.xlu0 %1338  ;;  %v1647_v21 = vadd.f32 %v6643_v45, %v1583_v29  ;;  %v10959_v36 = vld [vmem:[#allocation61_spill] sm:$0xff]  ;;  %v10960_v40 = vld [vmem:[#allocation59_spill] sm:$0xff] }
 0x237   : > { %10955 = vst [vmem:[#allocation7_spill] sm:$0xff] %v6916_v60  ;;  %2171 = vperm.xlu0 %4990, %v6522_v33   ;;  %v1768_v2 = vmul.f32 %v10958_v61, %v1720_v34  ;;  %v1093_v31 = vsel %vm1090_vm2, %v10956_v49, %v10957_v5  ;;  %v1248_v47 = vmul.f32 %v6624_v6, %v1230_v13  ;;  %v10963_v13 = vld [vmem:[#allocation66_spill] sm:$0xff] }
 0x238   : > { %1813 = vrot.lane.b32.xlu1 %v6374_v56, %s10729_s30  ;;  %v1646_v1 = vadd.f32 %v6639_v3, %v1582_v44  ;;  %v1585_v23 = vadd.f32 %v1569_v0, %v1448_v28  ;;  %v1833_v33 = vsel %vm1831_vm6, %v10960_v40, %v10959_v36  ;;  %v1249_v45 = vmul.f32 %v6627_v17, %v1222_v18  ;;  %v10961_v44 = vld [vmem:[#allocation50_spill] sm:$0xff]  ;;  %v10962_v0 = vld [vmem:[#allocation64_spill] sm:$0xff] }
 0x239   : > { %v1767_v29 = vmul.f32 %v10958_v61, %v1719_v46  ;;  %v1841_v34 = vsel %vm1831_vm6, %v10959_v36, %v10960_v40  ;;  %v1722_v4 = vmul.f32 %v6738_v12, %v1704_v63  ;;  %v1119_v26 = vmul.f32 %v6614_v9, %v1101_v37 }
 0x23a   : > { %v1648_v3 = vadd.f32 %v6664_v58, %v1584_v14  ;;  %v1769_v28 = vmul.f32 %v10961_v44, %v1721_v52  ;;  %v1367_v18 = vsel %vm1356_vm4, %v10963_v13, %v10962_v0  ;;  %v1120_v46 = vmul.f32 %v6621_v42, %v1093_v31  ;;  %v10964_v14 = vld [vmem:[#allocation15_spill] sm:$0xff]  ;;  %v6974_v52 = vpop.permute.xlu1 %1217  ;;  %v10966_v31 = vld [vmem:[#allocation77_spill] sm:$0xff]  ;;  %v6985_v40 = vpop.permute.xlu0 %1354 }
 0x23b   : > { %1950 = vrot.lane.b32.xlu0 %v6374_v56, %s10687_s14  ;;  %v1784_v49 = vadd.f32 %v1768_v2, %v1647_v21  ;;  %v1858_v5 = vmul.f32 %v6685_v19, %v1833_v33  ;;  %v1359_v58 = vsel %vm1356_vm4, %v10962_v0, %v10963_v13  ;;  %v1296_v63 = vmul.f32 %v10964_v14, %v1248_v47  ;;  %v10965_v2 = vld [vmem:[#allocation69_spill] sm:$0xff]  ;;  %v10968_v13 = vld [vmem:[#allocation24_spill] sm:$0xff] }
 0x23c   : > { %1829 = vrot.lane.b32.xlu1 %v10944_v55, %s10729_s30  ;;  %v1859_v37 = vmul.f32 %v6697_v41, %v1841_v34  ;;  %v1649_v61 = vadd.f32 %v6672_v59, %v1585_v23  ;;  %v1297_v21 = vmul.f32 %v10964_v14, %v1249_v45  ;;  %v1504_v36 = vsel %vm1493_vm5, %v10966_v31, %v10965_v2  ;;  %v10969_v45 = vld [vmem:[#allocation63_spill] sm:$0xff]  ;;  %v10970_v34 = vld [vmem:[#allocation60_spill] sm:$0xff] }
 0x23d   : > { %v10967_v33 = vmov 0   ;;  %v1770_v47 = vmul.f32 %v10961_v44, %v1722_v4  ;;  %v1385_v0 = vmul.f32 %v6681_v62, %v1367_v18  ;;  %v1175_v8 = vmul.f32 %v10968_v13, %v1119_v26  ;;  %v11029_v41 = vld [vmem:[#allocation107_spill] sm:$0xff] }
 0x23e   : > { %4993 = vset.pattern.permute.xlu0 %v10967_v33  ;;  %v1496_v59 = vsel %vm1493_vm5, %v10965_v2, %v10966_v31  ;;  %v1785_v23 = vadd.f32 %v1769_v28, %v1648_v3  ;;  %v1970_v14 = vsel %vm1968_vm8, %v10970_v34, %v10969_v45  ;;  %v1386_v60 = vmul.f32 %v6683_v38, %v1359_v58  ;;  %v10971_v28 = vld [vmem:[#allocation41_spill] sm:$0xff] }
 0x23f   : > { %v1176_v11 = vmul.f32 %v10968_v13, %v1120_v46  ;;  %1966 = vrot.lane.b32.xlu0 %v10944_v55, %s10687_s14  ;;  %v1783_v4 = vadd.f32 %v1767_v29, %v1646_v1  ;;  %v1978_v26 = vsel %vm1968_vm8, %v10969_v45, %v10970_v34  ;;  %v1312_v44 = vadd.f32 %v1296_v63, %v1175_v8  ;;  %v10973_v13 = vld [vmem:[#allocation19_spill] sm:$0xff]  ;;  %v7018_v63 = vpop.permute.xlu1 %1491 }
 0x240   : > { %v1522_v3 = vmul.f32 %v6723_v27, %v1504_v36  ;;  %2083 = vrot.lane.b32.xlu1 %v6285_v10, %s10685_s15  ;;  %v1906_v18 = vmul.f32 %v10971_v28, %v1858_v5  ;;  %v1523_v46 = vmul.f32 %v6725_v53, %v1496_v59  ;;  %v7013_v2 = vadd.f32 %v6897_v24, %v1784_v49  ;;  %v7026_v49 = vpop.permute.xlu0 %1805  ;;  %v10978_v59 = vld [vmem:[#allocation27_spill] sm:$0xff] }
 0x241   : > { %v1313_v58 = vadd.f32 %v1297_v21, %v1176_v11  ;;  %v1907_v1 = vmul.f32 %v10971_v28, %v1859_v37  ;;  %v1786_v29 = vadd.f32 %v1770_v47, %v1649_v61  ;;  %v1995_v31 = vmul.f32 %v6699_v32, %v1970_v14  ;;  %v10974_v11 = vld [vmem:[#allocation70_spill] sm:$0xff]  ;;  %v10976_v37 = vld [vmem:[#allocation76_spill] sm:$0xff]  ;;  %v10979_v14 = vld [vmem:[#allocation81_spill] sm:$0xff] }
 0x242   : > { %10972 = vst [vmem:[#allocation35_spill] sm:$0xff] %v7013_v2  ;;  %v1433_v8 = vmul.f32 %v10973_v13, %v1385_v0  ;;  %v1922_v36 = vadd.f32 %v1906_v18, %v1785_v23  ;;  %v1996_v10 = vmul.f32 %v6718_v39, %v1978_v26  ;;  %v1434_v5 = vmul.f32 %v10973_v13, %v1386_v60  ;;  %v10975_v21 = vld [vmem:[#allocation78_spill] sm:$0xff]  ;;  %v10977_v61 = vld [vmem:[#allocation68_spill] sm:$0xff]  ;;  %v10980_v26 = vld [vmem:[#allocation83_spill] sm:$0xff] }
 0x243   : > { %v1231_v24 = vsel %vm1219_vm3, %v10975_v21, %v10974_v11  ;;  %2087 = vrot.lane.b32.xlu0 %v6374_v56, %s10685_s15  ;;  %v1094_v47 = vsel %vm1090_vm2, %v10977_v61, %v10976_v37  ;;  %v1102_v60 = vsel %vm1090_vm2, %v10976_v37, %v10977_v61  ;;  %v1570_v23 = vmul.f32 %v10978_v59, %v1522_v3  ;;  %v10981_v18 = vld [vmem:[#allocation45_spill] sm:$0xff]  ;;  %v10982_v13 = vld [vmem:[#allocation79_spill] sm:$0xff]  ;;  %v11006_v39 = vld [vmem:[#allocation88_spill] sm:$0xff] }
 0x244   : > { %v1449_v0 = vadd.f32 %v1433_v8, %v1312_v44  ;;  %2099 = vrot.lane.b32.xlu1 %v6317_v54, %s10685_s15  ;;  %v1450_v45 = vadd.f32 %v1434_v5, %v1313_v58  ;;  %v1571_v34 = vmul.f32 %v10978_v59, %v1523_v46  ;;  %v1223_v56 = vsel %vm1219_vm3, %v10974_v11, %v10975_v21  ;;  %v10983_v8 = vld [vmem:[#allocation71_spill] sm:$0xff]  ;;  %v11007_v32 = vld [vmem:[#allocation94_spill] sm:$0xff]  ;;  %v11014_v2 = vld [vmem:[#allocation100_spill] sm:$0xff] }
 0x245   : > { %v1368_v28 = vsel %vm1356_vm4, %v10980_v26, %v10979_v14  ;;  %v2043_v44 = vmul.f32 %v10981_v18, %v1995_v31  ;;  %v1250_v3 = vmul.f32 %v6624_v6, %v1231_v24  ;;  %v1697_v54 = vsel %vm1694_vm7, %v10983_v8, %v10982_v13 }
 0x246   : > { %v1923_v58 = vadd.f32 %v1907_v1, %v1786_v29  ;;  %v2044_v46 = vmul.f32 %v10981_v18, %v1996_v10  ;;  %v1121_v5 = vmul.f32 %v6614_v9, %v1102_v60  ;;  %v1122_v11 = vmul.f32 %v6621_v42, %v1094_v47  ;;  %v7071_v10 = vpop.permute.xlu1 %1803 }
 0x247   : > { %v1705_v21 = vsel %vm1694_vm7, %v10982_v13, %v10983_v8  ;;  %2103 = vrot.lane.b32.xlu0 %v10944_v55, %s10685_s15  ;;  %v1586_v31 = vadd.f32 %v1570_v23, %v1449_v0  ;;  %v1251_v24 = vmul.f32 %v6627_v17, %v1223_v56  ;;  %v1360_v1 = vsel %vm1356_vm4, %v10979_v14, %v10980_v26  ;;  %v7077_v55 = vpop.permute.xlu0 %1821  ;;  %v10985_v0 = vld [vmem:[#allocation32_spill] sm:$0xff]  ;;  %v10990_v13 = vld [vmem:[#allocation87_spill] sm:$0xff]  ;;  %v10991_v8 = vld [vmem:[#allocation93_spill] sm:$0xff] }
 0x248   : > { %v1387_v29 = vmul.f32 %v6681_v62, %v1368_v28  ;;  %2175 = vperm.xlu1 %4991, %v6483_v25   ;;  %v7074_v37 = vadd.f32 %v2043_v44, %v1922_v36  ;;  %v1587_v61 = vadd.f32 %v1571_v34, %v1450_v45  ;;  %v1723_v47 = vmul.f32 %v6727_v35, %v1697_v54  ;;  %v10986_v56 = vld [vmem:[#allocation72_spill] sm:$0xff] }
 0x249   : > { %v7080_v60 = vadd.f32 %v6876_v43, %v1783_v4  ;;  %v1298_v59 = vmul.f32 %v10985_v0, %v1250_v3  ;;  %v1724_v23 = vmul.f32 %v6738_v12, %v1705_v21  ;;  %v10987_v14 = vld [vmem:[#allocation80_spill] sm:$0xff]  ;;  %v7088_v25 = vadd.f32 %v2044_v46, %v1923_v58 }
 0x24a   : > { %v1505_v26 = vsel %vm1493_vm5, %v10987_v14, %v10986_v56  ;;  %v10988_v36 = vld [vmem:[#allocation8_spill] sm:$0xff]  ;;  %v1497_v43 = vsel %vm1493_vm5, %v10986_v56, %v10987_v14  ;;  %v1388_v4 = vmul.f32 %v6683_v38, %v1360_v1  ;;  %v1299_v28 = vmul.f32 %v10985_v0, %v1251_v24  ;;  %v7124_v0 = vpop.permute.xlu1 %1819  ;;  %v10996_v56 = vld [vmem:[#allocation82_spill] sm:$0xff] }
 0x24b   : > { %10984 = vst [vmem:[#allocation57_spill] sm:$0xff] %v7080_v60  ;;  %v1177_v45 = vmul.f32 %v10988_v36, %v1121_v5  ;;  %v1178_v34 = vmul.f32 %v10988_v36, %v1122_v11  ;;  %v1650_v18 = vadd.f32 %v6647_v15, %v1586_v31  ;;  %v10989_v44 = vld [vmem:[#allocation20_spill] sm:$0xff]  ;;  %v1232_v54 = vsel %vm1219_vm3, %v10991_v8, %v10990_v13  ;;  %v10997_v14 = vld [vmem:[#allocation74_spill] sm:$0xff] }
 0x24c   : > { %v1435_v3 = vmul.f32 %v10989_v44, %v1387_v29  ;;  %1948 = vrot.lane.b32.xlu1 %v6351_v50, %s10687_s14  ;;  %v10992_v58 = vld [vmem:[#allocation104_spill] sm:$0xff]  ;;  %v1524_v21 = vmul.f32 %v6723_v27, %v1505_v26  ;;  %v1224_v15 = vsel %vm1219_vm3, %v10990_v13, %v10991_v8  ;;  %v1525_v1 = vmul.f32 %v6725_v53, %v1497_v43  ;;  %v10994_v29 = vld [vmem:[#allocation85_spill] sm:$0xff] }
 0x24d   : > { %v7107_v46 = vadd.f32 %v10992_v58, %v1587_v61  ;;  %v10993_v5 = vld [vmem:[#allocation52_spill] sm:$0xff]  ;;  %4992 = vset.pattern.permute.xlu1 %v10967_v33  ;;  %v1314_v31 = vadd.f32 %v1298_v59, %v1177_v45  ;;  %v10995_v61 = vld [vmem:[#allocation91_spill] sm:$0xff]  ;;  %v1698_v26 = vsel %vm1694_vm7, %v10997_v14, %v10996_v56  ;;  %v1436_v36 = vmul.f32 %v10989_v44, %v1388_v4  ;;  %v7136_v45 = vpop.permute.xlu0 %2089  ;;  %v10999_v44 = vld [vmem:[#allocation42_spill] sm:$0xff] }
 0x24e   : > { %v1771_v11 = vmul.f32 %v10993_v5, %v1723_v47  ;;  %v7117_v24 = vmul.f32 %v10993_v5, %v1724_v23  ;;  %v1103_v47 = vsel %vm1090_vm2, %v10995_v61, %v10994_v29  ;;  %v1095_v59 = vsel %vm1090_vm2, %v10994_v29, %v10995_v61  ;;  %v11000_v29 = vld [vmem:[#allocation84_spill] sm:$0xff] }
 0x24f   : > { %v1252_v23 = vmul.f32 %v6624_v6, %v1232_v54  ;;  %v1315_v43 = vadd.f32 %v1299_v28, %v1178_v34  ;;  %v1706_v13 = vsel %vm1694_vm7, %v10996_v56, %v10997_v14  ;;  %v1451_v8 = vadd.f32 %v1435_v3, %v1314_v31  ;;  %v11001_v54 = vld [vmem:[#allocation86_spill] sm:$0xff]  ;;  %v11003_v56 = vld [vmem:[#allocation96_spill] sm:$0xff] }
 0x250   : > { %v1253_v58 = vmul.f32 %v6627_v17, %v1224_v15  ;;  %1964 = vrot.lane.b32.xlu1 %v6363_v51, %s10687_s14  ;;  %v7145_v4 = vadd.f32 %v1771_v11, %v1650_v18  ;;  %v1572_v5 = vmul.f32 %v10999_v44, %v1524_v21  ;;  %v1369_v34 = vsel %vm1356_vm4, %v11001_v54, %v11000_v29  ;;  %v11002_v31 = vld [vmem:[#allocation90_spill] sm:$0xff]  ;;  %s11166_s14 = smov 111  }
 0x251   : > { %v1123_v28 = vmul.f32 %v6614_v9, %v1103_v47  ;;  %v1573_v61 = vmul.f32 %v10999_v44, %v1525_v1  ;;  %v1725_v3 = vmul.f32 %v6727_v35, %v1698_v26  ;;  %v1124_v15 = vmul.f32 %v6621_v42, %v1095_v59  ;;  %v11005_v1 = vld [vmem:[#allocation16_spill] sm:$0xff] }
 0x252   : > { %10998 = vst [vmem:[#allocation40_spill] sm:$0xff] %v7145_v4  ;;  %v1233_v18 = vsel %vm1219_vm3, %v11003_v56, %v11002_v31  ;;  %v1726_v21 = vmul.f32 %v6738_v12, %v1706_v13  ;;  %v1452_v14 = vadd.f32 %v1436_v36, %v1315_v43  ;;  %v1361_v47 = vsel %vm1356_vm4, %v11000_v29, %v11001_v54  ;;  %v11008_v36 = vld [vmem:[#allocation26_spill] sm:$0xff]  ;;  %v11009_v13 = vld [vmem:[#allocation89_spill] sm:$0xff]  ;;  %v7186_v29 = vpop.permute.xlu0 %1672  ;;  %v11020_v12 = vld [vmem:[#allocation92_spill] sm:$0xff] }
 0x253   : > { %v7160_v11 = vpop.permute.xlu1 %1889  ;;  %v1300_v44 = vmul.f32 %v11005_v1, %v1252_v23  ;;  %v1588_v26 = vadd.f32 %v1572_v5, %v1451_v8  ;;  %v1389_v59 = vmul.f32 %v6681_v62, %v1369_v34  ;;  %v1301_v33 = vmul.f32 %v11005_v1, %v1253_v58  ;;  %v11010_v8 = vld [vmem:[#allocation95_spill] sm:$0xff] }
 0x254   : > { %11004 = vst [vmem:[#allocation56_spill] sm:$0xff] %v7160_v11  ;;  %v1104_v11 = vsel %vm1090_vm2, %v11007_v32, %v11006_v39  ;;  %2085 = vrot.lane.b32.xlu1 %v6351_v50, %s10685_s15  ;;  %v1179_v43 = vmul.f32 %v11008_v36, %v1123_v28  ;;  %v1096_v23 = vsel %vm1090_vm2, %v11006_v39, %v11007_v32  ;;  %v11012_v28 = vld [vmem:[#allocation43_spill] sm:$0xff] }
 0x255   : > { %v1506_v58 = vsel %vm1493_vm5, %v11010_v8, %v11009_v13  ;;  %v1254_v5 = vmul.f32 %v6624_v6, %v1233_v18  ;;  %v1390_v50 = vmul.f32 %v6683_v38, %v1361_v47  ;;  %v1180_v54 = vmul.f32 %v11008_v36, %v1124_v15 }
 0x256   : > { %v1498_v32 = vsel %vm1493_vm5, %v11009_v13, %v11010_v8  ;;  %v1225_v39 = vsel %vm1219_vm3, %v11002_v31, %v11003_v56  ;;  %v7202_v18 = vmul.f32 %v11012_v28, %v1725_v3  ;;  %v7205_v1 = vmul.f32 %v11012_v28, %v1726_v21  ;;  %v11013_v8 = vld [vmem:[#allocation97_spill] sm:$0xff] }
 0x257   : > { %v7199_v34 = vpop.permute.xlu1 %2073  ;;  %v1316_v47 = vadd.f32 %v1300_v44, %v1179_v43  ;;  %v1125_v15 = vmul.f32 %v6614_v9, %v1104_v11  ;;  %v1317_v36 = vadd.f32 %v1301_v33, %v1180_v54  ;;  %v1126_v4 = vmul.f32 %v6621_v42, %v1096_v23  ;;  %v11015_v21 = vld [vmem:[#allocation33_spill] sm:$0xff] }
 0x258   : > { %11011 = vst [vmem:[#allocation55_spill] sm:$0xff] %v7199_v34  ;;  %v1526_v13 = vmul.f32 %v6723_v27, %v1506_v58  ;;  %v1370_v31 = vsel %vm1356_vm4, %v11014_v2, %v11013_v8  ;;  %2101 = vrot.lane.b32.xlu1 %v6363_v51, %s10685_s15  ;;  %v1527_v3 = vmul.f32 %v6725_v53, %v1498_v32  ;;  %v11016_v43 = vld [vmem:[#allocation37_spill] sm:$0xff] }
 0x259   : > { %v1255_v56 = vmul.f32 %v6627_v17, %v1225_v39  ;;  %v1302_v44 = vmul.f32 %v11015_v21, %v1254_v5  ;;  %v1362_v33 = vsel %vm1356_vm4, %v11013_v8, %v11014_v2  ;;  %v7223_v11 = vadd.f32 %v1573_v61, %v1452_v14  ;;  %v11017_v28 = vld [vmem:[#allocation105_spill] sm:$0xff]  ;;  %v11019_v39 = vld [vmem:[#allocation99_spill] sm:$0xff]  ;;  %v7240_v14 = vpop.permute.xlu0 %1688 }
 0x25a   : > { %v1437_v23 = vmul.f32 %v11016_v43, %v1389_v59  ;;  %v1438_v58 = vmul.f32 %v11016_v43, %v1390_v50  ;;  %v7228_v51 = vadd.f32 %v11017_v28, %v1588_v26  ;;  %v11018_v32 = vld [vmem:[#allocation9_spill] sm:$0xff]  ;;  %v1499_v5 = vsel %vm1493_vm5, %v11020_v12, %v11019_v39 }
 0x25b   : > { %v2076_v54 = vpop.permute.xlu1 %2075  ;;  %v1181_v60 = vmul.f32 %v11018_v32, %v1125_v15  ;;  %v1507_v2 = vsel %vm1493_vm5, %v11019_v39, %v11020_v12  ;;  %v1391_v61 = vmul.f32 %v6681_v62, %v1370_v31  ;;  %v1182_v59 = vmul.f32 %v11018_v32, %v1126_v4  ;;  %v11021_v8 = vld [vmem:[#allocation29_spill] sm:$0xff] }
 0x25c   : > { %v7243_v26 = vadd.f32 %v1437_v23, %v1316_v47  ;;  %v7245_v50 = vadd.f32 %v1438_v58, %v1317_v36  ;;  %v1392_v15 = vmul.f32 %v6683_v38, %v1362_v33  ;;  %v7249_v43 = vmul.f32 %v11021_v8, %v1526_v13  ;;  %v11022_v4 = vld [vmem:[#allocation121_spill] sm:$0xff]  ;;  %v11024_v23 = vld [vmem:[#allocation108_spill] sm:$0xff] }
 0x25d   : > { %v7252_v28 = vmul.f32 %v11021_v8, %v1527_v3  ;;  %v1303_v12 = vmul.f32 %v11015_v21, %v1255_v56  ;;  %v1318_v39 = vadd.f32 %v1302_v44, %v1181_v60  ;;  %v1528_v31 = vmul.f32 %v6723_v27, %v1507_v2  ;;  %v11023_v3 = vld [vmem:[#allocation21_spill] sm:$0xff]  ;;  %v7273_v56 = vld [vmem:[%s10481_s3 + $0x10] ss:$0 sm:$0xff]  ;;  %v7278_v21 = vld [vmem:[%s10481_s3 + $0x18] ss:$0 sm:$0xff] }
 0x25e   : > { %v1529_v35 = vmul.f32 %v6725_v53, %v1499_v5  ;;  %v1226_v47 = vsel %vm1219_vm3, %v11022_v4, %v6853_v20  ;;  %v1234_v36 = vsel %vm1219_vm3, %v6853_v20, %v11022_v4  ;;  %v1439_v33 = vmul.f32 %v11023_v3, %v1391_v61  ;;  %11025 = vst [vmem:[#allocation25_spill] sm:$0xff] %v7273_v56  ;;  %v11028_v4 = vld [vmem:[#allocation117_spill] sm:$0xff] }
 0x25f   : > { %v2092_v13 = vpop.permute.xlu1 %2091  ;;  %v1105_v60 = vsel %vm1090_vm2, %v6824_v30, %v11024_v23  ;;  %11026 = vst [vmem:[#allocation62_spill] sm:$0xff] %v7278_v21  ;;  %v7284_v58 = vpop.permute.xlu0 %1764  ;;  %v1440_v32 = vmul.f32 %v11023_v3, %v1392_v15  ;;  %v1097_v5 = vsel %vm1090_vm2, %v11024_v23, %v6824_v30  ;;  %v1319_v8 = vadd.f32 %v1303_v12, %v1182_v59  ;;  %v11030_v3 = vld [vmem:[#allocation49_spill] sm:$0xff] }
 0x260   : > { %v2107_v20 = vsel %vm2105_vm9, %v2076_v54, %v2092_v13  ;;  %v2115_v44 = vsel %vm2105_vm9, %v2092_v13, %v2076_v54  ;;  %11027 = vst [vmem:[#allocation58_spill] sm:$0xff] %v7284_v58  ;;  %v1363_v34 = vsel %vm1356_vm4, %v11029_v41, %v11028_v4  ;;  %v1256_v54 = vmul.f32 %v6624_v6, %v1234_v36 }
 0x261   : > { %v2132_v2 = vmul.f32 %v7273_v56, %v2107_v20  ;;  %v2133_v61 = vmul.f32 %v7278_v21, %v2115_v44  ;;  %v1257_v13 = vmul.f32 %v6627_v17, %v1226_v47  ;;  %v1371_v15 = vsel %vm1356_vm4, %v11028_v4, %v11029_v41  ;;  %v11032_v20 = vld [vmem:[#allocation44_spill] sm:$0xff]  ;;  %v11033_v56 = vld [vmem:[#allocation126_spill] sm:$0xff] }
 0x262   : > { %v1127_v30 = vmul.f32 %v6614_v9, %v1105_v60  ;;  %v7309_v44 = vmul.f32 %v11032_v20, %v1528_v31  ;;  %v7312_v36 = vmul.f32 %v11032_v20, %v1529_v35  ;;  %v1455_v47 = vadd.f32 %v1439_v33, %v1318_v39  ;;  %v11036_v33 = vld [vmem:[#allocation17_spill] sm:$0xff]  ;;  %v11038_v4 = vld [vmem:[#allocation18_spill] sm:$0xff] }
 0x263   : > { %v2180_v23 = vmul.f32 %v11030_v3, %v2132_v2  ;;  %v2181_v59 = vmul.f32 %v11030_v3, %v2133_v61  ;;  %v7306_v12 = vpop.permute.xlu1 %2159  ;;  %v1128_v58 = vmul.f32 %v6621_v42, %v1097_v5  ;;  %v1456_v21 = vadd.f32 %v1440_v32, %v1319_v8  ;;  %v11037_v61 = vld [vmem:[#allocation28_spill] sm:$0xff] }
 0x264   : > { %11031 = vst [vmem:[#allocation67_spill] sm:$0xff] %v7306_v12  ;;  %v1106_v41 = vsel %vm1090_vm2, %v6923_v22, %v11033_v56  ;;  %v7319_v60 = vpop.permute.xlu0 %1885  ;;  %v1393_v35 = vmul.f32 %v6681_v62, %v1371_v15  ;;  %v1394_v39 = vmul.f32 %v6683_v38, %v1363_v34  ;;  %v1304_v5 = vmul.f32 %v11036_v33, %v1256_v54 }
 0x265   : > { %v7322_v2 = vadd.f32 %v2181_v59, %v7088_v25  ;;  %v7325_v31 = vadd.f32 %v2180_v23, %v7074_v37  ;;  %v1305_v32 = vmul.f32 %v11036_v33, %v1257_v13  ;;  %v1183_v8 = vmul.f32 %v11037_v61, %v1127_v30  ;;  %v11042_v30 = vld [vmem:[#allocation30_spill] sm:$0xff] }
 0x266   : > { %v1235_v3 = vsel %vm1219_vm3, %v6974_v52, %v11038_v4  ;;  %v1184_v34 = vmul.f32 %v11037_v61, %v1128_v58  ;;  %v1098_v54 = vsel %vm1090_vm2, %v11033_v56, %v6923_v22  ;;  %v1129_v13 = vmul.f32 %v6614_v9, %v1106_v41 }
 0x267   : > { %11034 = vst [vmem:[#allocation75_spill] sm:$0xff] %v7322_v2  ;;  %11035 = vst [vmem:[#allocation65_spill] sm:$0xff] %v7325_v31  ;;  %v7336_v25 = vpop.permute.xlu1 %1670  ;;  %v7339_v37 = vmul.f32 0.70710677, %v7322_v2  ;;  %v7342_v15 = vmul.f32 0.70710677, %v7325_v31  ;;  %v1508_v23 = vsel %vm1493_vm5, %v6886_v48, %v11042_v30  ;;  %v1500_v59 = vsel %vm1493_vm5, %v11042_v30, %v6886_v48 }
 0x268   : > { %11039 = vst [vmem:[#allocation73_spill] sm:$0xff] %v7336_v25  ;;  %v1372_v58 = vsel %vm1356_vm4, %v6985_v40, %v6934_v57  ;;  %v7362_v20 = vpop.permute.xlu0 %1893  ;;  %v1320_v41 = vadd.f32 %v1304_v5, %v1183_v8  ;;  %v1321_v33 = vadd.f32 %v1305_v32, %v1184_v34  ;;  %v1227_v48 = vsel %vm1219_vm3, %v11038_v4, %v6974_v52  ;;  %v11044_v30 = vld [vmem:[#allocation39_spill] sm:$0xff] }
 0x269   : > { %11040 = vst [vmem:[#allocation38_spill] sm:$0xff] %v7339_v37  ;;  %11041 = vst [vmem:[#allocation61_spill] sm:$0xff] %v7342_v15  ;;  %v7365_v22 = vand.u32 2147483647, %v7339_v37  ;;  %v7368_v56 = vand.u32 2147483647, %v7342_v15  ;;  %v1258_v61 = vmul.f32 %v6624_v6, %v1235_v3  ;;  %v1441_v9 = vmul.f32 %v11044_v30, %v1393_v35 }
 0x26a   : > { %11043 = vst [vmem:[#allocation59_spill] sm:$0xff] %v7362_v20  ;;  %v1530_v12 = vmul.f32 %v6723_v27, %v1508_v23  ;;  %v1442_v5 = vmul.f32 %v11044_v30, %v1394_v39  ;;  %v1531_v32 = vmul.f32 %v6725_v53, %v1500_v59  ;;  %v1364_v52 = vsel %vm1356_vm4, %v6934_v57, %v6985_v40  ;;  %v11046_v4 = vld [vmem:[#allocation11_spill] sm:$0xff]  ;;  %v11047_v30 = vld [vmem:[#allocation34_spill] sm:$0xff] }
 0x26b   : > { %v7377_v20 = vpop.permute.xlu1 %1686  ;;  %v2277_v37 = vmul.f32 0.3275911, %v7365_v22  ;;  %v2276_v15 = vmul.f32 0.3275911, %v7368_v56  ;;  %v1395_v8 = vmul.f32 %v6681_v62, %v1372_v58  ;;  %v1130_v35 = vmul.f32 %v6621_v42, %v1098_v54  ;;  %v11048_v31 = vld [vmem:[#allocation31_spill] sm:$0xff]  ;;  %v11087_v62 = vld [vmem:[#allocation53_spill] sm:$0xff] }
 0x26c   : > { %11045 = vst [vmem:[#allocation50_spill] sm:$0xff] %v7377_v20  ;;  %v1185_v3 = vmul.f32 %v11046_v4, %v1129_v13  ;;  %v1259_v34 = vmul.f32 %v6627_v17, %v1227_v48  ;;  %v7391_v23 = vpop.permute.xlu0 %1956  ;;  %v1457_v25 = vadd.f32 %v1441_v9, %v1320_v41  ;;  %v1458_v39 = vadd.f32 %v1442_v5, %v1321_v33 }
 0x26d   : > { %v2293_v6 = vadd.f32 1.0, %v2277_v37  ;;  %v1306_v59 = vmul.f32 %v11047_v30, %v1258_v61  ;;  %v2292_v20 = vadd.f32 1.0, %v2276_v15  ;;  %v1578_v2 = vmul.f32 %v11048_v31, %v1530_v12  ;;  %v11049_v37 = vld [vmem:[#allocation23_spill] sm:$0xff] }
 0x26e   : > { %v1509_v57 = vsel %vm1493_vm5, %v7018_v63, %v6863_v16  ;;  %v1396_v40 = vmul.f32 %v6683_v38, %v1364_v52  ;;  %v1579_v13 = vmul.f32 %v11048_v31, %v1531_v32  ;;  %v1501_v9 = vsel %vm1493_vm5, %v6863_v16, %v7018_v63  ;;  %v11052_v32 = vld [vmem:[#allocation113_spill] sm:$0xff] }
 0x26f   : > { %v7400_v54 = vpop.permute.xlu1 %1760  ;;  %5104 = vrcp.f32 %v2293_v6  ;;  %v1443_v15 = vmul.f32 %v11049_v37, %v1395_v8  ;;  %v1590_v12 = vadd.f32 %v7249_v43, %v7243_v26  ;;  %v1591_v58 = vadd.f32 %v7252_v28, %v7245_v50  ;;  %v11050_v6 = vld [vmem:[#allocation106_spill] sm:$0xff] }
 0x270   : > { %5106 = vrcp.f32 %v2292_v20  ;;  %v1307_v41 = vmul.f32 %v11047_v30, %v1259_v34  ;;  %v1653_v33 = vadd.f32 %v11050_v6, %v7223_v11  ;;  %v7415_v31 = vpop.permute.xlu0 %1809  ;;  %v1592_v48 = vadd.f32 %v7309_v44, %v1455_v47 }
 0x271   : > { %v1593_v16 = vadd.f32 %v7312_v36, %v1456_v21  ;;  %v1322_v63 = vadd.f32 %v1306_v59, %v1185_v3  ;;  %v1532_v20 = vmul.f32 %v6723_v27, %v1509_v57  ;;  %v1186_v61 = vmul.f32 %v11046_v4, %v1130_v35  ;;  %v11055_v4 = vld [vmem:[#allocation123_spill] sm:$0xff]  ;;  %v11056_v59 = vld [vmem:[#allocation124_spill] sm:$0xff] }
 0x272   : > { %v1594_v26 = vadd.f32 %v1578_v2, %v1457_v25  ;;  %v1533_v43 = vmul.f32 %v6725_v53, %v1501_v9  ;;  %v1444_v50 = vmul.f32 %v11049_v37, %v1396_v40  ;;  %v7427_v11 = vadd.f32 %v7117_v24, %v7107_v46  ;;  %v11051_v2 = vld [vmem:[#allocation109_spill] sm:$0xff]  ;;  %v11053_v46 = vld [vmem:[#allocation46_spill] sm:$0xff]  ;;  %v11075_v27 = vld [vmem:[#allocation35_spill] sm:$0xff] }
 0x273   : > { %v7423_v28 = vpop.permute.xlu1 %1940  ;;  %v1595_v5 = vadd.f32 %v1579_v13, %v1458_v39  ;;  %v1459_v44 = vadd.f32 %v1443_v15, %v1322_v63  ;;  %v7431_v21 = vadd.f32 %v7202_v18, %v7228_v51  ;;  %v1323_v36 = vadd.f32 %v1307_v41, %v1186_v61  ;;  %v11054_v51 = vld [vmem:[#allocation36_spill] sm:$0xff]  ;;  %v11058_v37 = vld [vmem:[#allocation125_spill] sm:$0xff]  ;;  %v11060_v41 = vld [vmem:[#allocation55_spill] sm:$0xff] }
 0x274   : > { %v7434_v47 = vadd.f32 %v7205_v1, %v1653_v33  ;;  %v7437_v25 = vadd.f32 %v11051_v2, %v1590_v12  ;;  %v7440_v52 = vadd.f32 %v11052_v32, %v1591_v58  ;;  %v7442_v8 = vpop.permute.xlu0 %1825  ;;  %v1580_v24 = vmul.f32 %v11053_v46, %v1532_v20  ;;  %v11063_v61 = vld [vmem:[#allocation120_spill] sm:$0xff]  ;;  %v11065_v2 = vld [vmem:[#allocation25_spill] sm:$0xff] }
 0x275   : > { %v1834_v18 = vsel %vm1831_vm6, %v7071_v10, %v7124_v0  ;;  %v1656_v35 = vadd.f32 %v11054_v51, %v1592_v48  ;;  %v7451_v1 = vadd.f32 %v11055_v4, %v1593_v16  ;;  %v1581_v3 = vmul.f32 %v11053_v46, %v1533_v43  ;;  %v11062_v16 = vld [vmem:[#allocation114_spill] sm:$0xff]  ;;  %v11066_v46 = vld [vmem:[#allocation47_spill] sm:$0xff]  ;;  %v11074_v53 = vld [vmem:[#allocation57_spill] sm:$0xff] }
 0x276   : > { %v1460_v34 = vadd.f32 %v1444_v50, %v1323_v36  ;;  %v1842_v39 = vsel %vm1831_vm6, %v7124_v0, %v7071_v10  ;;  %v7461_v57 = vadd.f32 %v11056_v59, %v1594_v26  ;;  %v1596_v40 = vadd.f32 %v1580_v24, %v1459_v44  ;;  %v11064_v44 = vld [vmem:[#allocation122_spill] sm:$0xff]  ;;  %v11068_v4 = vld [vmem:[#allocation127_spill] sm:$0xff] }
 0x277   : > { %v7458_v30 = vpop.permute.xlu1 %1942  ;;  %v1835_v13 = vsel %vm1831_vm6, %v7026_v49, %v7077_v55  ;;  %v1700_v9 = vsel %vm1694_vm7, %v7186_v29, %v7240_v14  ;;  %v7472_v15 = vadd.f32 %v11058_v37, %v1595_v5  ;;  %v1860_v0 = vmul.f32 %v6685_v19, %v1834_v18  ;;  %v11067_v18 = vld [vmem:[#allocation62_spill] sm:$0xff] }
 0x278   : > { %11057 = vst [vmem:[#allocation64_spill] sm:$0xff] %v7461_v57  ;;  %v1843_v12 = vsel %vm1831_vm6, %v7077_v55, %v7026_v49  ;;  %v1708_v58 = vsel %vm1694_vm7, %v7240_v14, %v7186_v29  ;;  %v2106_v6 = vsel %vm2105_vm9, %v11060_v41, %v7136_v45  ;;  %v7489_v33 = vpop.permute.xlu0 %1901  ;;  %v1861_v63 = vmul.f32 %v11062_v16, %v1842_v39 }
 0x279   : > { %11059 = vst [vmem:[#allocation66_spill] sm:$0xff] %v7472_v15  ;;  %v7474_v10 = vpop.eup %5104  ;;  %11061 = vst [vmem:[#allocation15_spill] sm:$0xff] %v7489_v33  ;;  %v2114_v49 = vsel %vm2105_vm9, %v7136_v45, %v11060_v41  ;;  %v2469_v29 = vsub.f32 0.0, %v7365_v22  ;;  %v1597_v14 = vadd.f32 %v1581_v3, %v1460_v34  ;;  %v1862_v20 = vmul.f32 %v6685_v19, %v1835_v13  ;;  %v11070_v41 = vld [vmem:[#allocation14_spill] sm:$0xff] }
 0x27a   : > { %v7491_v48 = vpop.eup %5106  ;;  %v2325_v55 = vmul.f32 1.0614054, %v7474_v10  ;;  %v1729_v26 = vmul.f32 %v11063_v61, %v1700_v9  ;;  %v1863_v5 = vmul.f32 %v11062_v16, %v1843_v12  ;;  %v1730_v36 = vmul.f32 %v11064_v44, %v1708_v58  ;;  %v11069_v12 = vld [vmem:[#allocation51_spill] sm:$0xff] }
 0x27b   : > { %v7502_v43 = vpop.permute.xlu1 %1958  ;;  %v2324_v50 = vmul.f32 1.0614054, %v7491_v48  ;;  %v2130_v32 = vmul.f32 %v11065_v2, %v2106_v6  ;;  %v1908_v24 = vmul.f32 %v11066_v46, %v1860_v0  ;;  %v2131_v51 = vmul.f32 %v11067_v18, %v2114_v49  ;;  %v11071_v0 = vld [vmem:[#allocation7_spill] sm:$0xff] }
 0x27c   : > { %v2341_v45 = vadd.f32 -1.4531521, %v2325_v55  ;;  %v7511_v3 = vadd.f32 %v11068_v4, %v1596_v40  ;;  %v1909_v39 = vmul.f32 %v11066_v46, %v1861_v63  ;;  %v2485_v9 = vmul.f32 %v2469_v29, %v7365_v22  ;;  %v11072_v63 = vld [vmem:[#allocation48_spill] sm:$0xff]  ;;  %v11073_v4 = vld [vmem:[#allocation22_spill] sm:$0xff] }
 0x27d   : > { %v2340_v34 = vadd.f32 -1.4531521, %v2324_v50  ;;  %v2011_v59 = vpop.permute.xlu0 %2010  ;;  %v2468_v37 = vsub.f32 0.0, %v7368_v56  ;;  %v1777_v58 = vmul.f32 %v11069_v12, %v1729_v26  ;;  %v1778_v50 = vmul.f32 %v11069_v12, %v1730_v36 }
 0x27e   : > { %v2357_v13 = vmul.f32 %v7474_v10, %v2341_v45  ;;  %v2041_v6 = vmul.f32 %v2011_v59, %v11070_v41  ;;  %v2042_v55 = vmul.f32 %v2011_v59, %v11071_v0  ;;  %v2178_v46 = vmul.f32 %v11072_v63, %v2130_v32  ;;  %v11076_v59 = vld [vmem:[#allocation40_spill] sm:$0xff] }
 0x27f   : > { %v7520_v49 = vpop.permute.xlu1 %2030  ;;  %v2356_v40 = vmul.f32 %v7491_v48, %v2340_v34  ;;  %v7526_v45 = vadd.f32 %v11073_v4, %v1597_v14  ;;  %v2179_v29 = vmul.f32 %v11072_v63, %v2131_v51  ;;  %v7532_v0 = vadd.f32 %v1908_v24, %v11076_v59 }
 0x280   : > { %v2373_v22 = vadd.f32 1.4214138, %v2357_v13  ;;  %v2057_v26 = vadd.f32 %v2041_v6, %v11074_v53  ;;  %v2058_v41 = vadd.f32 %v2042_v55, %v11075_v27  ;;  %v2504_v34 = vmul.f32 1.442695, %v2485_v9 }
 0x281   : > { %v2372_v17 = vadd.f32 1.4214138, %v2356_v40  ;;  %v7534_v38 = vpop.permute.xlu0 %2022  ;;  %v2484_v32 = vmul.f32 %v2468_v37, %v7368_v56  ;;  %v7539_v14 = vadd.f32 %v1909_v39, %v7427_v11  ;;  %v7541_v13 = vadd.f32 %v1777_v58, %v1656_v35  ;;  %v11077_v35 = vld [vmem:[#allocation75_spill] sm:$0xff]  ;;  %v11078_v37 = vld [vmem:[#allocation65_spill] sm:$0xff] }
 0x282   : > { %v2389_v36 = vmul.f32 %v7474_v10, %v2373_v22  ;;  %v7545_v53 = vadd.f32 %v2179_v29, %v2058_v41  ;;  %v7547_v27 = vadd.f32 %v2178_v46, %v2057_v26  ;;  %v1910_v24 = vmul.f32 %v7319_v60, %v1862_v20 }
 0x283   : > { %v7543_v51 = vpop.permute.xlu1 %1807  ;;  %v1911_v12 = vmul.f32 %v7319_v60, %v1863_v5  ;;  %v2388_v9 = vmul.f32 %v7491_v48, %v2372_v17  ;;  %v7553_v56 = vadd.f32 %v1778_v50, %v7451_v1  ;;  %v7559_v39 = vmul.f32 0.5, %v11077_v35  ;;  %v11079_v1 = vld [vmem:[#allocation50_spill] sm:$0xff]  ;;  %v11080_v5 = vld [vmem:[#allocation73_spill] sm:$0xff] }
 0x284   : > { %v2405_v6 = vadd.f32 -0.28449672, %v2389_v36  ;;  %v7556_v11 = vmul.f32 0.70710677, %v7545_v53  ;;  %v7562_v58 = vmul.f32 0.5, %v11078_v37  ;;  %5108 = vpow2.f32 %v2504_v34 }
 0x285   : > { %v7564_v55 = vpop.permute.xlu0 %2026  ;;  %v7568_v60 = vmul.f32 0.70710677, %v7547_v27  ;;  %v2502_v17 = vmul.f32 1.442695, %v2484_v32  ;;  %v1699_v40 = vsel %vm1694_vm7, %v11080_v5, %v11079_v1  ;;  %v1707_v50 = vsel %vm1694_vm7, %v11079_v1, %v11080_v5 }
 0x286   : > { %v2421_v20 = vmul.f32 %v7474_v10, %v2405_v6  ;;  %v7579_v46 = vand.u32 2147483647, %v7556_v11  ;;  %v2404_v4 = vadd.f32 -0.28449672, %v2388_v9  ;;  %v1926_v22 = vadd.f32 %v1910_v24, %v7431_v21  ;;  %v11082_v6 = vld [vmem:[#allocation116_spill] sm:$0xff] }
 0x287   : > { %v1824_v63 = vpop.permute.xlu1 %1823  ;;  %v7583_v29 = vadd.f32 %v1911_v12, %v7434_v47  ;;  %v1971_v26 = vsel %vm1968_vm8, %v7423_v28, %v7391_v23  ;;  %v1979_v41 = vsel %vm1968_vm8, %v7391_v23, %v7423_v28  ;;  %v1837_v59 = vsel %vm1831_vm6, %v7415_v31, %v7442_v8  ;;  %v11081_v28 = vld [vmem:[#allocation115_spill] sm:$0xff] }
 0x288   : > { %v1845_v21 = vsel %vm1831_vm6, %v7442_v8, %v7415_v31  ;;  %v2275_v47 = vmul.f32 0.3275911, %v7579_v46  ;;  %v2437_v36 = vadd.f32 0.2548296, %v2421_v20  ;;  %v1727_v34 = vmul.f32 %v11063_v61, %v1699_v40  ;;  %v11084_v40 = vld [vmem:[#allocation38_spill] sm:$0xff] }
 0x289   : > { %v1728_v32 = vmul.f32 %v11064_v44, %v1707_v50  ;;  %v7604_v24 = vpop.permute.xlu0 %2093  ;;  %v7607_v23 = vand.u32 2147483647, %v7568_v60  ;;  %5110 = vpow2.f32 %v2502_v17  ;;  %v1997_v12 = vmul.f32 %v11081_v28, %v1971_v26 }
 0x28a   : > { %v1998_v9 = vmul.f32 %v11082_v6, %v1979_v41  ;;  %v2291_v31 = vadd.f32 1.0, %v2275_v47  ;;  %v2420_v8 = vmul.f32 %v7491_v48, %v2404_v4  ;;  %v1866_v37 = vmul.f32 %v6685_v19, %v1837_v59  ;;  %v11085_v4 = vld [vmem:[#allocation54_spill] sm:$0xff] }
 0x28b   : > { %v7611_v35 = vpop.permute.xlu1 %1897  ;;  %v1867_v20 = vmul.f32 %v11062_v16, %v1845_v21  ;;  %v1972_v1 = vsel %vm1968_vm8, %v7458_v30, %v7502_v43  ;;  %v2274_v17 = vmul.f32 0.3275911, %v7607_v23  ;;  %v1980_v5 = vsel %vm1968_vm8, %v7502_v43, %v7458_v30  ;;  %v11086_v21 = vld [vmem:[#allocation61_spill] sm:$0xff] }
 0x28c   : > { %11083 = vst [vmem:[#allocation69_spill] sm:$0xff] %v7611_v35  ;;  %vm2229_vm10 = vcmp.ge.f32.partialorder %v11084_v40, 0.0  ;;  %5112 = vrcp.f32 %v2291_v31  ;;  %v2453_v50 = vmul.f32 %v7474_v10, %v2437_v36  ;;  %v1775_v26 = vmul.f32 %v11085_v4, %v1727_v34  ;;  %v11088_v36 = vld [vmem:[#allocation59_spill] sm:$0xff] }
 0x28d   : > { %v1776_v41 = vmul.f32 %v11085_v4, %v1728_v32  ;;  %v1677_v59 = vpop.permute.xlu0 %1676  ;;  %vm2228_vm11 = vcmp.ge.f32.partialorder %v11086_v21, 0.0  ;;  %v2290_v47 = vadd.f32 1.0, %v2274_v17  ;;  %v2045_v42 = vmul.f32 %v11087_v62, %v1997_v12  ;;  %v11090_v21 = vld [vmem:[#allocation56_spill] sm:$0xff] }
 0x28e   : > { %v1999_v35 = vmul.f32 %v11081_v28, %v1972_v1  ;;  %v1836_v30 = vsel %vm1831_vm6, %v7543_v51, %v1824_v63  ;;  %v2436_v31 = vadd.f32 0.2548296, %v2420_v8  ;;  %v5109_v33 = vpop.eup %5108  ;;  %v2046_v10 = vmul.f32 %v11087_v62, %v1998_v9 }
 0x28f   : > { %v2078_v43 = vpop.permute.xlu1 %2077  ;;  %v1914_v34 = vmul.f32 %v11088_v36, %v1866_v37  ;;  %v1915_v32 = vmul.f32 %v11088_v36, %v1867_v20  ;;  %v2000_v4 = vmul.f32 %v11082_v6, %v1980_v5  ;;  %v1844_v12 = vsel %vm1831_vm6, %v1824_v63, %v7543_v51 }
 0x290   : > { %v2047_v17 = vmul.f32 %v7534_v38, %v1999_v35  ;;  %v2533_v1 = vmul.f32 %v5109_v33, %v2453_v50  ;;  %5114 = vrcp.f32 %v2290_v47  ;;  %v1864_v8 = vmul.f32 %v6685_v19, %v1836_v30 }
 0x291   : > { %v2048_v15 = vmul.f32 %v7534_v38, %v2000_v4  ;;  %v1693_v57 = vpop.permute.xlu0 %1692  ;;  %v11089_v62 = vmov -1.0   ;;  %v2467_v37 = vsub.f32 0.0, %v7579_v46  ;;  %v1791_v20 = vadd.f32 %v1775_v26, %v7437_v25 }
 0x292   : > { %v2245_v9 = vsel %vm2229_vm10, 1.0, %v11089_v62  ;;  %v1792_v35 = vadd.f32 %v1776_v41, %v7440_v52  ;;  %v2244_v33 = vsel %vm2228_vm11, 1.0, %v11089_v62  ;;  %v2452_v38 = vmul.f32 %v7491_v48, %v2436_v31 }
 0x293   : > { %v2080_v5 = vpop.permute.xlu1 %2079  ;;  %v5111_v51 = vpop.eup %5110  ;;  %v1865_v63 = vmul.f32 %v11062_v16, %v1844_v12  ;;  %v7657_v50 = vadd.f32 %v2045_v42, %v7532_v0  ;;  %v7660_v40 = vadd.f32 %v2046_v10, %v7539_v14  ;;  %vm2227_vm12 = vcmp.ge.f32.partialorder %v7556_v11, 0.0 }
 0x294   : > { %v7664_v25 = vadd.f32 %v1914_v34, %v7541_v13  ;;  %v7667_v52 = vadd.f32 %v1915_v32, %v7553_v56  ;;  %v2063_v26 = vadd.f32 %v2047_v17, %v1926_v22  ;;  %v2549_v41 = vsub.f32 1.0, %v2533_v1 }
 0x295   : > { %v2064_v48 = vadd.f32 %v2048_v15, %v7583_v29  ;;  %v1912_v47 = vmul.f32 %v11090_v21, %v1864_v8  ;;  %v1947_v30 = vpop.permute.xlu0 %1946  ;;  %v2483_v42 = vmul.f32 %v2467_v37, %v7579_v46  ;;  %v7673_v0 = vmul.f32 0.5, %v7545_v53  ;;  %v11092_v8 = vld [vmem:[#allocation67_spill] sm:$0xff] }
 0x296   : > { %v7675_v14 = vpop.eup %5112  ;;  %v7678_v13 = vsel %vm2227_vm12, 1.0, %v11089_v62  ;;  %vm2226_vm13 = vcmp.ge.f32.partialorder %v7568_v60, 0.0  ;;  %v2532_v56 = vmul.f32 %v5111_v51, %v2452_v38  ;;  %v7682_v22 = vmul.f32 0.5, %v7547_v27 }
 0x297   : > { %v2096_v11 = vpop.permute.xlu1 %2095  ;;  %v1913_v15 = vmul.f32 %v11090_v21, %v1865_v63  ;;  %v2466_v29 = vsub.f32 0.0, %v7607_v23  ;;  %v2323_v60 = vmul.f32 1.0614054, %v7675_v14  ;;  %v2565_v36 = vmul.f32 %v2549_v41, %v2245_v9 }
 0x298   : > { %11091 = vst [vmem:[#allocation77_spill] sm:$0xff] %v7682_v22  ;;  %v2109_v46 = vsel %vm2105_vm9, %v2080_v5, %v2096_v11  ;;  %v2117_v53 = vsel %vm2105_vm9, %v2096_v11, %v2080_v5  ;;  %v7693_v34 = vadd.f32 %v1912_v47, %v1791_v20  ;;  %v1702_v27 = vsel %vm1694_vm7, %v1677_v59, %v1693_v57 }
 0x299   : > { %v2136_v31 = vmul.f32 %v11065_v2, %v2109_v46  ;;  %v2137_v10 = vmul.f32 %v11067_v18, %v2117_v53  ;;  %v1963_v32 = vpop.permute.xlu0 %1962  ;;  %v2500_v4 = vmul.f32 1.442695, %v2483_v42  ;;  %v7698_v17 = vsel %vm2226_vm13, 1.0, %v11089_v62 }
 0x29a   : > { %v7700_v12 = vpop.eup %5114  ;;  %v1710_v1 = vsel %vm1694_vm7, %v1693_v57, %v1677_v59  ;;  %v2548_v20 = vsub.f32 1.0, %v2532_v56  ;;  %v2108_v38 = vsel %vm2105_vm9, %v2078_v43, %v7604_v24  ;;  %v2116_v51 = vsel %vm2105_vm9, %v7604_v24, %v2078_v43 }
 0x29b   : > { %v2184_v37 = vmul.f32 %v11092_v8, %v2136_v31  ;;  %v2185_v5 = vmul.f32 %v11092_v8, %v2137_v10  ;;  %v7706_v9 = vpop.permute.xlu1 %2167  ;;  %v2339_v63 = vadd.f32 -1.4531521, %v2323_v60  ;;  %v2482_v41 = vmul.f32 %v2466_v29, %v7607_v23  ;;  %v7742_v60 = vld [vmem:[%s10486_s8 + $0x8] sm:$0xff] }
 0x29c   : > { %11093 = vst [vmem:[#allocation24_spill] sm:$0xff] %v7706_v9  ;;  %v1733_v57 = vmul.f32 %v11063_v61, %v1702_v27  ;;  %v2597_v47 = vadd.f32 1.0, %v2565_v36  ;;  %v1734_v42 = vmul.f32 %v11064_v44, %v1710_v1  ;;  %v1974_v11 = vsel %vm1968_vm8, %v1947_v30, %v1963_v32  ;;  %v7747_v36 = vld [vmem:[%s10486_s8] sm:$0xff]  ;;  %v11095_v27 = vld [vmem:[#allocation58_spill] sm:$0xff]  ;;  %3243 = vperm.xlu0 %4993, %v7742_v60  }
 0x29d   : > { %v7716_v59 = vadd.f32 %v2184_v37, %v2063_v26  ;;  %v7718_v21 = vadd.f32 %v2185_v5, %v2064_v48  ;;  %v7723_v56 = vpop.permute.xlu0 %2038  ;;  %v2355_v46 = vmul.f32 %v7675_v14, %v2339_v63  ;;  %v2322_v24 = vmul.f32 1.0614054, %v7700_v12  ;;  %3238 = vperm.xlu1 %4992, %v7747_v36   ;;  %v7763_v37 = vld [vmem:[%s10486_s8 + $0x20] sm:$0xff]  ;;  %v7768_v5 = vld [vmem:[%s10486_s8 + $0x10] sm:$0xff] }
 0x29e   : > { %11094 = vst [vmem:[#allocation63_spill] sm:$0xff] %v7723_v56  ;;  %v1982_v26 = vsel %vm1968_vm8, %v1963_v32, %v1947_v30  ;;  %v2564_v53 = vmul.f32 %v2548_v20, %v2244_v33  ;;  %v7737_v29 = vadd.f32 %v1913_v15, %v1792_v35  ;;  %5116 = vpow2.f32 %v2500_v4 }
 0x29f   : > { %v7728_v23 = vmul.f32 0.70710677, %v7716_v59  ;;  %v7731_v43 = vmul.f32 0.70710677, %v7718_v21  ;;  %v7735_v48 = vpop.permute.xlu1 %1674  ;;  %v2371_v31 = vadd.f32 1.4214138, %v2355_v46  ;;  %v1781_v30 = vmul.f32 %v11095_v27, %v1733_v57 }
 0x2a0   : > { %v2498_v10 = vmul.f32 1.442695, %v2482_v41  ;;  %v2003_v33 = vmul.f32 %v11081_v28, %v1974_v11  ;;  %v2134_v15 = vmul.f32 %v11065_v2, %v2108_v38  ;;  %v2135_v4 = vmul.f32 %v11067_v18, %v2116_v51  ;;  %3258 = vperm.xlu0 %4993, %v7763_v37  }
 0x2a1   : > { %v2264_v32 = vand.u32 2147483647, %v7728_v23  ;;  %v7752_v35 = vand.u32 2147483647, %v7731_v43  ;;  %v2004_v1 = vmul.f32 %v11082_v6, %v1982_v26  ;;  %v2338_v8 = vadd.f32 -1.4531521, %v2322_v24  ;;  %3248 = vperm.xlu1 %4992, %v7768_v5  }
 0x2a2   : > { %v1782_v20 = vmul.f32 %v11095_v27, %v1734_v42  ;;  %v2156_v38 = vpop.permute.xlu0 %2155  ;;  %v2387_v51 = vmul.f32 %v7675_v14, %v2371_v31  ;;  %v2596_v57 = vadd.f32 1.0, %v2564_v53  ;;  %v7774_v26 = vmul.f32 %v2597_v47, %v7559_v39 }
 0x2a3   : > { %v2281_v63 = vmul.f32 0.3275911, %v7752_v35  ;;  %v1691_v41 = vpop.permute.xlu1 %1690  ;;  %v2280_v11 = vmul.f32 0.3275911, %v2264_v32  ;;  %v2182_v46 = vmul.f32 %v2156_v38, %v2134_v15  ;;  %v2183_v24 = vmul.f32 %v2156_v38, %v2135_v4 }
 0x2a4   : > { %v7777_v9 = vadd.f32 %v1781_v30, %v7511_v3  ;;  %v2051_v22 = vmul.f32 %v7520_v49, %v2003_v33  ;;  %5118 = vpow2.f32 %v2498_v10  ;;  %v2052_v42 = vmul.f32 %v7520_v49, %v2004_v1  ;;  %v7791_v3 = vld [vmem:[%s10486_s8 + $0x30] sm:$0xff] }
 0x2a5   : > { %v2297_v56 = vadd.f32 1.0, %v2281_v63  ;;  %v2198_v53 = vadd.f32 %v2182_v46, %v7657_v50  ;;  %v7785_v31 = vadd.f32 %v2183_v24, %v7660_v40  ;;  %v2354_v39 = vmul.f32 %v7700_v12, %v2338_v8  ;;  %3268 = vperm.xlu0 %4993, %v7791_v3  }
 0x2a6   : > { %v7794_v47 = vadd.f32 %v1782_v20, %v7526_v45  ;;  %v2472_v10 = vsub.f32 0.0, %v2264_v32  ;;  %v7796_v27 = vpop.permute.xlu0 %2163  ;;  %v2403_v49 = vadd.f32 -0.28449672, %v2387_v51  ;;  %v7799_v50 = vmul.f32 %v2596_v57, %v7562_v58  ;;  %v7809_v45 = vld [vmem:[%s10486_s8 + $0x18] sm:$0xff] }
 0x2a7   : > { %v1945_v30 = vpop.permute.xlu1 %1944  ;;  %v2296_v40 = vadd.f32 1.0, %v2280_v11  ;;  %5120 = vrcp.f32 %v2297_v56  ;;  %v7801_v33 = vmul.f32 0.70710677, %v2198_v53  ;;  %v7804_v15 = vmul.f32 0.70710677, %v7785_v31  ;;  %3253 = vperm.xlu1 %4992, %v7809_v45  }
 0x2a8   : > { %11096 = vst [vmem:[#allocation60_spill] sm:$0xff] %v7794_v47  ;;  %v2473_v4 = vsub.f32 0.0, %v7752_v35  ;;  %v7813_v1 = vadd.f32 %v2051_v22, %v7664_v25  ;;  %v7816_v58 = vmul.f32 0.5, %v7718_v21  ;;  %v7819_v56 = vmul.f32 0.5, %v7716_v59  ;;  %v5117_v8 = vpop.eup %5116  ;;  %v7831_v25 = vld [vmem:[%s10486_s8 + $0x28] sm:$0xff] }
 0x2a9   : > { %v7824_v20 = vadd.f32 %v2052_v42, %v7667_v52  ;;  %v2262_v63 = vand.u32 2147483647, %v7801_v33  ;;  %v2370_v38 = vadd.f32 1.4214138, %v2354_v39  ;;  %vm2233_vm14 = vcmp.ge.f32.partialorder %v7731_v43, 0.0 }
 0x2aa   : > { %11097 = vst [vmem:[#allocation41_spill] sm:$0xff] %v7813_v1  ;;  %11098 = vst [vmem:[#allocation19_spill] sm:$0xff] %v7816_v58  ;;  %v2488_v22 = vmul.f32 %v2472_v10, %v2264_v32  ;;  %v2263_v59 = vand.u32 2147483647, %v7804_v15  ;;  %v7834_v21 = vpop.permute.xlu0 %1827  ;;  %v2419_v57 = vmul.f32 %v7675_v14, %v2403_v49  ;;  %vm2232_vm15 = vcmp.ge.f32.partialorder %v7728_v23, 0.0 }
 0x2ab   : > { %11099 = vst [vmem:[#allocation70_spill] sm:$0xff] %v7819_v56  ;;  %11100 = vst [vmem:[#allocation78_spill] sm:$0xff] %v7824_v20  ;;  %v1961_v51 = vpop.permute.xlu1 %1960  ;;  %5122 = vrcp.f32 %v2296_v40  ;;  %v1701_v52 = vsel %vm1694_vm7, %v7735_v48, %v1691_v41  ;;  %v2489_v11 = vmul.f32 %v2473_v4, %v7752_v35  ;;  %v1709_v24 = vsel %vm1694_vm7, %v1691_v41, %v7735_v48  ;;  %v7860_v35 = vld [vmem:[%s10486_s8 + $0x38] sm:$0xff] }
 0x2ac   : > { %v1973_v43 = vsel %vm1968_vm8, %v1945_v30, %v1961_v51  ;;  %v1981_v32 = vsel %vm1968_vm8, %v1961_v51, %v1945_v30  ;;  %v2279_v46 = vmul.f32 0.3275911, %v2263_v59  ;;  %v7850_v42 = vsel %vm2233_vm14, 1.0, %v11089_v62  ;;  %3263 = vperm.xlu1 %4992, %v7831_v25  }
 0x2ad   : > { %11101 = vst [vmem:[#allocation76_spill] sm:$0xff] %v7850_v42  ;;  %v11102_v39 = vmov 1   ;;  %v2278_v10 = vmul.f32 0.3275911, %v2262_v63  ;;  %v2001_v49 = vmul.f32 %v11081_v28, %v1973_v43  ;;  %v2435_v40 = vadd.f32 0.2548296, %v2419_v57 }
 0x2ae   : > { %4994 = vset.pattern.permute.xlu0 %v11102_v39  ;;  %v2386_v30 = vmul.f32 %v7700_v12, %v2370_v38  ;;  %v5119_v48 = vpop.eup %5118  ;;  %v2510_v41 = vmul.f32 1.442695, %v2488_v22  ;;  %v1731_v4 = vmul.f32 %v11063_v61, %v1701_v52  ;;  %v2002_v51 = vmul.f32 %v11082_v6, %v1981_v32  ;;  %v2082_v56 = vpop.permute.xlu0 %2081 }
 0x2af   : > { %3357 = vperm.xlu0 %4994, %v7747_v36   ;;  %v7864_v58 = vpop.permute.xlu1 %2034  ;;  %v7869_v38 = vsel %vm2232_vm15, 1.0, %v11089_v62  ;;  %v2470_v57 = vsub.f32 0.0, %v2262_v63  ;;  %v1732_v43 = vmul.f32 %v11064_v44, %v1709_v24  ;;  %v2451_v42 = vmul.f32 %v7675_v14, %v2435_v40 }
 0x2b0   : > { %11103 = vst [vmem:[#allocation68_spill] sm:$0xff] %v7864_v58  ;;  %11104 = vst [vmem:[#allocation27_spill] sm:$0xff] %v7869_v38  ;;  %v2402_v20 = vadd.f32 -0.28449672, %v2386_v30  ;;  %v2512_v1 = vmul.f32 1.442695, %v2489_v11  ;;  %3273 = vperm.xlu1 %4992, %v7860_v35   ;;  %v2049_v23 = vmul.f32 %v7564_v55, %v2001_v49  ;;  %5124 = vpow2.f32 %v2510_v41 }
 0x2b1   : > { %v2295_v22 = vadd.f32 1.0, %v2279_v46  ;;  %v2471_v47 = vsub.f32 0.0, %v2263_v59  ;;  %v7873_v52 = vmul.f32 0.5, %v2198_v53  ;;  %v7876_v32 = vpop.eup %5120  ;;  %v2294_v61 = vadd.f32 1.0, %v2278_v10 }
 0x2b2   : > { %v2531_v58 = vmul.f32 %v5117_v8, %v2451_v42  ;;  %v2418_v38 = vmul.f32 %v7700_v12, %v2402_v20  ;;  %v7882_v14 = vmul.f32 0.5, %v7785_v31  ;;  %v2050_v11 = vmul.f32 %v7564_v55, %v2002_v51  ;;  %v2098_v53 = vpop.permute.xlu0 %2097 }
 0x2b3   : > { %3369 = vperm.xlu0 %4994, %v7809_v45   ;;  %v7885_v46 = vpop.permute.xlu1 %1811  ;;  %v2329_v24 = vmul.f32 1.0614054, %v7876_v32  ;;  %v2486_v40 = vmul.f32 %v2470_v57, %v2262_v63  ;;  %v1779_v10 = vmul.f32 %v7400_v54, %v1731_v4  ;;  %v2110_v8 = vsel %vm2105_vm9, %v2082_v56, %v2098_v53 }
 0x2b4   : > { %v2118_v20 = vsel %vm2105_vm9, %v2098_v53, %v2082_v56  ;;  %5126 = vrcp.f32 %v2295_v22  ;;  %v2487_v42 = vmul.f32 %v2471_v47, %v2263_v59  ;;  %v2138_v31 = vmul.f32 %v11065_v2, %v2110_v8  ;;  %4995 = vset.pattern.permute.xlu1 %v11102_v39 }
 0x2b5   : > { %v2139_v55 = vmul.f32 %v11067_v18, %v2118_v20  ;;  %v7896_v49 = vpop.eup %5122  ;;  %5128 = vrcp.f32 %v2294_v61  ;;  %v2065_v63 = vadd.f32 %v2049_v23, %v7693_v34  ;;  %v2547_v30 = vsub.f32 1.0, %v2531_v58  ;;  %3361 = vperm.xlu1 %4995, %v7742_v60  }
 0x2b6   : > { %v2434_v41 = vadd.f32 0.2548296, %v2418_v38  ;;  %v2066_v56 = vadd.f32 %v2050_v11, %v7737_v29  ;;  %v2186_v47 = vmul.f32 %v7796_v27, %v2138_v31  ;;  %v7904_v4 = vpop.permute.xlu0 %2171  ;;  %v2345_v51 = vadd.f32 -1.4531521, %v2329_v24  ;;  %v11109_v24 = vld [vmem:[#allocation66_spill] sm:$0xff] }
 0x2b7   : > { %3377 = vperm.xlu0 %4994, %v7831_v25   ;;  %v2187_v59 = vmul.f32 %v7796_v27, %v2139_v55  ;;  %v1814_v39 = vpop.permute.xlu1 %1813  ;;  %5130 = vpow2.f32 %v2512_v1  ;;  %v1780_v61 = vmul.f32 %v7400_v54, %v1732_v43  ;;  %v2563_v34 = vmul.f32 %v2547_v30, %v7678_v13  ;;  %v11107_v13 = vld [vmem:[#allocation64_spill] sm:$0xff] }
 0x2b8   : > { %v2450_v58 = vmul.f32 %v7700_v12, %v2434_v41  ;;  %vm2230_vm0 = vcmp.ge.f32.partialorder %v7801_v33, 0.0  ;;  %v7910_v38 = vadd.f32 %v2186_v47, %v2065_v63  ;;  %v2328_v57 = vmul.f32 1.0614054, %v7896_v49 }
 0x2b9   : > { %v7912_v29 = vadd.f32 %v2187_v59, %v2066_v56  ;;  %vm2231_vm1 = vcmp.ge.f32.partialorder %v7804_v15, 0.0  ;;  %v2506_v27 = vmul.f32 1.442695, %v2486_v40  ;;  %v2595_v22 = vadd.f32 1.0, %v2563_v34  ;;  %3365 = vperm.xlu1 %4995, %v7768_v5  }
 0x2ba   : > { %11105 = vst [vmem:[#allocation81_spill] sm:$0xff] %v7910_v38  ;;  %v2530_v23 = vmul.f32 %v5119_v48, %v2450_v58  ;;  %v2508_v54 = vmul.f32 1.442695, %v2487_v42  ;;  %v7919_v12 = vadd.f32 %v1779_v10, %v11107_v13  ;;  %v7922_v1 = vmul.f32 0.70710677, %v7910_v38  ;;  %v1951_v43 = vpop.permute.xlu0 %1950  ;;  %v7931_v42 = vpop.eup %5124  ;;  %v11114_v38 = vld [vmem:[#allocation24_spill] sm:$0xff] }
 0x2bb   : > { %11106 = vst [vmem:[#allocation83_spill] sm:$0xff] %v7912_v29  ;;  %3385 = vperm.xlu0 %4994, %v7860_v35   ;;  %v1830_v11 = vpop.permute.xlu1 %1829  ;;  %v2361_v53 = vmul.f32 %v7876_v32, %v2345_v51  ;;  %v7926_v8 = vadd.f32 %v1780_v61, %v11109_v24  ;;  %v2611_v48 = vmul.f32 %v2595_v22, %v7673_v0  ;;  %v7934_v10 = vmul.f32 0.70710677, %v7912_v29 }
 0x2bc   : > { %11108 = vst [vmem:[#allocation45_spill] sm:$0xff] %v7922_v1  ;;  %v2546_v40 = vsub.f32 1.0, %v2530_v23  ;;  %v1839_v20 = vsel %vm1831_vm6, %v1814_v39, %v1830_v11  ;;  %v1838_v31 = vsel %vm1831_vm6, %v7885_v46, %v7834_v21  ;;  %v1847_v55 = vsel %vm1831_vm6, %v1830_v11, %v1814_v39  ;;  %v11111_v11 = vld [vmem:[#allocation77_spill] sm:$0xff] }
 0x2bd   : > { %v2344_v63 = vadd.f32 -1.4531521, %v2328_v57  ;;  %5132 = vpow2.f32 %v2506_v27  ;;  %v2635_v0 = vpack.c.bf16 %v7774_v26, %v2611_v48  ;;  %v1870_v41 = vmul.f32 %v6685_v19, %v1839_v20  ;;  %3373 = vperm.xlu1 %4995, %v7763_v37  }
 0x2be   : > { %v2562_v30 = vmul.f32 %v2546_v40, %v7698_v17  ;;  %v11110_v56 = vmov 2   ;;  %v7947_v47 = vpop.eup %5126  ;;  %5134 = vpow2.f32 %v2508_v54  ;;  %v2266_v59 = vand.u32 2147483647, %v7922_v1  ;;  %v1967_v51 = vpop.permute.xlu0 %1966 }
 0x2bf   : > { %4996 = vset.pattern.permute.xlu0 %v11110_v56  ;;  %v2084_v61 = vpop.permute.xlu1 %2083  ;;  %v7953_v39 = vsel %vm2231_vm1, 1.0, %v11089_v62  ;;  %v2377_v26 = vadd.f32 1.4214138, %v2361_v53  ;;  %v7956_v17 = vpop.eup %5128  ;;  %2675 = vmatprep.subr.bf16.mxu1 %v2635_v0  ;;  %v1871_v58 = vmul.f32 %v11062_v16, %v1847_v55  ;;  %v1976_v57 = vsel %vm1968_vm8, %v1951_v43, %v1967_v51  ;;  %v11112_v53 = vld [vmem:[#allocation15_spill] sm:$0xff] }
 0x2c0   : > { %3485 = vperm.xlu0 %4996, %v7747_v36   ;;  %v2594_v34 = vadd.f32 1.0, %v2562_v30  ;;  %v7964_v27 = vsel %vm2230_vm0, 1.0, %v11089_v62  ;;  %v7967_v15 = vand.u32 2147483647, %v7934_v10  ;;  %v1846_v22 = vsel %vm1831_vm6, %v7834_v21, %v7885_v46 }
 0x2c1   : > { %v7974_v23 = vmul.f32 %v6685_v19, %v1838_v31  ;;  %v7977_v54 = vmul.f32 %v7896_v49, %v2344_v63  ;;  %v7979_v13 = vpop.eup %5130  ;;  %v1918_v24 = vmul.f32 %v11112_v53, %v1870_v41  ;;  %v1984_v48 = vsel %vm1968_vm8, %v1967_v51, %v1951_v43  ;;  %3381 = vperm.xlu1 %4995, %v7791_v3   ;;  %v11113_v19 = vld [vmem:[#allocation63_spill] sm:$0xff] }
 0x2c2   : > { %v2610_v33 = vmul.f32 %v2594_v34, %v11111_v11  ;;  %v2327_v40 = vmul.f32 1.0614054, %v7947_v47  ;;  %v2474_v21 = vsub.f32 0.0, %v2266_v59  ;;  %v2007_v46 = vmul.f32 %v11081_v28, %v1976_v57  ;;  %v2088_v20 = vpop.permute.xlu0 %2087 }
 0x2c3   : > { %v2100_v31 = vpop.permute.xlu1 %2099  ;;  %v2393_v55 = vmul.f32 %v7876_v32, %v2377_v26  ;;  %v2326_v63 = vmul.f32 1.0614054, %v7956_v17  ;;  %v2282_v0 = vmul.f32 0.3275911, %v2266_v59  ;;  %v1919_v43 = vmul.f32 %v11112_v53, %v1871_v58 }
 0x2c4   : > { %3505 = vperm.xlu0 %4996, %v7831_v25   ;;  %v2634_v30 = vpack.c.bf16 %v7799_v50, %v2610_v33  ;;  %v2111_v41 = vsel %vm2105_vm9, %v2084_v61, %v2100_v31  ;;  %v2283_v51 = vmul.f32 0.3275911, %v7967_v15  ;;  %v2008_v34 = vmul.f32 %v11082_v6, %v1984_v48 }
 0x2c5   : > { %v2119_v57 = vsel %vm2105_vm9, %v2100_v31, %v2084_v61  ;;  %v2140_v26 = vmul.f32 %v11065_v2, %v2111_v41  ;;  %v1934_v11 = vadd.f32 %v1918_v24, %v7777_v9  ;;  %v2055_v44 = vmul.f32 %v11113_v19, %v2007_v46  ;;  %4997 = vset.pattern.permute.xlu1 %v11110_v56  ;;  %v11115_v9 = vld [vmem:[#allocation60_spill] sm:$0xff]  ;;  %v11116_v31 = vld [vmem:[#allocation41_spill] sm:$0xff] }
 0x2c6   : > { %2676 = vmatpush1.bf16.msra.mxu1 %v2634_v30  ;;  %v2141_v50 = vmul.f32 %v11067_v18, %v2119_v57  ;;  %v2343_v58 = vadd.f32 -1.4531521, %v2327_v40  ;;  %v2475_v33 = vsub.f32 0.0, %v7967_v15  ;;  %v2490_v53 = vmul.f32 %v2474_v21, %v2266_v59  ;;  %v2104_v1 = vpop.permute.xlu0 %2103  ;;  %3489 = vperm.xlu1 %4997, %v7742_v60   ;;  %v8025_v30 = vld [vmem:[%s10481_s3 + $0x10] ss:$0 sm:$0xff] }
 0x2c7   : > { %v2188_v48 = vmul.f32 %v11114_v38, %v2140_v26  ;;  %v2409_v29 = vadd.f32 -0.28449672, %v2393_v55  ;;  %v8008_v2 = vpop.eup %5132  ;;  %v1935_v61 = vadd.f32 %v1919_v43, %v11115_v9  ;;  %v2113_v24 = vsel %vm2105_vm9, %v2088_v20, %v2104_v1  ;;  %v2176_v40 = vpop.permute.xlu1 %2175  ;;  %v8031_v43 = vld [vmem:[%s10481_s3 + $0x18] ss:$0 sm:$0xff] }
 0x2c8   : > { %3509 = vperm.xlu0 %4996, %v7791_v3   ;;  %v2189_v18 = vmul.f32 %v11114_v38, %v2141_v50  ;;  %v2121_v59 = vsel %vm2105_vm9, %v2104_v1, %v2088_v20  ;;  %v8016_v21 = vpop.eup %5134  ;;  %v2056_v46 = vmul.f32 %v11113_v19, %v2008_v34  ;;  %v2144_v38 = vmul.f32 %v8025_v30, %v2113_v24  ;;  %v11118_v20 = vld [vmem:[#allocation78_spill] sm:$0xff] }
 0x2c9   : > { %v8020_v55 = vadd.f32 %v2188_v48, %v11116_v31  ;;  %v2145_v1 = vmul.f32 %v8031_v43, %v2121_v59  ;;  %v2071_v19 = vadd.f32 %v2055_v44, %v1934_v11  ;;  %v2359_v34 = vmul.f32 %v7947_v47, %v2343_v58 }
 0x2ca   : > { %v8035_v41 = vadd.f32 %v2189_v18, %v11118_v20  ;;  %v2342_v57 = vadd.f32 -1.4531521, %v2326_v63  ;;  %v2192_v50 = vmul.f32 %v2176_v40, %v2144_v38  ;;  %v2425_v9 = vmul.f32 %v7876_v32, %v2409_v29 }
 0x2cb   : > { %11117 = vst [vmem:[#allocation79_spill] sm:$0xff] %v8020_v55  ;;  %v8039_v26 = vmul.f32 0.70710677, %v8020_v55  ;;  %v2193_v48 = vmul.f32 %v2176_v40, %v2145_v1  ;;  %v11120_v24 = vmov 3   ;;  %v2298_v31 = vadd.f32 1.0, %v2282_v0  ;;  %v1949_v11 = vpop.permute.xlu1 %1948 }
 0x2cc   : > { %11119 = vst [vmem:[#allocation71_spill] sm:$0xff] %v8035_v41  ;;  %5009 = vset.pattern.permute.xlu0 %v11120_v24  ;;  %4998 = vset.pattern.permute.xlu1 %v11120_v24  ;;  %v2299_v59 = vadd.f32 1.0, %v2283_v51  ;;  %v1869_v18 = vmul.f32 %v11062_v16, %v1846_v22  ;;  %v8046_v44 = vmul.f32 0.70710677, %v8035_v41  ;;  %v2491_v63 = vmul.f32 %v2475_v33, %v7967_v15 }
 0x2cd   : > { %3617 = vperm.xlu0 %5009, %v7742_v60   ;;  %3613 = vperm.xlu1 %4998, %v7747_v36   ;;  %v2268_v29 = vand.u32 2147483647, %v8039_v26  ;;  %v2072_v58 = vadd.f32 %v2056_v46, %v1935_v61  ;;  %v8052_v40 = vadd.f32 %v2192_v50, %v2071_v19  ;;  %v2514_v38 = vmul.f32 1.442695, %v2490_v53 }
 0x2ce   : > { %v2269_v0 = vand.u32 2147483647, %v8046_v44  ;;  %v2358_v22 = vmul.f32 %v7956_v17, %v2342_v57  ;;  %v2376_v51 = vadd.f32 1.4214138, %v7977_v54  ;;  %v2375_v16 = vadd.f32 1.4214138, %v2359_v34 }
 0x2cf   : > { %v2284_v1 = vmul.f32 0.3275911, %v2268_v29  ;;  %v8057_v20 = vadd.f32 %v2193_v48, %v2072_v58  ;;  %v2441_v55 = vadd.f32 0.2548296, %v2425_v9  ;;  %5136 = vrcp.f32 %v2298_v31  ;;  %v1965_v61 = vpop.permute.xlu1 %1964  ;;  %v11121_v54 = vld [vmem:[#allocation69_spill] sm:$0xff] }
 0x2d0   : > { %v2285_v41 = vmul.f32 0.3275911, %v2269_v0  ;;  %v2476_v15 = vsub.f32 0.0, %v2268_v29  ;;  %v8060_v33 = vmul.f32 0.70710677, %v8052_v40  ;;  %5138 = vrcp.f32 %v2299_v59 }
 0x2d1   : > { %3625 = vperm.xlu0 %5009, %v7809_v45   ;;  %4999 = vset.pattern.permute.xlu1 %v11110_v56  ;;  %v2516_v53 = vmul.f32 1.442695, %v2491_v63  ;;  %v1916_v46 = vmul.f32 %v11121_v54, %v7974_v23  ;;  %v1917_v19 = vmul.f32 %v11121_v54, %v1869_v18  ;;  %v2477_v57 = vsub.f32 0.0, %v2269_v0 }
 0x2d2   : > { %3493 = vperm.xlu1 %4999, %v7768_v5   ;;  %v2301_v34 = vadd.f32 1.0, %v2285_v41  ;;  %v2374_v50 = vadd.f32 1.4214138, %v2358_v22  ;;  %v2392_v48 = vmul.f32 %v7896_v49, %v2376_v51  ;;  %5140 = vpow2.f32 %v2514_v38 }
 0x2d3   : > { %v2300_v9 = vadd.f32 1.0, %v2284_v1  ;;  %v8070_v31 = vmul.f32 0.70710677, %v8057_v20  ;;  %v2391_v59 = vmul.f32 %v7947_v47, %v2375_v16  ;;  %v2492_v63 = vmul.f32 %v2476_v15, %v2268_v29  ;;  %v2086_v58 = vpop.permute.xlu1 %2085 }
 0x2d4   : > { %5142 = vrcp.f32 %v2301_v34  ;;  %v2272_v23 = vand.u32 2147483647, %v8060_v33  ;;  %v2457_v18 = vmul.f32 %v7876_v32, %v2441_v55  ;;  %v1932_v41 = vadd.f32 %v1916_v46, %v7919_v12 }
 0x2d5   : > { %3633 = vperm.xlu0 %5009, %v7831_v25   ;;  %5144 = vpow2.f32 %v2516_v53  ;;  %v1933_v38 = vadd.f32 %v1917_v19, %v7926_v8  ;;  %v1975_v22 = vsel %vm1968_vm8, %v1949_v11, %v1965_v61  ;;  %v2493_v16 = vmul.f32 %v2477_v57, %v2269_v0 }
 0x2d6   : > { %3497 = vperm.xlu1 %4999, %v7809_v45   ;;  %v1983_v29 = vsel %vm1968_vm8, %v1965_v61, %v1949_v11  ;;  %v2390_v51 = vmul.f32 %v7956_v17, %v2374_v50  ;;  %v2408_v1 = vadd.f32 -0.28449672, %v2392_v48  ;;  %5146 = vrcp.f32 %v2300_v9  ;;  %v11122_v61 = vld [vmem:[#allocation68_spill] sm:$0xff] }
 0x2d7   : > { %v2273_v32 = vand.u32 2147483647, %v8070_v31  ;;  %v2005_v55 = vmul.f32 %v11081_v28, %v1975_v22  ;;  %v2006_v12 = vmul.f32 %v11082_v6, %v1983_v29  ;;  %v8087_v8 = vmul.f32 1.442695, %v2492_v63  ;;  %v2102_v53 = vpop.permute.xlu1 %2101 }
 0x2d8   : > { %v2288_v15 = vmul.f32 0.3275911, %v2272_v23  ;;  %v2407_v54 = vadd.f32 -0.28449672, %v2391_v59  ;;  %v2537_v0 = vmul.f32 %v7979_v13, %v2457_v18  ;;  %v2480_v11 = vsub.f32 0.0, %v2272_v23 }
 0x2d9   : > { %3637 = vperm.xlu0 %5009, %v7791_v3   ;;  %v2053_v46 = vmul.f32 %v11122_v61, %v2005_v55  ;;  %v2054_v19 = vmul.f32 %v11122_v61, %v2006_v12  ;;  %v2112_v34 = vsel %vm2105_vm9, %v2086_v58, %v2102_v53  ;;  %v11123_v57 = vmov 4   ;;  %v8096_v50 = vpop.eup %5136 }
 0x2da   : > { %5000 = vset.pattern.permute.xlu1 %v11123_v57  ;;  %v8098_v48 = vmul.f32 1.442695, %v2493_v16  ;;  %v2120_v9 = vsel %vm2105_vm9, %v2102_v53, %v2086_v58  ;;  %v2142_v13 = vmul.f32 %v8025_v30, %v2112_v34  ;;  %v2423_v3 = vmul.f32 %v7947_v47, %v2407_v54  ;;  %v8105_v59 = vpop.eup %5138 }
 0x2db   : > { %3681 = vperm.xlu1 %5000, %v7742_v60   ;;  %v2289_v63 = vmul.f32 0.3275911, %v2273_v32  ;;  %v2069_v18 = vadd.f32 %v2053_v46, %v1932_v41  ;;  %v2143_v22 = vmul.f32 %v8031_v43, %v2120_v9  ;;  %v2553_v29 = vsub.f32 1.0, %v2537_v0 }
 0x2dc   : > { %v2190_v55 = vmul.f32 %v7904_v4, %v2142_v13  ;;  %v2439_v16 = vadd.f32 0.2548296, %v2423_v3  ;;  %v2406_v12 = vadd.f32 -0.28449672, %v2390_v51  ;;  %v2424_v61 = vmul.f32 %v7896_v49, %v2408_v1  ;;  %v8111_v30 = vpop.eup %5140 }
 0x2dd   : > { %5014 = vset.pattern.permute.xlu0 %v11123_v57  ;;  %v2304_v58 = vadd.f32 1.0, %v2288_v15  ;;  %v2481_v53 = vsub.f32 0.0, %v2273_v32  ;;  %v2070_v54 = vadd.f32 %v2054_v19, %v1933_v38  ;;  %v2191_v34 = vmul.f32 %v7904_v4, %v2143_v22  ;;  %v11124_v4 = vld [vmem:[#allocation76_spill] sm:$0xff] }
 0x2de   : > { %3677 = vperm.xlu0 %5014, %v7747_v36   ;;  %v8115_v41 = vpop.eup %5142  ;;  %v8117_v43 = vadd.f32 %v2190_v55, %v2069_v18  ;;  %v2455_v0 = vmul.f32 %v7947_v47, %v2439_v16  ;;  %v2422_v51 = vmul.f32 %v7956_v17, %v2406_v12  ;;  %v2440_v1 = vadd.f32 0.2548296, %v2424_v61 }
 0x2df   : > { %5001 = vset.pattern.permute.xlu1 %v11120_v24  ;;  %v8122_v46 = vpop.eup %5144  ;;  %v2305_v15 = vadd.f32 1.0, %v2289_v63  ;;  %v2496_v9 = vmul.f32 %v2480_v11, %v2272_v23  ;;  %v8124_v38 = vadd.f32 %v2191_v34, %v2070_v54  ;;  %v2569_v19 = vmul.f32 %v2553_v29, %v11124_v4 }
 0x2e0   : > { %3621 = vperm.xlu1 %5001, %v7768_v5   ;;  %v8129_v13 = vmul.f32 0.70710677, %v8117_v43  ;;  %v2535_v47 = vmul.f32 %v8016_v21, %v2455_v0  ;;  %v2438_v3 = vadd.f32 0.2548296, %v2422_v51  ;;  %v2456_v18 = vmul.f32 %v7896_v49, %v2440_v1  ;;  %v8133_v22 = vpop.eup %5146 }
 0x2e1   : > { %v2497_v55 = vmul.f32 %v2481_v53, %v2273_v32  ;;  %v8136_v63 = vmul.f32 0.70710677, %v8124_v38  ;;  %v2331_v23 = vmul.f32 1.0614054, %v8105_v59  ;;  %v2333_v11 = vmul.f32 1.0614054, %v8115_v41 }
 0x2e2   : > { %3697 = vperm.xlu0 %5014, %v7831_v25   ;;  %v2270_v29 = vand.u32 2147483647, %v8129_v13  ;;  %v2551_v16 = vsub.f32 1.0, %v2535_v47  ;;  %v2454_v21 = vmul.f32 %v7956_v17, %v2438_v3  ;;  %v2536_v12 = vmul.f32 %v7931_v42, %v2456_v18 }
 0x2e3   : > { %5148 = vrcp.f32 %v2305_v15  ;;  %v2271_v49 = vand.u32 2147483647, %v8136_v63  ;;  %v2347_v32 = vadd.f32 -1.4531521, %v2331_v23  ;;  %v2349_v61 = vadd.f32 -1.4531521, %v2333_v11 }
 0x2e4   : > { %v11125_v53 = vmov 5   ;;  %v2286_v54 = vmul.f32 0.3275911, %v2270_v29  ;;  %v2567_v34 = vmul.f32 %v2551_v16, %v7953_v39  ;;  %v2601_v0 = vadd.f32 1.0, %v2569_v19  ;;  %v11126_v11 = vld [vmem:[#allocation27_spill] sm:$0xff] }
 0x2e5   : > { %5002 = vset.pattern.permute.xlu1 %v11125_v53  ;;  %v2534_v51 = vmul.f32 %v8008_v2, %v2454_v21  ;;  %v2287_v1 = vmul.f32 0.3275911, %v2271_v49  ;;  %v2478_v4 = vsub.f32 0.0, %v2270_v29  ;;  %v2552_v17 = vsub.f32 1.0, %v2536_v12  ;;  %v11127_v2 = vld [vmem:[#allocation19_spill] sm:$0xff] }
 0x2e6   : > { %3805 = vperm.xlu1 %5002, %v7747_v36   ;;  %v2363_v42 = vmul.f32 %v8105_v59, %v2347_v32  ;;  %3705 = vperm.xlu0 %5014, %v7860_v35   ;;  %v2302_v15 = vadd.f32 1.0, %v2286_v54  ;;  %v2479_v47 = vsub.f32 0.0, %v2271_v49  ;;  %v2599_v3 = vadd.f32 1.0, %v2567_v34 }
 0x2e7   : > { %v2550_v18 = vsub.f32 1.0, %v2534_v51  ;;  %5150 = vrcp.f32 %v2304_v58  ;;  %v2303_v23 = vadd.f32 1.0, %v2287_v1  ;;  %v2568_v39 = vmul.f32 %v2552_v17, %v11126_v11 }
 0x2e8   : > { %v2365_v19 = vmul.f32 %v8115_v41, %v2349_v61  ;;  %5152 = vrcp.f32 %v2302_v15  ;;  %v2615_v36 = vmul.f32 %v2599_v3, %v7882_v14  ;;  %v2617_v16 = vmul.f32 %v2601_v0, %v11127_v2 }
 0x2e9   : > { %v2566_v21 = vmul.f32 %v2550_v18, %v7964_v27  ;;  %5154 = vrcp.f32 %v2303_v23  ;;  %v2494_v12 = vmul.f32 %v2478_v4, %v2270_v29  ;;  %v2600_v32 = vadd.f32 1.0, %v2568_v39  ;;  %v11128_v29 = vld [vmem:[#allocation70_spill] sm:$0xff] }
 0x2ea   : > { %3809 = vperm.xlu1 %5002, %v7742_v60   ;;  %v2379_v54 = vadd.f32 1.4214138, %v2363_v42  ;;  %5019 = vset.pattern.permute.xlu0 %v11125_v53  ;;  %v2495_v58 = vmul.f32 %v2479_v47, %v2271_v49  ;;  %v2637_v34 = vpack.c.bf16 %v2617_v16, %v2615_v36  ;;  %v2381_v1 = vadd.f32 1.4214138, %v2365_v19 }
 0x2eb   : > { %v2598_v51 = vadd.f32 1.0, %v2566_v21  ;;  %3813 = vperm.xlu0 %5019, %v7768_v5   ;;  %5156 = vpow2.f32 %v8098_v48  ;;  %v2526_v14 = vmul.f32 1.442695, %v2496_v9  ;;  %v2528_v61 = vmul.f32 1.442695, %v2497_v55 }
 0x2ec   : > { %v2395_v27 = vmul.f32 %v8105_v59, %v2379_v54  ;;  %2677 = vmatprep.subr.bf16.mxu1 %v2637_v34  ;;  %v2616_v4 = vmul.f32 %v2600_v32, %v11128_v29  ;;  %vm2235_vm10 = vcmp.ge.f32.partialorder %v7934_v10, 0.0  ;;  %v2397_v49 = vmul.f32 %v8115_v41, %v2381_v1  ;;  %v11129_v54 = vld [vmem:[#allocation83_spill] sm:$0xff] }
 0x2ed   : > { %v2614_v0 = vmul.f32 %v2598_v51, %v7873_v52  ;;  %v8166_v17 = vpop.eup %5148  ;;  %5158 = vpow2.f32 %v8087_v8  ;;  %v2522_v48 = vmul.f32 1.442695, %v2494_v12  ;;  %v2330_v55 = vmul.f32 1.0614054, %v8096_v50 }
 0x2ee   : > { %5003 = vset.pattern.permute.xlu1 %v11110_v56  ;;  %v2411_v9 = vadd.f32 -0.28449672, %v2395_v27  ;;  %v2524_v42 = vmul.f32 1.442695, %v2495_v58  ;;  %v2413_v15 = vadd.f32 -0.28449672, %v2397_v49  ;;  %5160 = vpow2.f32 %v2526_v14 }
 0x2ef   : > { %3501 = vperm.xlu1 %5003, %v7763_v37   ;;  %v2636_v52 = vpack.c.bf16 %v2616_v4, %v2614_v0  ;;  %v2332_v47 = vmul.f32 1.0614054, %v8133_v22  ;;  %3825 = vperm.xlu0 %5019, %v7831_v25   ;;  %vm2237_vm11 = vcmp.ge.f32.partialorder %v8046_v44, 0.0  ;;  %v2346_v18 = vadd.f32 -1.4531521, %v2330_v55  ;;  %v11130_v14 = vld [vmem:[#allocation71_spill] sm:$0xff] }
 0x2f0   : > { %v2427_v3 = vmul.f32 %v8105_v59, %v2411_v9  ;;  %5162 = vpow2.f32 %v2528_v61  ;;  %v2251_v8 = vsel %vm2235_vm10, 1.0, %v11089_v62  ;;  %v2429_v23 = vmul.f32 %v8115_v41, %v2413_v15 }
 0x2f1   : > { %2678 = vmatpush1.bf16.msra.mxu1 %v2636_v52  ;;  %v2348_v11 = vadd.f32 -1.4531521, %v2332_v47  ;;  %v8179_v39 = vpop.eup %5150  ;;  %5164 = vpow2.f32 %v2522_v48  ;;  %v2362_v25 = vmul.f32 %v8096_v50, %v2346_v18  ;;  %v2337_v36 = vmul.f32 1.0614054, %v8166_v17  ;;  %v11131_v52 = vld [vmem:[#allocation45_spill] sm:$0xff] }
 0x2f2   : > { %v2443_v19 = vadd.f32 0.2548296, %v2427_v3  ;;  %v8184_v2 = vpop.eup %5152  ;;  %5166 = vpow2.f32 %v2524_v42  ;;  %v2253_v10 = vsel %vm2237_vm11, 1.0, %v11089_v62  ;;  %v2445_v16 = vadd.f32 0.2548296, %v2429_v23 }
 0x2f3   : > { %5004 = vset.pattern.permute.xlu1 %v11123_v57  ;;  %v2364_v21 = vmul.f32 %v8133_v22, %v2348_v11  ;;  %v8191_v12 = vpop.eup %5154  ;;  %v2587_v58 = vmul.f32 0.5, %v11129_v54  ;;  %v2378_v34 = vadd.f32 1.4214138, %v2362_v25  ;;  %v2353_v51 = vadd.f32 -1.4531521, %v2337_v36 }
 0x2f4   : > { %3685 = vperm.xlu1 %5004, %v7768_v5   ;;  %v2459_v32 = vmul.f32 %v8105_v59, %v2443_v19  ;;  %v2461_v1 = vmul.f32 %v8115_v41, %v2445_v16  ;;  %v2589_v61 = vmul.f32 0.5, %v11130_v14  ;;  %v2335_v44 = vmul.f32 1.0614054, %v8191_v12 }
 0x2f5   : > { %v2380_v27 = vadd.f32 1.4214138, %v2364_v21  ;;  %v5157_v0 = vpop.eup %5156  ;;  %v2394_v5 = vmul.f32 %v8096_v50, %v2378_v34  ;;  %v2369_v4 = vmul.f32 %v8166_v17, %v2353_v51  ;;  %v2334_v59 = vmul.f32 1.0614054, %v8184_v2 }
 0x2f6   : > { %v2539_v29 = vmul.f32 %v8122_v46, %v2459_v32  ;;  %v2541_v49 = vmul.f32 %v5157_v0, %v2461_v1  ;;  %v2351_v9 = vadd.f32 -1.4531521, %v2335_v44  ;;  %v2336_v41 = vmul.f32 1.0614054, %v8179_v39 }
 0x2f7   : > { %v2396_v48 = vmul.f32 %v8133_v22, %v2380_v27  ;;  %v5159_v55 = vpop.eup %5158  ;;  %vm2234_vm12 = vcmp.ge.f32.partialorder %v11131_v52, 0.0  ;;  %v2410_v15 = vadd.f32 -0.28449672, %v2394_v5  ;;  %v2385_v46 = vadd.f32 1.4214138, %v2369_v4  ;;  %v11134_v52 = vld [vmem:[#allocation79_spill] sm:$0xff] }
 0x2f8   : > { %3689 = vperm.xlu1 %5004, %v7809_v45   ;;  %v2555_v42 = vsub.f32 1.0, %v2539_v29  ;;  %v2557_v47 = vsub.f32 1.0, %v2541_v49  ;;  %v2367_v18 = vmul.f32 %v8191_v12, %v2351_v9  ;;  %v2350_v23 = vadd.f32 -1.4531521, %v2334_v59  ;;  %v8207_v11 = vpop.eup %5160 }
 0x2f9   : > { %v2412_v3 = vadd.f32 -0.28449672, %v2396_v48  ;;  %v2426_v25 = vmul.f32 %v8096_v50, %v2410_v15  ;;  %v2401_v36 = vmul.f32 %v8166_v17, %v2385_v46  ;;  %v2352_v16 = vadd.f32 -1.4531521, %v2336_v41 }
 0x2fa   : > { %v2571_v19 = vmul.f32 %v2555_v42, %v2251_v8  ;;  %v5163_v21 = vpop.eup %5162  ;;  %v2573_v32 = vmul.f32 %v2557_v47, %v2253_v10  ;;  %v2383_v34 = vadd.f32 1.4214138, %v2367_v18  ;;  %v2366_v51 = vmul.f32 %v8184_v2, %v2350_v23 }
 0x2fb   : > { %v2428_v54 = vmul.f32 %v8133_v22, %v2412_v3  ;;  %v11132_v1 = vmov 6   ;;  %v8214_v14 = vpop.eup %5164  ;;  %vm2241_vm13 = vcmp.ge.f32.partialorder %v8070_v31, 0.0  ;;  %v2442_v8 = vadd.f32 0.2548296, %v2426_v25 }
 0x2fc   : > { %5005 = vset.pattern.permute.xlu1 %v11132_v1  ;;  %v2603_v27 = vadd.f32 1.0, %v2571_v19  ;;  %v2417_v44 = vadd.f32 -0.28449672, %v2401_v36  ;;  %v2368_v0 = vmul.f32 %v8179_v39, %v2352_v16  ;;  %v5167_v29 = vpop.eup %5166  ;;  %v2605_v10 = vadd.f32 1.0, %v2573_v32 }
 0x2fd   : > { %3937 = vperm.xlu1 %5005, %v7742_v60   ;;  %v2444_v5 = vadd.f32 0.2548296, %v2428_v54  ;;  %v2399_v4 = vmul.f32 %v8191_v12, %v2383_v34  ;;  %v2382_v59 = vadd.f32 1.4214138, %v2366_v51  ;;  %v2458_v48 = vmul.f32 %v8096_v50, %v2442_v8  ;;  %v11133_v54 = vld [vmem:[#allocation81_spill] sm:$0xff] }
 0x2fe   : > { %v2619_v49 = vmul.f32 %v2603_v27, %v2587_v58  ;;  %v2433_v9 = vmul.f32 %v8166_v17, %v2417_v44  ;;  %v2384_v41 = vadd.f32 1.4214138, %v2368_v0  ;;  %v2621_v42 = vmul.f32 %v2605_v10, %v2589_v61 }
 0x2ff   : > { %v2460_v15 = vmul.f32 %v8133_v22, %v2444_v5  ;;  %v2415_v46 = vadd.f32 -0.28449672, %v2399_v4  ;;  %v2398_v47 = vmul.f32 %v8184_v2, %v2382_v59  ;;  %vm2236_vm14 = vcmp.ge.f32.partialorder %v8039_v26, 0.0 }
 0x300   : > { %v2538_v60 = vmul.f32 %v8111_v30, %v2458_v48  ;;  %v2449_v3 = vadd.f32 0.2548296, %v2433_v9  ;;  %v2400_v18 = vmul.f32 %v8179_v39, %v2384_v41  ;;  %v2639_v58 = vpack.c.bf16 %v2621_v42, %v2619_v49 }
 0x301   : > { %5006 = vset.pattern.permute.xlu1 %v11120_v24  ;;  %v2540_v50 = vmul.f32 %v5159_v55, %v2460_v15  ;;  %v2431_v23 = vmul.f32 %v8191_v12, %v2415_v46  ;;  %v2414_v19 = vadd.f32 -0.28449672, %v2398_v47  ;;  %v2250_v22 = vsel %vm2234_vm12, 1.0, %v11089_v62 }
 0x302   : > { %3629 = vperm.xlu1 %5006, %v7763_v37   ;;  %v2554_v61 = vsub.f32 1.0, %v2538_v60  ;;  %v2465_v26 = vmul.f32 %v8166_v17, %v2449_v3  ;;  %v2416_v30 = vadd.f32 -0.28449672, %v2400_v18  ;;  %2679 = vmatprep.subr.bf16.mxu1 %v2639_v58  ;;  %v2252_v25 = vsel %vm2236_vm14, 1.0, %v11089_v62 }
 0x303   : > { %v2556_v36 = vsub.f32 1.0, %v2540_v50  ;;  %v2447_v16 = vadd.f32 0.2548296, %v2431_v23  ;;  %v2430_v55 = vmul.f32 %v8184_v2, %v2414_v19  ;;  %v2586_v34 = vmul.f32 0.5, %v11133_v54  ;;  %v5039_v54 = vld [vmem:[%s10485_s7 + $0x18] sm:$0xff]  }
 0x304   : > { %v2570_v32 = vmul.f32 %v2554_v61, %v2250_v22  ;;  %v2545_v51 = vmul.f32 %v5163_v21, %v2465_v26  ;;  %v2432_v37 = vmul.f32 %v8179_v39, %v2416_v30  ;;  %v2588_v8 = vmul.f32 0.5, %v11134_v52 }
 0x305   : > { %v2572_v27 = vmul.f32 %v2556_v36, %v2252_v25  ;;  %v2463_v44 = vmul.f32 %v8191_v12, %v2447_v16  ;;  %v2446_v17 = vadd.f32 0.2548296, %v2430_v55  ;;  %vm2239_vm15 = vcmp.ge.f32.partialorder %v8136_v63, 0.0  ;;  %v5036_v36 = vld [vmem:[%s10485_s7] sm:$0xff]   ;;  %v5037_v16 = vld [vmem:[%s10485_s7 + $0x8] sm:$0xff]  }
 0x306   : > { %5007 = vset.pattern.permute.xlu1 %v11125_v53  ;;  %v2602_v0 = vadd.f32 1.0, %v2570_v32  ;;  %v2561_v10 = vsub.f32 1.0, %v2545_v51  ;;  %v2448_v5 = vadd.f32 0.2548296, %v2432_v37  ;;  %v2257_v21 = vsel %vm2241_vm13, 1.0, %v11089_v62  ;;  %v5038_v32 = vld [vmem:[%s10485_s7 + $0x10] sm:$0xff]  }
 0x307   : > { %3817 = vperm.xlu1 %5007, %v7809_v45   ;;  %v2604_v4 = vadd.f32 1.0, %v2572_v27  ;;  %v2543_v59 = vmul.f32 %v5167_v29, %v2463_v44  ;;  %v2462_v49 = vmul.f32 %v8184_v2, %v2446_v17  ;;  %vm2238_vm0 = vcmp.ge.f32.partialorder %v8129_v13, 0.0 }
 0x308   : > { %v2577_v48 = vmul.f32 %v2561_v10, %v2257_v21  ;;  %v2464_v12 = vmul.f32 %v8179_v39, %v2448_v5  ;;  %v2618_v9 = vmul.f32 %v2602_v0, %v2586_v34  ;;  %vm2240_vm1 = vcmp.ge.f32.partialorder %v8060_v33, 0.0  ;;  %v5305_v39 = vld [vmem:[%s10486_s8] sm:$0xff]  ;;  %v5310_v34 = vld [vmem:[%s10486_s8 + $0x10] sm:$0xff] }
 0x309   : > { %v2620_v41 = vmul.f32 %v2604_v4, %v2588_v8  ;;  %v2559_v42 = vsub.f32 1.0, %v2543_v59  ;;  %v2542_v15 = vmul.f32 %v8214_v14, %v2462_v49  ;;  %v2255_v45 = vsel %vm2239_vm15, 1.0, %v11089_v62 }
 0x30a   : > { %v2544_v31 = vmul.f32 %v8207_v11, %v2464_v12  ;;  %v11135_v29 = vmov 7   ;;  %v2609_v47 = vadd.f32 1.0, %v2577_v48  ;;  %v2593_v14 = vmul.f32 0.5, %v8057_v20 }
 0x30b   : > { %5008 = vset.pattern.permute.xlu1 %v11135_v29  ;;  %v2638_v2 = vpack.c.bf16 %v2620_v41, %v2618_v9  ;;  %v2575_v46 = vmul.f32 %v2559_v42, %v2255_v45  ;;  %v2558_v60 = vsub.f32 1.0, %v2542_v15  ;;  %v2254_v63 = vsel %vm2238_vm0, 1.0, %v11089_v62 }
 0x30c   : > { %4061 = vperm.xlu1 %5008, %v5305_v39   ;;  %v2560_v3 = vsub.f32 1.0, %v2544_v31  ;;  %v2591_v11 = vmul.f32 0.5, %v8124_v38  ;;  %v2256_v58 = vsel %vm2240_vm1, 1.0, %v11089_v62  ;;  %v2625_v22 = vmul.f32 %v2609_v47, %v2593_v14 }
 0x30d   : > { %2680 = vmatpush1.bf16.msra.mxu1 %v2638_v2  ;;  %v2607_v18 = vadd.f32 1.0, %v2575_v46  ;;  %v2574_v50 = vmul.f32 %v2558_v60, %v2254_v63  ;;  %v2590_v61 = vmul.f32 0.5, %v8117_v43  ;;  %v2592_v13 = vmul.f32 0.5, %v8052_v40  ;;  %v5307_v43 = vld [vmem:[%s10486_s8 + $0x18] sm:$0xff] }
 0x30e   : > { %v2576_v23 = vmul.f32 %v2560_v3, %v2256_v58  ;;  %vm2662_vm10 = vcmask 523264   ;;  %v11136_v40 = vmov 0   ;;  %v11137_v55 = vmov 8  }
 0x30f   : > { %v2623_v19 = vmul.f32 %v2607_v18, %v2591_v11  ;;  %v2606_v20 = vadd.f32 1.0, %v2574_v50 }
 0x310   : > { %5010 = vset.pattern.permute.xlu1 %v11110_v56  ;;  %v2608_v26 = vadd.f32 1.0, %v2576_v23  ;;  %v5306_v56 = vld [vmem:[%s10486_s8 + $0x20] sm:$0xff] }
 0x311   : > { %3513 = vperm.xlu1 %5010, %v7860_v35   ;;  %v2641_v38 = vpack.c.bf16 %v2625_v22, %v2623_v19  ;;  %v2622_v30 = vmul.f32 %v2606_v20, %v2590_v61 }
 0x312   : > { %v2624_v25 = vmul.f32 %v2608_v26, %v2592_v13 }
 0x313   : > { %2681 = vmatprep.subr.bf16.mxu1 %v2641_v38 }
 0x314   : > { %v2640_v33 = vpack.c.bf16 %v2624_v25, %v2622_v30 }
 0x315   : > { %5011 = vset.pattern.permute.xlu1 %v11123_v57 }
 0x316   : > { %3693 = vperm.xlu1 %5011, %v5306_v56   ;;  %2682 = vmatpush1.bf16.msra.mxu1 %v2640_v33 }
 0x319   : > { %4891 = vmatmul.mubr.msk.bf16.vlgmr.msra.gmra.mrb[0].mxu1 %vm2662_vm10, %v5036_v36 }
 0x31a   : > { %5012 = vset.pattern.permute.xlu1 %v11132_v1  ;;  %2717 = vmatprep.mubr.bf16.mxu1 %v11136_v40 }
 0x31b   : > { %3945 = vperm.xlu1 %5012, %v5307_v43  }
 0x31f   : > { %5013 = vset.pattern.permute.xlu1 %v11137_v55 }
 0x320   : > { %4189 = vperm.xlu1 %5013, %v5305_v39  }
 0x321   : > { %4892 = vmatmul.mubr.msk.bf16.gmra.mrb[4].mxu1 %vm2662_vm10, %v5037_v16 }
 0x322   : > { %2727 = vmatprep.mubr.bf16.mxu1 %v11136_v40 }
 0x324   : > { %5015 = vset.pattern.permute.xlu1 %v11120_v24  ;;  %v5309_v24 = vld [vmem:[%s10486_s8 + $0x28] sm:$0xff] }
 0x325   : > { %3641 = vperm.xlu1 %5015, %v7860_v35   ;;  %v5308_v35 = vld [vmem:[%s10486_s8 + $0x30] sm:$0xff] }
 0x329   : > { %5016 = vset.pattern.permute.xlu1 %v11125_v53  ;;  %4893 = vmatmul.mubr.msk.bf16.gmra.mrb[8].mxu1 %vm2662_vm10, %v5038_v32 }
 0x32a   : > { %3821 = vperm.xlu1 %5016, %v5306_v56   ;;  %2737 = vmatprep.mubr.bf16.mxu1 %v11136_v40 }
 0x32e   : > { %5017 = vset.pattern.permute.xlu1 %v11135_v29 }
 0x32f   : > { %4073 = vperm.xlu1 %5017, %v5307_v43  }
 0x331   : > { %4894 = vmatmul.mubr.msk.bf16.gmra.mrb[12].mxu1 %vm2662_vm10, %v5039_v54 }
 0x333   : > { %5018 = vset.pattern.permute.xlu1 %v11123_v57  ;;  %v8316_v57 = vpop.permute.xlu1 %3238 }
 0x334   : > { %3701 = vperm.xlu1 %5018, %v5308_v35   ;;  %11138 = vst [vmem:[#allocation32_spill] sm:$0xff] %v8316_v57 }
 0x337   : > { %v8318_v51 = vpop.permute.xlu1 %3248 }
 0x338   : > { %5020 = vset.pattern.permute.xlu1 %v11132_v1  ;;  %11139 = vst [vmem:[#allocation72_spill] sm:$0xff] %v8318_v51 }
 0x339   : > { %3953 = vperm.xlu1 %5020, %v5309_v24  }
 0x33b   : > { %v8320_v37 = vpop.permute.xlu1 %3253 }
 0x33d   : > { %5021 = vset.pattern.permute.xlu1 %v11137_v55 }
 0x33e   : > { %4197 = vperm.xlu1 %5021, %v5310_v34  }
 0x33f   : > { %v8322_v27 = vpop.permute.xlu1 %3263 }
 0x340   : > { %11140 = vst [vmem:[#allocation80_spill] sm:$0xff] %v8322_v27 }
 0x342   : > { %5023 = vset.pattern.permute.xlu1 %v11125_v53 }
 0x343   : > { %v8324_v52 = vpop.permute.xlu1 %3273 }
 0x344   : > { %11141 = vst [vmem:[#allocation8_spill] sm:$0xff] %v8324_v52 }
 0x347   : > { %v8326_v8 = vpop.permute.xlu1 %3361 }
 0x348   : > { %11142 = vst [vmem:[#allocation20_spill] sm:$0xff] %v8326_v8 }
 0x34b   : > { %v8328_v44 = vpop.permute.xlu1 %3365 }
 0x34c   : > { %11143 = vst [vmem:[#allocation87_spill] sm:$0xff] %v8328_v44 }
 0x34f   : > { %v8349_v48 = vpop.permute.xlu1 %3373 }
 0x350   : > { %11144 = vst [vmem:[#allocation93_spill] sm:$0xff] %v8349_v48 }
 0x353   : > { %v8365_v39 = vpop.permute.xlu1 %3381 }
 0x354   : > { %11145 = vst [vmem:[#allocation104_spill] sm:$0xff] %v8365_v39 }
 0x357   : > { %v8375_v23 = vpop.permute.xlu1 %3489 }
 0x358   : > { %11146 = vst [vmem:[#allocation52_spill] sm:$0xff] %v8375_v23 }
 0x35b   : > { %v8391_v43 = vpop.permute.xlu1 %3613 }
 0x35c   : > { %11147 = vst [vmem:[#allocation85_spill] sm:$0xff] %v8391_v43 }
 0x3ec   : > { %v8330_v17 = vpop.f32.mrb[0].mxu1 }
 0x3ed   : > { %v8333_v0 = vmul.f32 0.70710677, %v8330_v17  ;;  %v8335_v53 = vpop.f32.mrb[1].mxu1 }
 0x3ee   : > { %v8338_v10 = vmul.f32 0.70710677, %v8335_v53  ;;  %v8340_v5 = vpop.f32.mrb[2].mxu1 }
 0x3ef   : > { %v2796_v4 = vand.u32 2147483647, %v8333_v0  ;;  %v8344_v21 = vmul.f32 0.70710677, %v8340_v5  ;;  %v8347_v49 = vpop.f32.mrb[3].mxu1  ;;  %vm2764_vm11 = vcmp.ge.f32.partialorder %v8333_v0, 0.0 }
 0x3f0   : > { %v2797_v59 = vand.u32 2147483647, %v8338_v10  ;;  %v8355_v15 = vmul.f32 0.70710677, %v8347_v49  ;;  %vm2765_vm12 = vcmp.ge.f32.partialorder %v8338_v10, 0.0 }
 0x3f1   : > { %v2812_v12 = vmul.f32 0.3275911, %v2796_v4  ;;  %v8352_v41 = vand.u32 2147483647, %v8344_v21  ;;  %v3004_v18 = vsub.f32 0.0, %v2796_v4  ;;  %v2781_v0 = vsel %vm2765_vm12, 1.0, %v11089_v62 }
 0x3f2   : > { %v2813_v9 = vmul.f32 0.3275911, %v2797_v59  ;;  %v8361_v46 = vand.u32 2147483647, %v8355_v15  ;;  %v3005_v58 = vsub.f32 0.0, %v2797_v59  ;;  %vm2766_vm13 = vcmp.ge.f32.partialorder %v8344_v21, 0.0 }
 0x3f3   : > { %v2828_v42 = vadd.f32 1.0, %v2812_v12  ;;  %v2814_v31 = vmul.f32 0.3275911, %v8352_v41  ;;  %v3020_v20 = vmul.f32 %v3004_v18, %v2796_v4  ;;  %vm2767_vm14 = vcmp.ge.f32.partialorder %v8355_v15, 0.0 }
 0x3f4   : > { %v2829_v45 = vadd.f32 1.0, %v2813_v9  ;;  %v8358_v2 = vpop.f32.mrb[4].mxu1  ;;  %v2815_v63 = vmul.f32 0.3275911, %v8361_v46  ;;  %v3021_v13 = vmul.f32 %v3005_v58, %v2797_v59  ;;  %v2783_v15 = vsel %vm2767_vm14, 1.0, %v11089_v62 }
 0x3f5   : > { %5168 = vrcp.f32 %v2828_v42  ;;  %v8363_v47 = vpop.f32.mrb[5].mxu1  ;;  %v2830_v60 = vadd.f32 1.0, %v2814_v31  ;;  %v8373_v50 = vmul.f32 0.70710677, %v8358_v2  ;;  %v3036_v32 = vmul.f32 1.442695, %v3020_v20 }
 0x3f6   : > { %5170 = vrcp.f32 %v2829_v45  ;;  %v8367_v14 = vpop.f32.mrb[6].mxu1  ;;  %v2831_v11 = vadd.f32 1.0, %v2815_v63  ;;  %v8387_v36 = vmul.f32 0.70710677, %v8363_v47  ;;  %v3038_v35 = vmul.f32 1.442695, %v3021_v13 }
 0x3f7   : > { %v8370_v3 = vpop.f32.mrb[7].mxu1  ;;  %5172 = vrcp.f32 %v2830_v60  ;;  %v8382_v30 = vand.u32 2147483647, %v8373_v50  ;;  %vm2768_vm15 = vcmp.ge.f32.partialorder %v8373_v50, 0.0 }
 0x3f8   : > { %5174 = vrcp.f32 %v2831_v11  ;;  %v8400_v9 = vand.u32 2147483647, %v8387_v36  ;;  %v3006_v11 = vsub.f32 0.0, %v8352_v41  ;;  %vm2769_vm0 = vcmp.ge.f32.partialorder %v8387_v36, 0.0 }
 0x3f9   : > { %v2816_v4 = vmul.f32 0.3275911, %v8382_v30  ;;  %5176 = vpow2.f32 %v3036_v32  ;;  %v3008_v21 = vsub.f32 0.0, %v8382_v30 }
 0x3fa   : > { %5178 = vpow2.f32 %v3038_v35  ;;  %v3022_v35 = vmul.f32 %v3006_v11, %v8352_v41 }
 0x3fb   : > { %v2832_v13 = vadd.f32 1.0, %v2816_v4 }
 0x3fc   : > { %v8377_v19 = vpop.f32.mrb[8].mxu1 }
 0x3fd   : > { %v8379_v22 = vpop.f32.mrb[9].mxu1  ;;  %5180 = vrcp.f32 %v2832_v13 }
 0x3fe   : > { %v8384_v25 = vpop.f32.mrb[10].mxu1 }
 0x3ff   : > { %v5169_v61 = vpop.eup %5168  ;;  %v8389_v56 = vpop.f32.mrb[11].mxu1 }
 0x400   : > { %v5171_v26 = vpop.eup %5170  ;;  %v2860_v38 = vmul.f32 1.0614054, %v5169_v61 }
 0x401   : > { %v2861_v33 = vmul.f32 1.0614054, %v5171_v26  ;;  %v8393_v16 = vpop.eup %5172 }
 0x402   : > { %v2876_v40 = vadd.f32 -1.4531521, %v2860_v38  ;;  %v2862_v34 = vmul.f32 1.0614054, %v8393_v16  ;;  %v8404_v60 = vpop.eup %5174  ;;  %v8410_v38 = vpop.permute.xlu1 %3493 }
 0x403   : > { %v2877_v54 = vadd.f32 -1.4531521, %v2861_v33  ;;  %11148 = vst [vmem:[#allocation91_spill] sm:$0xff] %v8410_v38 }
 0x404   : > { %v2892_v24 = vmul.f32 %v5169_v61, %v2876_v40  ;;  %v8397_v59 = vpop.f32.mrb[12].mxu1  ;;  %v2878_v31 = vadd.f32 -1.4531521, %v2862_v34 }
 0x405   : > { %v2893_v12 = vmul.f32 %v5171_v26, %v2877_v54  ;;  %v8402_v42 = vpop.f32.mrb[13].mxu1  ;;  %v2817_v54 = vmul.f32 0.3275911, %v8400_v9 }
 0x406   : > { %v2908_v45 = vadd.f32 1.4214138, %v2892_v24  ;;  %v8407_v18 = vpop.f32.mrb[14].mxu1  ;;  %v2894_v20 = vmul.f32 %v8393_v16, %v2878_v31  ;;  %v8416_v24 = vmul.f32 0.70710677, %v8367_v14  ;;  %v8424_v52 = vpop.permute.xlu1 %3497 }
 0x407   : > { %v2909_v63 = vadd.f32 1.4214138, %v2893_v12  ;;  %v8412_v33 = vpop.f32.mrb[15].mxu1  ;;  %v2863_v12 = vmul.f32 1.0614054, %v8404_v60  ;;  %v2833_v38 = vadd.f32 1.0, %v2817_v54 }
 0x408   : > { %v2924_v58 = vmul.f32 %v5169_v61, %v2908_v45  ;;  %v2910_v34 = vadd.f32 1.4214138, %v2894_v20  ;;  %v3040_v20 = vmul.f32 1.442695, %v3022_v35  ;;  %vm2770_vm1 = vcmp.ge.f32.partialorder %v8416_v24, 0.0 }
 0x409   : > { %v2925_v40 = vmul.f32 %v5171_v26, %v2909_v63  ;;  %v8422_v63 = vand.u32 2147483647, %v8416_v24  ;;  %v2879_v8 = vadd.f32 -1.4531521, %v2863_v12  ;;  %5182 = vrcp.f32 %v2833_v38 }
 0x40a   : > { %v2940_v32 = vadd.f32 -0.28449672, %v2924_v58  ;;  %v2926_v4 = vmul.f32 %v8393_v16, %v2910_v34  ;;  %5184 = vpow2.f32 %v3040_v20  ;;  %v8431_v12 = vpop.permute.xlu1 %3681 }
 0x40b   : > { %v2941_v51 = vadd.f32 -0.28449672, %v2925_v40  ;;  %v5177_v40 = vpop.eup %5176  ;;  %v2818_v41 = vmul.f32 0.3275911, %v8422_v63  ;;  %v2895_v54 = vmul.f32 %v8404_v60, %v2879_v8  ;;  %11149 = vst [vmem:[#allocation82_spill] sm:$0xff] %v8431_v12  ;;  %v3007_v8 = vsub.f32 0.0, %v8361_v46 }
 0x40c   : > { %v2956_v45 = vmul.f32 %v5169_v61, %v2940_v32  ;;  %v2942_v23 = vadd.f32 -0.28449672, %v2926_v4  ;;  %v5179_v11 = vpop.eup %5178  ;;  %v8440_v4 = vmul.f32 0.70710677, %v8370_v3 }
 0x40d   : > { %v2957_v31 = vmul.f32 %v5171_v26, %v2941_v51  ;;  %v8434_v38 = vpop.eup %5180 }
 0x40e   : > { %v2972_v44 = vadd.f32 0.2548296, %v2956_v45  ;;  %v2958_v13 = vmul.f32 %v8393_v16, %v2942_v23  ;;  %v2911_v23 = vadd.f32 1.4214138, %v2895_v54  ;;  %v8454_v54 = vand.u32 2147483647, %v8440_v4 }
 0x40f   : > { %v2973_v58 = vadd.f32 0.2548296, %v2957_v31  ;;  %v8442_v31 = vpop.permute.xlu1 %3621 }
 0x410   : > { %v2988_v39 = vmul.f32 %v5169_v61, %v2972_v44  ;;  %v2780_v44 = vsel %vm2764_vm11, 1.0, %v11089_v62  ;;  %11150 = vst [vmem:[#allocation74_spill] sm:$0xff] %v8442_v31  ;;  %vm2771_vm11 = vcmp.ge.f32.partialorder %v8440_v4, 0.0 }
 0x411   : > { %v2989_v6 = vmul.f32 %v5171_v26, %v2973_v58  ;;  %v2834_v26 = vadd.f32 1.0, %v2818_v41  ;;  %v2864_v58 = vmul.f32 1.0614054, %v8434_v38 }
 0x412   : > { %v3068_v51 = vmul.f32 %v5177_v40, %v2988_v39  ;;  %v2974_v39 = vadd.f32 0.2548296, %v2958_v13  ;;  %v3117_v13 = vmul.f32 0.5, %v8335_v53 }
 0x413   : > { %v3069_v32 = vmul.f32 %v5179_v11, %v2989_v6  ;;  %v3116_v6 = vmul.f32 0.5, %v8330_v17  ;;  %5186 = vrcp.f32 %v2834_v26  ;;  %v2927_v11 = vmul.f32 %v8404_v60, %v2911_v23 }
 0x414   : > { %v3084_v34 = vsub.f32 1.0, %v3068_v51  ;;  %v2990_v41 = vmul.f32 %v8393_v16, %v2974_v39  ;;  %v8449_v51 = vpop.eup %5182  ;;  %v3023_v17 = vmul.f32 %v3007_v8, %v8361_v46  ;;  %v8463_v46 = vpop.permute.xlu1 %3805 }
 0x415   : > { %v3085_v61 = vsub.f32 1.0, %v3069_v32  ;;  %v5185_v32 = vpop.eup %5184  ;;  %v2865_v26 = vmul.f32 1.0614054, %v8449_v51  ;;  %11154 = vst [vmem:[#allocation86_spill] sm:$0xff] %v8463_v46 }
 0x416   : > { %v3100_v35 = vmul.f32 %v3084_v34, %v2780_v44  ;;  %v2880_v34 = vadd.f32 -1.4531521, %v2864_v58  ;;  %v3070_v44 = vmul.f32 %v5185_v32, %v2990_v41  ;;  %v3042_v53 = vmul.f32 1.442695, %v3023_v17 }
 0x417   : > { %v3101_v45 = vmul.f32 %v3085_v61, %v2781_v0  ;;  %v2943_v61 = vadd.f32 -0.28449672, %v2927_v11  ;;  %v2819_v0 = vmul.f32 0.3275911, %v8454_v54  ;;  %v2881_v8 = vadd.f32 -1.4531521, %v2865_v26 }
 0x418   : > { %v3132_v10 = vadd.f32 1.0, %v3100_v35  ;;  %v8465_v35 = vpop.permute.xlu0 %3243  ;;  %v2896_v39 = vmul.f32 %v8434_v38, %v2880_v34  ;;  %v3086_v23 = vsub.f32 1.0, %v3070_v44  ;;  %5188 = vpow2.f32 %v3042_v53  ;;  %v8481_v58 = vpop.permute.xlu1 %3809 }
 0x419   : > { %v3133_v40 = vadd.f32 1.0, %v3101_v45  ;;  %11155 = vst [vmem:[#allocation90_spill] sm:$0xff] %v8465_v35  ;;  %v2959_v45 = vmul.f32 %v8404_v60, %v2943_v61  ;;  %11158 = vst [vmem:[#allocation96_spill] sm:$0xff] %v8481_v58  ;;  %v2897_v32 = vmul.f32 %v8449_v51, %v2881_v8  ;;  %v8490_v44 = vmul.f32 0.70710677, %v8377_v19 }
 0x41a   : > { %v8445_v20 = vmul.f32 %v3132_v10, %v3116_v6  ;;  %v2835_v10 = vadd.f32 1.0, %v2819_v0  ;;  %v2912_v41 = vadd.f32 1.4214138, %v2896_v39  ;;  %v3024_v26 = vmul.f32 %v3008_v21, %v8382_v30 }
 0x41b   : > { %v8460_v16 = vmul.f32 %v3133_v40, %v3117_v13  ;;  %v2782_v40 = vsel %vm2766_vm13, 1.0, %v11089_v62  ;;  %v2975_v13 = vadd.f32 0.2548296, %v2959_v45  ;;  %v3009_v53 = vsub.f32 0.0, %v8400_v9 }
 0x41c   : > { %11151 = vst [vmem:[#allocation42_spill] sm:$0xff] %v8445_v20  ;;  %3292 = vrot.lane.b32.xlu0 %v8445_v20, %s5401_s12  ;;  %3172 = vrot.lane.b32.xlu1 %v8445_v20, %s11152_s25  ;;  %v8485_v11 = vpop.permute.xlu0 %3258  ;;  %v3102_v17 = vmul.f32 %v3086_v23, %v2782_v40  ;;  %5190 = vrcp.f32 %v2835_v10  ;;  %v2928_v61 = vmul.f32 %v8434_v38, %v2912_v41  ;;  %v2913_v23 = vadd.f32 1.4214138, %v2897_v32  ;;  %v8500_v8 = vpop.permute.xlu1 %3501 }
 0x41d   : > { %11153 = vst [vmem:[#allocation84_spill] sm:$0xff] %v8460_v16  ;;  %v8475_v6 = vpop.eup %5186  ;;  %11159 = vst [vmem:[#allocation16_spill] sm:$0xff] %v8485_v11  ;;  %v2991_v39 = vmul.f32 %v8404_v60, %v2975_v13  ;;  %v8503_v10 = vand.u32 2147483647, %v8490_v44  ;;  %v8506_v40 = vmul.f32 0.70710677, %v8379_v22 }
 0x41e   : > { %v2866_v34 = vmul.f32 1.0614054, %v8475_v6  ;;  %v3134_v0 = vadd.f32 1.0, %v3102_v17  ;;  %11160 = vst [vmem:[#allocation88_spill] sm:$0xff] %v8500_v8  ;;  %v3118_v41 = vmul.f32 0.5, %v8340_v5  ;;  %v3025_v17 = vmul.f32 %v3009_v53, %v8400_v9 }
 0x41f   : > { %v2944_v60 = vadd.f32 -0.28449672, %v2928_v61  ;;  %v3044_v21 = vmul.f32 1.442695, %v3024_v26  ;;  %v2820_v5 = vmul.f32 0.3275911, %v8503_v10 }
 0x420   : > { %3420 = vrot.lane.b32.xlu1 %v8445_v20, %s11156_s26  ;;  %3308 = vrot.lane.b32.xlu0 %v8460_v16, %s5401_s12  ;;  %v2882_v45 = vadd.f32 -1.4531521, %v2866_v34  ;;  %v8508_v31 = vpop.permute.xlu0 %3268  ;;  %v8516_v13 = vmul.f32 %v3134_v0, %v3118_v41  ;;  %v2929_v34 = vmul.f32 %v8449_v51, %v2913_v23  ;;  %v8522_v12 = vand.u32 2147483647, %v8506_v40  ;;  %v8528_v61 = vpop.permute.xlu1 %3685 }
 0x421   : > { %11161 = vst [vmem:[#allocation94_spill] sm:$0xff] %v8508_v31  ;;  %11164 = vst [vmem:[#allocation89_spill] sm:$0xff] %v8528_v61  ;;  %5192 = vpow2.f32 %v3044_v21  ;;  %v3046_v9 = vmul.f32 1.442695, %v3025_v17  ;;  %v3010_v26 = vsub.f32 0.0, %v8422_v63  ;;  %v2960_v23 = vmul.f32 %v8434_v38, %v2944_v60 }
 0x422   : > { %v5189_v30 = vpop.eup %5188  ;;  %11163 = vst [vmem:[#allocation26_spill] sm:$0xff] %v8516_v13  ;;  %v2898_v58 = vmul.f32 %v8475_v6, %v2882_v45  ;;  %v2945_v45 = vadd.f32 -0.28449672, %v2929_v34  ;;  %v2821_v35 = vmul.f32 0.3275911, %v8522_v12  ;;  %v3013_v48 = vsub.f32 0.0, %v8522_v12 }
 0x423   : > { %v3071_v32 = vmul.f32 %v5189_v30, %v2991_v39  ;;  %v2836_v30 = vadd.f32 1.0, %v2820_v5  ;;  %v8539_v61 = vmul.f32 0.70710677, %v8384_v25  ;;  %5194 = vpow2.f32 %v3046_v9 }
 0x424   : > { %3548 = vrot.lane.b32.xlu1 %v8445_v20, %s11157_s16  ;;  %3756 = vrot.lane.b32.xlu0 %v8460_v16, %s10731_s17  ;;  %v8534_v0 = vpop.permute.xlu0 %3357  ;;  %v2914_v41 = vadd.f32 1.4214138, %v2898_v58  ;;  %v3026_v21 = vmul.f32 %v3010_v26, %v8422_v63  ;;  %v2976_v17 = vadd.f32 0.2548296, %v2960_v23  ;;  %v8550_v5 = vpop.permute.xlu1 %3689  ;;  %v2837_v31 = vadd.f32 1.0, %v2821_v35 }
 0x425   : > { %11165 = vst [vmem:[#allocation95_spill] sm:$0xff] %v8534_v0  ;;  %v3087_v39 = vsub.f32 1.0, %v3071_v32  ;;  %v2961_v32 = vmul.f32 %v8449_v51, %v2945_v45  ;;  %5196 = vrcp.f32 %v2836_v30  ;;  %v8553_v28 = vand.u32 2147483647, %v8539_v61 }
 0x426   : > { %v8532_v53 = vpop.eup %5190  ;;  %v2930_v34 = vmul.f32 %v8475_v6, %v2914_v41  ;;  %v3048_v63 = vmul.f32 1.442695, %v3026_v21  ;;  %5198 = vrcp.f32 %v2837_v31  ;;  %v8571_v21 = vmul.f32 0.70710677, %v8389_v56 }
 0x427   : > { %v2867_v60 = vmul.f32 1.0614054, %v8532_v53  ;;  %v3103_v58 = vmul.f32 %v3087_v39, %v2783_v15  ;;  %v2992_v39 = vmul.f32 %v8434_v38, %v2976_v17  ;;  %v2977_v23 = vadd.f32 0.2548296, %v2961_v32 }
 0x428   : > { %3740 = vrot.lane.b32.xlu1 %v8445_v20, %s10731_s17  ;;  %3884 = vrot.lane.b32.xlu0 %v8460_v16, %s10729_s30  ;;  %v8555_v46 = vpop.permute.xlu0 %3369  ;;  %v2946_v45 = vadd.f32 -0.28449672, %v2930_v34  ;;  %v8562_v41 = vpop.permute.xlu1 %3937  ;;  %v2822_v30 = vmul.f32 0.3275911, %v8553_v28  ;;  %v3119_v15 = vmul.f32 0.5, %v8347_v49  ;;  %5200 = vpow2.f32 %v3048_v63 }
 0x429   : > { %v2883_v9 = vadd.f32 -1.4531521, %v2867_v60  ;;  %v3135_v26 = vadd.f32 1.0, %v3103_v58  ;;  %11167 = vst [vmem:[#allocation43_spill] sm:$0xff] %v8562_v41  ;;  %v2993_v17 = vmul.f32 %v8449_v51, %v2977_v23  ;;  %v3011_v34 = vsub.f32 0.0, %v8454_v54 }
 0x42a   : > { %v2962_v49 = vmul.f32 %v8475_v6, %v2946_v45  ;;  %v2838_v41 = vadd.f32 1.0, %v2822_v30  ;;  %v8587_v63 = vand.u32 2147483647, %v8571_v21  ;;  %vm2772_vm12 = vcmp.ge.f32.partialorder %v8490_v44, 0.0 }
 0x42b   : > { %v5193_v35 = vpop.eup %5192  ;;  %v2899_v38 = vmul.f32 %v8532_v53, %v2883_v9  ;;  %v8574_v60 = vmul.f32 %v3135_v26, %v3119_v15  ;;  %v8594_v26 = vmul.f32 0.70710677, %v8397_v59  ;;  %v3027_v30 = vmul.f32 %v3011_v34, %v8454_v54 }
 0x42c   : > { %3868 = vrot.lane.b32.xlu1 %v8445_v20, %s10729_s30  ;;  %4012 = vrot.lane.b32.xlu0 %v8460_v16, %s11162_s18  ;;  %v8576_v58 = vpop.permute.xlu0 %3377  ;;  %v3072_v31 = vmul.f32 %v5193_v35, %v2992_v39  ;;  %v8589_v9 = vpop.permute.xlu1 %3629  ;;  %v2978_v45 = vadd.f32 0.2548296, %v2962_v49  ;;  %v2784_v35 = vsel %vm2768_vm15, 1.0, %v11089_v62  ;;  %5202 = vrcp.f32 %v2838_v41 }
 0x42d   : > { %11168 = vst [vmem:[#allocation97_spill] sm:$0xff] %v8574_v60  ;;  %11169 = vst [vmem:[#allocation100_spill] sm:$0xff] %v8576_v58  ;;  %v5195_v32 = vpop.eup %5194  ;;  %v2915_v50 = vadd.f32 1.4214138, %v2899_v38  ;;  %v2823_v43 = vmul.f32 0.3275911, %v8587_v63 }
 0x42e   : > { %11170 = vst [vmem:[#allocation33_spill] sm:$0xff] %v8589_v9  ;;  %v3088_v39 = vsub.f32 1.0, %v3072_v31  ;;  %v3073_v23 = vmul.f32 %v5195_v32, %v2993_v17  ;;  %v8610_v31 = vand.u32 2147483647, %v8594_v26  ;;  %v8613_v54 = vmul.f32 0.70710677, %v8402_v42 }
 0x42f   : > { %v8591_v51 = vpop.eup %5196  ;;  %v2994_v17 = vmul.f32 %v8475_v6, %v2978_v45  ;;  %v2931_v49 = vmul.f32 %v8532_v53, %v2915_v50  ;;  %v3120_v58 = vmul.f32 0.5, %v8358_v2  ;;  %v2839_v0 = vadd.f32 1.0, %v2823_v43 }
 0x430   : > { %3996 = vrot.lane.b32.xlu1 %v8445_v20, %s11162_s18  ;;  %3174 = vrot.lane.b32.xlu0 %v8516_v13, %s11152_s25  ;;  %v8598_v15 = vpop.permute.xlu0 %3385  ;;  %v8607_v38 = vpop.eup %5198  ;;  %v3104_v41 = vmul.f32 %v3088_v39, %v2784_v35  ;;  %v3089_v36 = vsub.f32 1.0, %v3073_v23  ;;  %v2824_v6 = vmul.f32 0.3275911, %v8610_v31  ;;  %v8628_v39 = vand.u32 2147483647, %v8613_v54 }
 0x431   : > { %11171 = vst [vmem:[#allocation37_spill] sm:$0xff] %v8598_v15  ;;  %v8617_v32 = vpop.permute.xlu1 %3817  ;;  %v2785_v15 = vsel %vm2769_vm0, 1.0, %v11089_v62  ;;  %v2869_v57 = vmul.f32 1.0614054, %v8607_v38  ;;  %v8631_v23 = vmul.f32 0.70710677, %v8407_v18  ;;  %5204 = vrcp.f32 %v2839_v0 }
 0x432   : > { %v5201_v34 = vpop.eup %5200  ;;  %v3136_v2 = vadd.f32 1.0, %v3104_v41  ;;  %v2947_v43 = vadd.f32 -0.28449672, %v2931_v49  ;;  %v3121_v35 = vmul.f32 0.5, %v8363_v47  ;;  %v2825_v47 = vmul.f32 0.3275911, %v8628_v39 }
 0x433   : > { %v3074_v50 = vmul.f32 %v5201_v34, %v2994_v17  ;;  %v2885_v9 = vadd.f32 -1.4531521, %v2869_v57  ;;  %v2786_v49 = vsel %vm2770_vm1, 1.0, %v11089_v62  ;;  %v3012_v34 = vsub.f32 0.0, %v8503_v10 }
 0x434   : > { %4124 = vrot.lane.b32.xlu1 %v8445_v20, %s11166_s14  ;;  %3422 = vrot.lane.b32.xlu0 %v8516_v13, %s11156_s26  ;;  %v2868_v20 = vmul.f32 1.0614054, %v8591_v51  ;;  %v8633_v45 = vpop.permute.xlu0 %3485  ;;  %v2963_v17 = vmul.f32 %v8532_v53, %v2947_v43  ;;  %vm2773_vm13 = vcmp.ge.f32.partialorder %v8506_v40, 0.0  ;;  %vm2774_vm14 = vcmp.ge.f32.partialorder %v8539_v61, 0.0 }
 0x435   : > { %11172 = vst [vmem:[#allocation105_spill] sm:$0xff] %v8633_v45  ;;  %v8642_v8 = vpop.permute.xlu1 %4061  ;;  %v3090_v0 = vsub.f32 1.0, %v3074_v50  ;;  %vm2775_vm15 = vcmp.ge.f32.partialorder %v8571_v21, 0.0  ;;  %vm2776_vm0 = vcmp.ge.f32.partialorder %v8594_v26, 0.0  ;;  %vm2777_vm1 = vcmp.ge.f32.partialorder %v8613_v54, 0.0 }
 0x436   : > { %v2884_v27 = vadd.f32 -1.4531521, %v2868_v20  ;;  %v3105_v20 = vmul.f32 %v3089_v36, %v2785_v15  ;;  %11173 = vst [vmem:[#allocation9_spill] sm:$0xff] %v8642_v8  ;;  %v8644_v41 = vpop.eup %5202  ;;  %v2840_v15 = vadd.f32 1.0, %v2824_v6  ;;  %v8648_v36 = vand.u32 2147483647, %v8631_v23 }
 0x437   : > { %v2901_v6 = vmul.f32 %v8607_v38, %v2885_v9  ;;  %v2870_v45 = vmul.f32 1.0614054, %v8644_v41  ;;  %v3106_v50 = vmul.f32 %v3090_v0, %v2786_v49  ;;  %v2979_v43 = vadd.f32 0.2548296, %v2963_v17 }
 0x438   : > { %3188 = vrot.lane.b32.xlu1 %v8460_v16, %s11152_s25  ;;  %3550 = vrot.lane.b32.xlu0 %v8516_v13, %s11157_s16  ;;  %v3137_v57 = vadd.f32 1.0, %v3105_v20  ;;  %v8657_v8 = vpop.permute.xlu0 %3505  ;;  %v2826_v24 = vmul.f32 0.3275911, %v8648_v36  ;;  %v3122_v0 = vmul.f32 0.5, %v8367_v14  ;;  %v3018_v40 = vsub.f32 0.0, %v8648_v36 }
 0x439   : > { %11174 = vst [vmem:[#allocation99_spill] sm:$0xff] %v8657_v8  ;;  %v8671_v9 = vpop.permute.xlu1 %3513  ;;  %v2917_v11 = vadd.f32 1.4214138, %v2901_v6  ;;  %v3138_v17 = vadd.f32 1.0, %v3106_v50  ;;  %v2995_v49 = vmul.f32 %v8532_v53, %v2979_v43 }
 0x43a   : > { %v8669_v20 = vmul.f32 %v3137_v57, %v3121_v35  ;;  %11175 = vst [vmem:[#allocation92_spill] sm:$0xff] %v8671_v9  ;;  %v2842_v35 = vadd.f32 1.0, %v2826_v24 }
 0x43b   : > { %v8683_v57 = vpop.eup %5204 }
 0x43c   : > { %3436 = vrot.lane.b32.xlu1 %v8460_v16, %s11156_s26  ;;  %4126 = vrot.lane.b32.xlu0 %v8516_v13, %s11166_s14  ;;  %v2871_v24 = vmul.f32 1.0614054, %v8683_v57 }
 0x440   : > { %3564 = vrot.lane.b32.xlu1 %v8460_v16, %s11157_s16  ;;  %3190 = vrot.lane.b32.xlu0 %v8574_v60, %s11152_s25 }
 0x444   : > { %4140 = vrot.lane.b32.xlu1 %v8460_v16, %s11166_s14  ;;  %3438 = vrot.lane.b32.xlu0 %v8574_v60, %s11156_s26  ;;  %v3050_v16 = vmul.f32 1.442695, %v3027_v30  ;;  %v2900_v30 = vmul.f32 %v8591_v51, %v2884_v27  ;;  %v8650_v27 = vmul.f32 %v3136_v2, %v3120_v58  ;;  %v2841_v58 = vadd.f32 1.0, %v2825_v47 }
 0x445   : > { %v8667_v2 = vmul.f32 0.70710677, %v8412_v33 }
 0x446   : > { %5206 = vpow2.f32 %v3050_v16  ;;  %v2916_v16 = vadd.f32 1.4214138, %v2900_v30  ;;  %v3028_v30 = vmul.f32 %v3012_v34, %v8503_v10  ;;  %v8685_v10 = vpop.permute.xlu0 %3509 }
 0x447   : > { %5208 = vrcp.f32 %v2840_v15  ;;  %v2886_v15 = vadd.f32 -1.4531521, %v2870_v45  ;;  %v8681_v47 = vand.u32 2147483647, %v8667_v2  ;;  %11176 = vst [vmem:[#allocation29_spill] sm:$0xff] %v8685_v10  ;;  %v3029_v45 = vmul.f32 %v3013_v48, %v8522_v12 }
 0x448   : > { %3294 = vrot.lane.b32.xlu1 %v8516_v13, %s5401_s12  ;;  %3566 = vrot.lane.b32.xlu0 %v8574_v60, %s11157_s16  ;;  %v2932_v8 = vmul.f32 %v8591_v51, %v2916_v16  ;;  %5210 = vrcp.f32 %v2841_v58  ;;  %v3052_v16 = vmul.f32 1.442695, %v3028_v30  ;;  %v8695_v58 = vpop.permute.xlu1 %3693 }
 0x449   : > { %11177 = vst [vmem:[#allocation121_spill] sm:$0xff] %v8695_v58  ;;  %v2902_v14 = vmul.f32 %v8644_v41, %v2886_v15  ;;  %5212 = vrcp.f32 %v2842_v35  ;;  %v2827_v53 = vmul.f32 0.3275911, %v8681_v47  ;;  %v3054_v30 = vmul.f32 1.442695, %v3029_v45 }
 0x44a   : > { %v2948_v6 = vadd.f32 -0.28449672, %v2932_v8  ;;  %v8700_v8 = vmul.f32 %v3138_v17, %v3122_v0  ;;  %5214 = vpow2.f32 %v3052_v16  ;;  %v8705_v48 = vpop.permute.xlu0 %3617  ;;  %v3014_v15 = vsub.f32 0.0, %v8553_v28 }
 0x44b   : > { %11178 = vst [vmem:[#allocation21_spill] sm:$0xff] %v8705_v48  ;;  %v2918_v35 = vadd.f32 1.4214138, %v2902_v14  ;;  %v2887_v0 = vadd.f32 -1.4531521, %v2871_v24  ;;  %v2843_v17 = vadd.f32 1.0, %v2827_v53  ;;  %5216 = vpow2.f32 %v3054_v30 }
 0x44c   : > { %3742 = vrot.lane.b32.xlu1 %v8516_v13, %s10731_s17  ;;  %4142 = vrot.lane.b32.xlu0 %v8574_v60, %s11166_s14  ;;  %v2964_v12 = vmul.f32 %v8591_v51, %v2948_v6  ;;  %v8714_v16 = vpop.permute.xlu1 %3945  ;;  %v3030_v45 = vmul.f32 %v3014_v15, %v8553_v28  ;;  %v3123_v15 = vmul.f32 0.5, %v8370_v3 }
 0x44d   : > { %11179 = vst [vmem:[#allocation108_spill] sm:$0xff] %v8714_v16  ;;  %v2934_v24 = vmul.f32 %v8644_v41, %v2918_v35  ;;  %v2903_v53 = vmul.f32 %v8683_v57, %v2887_v0  ;;  %5218 = vrcp.f32 %v2843_v17  ;;  %v3016_v16 = vsub.f32 0.0, %v8610_v31 }
 0x44e   : > { %v2980_v6 = vadd.f32 0.2548296, %v2964_v12  ;;  %v8729_v4 = vpop.permute.xlu0 %3625  ;;  %v3056_v10 = vmul.f32 1.442695, %v3030_v45 }
 0x450   : > { %3870 = vrot.lane.b32.xlu1 %v8516_v13, %s10729_s30  ;;  %3296 = vrot.lane.b32.xlu0 %v8650_v27, %s5401_s12  ;;  %v5207_v34 = vpop.eup %5206  ;;  %v2996_v9 = vmul.f32 %v8591_v51, %v2980_v6  ;;  %v8741_v35 = vpop.permute.xlu1 %4189  ;;  %5220 = vpow2.f32 %v3056_v10 }
 0x451   : > { %v8702_v50 = vpop.eup %5208  ;;  %11180 = vst [vmem:[#allocation117_spill] sm:$0xff] %v8741_v35 }
 0x452   : > { %v8716_v48 = vpop.eup %5210  ;;  %v8745_v6 = vpop.permute.xlu0 %3633 }
 0x453   : > { %v2873_v30 = vmul.f32 1.0614054, %v8716_v48  ;;  %v8732_v28 = vpop.eup %5212  ;;  %11181 = vst [vmem:[#allocation107_spill] sm:$0xff] %v8745_v6  ;;  %v11240_v6 = vld [vmem:[#allocation111_spill] sm:$0xff] }
 0x454   : > { %3998 = vrot.lane.b32.xlu1 %v8516_v13, %s11162_s18  ;;  %3312 = vrot.lane.b32.xlu0 %v8669_v20, %s5401_s12  ;;  %v2933_v13 = vmul.f32 %v8607_v38, %v2917_v11  ;;  %v3075_v11 = vmul.f32 %v5207_v34, %v2995_v49  ;;  %v2872_v34 = vmul.f32 1.0614054, %v8702_v50  ;;  %v5215_v0 = vpop.eup %5214  ;;  %v2874_v51 = vmul.f32 1.0614054, %v8732_v28 }
 0x455   : > { %v2889_v58 = vadd.f32 -1.4531521, %v2873_v30  ;;  %v3076_v45 = vmul.f32 %v5215_v0, %v2996_v9  ;;  %v5217_v9 = vpop.eup %5216  ;;  %v8760_v30 = vpop.permute.xlu1 %3641 }
 0x456   : > { %v2949_v43 = vadd.f32 -0.28449672, %v2933_v13  ;;  %v3091_v49 = vsub.f32 1.0, %v3075_v11  ;;  %v2787_v13 = vsel %vm2771_vm11, 1.0, %v11089_v62  ;;  %v2888_v12 = vadd.f32 -1.4531521, %v2872_v34 }
 0x457   : > { %v2919_v34 = vadd.f32 1.4214138, %v2903_v53  ;;  %11182 = vst [vmem:[#allocation49_spill] sm:$0xff] %v8760_v30  ;;  %v3092_v0 = vsub.f32 1.0, %v3076_v45  ;;  %vm2778_vm11 = vcmp.ge.f32.partialorder %v8631_v23, 0.0 }
 0x458   : > { %3310 = vrot.lane.b32.xlu1 %v8574_v60, %s5401_s12  ;;  %3888 = vrot.lane.b32.xlu0 %v8669_v20, %s10729_s30  ;;  %v2965_v14 = vmul.f32 %v8607_v38, %v2949_v43  ;;  %v3107_v11 = vmul.f32 %v3091_v49, %v2787_v13  ;;  %v3015_v43 = vsub.f32 0.0, %v8587_v63  ;;  %v2950_v49 = vadd.f32 -0.28449672, %v2934_v24 }
 0x459   : > { %v2904_v3 = vmul.f32 %v8702_v50, %v2888_v12  ;;  %v2935_v53 = vmul.f32 %v8683_v57, %v2919_v34  ;;  %v2890_v12 = vadd.f32 -1.4531521, %v2874_v51  ;;  %v2789_v51 = vsel %vm2773_vm13, 1.0, %v11089_v62 }
 0x45a   : > { %v2981_v17 = vadd.f32 0.2548296, %v2965_v14  ;;  %v3139_v13 = vadd.f32 1.0, %v3107_v11  ;;  %v2966_v24 = vmul.f32 %v8644_v41, %v2950_v49  ;;  %v2905_v11 = vmul.f32 %v8716_v48, %v2889_v58 }
 0x45b   : > { %v2788_v58 = vsel %vm2772_vm12, 1.0, %v11089_v62  ;;  %v2951_v34 = vadd.f32 -0.28449672, %v2935_v53  ;;  %vm2779_vm12 = vcmp.ge.f32.partialorder %v8667_v2, 0.0 }
 0x45c   : > { %3758 = vrot.lane.b32.xlu1 %v8574_v60, %s10731_s17  ;;  %3178 = vrot.lane.b32.xlu0 %v8700_v8, %s11152_s25  ;;  %v2997_v14 = vmul.f32 %v8607_v38, %v2981_v17  ;;  %v8757_v10 = vmul.f32 %v3139_v13, %v3123_v15  ;;  %v3032_v38 = vmul.f32 %v3016_v16, %v8610_v31  ;;  %v3017_v17 = vsub.f32 0.0, %v8628_v39  ;;  %v8774_v13 = vpop.permute.xlu0 %3637 }
 0x45d   : > { %v2982_v49 = vadd.f32 0.2548296, %v2966_v24  ;;  %11183 = vst [vmem:[#allocation44_spill] sm:$0xff] %v8774_v13  ;;  %v2921_v31 = vadd.f32 1.4214138, %v2905_v11  ;;  %v2906_v16 = vmul.f32 %v8732_v28, %v2890_v12  ;;  %v3108_v45 = vmul.f32 %v3092_v0, %v2788_v58  ;;  %v8787_v24 = vpop.permute.xlu1 %3821 }
 0x45e   : > { %v3077_v15 = vmul.f32 %v5217_v9, %v2997_v14  ;;  %v3060_v44 = vmul.f32 1.442695, %v3032_v38  ;;  %v3033_v14 = vmul.f32 %v3017_v17, %v8628_v39  ;;  %11184 = vst [vmem:[#allocation126_spill] sm:$0xff] %v8787_v24  ;;  %v3124_v38 = vmul.f32 0.5, %v8377_v19  ;;  %v11242_v24 = vld [vmem:[#allocation103_spill] sm:$0xff] }
 0x45f   : > { %v2998_v9 = vmul.f32 %v8644_v41, %v2982_v49  ;;  %v2937_v12 = vmul.f32 %v8716_v48, %v2921_v31  ;;  %v2922_v39 = vadd.f32 1.4214138, %v2906_v16  ;;  %v3140_v58 = vadd.f32 1.0, %v3108_v45 }
 0x460   : > { %3886 = vrot.lane.b32.xlu1 %v8574_v60, %s10729_s30  ;;  %3426 = vrot.lane.b32.xlu0 %v8700_v8, %s11156_s26  ;;  %v3093_v53 = vsub.f32 1.0, %v3077_v15  ;;  %v8794_v17 = vpop.permute.xlu0 %3677  ;;  %v3062_v15 = vmul.f32 1.442695, %v3033_v14 }
 0x461   : > { %11185 = vst [vmem:[#allocation17_spill] sm:$0xff] %v8794_v17  ;;  %v2953_v31 = vadd.f32 -0.28449672, %v2937_v12  ;;  %v2938_v16 = vmul.f32 %v8732_v28, %v2922_v39  ;;  %v8805_v45 = vpop.permute.xlu1 %4073  ;;  %v8808_v14 = vmul.f32 %v3140_v58, %v3124_v38 }
 0x462   : > { %v3109_v41 = vmul.f32 %v3093_v53, %v2789_v51  ;;  %11186 = vst [vmem:[#allocation28_spill] sm:$0xff] %v8805_v45  ;;  %v2790_v51 = vsel %vm2774_vm14, 1.0, %v11089_v62 }
 0x463   : > { %v2969_v61 = vmul.f32 %v8716_v48, %v2953_v31  ;;  %v2954_v12 = vadd.f32 -0.28449672, %v2938_v16  ;;  %v3126_v31 = vmul.f32 0.5, %v8384_v25 }
 0x464   : > { %4014 = vrot.lane.b32.xlu1 %v8574_v60, %s11162_s18  ;;  %3554 = vrot.lane.b32.xlu0 %v8700_v8, %s11157_s16  ;;  %v3031_v60 = vmul.f32 %v3015_v43, %v8587_v63  ;;  %v2920_v63 = vadd.f32 1.4214138, %v2904_v3  ;;  %v8762_v43 = vpop.eup %5218  ;;  %v8814_v53 = vpop.permute.xlu0 %3697 }
 0x465   : > { %v2875_v3 = vmul.f32 1.0614054, %v8762_v43  ;;  %v5221_v11 = vpop.eup %5220  ;;  %11187 = vst [vmem:[#allocation18_spill] sm:$0xff] %v8814_v53  ;;  %v8828_v38 = vpop.permute.xlu1 %3701 }
 0x466   : > { %v3058_v35 = vmul.f32 1.442695, %v3031_v60  ;;  %v2936_v60 = vmul.f32 %v8702_v50, %v2920_v63  ;;  %v2967_v63 = vmul.f32 %v8683_v57, %v2951_v34  ;;  %v3078_v49 = vmul.f32 %v5221_v11, %v2998_v9  ;;  %11188 = vst [vmem:[#allocation30_spill] sm:$0xff] %v8828_v38 }
 0x467   : > { %v2891_v0 = vadd.f32 -1.4531521, %v2875_v3  ;;  %v3141_v9 = vadd.f32 1.0, %v3109_v41 }
 0x468   : > { %3176 = vrot.lane.b32.xlu1 %v8650_v27, %s11152_s25  ;;  %3746 = vrot.lane.b32.xlu0 %v8700_v8, %s10731_s17  ;;  %5222 = vpow2.f32 %v3058_v35  ;;  %v2952_v35 = vadd.f32 -0.28449672, %v2936_v60  ;;  %v2983_v34 = vadd.f32 0.2548296, %v2967_v63  ;;  %v3034_v60 = vmul.f32 %v3018_v40, %v8648_v36 }
 0x469   : > { %5224 = vpow2.f32 %v3060_v44  ;;  %v2907_v3 = vmul.f32 %v8762_v43, %v2891_v0  ;;  %v3125_v44 = vmul.f32 0.5, %v8379_v22  ;;  %v3019_v36 = vsub.f32 0.0, %v8681_v47  ;;  %v8846_v25 = vpop.permute.xlu1 %3953 }
 0x46a   : > { %v2968_v19 = vmul.f32 %v8702_v50, %v2952_v35  ;;  %5226 = vpow2.f32 %v3062_v15  ;;  %v3094_v63 = vsub.f32 1.0, %v3078_v49  ;;  %v2999_v22 = vmul.f32 %v8683_v57, %v2983_v34  ;;  %v8830_v57 = vpop.permute.xlu0 %3705  ;;  %11190 = vst [vmem:[#allocation11_spill] sm:$0xff] %v8846_v25  ;;  %v5313_v25 = vld [vmem:[%s10486_s8 + $0x10] sm:$0xff] }
 0x46b   : > { %v3064_v40 = vmul.f32 1.442695, %v3034_v60  ;;  %v2923_v39 = vadd.f32 1.4214138, %v2907_v3  ;;  %v3035_v0 = vmul.f32 %v3019_v36, %v8681_v47  ;;  %11189 = vst [vmem:[#allocation39_spill] sm:$0xff] %v8830_v57  ;;  %v8832_v58 = vmul.f32 %v3141_v9, %v3125_v44 }
 0x46c   : > { %3424 = vrot.lane.b32.xlu1 %v8650_v27, %s11156_s26  ;;  %3194 = vrot.lane.b32.xlu0 %v8757_v10, %s11152_s25  ;;  %v2984_v35 = vadd.f32 0.2548296, %v2968_v19  ;;  %v3110_v15 = vmul.f32 %v3094_v63, %v2790_v51  ;;  %v2985_v60 = vadd.f32 0.2548296, %v2969_v61  ;;  %v2970_v47 = vmul.f32 %v8732_v28, %v2954_v12 }
 0x46d   : > { %5228 = vpow2.f32 %v3064_v40  ;;  %v2939_v19 = vmul.f32 %v8762_v43, %v2923_v39  ;;  %v2791_v3 = vsel %vm2775_vm15, 1.0, %v11089_v62  ;;  %v8865_v26 = vpop.permute.xlu1 %4197 }
 0x46e   : > { %v3000_v34 = vmul.f32 %v8702_v50, %v2984_v35  ;;  %v3142_v16 = vadd.f32 1.0, %v3110_v15  ;;  %v3066_v50 = vmul.f32 1.442695, %v3035_v0  ;;  %v3001_v9 = vmul.f32 %v8716_v48, %v2985_v60  ;;  %v8848_v40 = vpop.permute.xlu0 %3813  ;;  %11192 = vst [vmem:[#allocation31_spill] sm:$0xff] %v8865_v26 }
 0x46f   : > { %v2986_v63 = vadd.f32 0.2548296, %v2970_v47  ;;  %11191 = vst [vmem:[#allocation34_spill] sm:$0xff] %v8848_v40  ;;  %v2792_v0 = vsel %vm2776_vm0, 1.0, %v11089_v62 }
 0x470   : > { %3552 = vrot.lane.b32.xlu1 %v8650_v27, %s11157_s16  ;;  %3442 = vrot.lane.b32.xlu0 %v8757_v10, %s11156_s26  ;;  %v8855_v21 = vmul.f32 %v3142_v16, %v3126_v31  ;;  %5230 = vpow2.f32 %v3066_v50  ;;  %v3128_v31 = vmul.f32 0.5, %v8397_v59  ;;  %v3129_v59 = vmul.f32 0.5, %v8402_v42 }
 0x471   : > { %v3002_v61 = vmul.f32 %v8732_v28, %v2986_v63  ;;  %v3130_v42 = vmul.f32 0.5, %v8407_v18 }
 0x472   : > { %v5223_v11 = vpop.eup %5222  ;;  %v8867_v15 = vpop.permute.xlu0 %3825 }
 0x473   : > { %v3079_v41 = vmul.f32 %v5223_v11, %v2999_v22  ;;  %v5225_v49 = vpop.eup %5224  ;;  %v2955_v22 = vadd.f32 -0.28449672, %v2939_v19  ;;  %11193 = vst [vmem:[#allocation23_spill] sm:$0xff] %v8867_v15  ;;  %v2793_v19 = vsel %vm2777_vm1, 1.0, %v11089_v62 }
 0x474   : > { %3744 = vrot.lane.b32.xlu1 %v8650_v27, %s10731_s17  ;;  %3570 = vrot.lane.b32.xlu0 %v8757_v10, %s11157_s16  ;;  %v5227_v51 = vpop.eup %5226  ;;  %v3080_v36 = vmul.f32 %v5225_v49, %v3000_v34 }
 0x475   : > { %v3095_v44 = vsub.f32 1.0, %v3079_v41  ;;  %v3081_v48 = vmul.f32 %v5227_v51, %v3001_v9  ;;  %v2971_v12 = vmul.f32 %v8762_v43, %v2955_v22  ;;  %v3127_v41 = vmul.f32 0.5, %v8389_v56 }
 0x476   : > { %v3096_v35 = vsub.f32 1.0, %v3080_v36  ;;  %v2794_v36 = vsel %vm2778_vm11, 1.0, %v11089_v62 }
 0x477   : > { %v3111_v11 = vmul.f32 %v3095_v44, %v2791_v3  ;;  %v5229_v39 = vpop.eup %5228  ;;  %v3097_v34 = vsub.f32 1.0, %v3081_v48  ;;  %v2987_v47 = vadd.f32 0.2548296, %v2971_v12 }
 0x478   : > { %3872 = vrot.lane.b32.xlu1 %v8650_v27, %s10729_s30  ;;  %3762 = vrot.lane.b32.xlu0 %v8757_v10, %s10731_s17  ;;  %v3112_v49 = vmul.f32 %v3096_v35, %v2792_v0  ;;  %v3082_v60 = vmul.f32 %v5229_v39, %v3002_v61 }
 0x479   : > { %v3143_v28 = vadd.f32 1.0, %v3111_v11  ;;  %v3113_v16 = vmul.f32 %v3097_v34, %v2793_v19  ;;  %v3003_v44 = vmul.f32 %v8762_v43, %v2987_v47  ;;  %v3131_v34 = vmul.f32 0.5, %v8412_v33 }
 0x47a   : > { %v3144_v56 = vadd.f32 1.0, %v3112_v49  ;;  %v3098_v3 = vsub.f32 1.0, %v3082_v60  ;;  %v5231_v23 = vpop.eup %5230 }
 0x47b   : > { %v8876_v54 = vmul.f32 %v3143_v28, %v3127_v41  ;;  %v3145_v63 = vadd.f32 1.0, %v3113_v16  ;;  %v3083_v43 = vmul.f32 %v5231_v23, %v3003_v44  ;;  %v2795_v41 = vsel %vm2779_vm12, 1.0, %v11089_v62 }
 0x47c   : > { %3192 = vrot.lane.b32.xlu1 %v8669_v20, %s11152_s25  ;;  %3300 = vrot.lane.b32.xlu0 %v8808_v14, %s5401_s12  ;;  %v8890_v9 = vmul.f32 %v3144_v56, %v3128_v31  ;;  %v3114_v22 = vmul.f32 %v3098_v3, %v2794_v36 }
 0x47d   : > { %v8901_v48 = vmul.f32 %v3145_v63, %v3129_v59  ;;  %v3099_v12 = vsub.f32 1.0, %v3083_v43 }
 0x47e   : > { %v3146_v61 = vadd.f32 1.0, %v3114_v22 }
 0x47f   : > { %v3115_v28 = vmul.f32 %v3099_v12, %v2795_v41 }
 0x480   : > { %3440 = vrot.lane.b32.xlu1 %v8669_v20, %s11156_s26  ;;  %3316 = vrot.lane.b32.xlu0 %v8832_v58, %s5401_s12  ;;  %v8913_v2 = vmul.f32 %v3146_v61, %v3130_v42  ;;  %v8983_v61 = vld [vmem:[%s10486_s8 + $0x30] sm:$0xff] }
 0x481   : > { %v3147_v60 = vadd.f32 1.0, %v3115_v28  ;;  %11209 = vst [vmem:[#allocation7_spill] sm:$0xff] %v8983_v61  ;;  %v5312_v28 = vld [vmem:[%s10486_s8] sm:$0xff] }
 0x483   : > { %v8932_v31 = vmul.f32 %v3147_v60, %v3131_v34 }
 0x484   : > { %3568 = vrot.lane.b32.xlu1 %v8669_v20, %s11157_s16  ;;  %3572 = vrot.lane.b32.xlu0 %v8832_v58, %s11157_s16 }
 0x485   : > { %11199 = vst [vmem:[#allocation123_spill] sm:$0xff] %v8932_v31 }
 0x488   : > { %3760 = vrot.lane.b32.xlu1 %v8669_v20, %s10731_s17  ;;  %3182 = vrot.lane.b32.xlu0 %v8855_v21, %s11152_s25 }
 0x48c   : > { %3298 = vrot.lane.b32.xlu1 %v8700_v8, %s5401_s12  ;;  %3430 = vrot.lane.b32.xlu0 %v8855_v21, %s11156_s26 }
 0x48e   : > { %v8880_v50 = vpop.permute.xlu0 %3292  ;;  %v8882_v51 = vpop.permute.xlu1 %3172 }
 0x490   : > { %3874 = vrot.lane.b32.xlu1 %v8700_v8, %s10729_s30  ;;  %3198 = vrot.lane.b32.xlu0 %v8876_v54, %s11152_s25 }
 0x492   : > { %v8892_v11 = vpop.permute.xlu1 %3420  ;;  %v8894_v35 = vpop.permute.xlu0 %3308 }
 0x494   : > { %3314 = vrot.lane.b32.xlu1 %v8757_v10, %s5401_s12  ;;  %3304 = vrot.lane.b32.xlu0 %v8890_v9, %s5401_s12 }
 0x496   : > { %v8904_v39 = vpop.permute.xlu1 %3548  ;;  %v8906_v0 = vpop.permute.xlu0 %3756 }
 0x497   : > { %11194 = vst [vmem:[#allocation106_spill] sm:$0xff] %v8906_v0  ;;  %v11241_v0 = vld [vmem:[#allocation102_spill] sm:$0xff] }
 0x498   : > { %3890 = vrot.lane.b32.xlu1 %v8757_v10, %s10729_s30  ;;  %3320 = vrot.lane.b32.xlu0 %v8901_v48, %s5401_s12  ;;  %s11221_s30 = smov 113  }
 0x49a   : > { %v8915_v49 = vpop.permute.xlu1 %3740  ;;  %v8917_v18 = vpop.permute.xlu0 %3884 }
 0x49b   : > { %11195 = vst [vmem:[#allocation109_spill] sm:$0xff] %v8915_v49  ;;  %11196 = vst [vmem:[#allocation113_spill] sm:$0xff] %v8917_v18 }
 0x49c   : > { %3180 = vrot.lane.b32.xlu1 %v8808_v14, %s11152_s25  ;;  %3186 = vrot.lane.b32.xlu0 %v8913_v2, %s11152_s25 }
 0x49e   : > { %v8924_v47 = vpop.permute.xlu1 %3868  ;;  %v8926_v19 = vpop.permute.xlu0 %4012 }
 0x49f   : > { %11197 = vst [vmem:[#allocation46_spill] sm:$0xff] %v8924_v47  ;;  %11198 = vst [vmem:[#allocation36_spill] sm:$0xff] %v8926_v19  ;;  %v11239_v47 = vld [vmem:[#allocation110_spill] sm:$0xff] }
 0x4a0   : > { %3428 = vrot.lane.b32.xlu1 %v8808_v14, %s11156_s26  ;;  %3434 = vrot.lane.b32.xlu0 %v8913_v2, %s11156_s26 }
 0x4a2   : > { %v8934_v56 = vpop.permute.xlu1 %3996  ;;  %v8936_v16 = vpop.permute.xlu0 %3174 }
 0x4a3   : > { %11200 = vst [vmem:[#allocation124_spill] sm:$0xff] %v8934_v56  ;;  %11201 = vst [vmem:[#allocation125_spill] sm:$0xff] %v8936_v16 }
 0x4a4   : > { %3556 = vrot.lane.b32.xlu1 %v8808_v14, %s11157_s16  ;;  %3202 = vrot.lane.b32.xlu0 %v8932_v31, %s11152_s25 }
 0x4a6   : > { %v8942_v33 = vpop.permute.xlu1 %4124  ;;  %v8944_v3 = vpop.permute.xlu0 %3422 }
 0x4a7   : > { %11202 = vst [vmem:[#allocation55_spill] sm:$0xff] %v8942_v33  ;;  %11203 = vst [vmem:[#allocation25_spill] sm:$0xff] %v8944_v3  ;;  %v5318_v33 = vld [vmem:[%s10486_s8 + $0x18] sm:$0xff] }
 0x4a8   : > { %3196 = vrot.lane.b32.xlu1 %v8832_v58, %s11152_s25  ;;  %3576 = vrot.lane.b32.xlu0 %v8901_v48, %s11157_s16 }
 0x4aa   : > { %v8950_v44 = vpop.permute.xlu1 %3188  ;;  %v8952_v23 = vpop.permute.xlu0 %3550 }
 0x4ab   : > { %11204 = vst [vmem:[#allocation47_spill] sm:$0xff] %v8952_v23 }
 0x4ac   : > { %3444 = vrot.lane.b32.xlu1 %v8832_v58, %s11156_s26  ;;  %3450 = vrot.lane.b32.xlu0 %v8932_v31, %s11156_s26 }
 0x4ae   : > { %v8958_v36 = vpop.permute.xlu1 %3436  ;;  %v8960_v59 = vpop.permute.xlu0 %4126 }
 0x4af   : > { %11205 = vst [vmem:[#allocation62_spill] sm:$0xff] %v8960_v59 }
 0x4b0   : > { %3302 = vrot.lane.b32.xlu1 %v8855_v21, %s5401_s12  ;;  %3748 = vrot.lane.b32.xlu0 %v8808_v14, %s10731_s17 }
 0x4b2   : > { %v8966_v63 = vpop.permute.xlu1 %3564  ;;  %v8968_v22 = vpop.permute.xlu0 %3190 }
 0x4b3   : > { %11206 = vst [vmem:[#allocation127_spill] sm:$0xff] %v8968_v22 }
 0x4b4   : > { %3558 = vrot.lane.b32.xlu1 %v8855_v21, %s11157_s16  ;;  %3764 = vrot.lane.b32.xlu0 %v8832_v58, %s10731_s17 }
 0x4b6   : > { %v8974_v43 = vpop.permute.xlu1 %4140  ;;  %v8976_v42 = vpop.permute.xlu0 %3438 }
 0x4b7   : > { %11207 = vst [vmem:[#allocation51_spill] sm:$0xff] %v8974_v43  ;;  %11208 = vst [vmem:[#allocation14_spill] sm:$0xff] %v8976_v42 }
 0x4b8   : > { %3318 = vrot.lane.b32.xlu1 %v8876_v54, %s5401_s12  ;;  %3829 = vperm.xlu0 %5019, %v8983_v61  }
 0x4ba   : > { %v8986_v12 = vpop.permute.xlu1 %3294  ;;  %v8988_v41 = vpop.permute.xlu0 %3566 }
 0x4bb   : > { %11210 = vst [vmem:[#allocation48_spill] sm:$0xff] %v8986_v12  ;;  %11211 = vst [vmem:[#allocation22_spill] sm:$0xff] %v8988_v41 }
 0x4bc   : > { %3446 = vrot.lane.b32.xlu1 %v8876_v54, %s11156_s26  ;;  %5022 = vset.pattern.permute.xlu0 %v11132_v1 }
 0x4bd   : > { %3933 = vperm.xlu0 %5022, %v5312_v28   ;;  %v9014_v28 = vld [vmem:[%s10486_s8 + $0x20] sm:$0xff] }
 0x4be   : > { %v8996_v34 = vpop.permute.xlu1 %3742  ;;  %v8998_v60 = vpop.permute.xlu0 %4142 }
 0x4bf   : > { %11212 = vst [vmem:[#allocation57_spill] sm:$0xff] %v8996_v34  ;;  %11213 = vst [vmem:[#allocation35_spill] sm:$0xff] %v8998_v60 }
 0x4c0   : > { %3574 = vrot.lane.b32.xlu1 %v8876_v54, %s11157_s16 }
 0x4c1   : > { %3941 = vperm.xlu0 %5022, %v5313_v25  }
 0x4c2   : > { %v9005_v26 = vpop.permute.xlu1 %3870  ;;  %v9007_v62 = vpop.permute.xlu0 %3296 }
 0x4c3   : > { %11214 = vst [vmem:[#allocation40_spill] sm:$0xff] %v9005_v26  ;;  %11215 = vst [vmem:[#allocation75_spill] sm:$0xff] %v9007_v62 }
 0x4c4   : > { %3184 = vrot.lane.b32.xlu1 %v8890_v9, %s11152_s25 }
 0x4c5   : > { %3949 = vperm.xlu0 %5022, %v9014_v28  }
 0x4c6   : > { %v9017_v40 = vpop.permute.xlu1 %3998  ;;  %v9019_v57 = vpop.permute.xlu0 %3312 }
 0x4c7   : > { %11216 = vst [vmem:[#allocation65_spill] sm:$0xff] %v9017_v40  ;;  %11217 = vst [vmem:[#allocation50_spill] sm:$0xff] %v9019_v57 }
 0x4c8   : > { %3432 = vrot.lane.b32.xlu1 %v8890_v9, %s11156_s26 }
 0x4c9   : > { %4002 = vrot.lane.b32.xlu0 %v8700_v8, %s11162_s18 }
 0x4ca   : > { %v9025_v26 = vpop.permute.xlu1 %3310  ;;  %v9027_v59 = vpop.permute.xlu0 %3888 }
 0x4cb   : > { %11218 = vst [vmem:[#allocation73_spill] sm:$0xff] %v9025_v26  ;;  %11219 = vst [vmem:[#allocation38_spill] sm:$0xff] %v9027_v59 }
 0x4cc   : > { %3560 = vrot.lane.b32.xlu1 %v8890_v9, %s11157_s16 }
 0x4cd   : > { %4018 = vrot.lane.b32.xlu0 %v8757_v10, %s11162_s18 }
 0x4ce   : > { %v9033_v60 = vpop.permute.xlu1 %3758  ;;  %v9035_v40 = vpop.permute.xlu0 %3178 }
 0x4cf   : > { %11220 = vst [vmem:[#allocation54_spill] sm:$0xff] %v9033_v60 }
 0x4d0   : > { %3200 = vrot.lane.b32.xlu1 %v8901_v48, %s11152_s25 }
 0x4d1   : > { %3892 = vrot.lane.b32.xlu0 %v8832_v58, %s11221_s30 }
 0x4d2   : > { %v9041_v38 = vpop.permute.xlu1 %3886  ;;  %v9043_v34 = vpop.permute.xlu0 %3426 }
 0x4d3   : > { %11222 = vst [vmem:[#allocation61_spill] sm:$0xff] %v9041_v38  ;;  %v5315_v38 = vld [vmem:[%s10486_s8 + $0x8] sm:$0xff] }
 0x4d4   : > { %3448 = vrot.lane.b32.xlu1 %v8901_v48, %s11156_s26 }
 0x4d5   : > { %3957 = vperm.xlu0 %5022, %v8983_v61  }
 0x4d6   : > { %v9048_v59 = vpop.permute.xlu1 %4014  ;;  %v3555_v60 = vpop.permute.xlu0 %3554 }
 0x4d7   : > { %11223 = vst [vmem:[#allocation53_spill] sm:$0xff] %v9048_v59 }
 0x4d8   : > { %3306 = vrot.lane.b32.xlu1 %v8913_v2, %s5401_s12 }
 0x4d9   : > { %5025 = vset.pattern.permute.xlu0 %v11135_v29 }
 0x4da   : > { %v9053_v57 = vpop.permute.xlu1 %3176  ;;  %v3747_v62 = vpop.permute.xlu0 %3746  ;;  %4065 = vperm.xlu0 %5025, %v5315_v38  }
 0x4db   : > { %11224 = vst [vmem:[#allocation59_spill] sm:$0xff] %v9053_v57  ;;  %v5316_v57 = vld [vmem:[%s10486_s8 + $0x28] sm:$0xff] }
 0x4dc   : > { %3322 = vrot.lane.b32.xlu1 %v8932_v31, %s5401_s12  ;;  %s11228_s12 = smov 127  }
 0x4de   : > { %v9060_v15 = vpop.permute.xlu1 %3424  ;;  %v3195_v59 = vpop.permute.xlu0 %3194  ;;  %4069 = vperm.xlu0 %5025, %v5313_v25  }
 0x4df   : > { %11225 = vst [vmem:[#allocation56_spill] sm:$0xff] %v9060_v15  ;;  %v3215_v13 = vsel %vm1090_vm2, %v3195_v59, %v9035_v40 }
 0x4e0   : > { %3562 = vrot.lane.b32.xlu1 %v8913_v2, %s11157_s16 }
 0x4e2   : > { %v9064_v23 = vpop.permute.xlu1 %3552  ;;  %v3443_v41 = vpop.permute.xlu0 %3442  ;;  %4081 = vperm.xlu0 %5025, %v5316_v57  }
 0x4e3   : > { %11226 = vst [vmem:[#allocation67_spill] sm:$0xff] %v9064_v23 }
 0x4e4   : > { %3578 = vrot.lane.b32.xlu1 %v8932_v31, %s11157_s16 }
 0x4e6   : > { %v9071_v53 = vpop.permute.xlu1 %3744  ;;  %v3571_v30 = vpop.permute.xlu0 %3570  ;;  %4130 = vrot.lane.b32.xlu0 %v8700_v8, %s11166_s14 }
 0x4e7   : > { %11227 = vst [vmem:[#allocation58_spill] sm:$0xff] %v9071_v53  ;;  %v3583_v25 = vsel %vm1493_vm5, %v3555_v60, %v3571_v30  ;;  %v3591_v15 = vsel %vm1493_vm5, %v3571_v30, %v3555_v60 }
 0x4e8   : > { %3750 = vrot.lane.b32.xlu1 %v8855_v21, %s11228_s12 }
 0x4ea   : > { %v9081_v23 = vpop.permute.xlu1 %3872  ;;  %v3763_v3 = vpop.permute.xlu0 %3762  ;;  %4146 = vrot.lane.b32.xlu0 %v8757_v10, %s11166_s14 }
 0x4eb   : > { %11229 = vst [vmem:[#allocation64_spill] sm:$0xff] %v9081_v23  ;;  %v9085_v42 = vsel %vm1694_vm7, %v3747_v62, %v3763_v3  ;;  %v9089_v53 = vsel %vm1694_vm7, %v3763_v3, %v3747_v62  ;;  %v9102_v23 = vld [vmem:[%s10486_s8 + $0x38] sm:$0xff] }
 0x4ec   : > { %3766 = vrot.lane.b32.xlu1 %v8876_v54, %s11228_s12 }
 0x4ee   : > { %v9095_v30 = vpop.permute.xlu1 %3192  ;;  %v3301_v60 = vpop.permute.xlu0 %3300  ;;  %3768 = vrot.lane.b32.xlu0 %v8901_v48, %s11228_s12 }
 0x4ef   : > { %11230 = vst [vmem:[#allocation66_spill] sm:$0xff] %v9095_v30 }
 0x4f0   : > { %3833 = vperm.xlu1 %5023, %v9102_v23  }
 0x4f2   : > { %v9105_v62 = vpop.permute.xlu1 %3440  ;;  %v3317_v3 = vpop.permute.xlu0 %3316  ;;  %4004 = vrot.lane.b32.xlu0 %v8808_v14, %s11162_s18 }
 0x4f3   : > { %11231 = vst [vmem:[#allocation77_spill] sm:$0xff] %v9105_v62  ;;  %v9109_v16 = vsel %vm1219_vm3, %v3301_v60, %v3317_v3  ;;  %v9113_v30 = vsel %vm1219_vm3, %v3317_v3, %v3301_v60 }
 0x4f4   : > { %4000 = vrot.lane.b32.xlu1 %v8650_v27, %s11162_s18 }
 0x4f5   : > { %5024 = vset.pattern.permute.xlu1 %v11135_v29 }
 0x4f6   : > { %v9120_v22 = vpop.permute.xlu1 %3568  ;;  %v9122_v62 = vpop.permute.xlu0 %3572  ;;  %4020 = vrot.lane.b32.xlu0 %v8832_v58, %s11162_s18 }
 0x4f7   : > { %11232 = vst [vmem:[#allocation15_spill] sm:$0xff] %v9120_v22 }
 0x4f8   : > { %4016 = vrot.lane.b32.xlu1 %v8669_v20, %s11162_s18 }
 0x4fa   : > { %v9128_v60 = vpop.permute.xlu1 %3760  ;;  %v3183_v3 = vpop.permute.xlu0 %3182  ;;  %4085 = vperm.xlu0 %5025, %v8983_v61  }
 0x4fb   : > { %11233 = vst [vmem:[#allocation63_spill] sm:$0xff] %v9128_v60  ;;  %v3207_v60 = vsel %vm1090_vm2, %v9035_v40, %v3195_v59  ;;  %v3455_v40 = vsel %vm1356_vm4, %v9043_v34, %v3443_v41  ;;  %v11237_v59 = vld [vmem:[#allocation98_spill] sm:$0xff] }
 0x4fc   : > { %4077 = vperm.xlu1 %5024, %v9014_v28   ;;  %v3226_v43 = vmul.f32 %v3215_v13, %v11237_v59  ;;  %v3475_v49 = vmul.f32 %v3455_v40, %v11240_v6  ;;  %v11243_v13 = vld [vmem:[#allocation118_spill] sm:$0xff] }
 0x4fe   : > { %v3299_v26 = vpop.permute.xlu1 %3298  ;;  %v9132_v12 = vpop.permute.xlu0 %3430  ;;  %5028 = vset.pattern.permute.xlu0 %v11137_v55 }
 0x4ff   : > { %11234 = vst [vmem:[#allocation24_spill] sm:$0xff] %v9132_v12  ;;  %4193 = vperm.xlu0 %5028, %v5315_v38  }
 0x500   : > { %3876 = vrot.lane.b32.xlu1 %v8808_v14, %s11221_s30 }
 0x501   : > { %5026 = vset.pattern.permute.xlu1 %v11132_v1  ;;  %v3463_v1 = vsel %vm1356_vm4, %v3443_v41, %v9043_v34  ;;  %v3602_v34 = vmul.f32 %v3591_v15, %v11243_v13 }
 0x502   : > { %v3875_v22 = vpop.permute.xlu1 %3874  ;;  %v3199_v45 = vpop.permute.xlu0 %3198  ;;  %v3474_v18 = vmul.f32 %v3463_v1, %v11239_v47 }
 0x503   : > { %v9146_v61 = vsel %vm1090_vm2, %v3183_v3, %v3199_v45  ;;  %v9150_v38 = vsel %vm1090_vm2, %v3199_v45, %v3183_v3  ;;  %4201 = vperm.xlu0 %5028, %v5318_v33   ;;  %v11238_v45 = vld [vmem:[#allocation101_spill] sm:$0xff] }
 0x504   : > { %11235 = vst [vmem:[#allocation60_spill] sm:$0xff] %v9146_v61  ;;  %11236 = vst [vmem:[#allocation41_spill] sm:$0xff] %v9150_v38  ;;  %3878 = vrot.lane.b32.xlu1 %v8855_v21, %s11221_s30  ;;  %v3227_v3 = vmul.f32 %v3207_v60, %v11238_v45  ;;  %v11244_v60 = vld [vmem:[#allocation119_spill] sm:$0xff]  ;;  %v3282_v61 = vmul.f32 %v8320_v37, %v3226_v43  ;;  %v3522_v15 = vmul.f32 %v8424_v52, %v3474_v18  ;;  %v11247_v18 = vld [vmem:[#allocation120_spill] sm:$0xff] }
 0x505   : > { %v3603_v1 = vmul.f32 %v3583_v25, %v11244_v60  ;;  %v3523_v43 = vmul.f32 %v8424_v52, %v3475_v49  ;;  %v3794_v52 = vmul.f32 %v9085_v42, %v11247_v18  ;;  %v11248_v49 = vld [vmem:[#allocation122_spill] sm:$0xff] }
 0x506   : > { %v3315_v56 = vpop.permute.xlu1 %3314  ;;  %v3305_v19 = vpop.permute.xlu0 %3304  ;;  %v3283_v38 = vmul.f32 %v8320_v37, %v3227_v3 }
 0x507   : > { %v3327_v17 = vsel %vm1219_vm3, %v3299_v26, %v3315_v56  ;;  %v3335_v33 = vsel %vm1219_vm3, %v3315_v56, %v3299_v26  ;;  %4209 = vperm.xlu0 %5028, %v5316_v57  }
 0x508   : > { %v3346_v12 = vmul.f32 %v3335_v33, %v11241_v0  ;;  %v3347_v41 = vmul.f32 %v3327_v17, %v11242_v24  ;;  %3894 = vrot.lane.b32.xlu1 %v8876_v54, %s11221_s30 }
 0x50a   : > { %v3394_v26 = vmul.f32 %v8555_v46, %v3346_v12  ;;  %v3395_v56 = vmul.f32 %v8555_v46, %v3347_v41  ;;  %v3891_v40 = vpop.permute.xlu1 %3890  ;;  %v3321_v33 = vpop.permute.xlu0 %3320  ;;  %v3650_v46 = vmul.f32 %v8729_v4, %v3602_v34  ;;  %v3651_v12 = vmul.f32 %v8729_v4, %v3603_v1 }
 0x50b   : > { %v9183_v17 = vsel %vm1219_vm3, %v3305_v19, %v3321_v33  ;;  %v9187_v57 = vsel %vm1219_vm3, %v3321_v33, %v3305_v19  ;;  %3882 = vrot.lane.b32.xlu0 %v8913_v2, %s11221_s30  ;;  %v3903_v3 = vsel %vm1831_vm6, %v3875_v22, %v3891_v40  ;;  %v3911_v19 = vsel %vm1831_vm6, %v3891_v40, %v3875_v22  ;;  %v11249_v40 = vld [vmem:[#allocation112_spill] sm:$0xff] }
 0x50c   : > { %11245 = vst [vmem:[#allocation78_spill] sm:$0xff] %v9183_v17  ;;  %11246 = vst [vmem:[#allocation69_spill] sm:$0xff] %v9187_v57  ;;  %v3410_v25 = vadd.f32 %v3394_v26, %v3282_v61  ;;  %v3411_v37 = vadd.f32 %v3395_v56, %v3283_v38  ;;  %3961 = vperm.xlu1 %5026, %v9102_v23   ;;  %v3795_v61 = vmul.f32 %v9089_v53, %v11248_v49  ;;  %v11250_v17 = vld [vmem:[#allocation114_spill] sm:$0xff] }
 0x50d   : > { %v3714_v4 = vmul.f32 %v8550_v5, %v8700_v8  ;;  %v3715_v1 = vmul.f32 %v8550_v5, %v8757_v10  ;;  %v3922_v33 = vmul.f32 %v3903_v3, %v11249_v40  ;;  %v3923_v57 = vmul.f32 %v3911_v19, %v11250_v17 }
 0x50e   : > { %v3538_v38 = vadd.f32 %v3522_v15, %v3410_v25  ;;  %v3539_v41 = vadd.f32 %v3523_v43, %v3411_v37  ;;  %v3181_v26 = vpop.permute.xlu1 %3180  ;;  %v3187_v34 = vpop.permute.xlu0 %3186  ;;  %v3842_v53 = vmul.f32 %v8617_v32, %v3794_v52  ;;  %v3843_v42 = vmul.f32 %v8617_v32, %v3795_v61  ;;  %v11251_v37 = vld [vmem:[#allocation108_spill] sm:$0xff] }
 0x50f   : > { %3898 = vrot.lane.b32.xlu0 %v8932_v31, %s11221_s30 }
 0x510   : > { %v3666_v56 = vadd.f32 %v3650_v46, %v3538_v38  ;;  %v3667_v22 = vadd.f32 %v3651_v12, %v3539_v41  ;;  %4128 = vrot.lane.b32.xlu1 %v8650_v27, %s11166_s14  ;;  %v3970_v46 = vmul.f32 %v11251_v37, %v3922_v33  ;;  %v3971_v12 = vmul.f32 %v11251_v37, %v3923_v57 }
 0x511   : > { %5027 = vset.pattern.permute.xlu1 %v11137_v55 }
 0x512   : > { %v3730_v8 = vadd.f32 %v3714_v4, %v3666_v56  ;;  %v3731_v15 = vadd.f32 %v3715_v1, %v3667_v22  ;;  %v3429_v43 = vpop.permute.xlu1 %3428  ;;  %v3435_v5 = vpop.permute.xlu0 %3434  ;;  %v3348_v4 = vmul.f32 %v9113_v30, %v11241_v0  ;;  %v3349_v1 = vmul.f32 %v9109_v16, %v11242_v24  ;;  %v11252_v30 = vld [vmem:[#allocation93_spill] sm:$0xff] }
 0x513   : > { %4134 = vrot.lane.b32.xlu0 %v8855_v21, %s11166_s14  ;;  %v3324_v16 = vsel %vm1219_vm3, %v8880_v50, %v8894_v35 }
 0x514   : > { %v3858_v10 = vadd.f32 %v3842_v53, %v3730_v8  ;;  %v3859_v25 = vadd.f32 %v3843_v42, %v3731_v15  ;;  %4144 = vrot.lane.b32.xlu1 %v8669_v20, %s11166_s14  ;;  %v3396_v42 = vmul.f32 %v11252_v30, %v3348_v4 }
 0x516   : > { %v9223_v3 = vadd.f32 %v3970_v46, %v3858_v10  ;;  %v9225_v32 = vadd.f32 %v3971_v12, %v3859_v25  ;;  %v3557_v19 = vpop.permute.xlu1 %3556  ;;  %v3203_v52 = vpop.permute.xlu0 %3202  ;;  %v11253_v10 = vld [vmem:[#allocation16_spill] sm:$0xff] }
 0x517   : > { %v3584_v61 = vsel %vm1493_vm5, %v3557_v19, %v9122_v62  ;;  %v3592_v57 = vsel %vm1493_vm5, %v9122_v62, %v3557_v19  ;;  %v9235_v38 = vsel %vm1090_vm2, %v3187_v34, %v3203_v52  ;;  %v9239_v41 = vsel %vm1090_vm2, %v3203_v52, %v3187_v34  ;;  %4150 = vrot.lane.b32.xlu0 %v8876_v54, %s11166_s14 }
 0x518   : > { %4205 = vperm.xlu1 %5027, %v9014_v28   ;;  %v3332_v28 = vsel %vm1219_vm3, %v8894_v35, %v8880_v50  ;;  %v3604_v8 = vmul.f32 %v3592_v57, %v11243_v13  ;;  %v3605_v15 = vmul.f32 %v3584_v61, %v11244_v60 }
 0x51a   : > { %v3197_v62 = vpop.permute.xlu1 %3196  ;;  %v9248_v56 = vpop.permute.xlu0 %3576 }
 0x51b   : > { %v3208_v22 = vsel %vm1090_vm2, %v3181_v26, %v3197_v62  ;;  %v3216_v34 = vsel %vm1090_vm2, %v3197_v62, %v3181_v26  ;;  %4217 = vperm.xlu0 %5028, %v9102_v23   ;;  %v3397_v26 = vmul.f32 %v11252_v30, %v3349_v1 }
 0x51c   : > { %v3228_v33 = vmul.f32 %v3216_v34, %v11237_v59  ;;  %v3229_v53 = vmul.f32 %v3208_v22, %v11238_v45  ;;  %3752 = vrot.lane.b32.xlu1 %v8890_v9, %s11228_s12  ;;  %v3341_v34 = vmul.f32 %v3324_v16, %v11242_v24  ;;  %v3452_v16 = vsel %vm1356_vm4, %v8892_v11, %v8958_v36 }
 0x51d   : > { %5029 = vset.pattern.permute.xlu1 %v11135_v29 }
 0x51e   : > { %v3284_v25 = vmul.f32 %v11253_v10, %v3228_v33  ;;  %v3285_v37 = vmul.f32 %v11253_v10, %v3229_v53  ;;  %v3445_v46 = vpop.permute.xlu1 %3444  ;;  %v3451_v12 = vpop.permute.xlu0 %3450  ;;  %v3204_v33 = vsel %vm1090_vm2, %v8882_v51, %v8950_v44  ;;  %v3212_v53 = vsel %vm1090_vm2, %v8950_v44, %v8882_v51  ;;  %v11256_v44 = vld [vmem:[#allocation121_spill] sm:$0xff] }
 0x51f   : > { %v3456_v50 = vsel %vm1356_vm4, %v3429_v43, %v3445_v46  ;;  %v3464_v35 = vsel %vm1356_vm4, %v3445_v46, %v3429_v43  ;;  %v9280_v19 = vsel %vm1356_vm4, %v3435_v5, %v3451_v12  ;;  %v9284_v52 = vsel %vm1356_vm4, %v3451_v12, %v3435_v5  ;;  %4024 = vrot.lane.b32.xlu0 %v8901_v48, %s11162_s18  ;;  %v11254_v43 = vld [vmem:[#allocation88_spill] sm:$0xff] }
 0x520   : > { %v3412_v61 = vadd.f32 %v3396_v42, %v3284_v25  ;;  %v3413_v57 = vadd.f32 %v3397_v26, %v3285_v37  ;;  %v3476_v4 = vmul.f32 %v3464_v35, %v11239_v47  ;;  %v3477_v29 = vmul.f32 %v3456_v50, %v11240_v6  ;;  %3754 = vrot.lane.b32.xlu1 %v8913_v2, %s11228_s12  ;;  %v11255_v42 = vld [vmem:[#allocation33_spill] sm:$0xff]  ;;  %v11257_v50 = vld [vmem:[#allocation95_spill] sm:$0xff] }
 0x521   : > { %v3340_v5 = vmul.f32 %v3332_v28, %v11241_v0  ;;  %v3652_v26 = vmul.f32 %v11255_v42, %v3604_v8  ;;  %v3653_v10 = vmul.f32 %v11255_v42, %v3605_v15  ;;  %v3460_v51 = vsel %vm1356_vm4, %v8958_v36, %v8892_v11  ;;  %v11259_v42 = vld [vmem:[#allocation60_spill] sm:$0xff] }
 0x522   : > { %v3524_v1 = vmul.f32 %v11254_v43, %v3476_v4  ;;  %v3525_v62 = vmul.f32 %v11254_v43, %v3477_v29  ;;  %v3303_v22 = vpop.permute.xlu1 %3302  ;;  %v3749_v30 = vpop.permute.xlu0 %3748  ;;  %v3716_v28 = vmul.f32 %v11256_v44, %v8808_v14  ;;  %v3717_v8 = vmul.f32 %v11256_v44, %v8832_v58 }
 0x523   : > { %4136 = vrot.lane.b32.xlu0 %v8890_v9, %s11166_s14  ;;  %v3388_v35 = vmul.f32 %v11257_v50, %v3340_v5  ;;  %v3221_v11 = vmul.f32 %v3204_v33, %v11238_v45  ;;  %v3468_v4 = vmul.f32 %v3460_v51, %v11239_v47  ;;  %v3469_v29 = vmul.f32 %v3452_v16, %v11240_v6  ;;  %v11260_v16 = vld [vmem:[#allocation126_spill] sm:$0xff] }
 0x524   : > { %v3540_v25 = vadd.f32 %v3524_v1, %v3412_v61  ;;  %v3541_v37 = vadd.f32 %v3525_v62, %v3413_v57  ;;  %3770 = vrot.lane.b32.xlu1 %v8932_v31, %s11228_s12  ;;  %v3389_v61 = vmul.f32 %v11257_v50, %v3341_v34  ;;  %v3220_v57 = vmul.f32 %v3212_v53, %v11237_v59  ;;  %v11258_v53 = vld [vmem:[#allocation41_spill] sm:$0xff]  ;;  %v11261_v50 = vld [vmem:[#allocation32_spill] sm:$0xff] }
 0x525   : > { %v3580_v62 = vsel %vm1493_vm5, %v8904_v39, %v8966_v63  ;;  %v3588_v5 = vsel %vm1493_vm5, %v8966_v63, %v8904_v39 }
 0x526   : > { %v3668_v15 = vadd.f32 %v3652_v26, %v3540_v25  ;;  %v3669_v46 = vadd.f32 %v3653_v10, %v3541_v37  ;;  %v3559_v12 = vpop.permute.xlu1 %3558  ;;  %v3765_v36 = vpop.permute.xlu0 %3764  ;;  %v3231_v26 = vmul.f32 %v11259_v42, %v11238_v45 }
 0x527   : > { %v3776_v43 = vsel %vm1694_vm7, %v3749_v30, %v3765_v36  ;;  %v3784_v1 = vsel %vm1694_vm7, %v3765_v36, %v3749_v30  ;;  %4152 = vrot.lane.b32.xlu0 %v8901_v48, %s11166_s14  ;;  %v3230_v30 = vmul.f32 %v11258_v53, %v11237_v59  ;;  %v3276_v36 = vmul.f32 %v11261_v50, %v3220_v57 }
 0x528   : > { %v3796_v34 = vmul.f32 %v3776_v43, %v11247_v18  ;;  %v3797_v33 = vmul.f32 %v3784_v1, %v11248_v49  ;;  %4006 = vrot.lane.b32.xlu1 %v8855_v21, %s11162_s18  ;;  %v3732_v10 = vadd.f32 %v3716_v28, %v3668_v15  ;;  %v3733_v25 = vadd.f32 %v3717_v8, %v3669_v46 }
 0x529   : > { %v3277_v43 = vmul.f32 %v11261_v50, %v3221_v11  ;;  %v3596_v8 = vmul.f32 %v3588_v5, %v11243_v13  ;;  %v3597_v15 = vmul.f32 %v3580_v62, %v11244_v60  ;;  %v11263_v11 = vld [vmem:[#allocation100_spill] sm:$0xff]  ;;  %v11267_v50 = vld [vmem:[#allocation109_spill] sm:$0xff] }
 0x52a   : > { %v3319_v37 = vpop.permute.xlu1 %3318  ;;  %v3844_v51 = vmul.f32 %v11260_v16, %v3796_v34  ;;  %v3845_v39 = vmul.f32 %v11260_v16, %v3797_v33  ;;  %v11264_v16 = vld [vmem:[#allocation105_spill] sm:$0xff] }
 0x52b   : > { %v3329_v63 = vsel %vm1219_vm3, %v3303_v22, %v3319_v37  ;;  %v3337_v44 = vsel %vm1219_vm3, %v3319_v37, %v3303_v22  ;;  %v11262_v22 = vld [vmem:[#allocation80_spill] sm:$0xff]  ;;  %v3516_v5 = vmul.f32 %v11264_v16, %v3468_v4  ;;  %v3517_v62 = vmul.f32 %v11264_v16, %v3469_v29 }
 0x52c   : > { %v3350_v1 = vmul.f32 %v3337_v44, %v11241_v0  ;;  %v3351_v28 = vmul.f32 %v3329_v63, %v11242_v24  ;;  %v9362_v46 = vadd.f32 %v3844_v51, %v3732_v10  ;;  %v9364_v34 = vadd.f32 %v3845_v39, %v3733_v25  ;;  %4022 = vrot.lane.b32.xlu1 %v8876_v54, %s11162_s18  ;;  %v11265_v10 = vld [vmem:[#allocation24_spill] sm:$0xff]  ;;  %v11266_v44 = vld [vmem:[#allocation106_spill] sm:$0xff] }
 0x52d   : > { %v3286_v33 = vmul.f32 %v11262_v22, %v3230_v30  ;;  %v3287_v57 = vmul.f32 %v11262_v22, %v3231_v26  ;;  %v3772_v4 = vsel %vm1694_vm7, %v11267_v50, %v11266_v44  ;;  %v3780_v29 = vsel %vm1694_vm7, %v11266_v44, %v11267_v50  ;;  %v11268_v22 = vld [vmem:[#allocation85_spill] sm:$0xff]  ;;  %v11273_v50 = vld [vmem:[#allocation84_spill] sm:$0xff] }
 0x52e   : > { %v3398_v53 = vmul.f32 %v11263_v11, %v3350_v1  ;;  %v3399_v42 = vmul.f32 %v11263_v11, %v3351_v28  ;;  %v3447_v37 = vpop.permute.xlu1 %3446  ;;  %v3404_v1 = vadd.f32 %v3388_v35, %v3276_v36  ;;  %v3405_v28 = vadd.f32 %v3389_v61, %v3277_v43  ;;  %v11269_v11 = vld [vmem:[#allocation99_spill] sm:$0xff] }
 0x52f   : > { %v3457_v25 = vsel %vm1356_vm4, %v11265_v10, %v3447_v37  ;;  %v3465_v51 = vsel %vm1356_vm4, %v3447_v37, %v11265_v10 }
 0x530   : > { %v3414_v30 = vadd.f32 %v3398_v53, %v3286_v33  ;;  %v3415_v39 = vadd.f32 %v3399_v42, %v3287_v57  ;;  %v3478_v26 = vmul.f32 %v3465_v51, %v11239_v47  ;;  %v3479_v63 = vmul.f32 %v3457_v25, %v11240_v6  ;;  %4089 = vperm.xlu1 %5029, %v9102_v23   ;;  %v11270_v51 = vld [vmem:[#allocation107_spill] sm:$0xff] }
 0x531   : > { %v3644_v33 = vmul.f32 %v11268_v22, %v3596_v8  ;;  %v3645_v57 = vmul.f32 %v11268_v22, %v3597_v15  ;;  %v3532_v16 = vadd.f32 %v3516_v5, %v3404_v1  ;;  %v3533_v10 = vadd.f32 %v3517_v62, %v3405_v28 }
 0x532   : > { %v3526_v53 = vmul.f32 %v11269_v11, %v3478_v26  ;;  %v3527_v42 = vmul.f32 %v11269_v11, %v3479_v63  ;;  %v3575_v37 = vpop.permute.xlu1 %3574  ;;  %v11272_v63 = vld [vmem:[#allocation17_spill] sm:$0xff]  ;;  %v11276_v11 = vld [vmem:[#allocation46_spill] sm:$0xff] }
 0x533   : > { %v3585_v25 = vsel %vm1493_vm5, %v3559_v12, %v3575_v37  ;;  %v3593_v35 = vsel %vm1493_vm5, %v3575_v37, %v3559_v12  ;;  %v3660_v8 = vadd.f32 %v3644_v33, %v3532_v16  ;;  %v3661_v15 = vadd.f32 %v3645_v57, %v3533_v10  ;;  %v11275_v57 = vld [vmem:[#allocation113_spill] sm:$0xff]  ;;  %v11279_v16 = vld [vmem:[#allocation51_spill] sm:$0xff] }
 0x534   : > { %v3542_v61 = vadd.f32 %v3526_v53, %v3414_v30  ;;  %v3543_v36 = vadd.f32 %v3527_v42, %v3415_v39  ;;  %v3606_v23 = vmul.f32 %v3593_v35, %v11243_v13  ;;  %v3607_v43 = vmul.f32 %v3585_v25, %v11244_v60  ;;  %3880 = vrot.lane.b32.xlu1 %v8890_v9, %s11221_s30  ;;  %v11271_v39 = vld [vmem:[#allocation42_spill] sm:$0xff]  ;;  %v11278_v53 = vld [vmem:[#allocation124_spill] sm:$0xff]  ;;  %v11280_v10 = vld [vmem:[#allocation55_spill] sm:$0xff] }
 0x535   : > { %5030 = vset.pattern.permute.xlu1 %v11137_v55  ;;  %v3788_v12 = vmul.f32 %v3772_v4, %v11247_v18  ;;  %v3789_v30 = vmul.f32 %v3780_v29, %v11248_v49  ;;  %v3708_v44 = vmul.f32 %v11272_v63, %v11271_v39  ;;  %v3709_v1 = vmul.f32 %v11272_v63, %v11273_v50  ;;  %v11277_v29 = vld [vmem:[#allocation36_spill] sm:$0xff] }
 0x536   : > { %v3654_v5 = vmul.f32 %v11270_v51, %v3606_v23  ;;  %v3655_v62 = vmul.f32 %v11270_v51, %v3607_v43  ;;  %v3185_v26 = vpop.permute.xlu1 %3184  ;;  %v3900_v55 = vsel %vm1831_vm6, %v11276_v11, %v11275_v57  ;;  %v3908_v4 = vsel %vm1831_vm6, %v11275_v57, %v11276_v11  ;;  %v11281_v43 = vld [vmem:[#allocation86_spill] sm:$0xff]  ;;  %v11283_v63 = vld [vmem:[#allocation116_spill] sm:$0xff] }
 0x537   : > { %v9416_v33 = vpop.permute.xlu0 %3829  ;;  %v4028_v42 = vsel %vm1968_vm8, %v11278_v53, %v11277_v29  ;;  %v4036_v37 = vsel %vm1968_vm8, %v11277_v29, %v11278_v53  ;;  %v4156_v25 = vsel %vm2105_vm9, %v11280_v10, %v11279_v16  ;;  %v4164_v35 = vsel %vm2105_vm9, %v11279_v16, %v11280_v10  ;;  %v9453_v29 = vld [vmem:[%s10481_s3 + $0x10] ss:$0 sm:$0xff]  ;;  %v11284_v16 = vld [vmem:[#allocation9_spill] sm:$0xff] }
 0x538   : > { %v9412_v28 = vadd.f32 %v3654_v5, %v3542_v61  ;;  %v9414_v22 = vadd.f32 %v3655_v62, %v3543_v36  ;;  %11274 = vst [vmem:[#allocation68_spill] sm:$0xff] %v9416_v33  ;;  %3896 = vrot.lane.b32.xlu1 %v8901_v48, %s11221_s30  ;;  %v3724_v36 = vadd.f32 %v3708_v44, %v3660_v8  ;;  %v11282_v62 = vld [vmem:[#allocation115_spill] sm:$0xff]  ;;  %s11403_s30 = sshll.u32 %s5525_s13, 3  ;;  %s4748_s13 = sld [smem:[#allocation2]] }
 0x539   : > { %v3725_v23 = vadd.f32 %v3709_v1, %v3661_v15  ;;  %v3836_v51 = vmul.f32 %v11281_v43, %v3788_v12  ;;  %v3837_v5 = vmul.f32 %v11281_v43, %v3789_v30  ;;  %v4044_v39 = vmul.f32 %v4028_v42, %v11282_v62  ;;  %v9459_v15 = vld [vmem:[%s10481_s3 + $0x18] ss:$0 sm:$0xff]  ;;  %v11285_v43 = vld [vmem:[#allocation117_spill] sm:$0xff]  ;;  %s422_s12 = scalar_lea.vmem %s10480_s2, %s11403_s30 }
 0x53a   : > { %v3433_v61 = vpop.permute.xlu1 %3432  ;;  %v4045_v50 = vmul.f32 %v4036_v37, %v11283_v63  ;;  %v3916_v57 = vmul.f32 %v3900_v55, %v11249_v40  ;;  %v3917_v11 = vmul.f32 %v3908_v4, %v11250_v17  ;;  %v4172_v8 = vmul.f32 %v9453_v29, %v4156_v25 }
 0x53b   : > { %v4173_v12 = vmul.f32 %v9459_v15, %v4164_v35  ;;  %v3852_v44 = vadd.f32 %v3836_v51, %v3724_v36  ;;  %v3853_v1 = vadd.f32 %v3837_v5, %v3725_v23  ;;  %v4092_v10 = vmul.f32 %v11284_v16, %v4044_v39  ;;  %v11287_v5 = vld [vmem:[#allocation69_spill] sm:$0xff]  ;;  %v11288_v39 = vld [vmem:[#allocation78_spill] sm:$0xff] }
 0x53c   : > { %4132 = vrot.lane.b32.xlu1 %v8808_v14, %s11166_s14  ;;  %v3934_v30 = vpop.permute.xlu0 %3933  ;;  %v4093_v25 = vmul.f32 %v11284_v16, %v4045_v50  ;;  %v4220_v36 = vmul.f32 %v11285_v43, %v4172_v8  ;;  %v3353_v50 = vmul.f32 %v11288_v39, %v11242_v24  ;;  %v11292_v16 = vld [vmem:[#allocation104_spill] sm:$0xff] }
 0x53d   : > { %v3964_v55 = vmul.f32 %v3934_v30, %v3916_v57  ;;  %v3965_v4 = vmul.f32 %v3934_v30, %v3917_v11  ;;  %v4221_v51 = vmul.f32 %v11285_v43, %v4173_v12  ;;  %v3352_v57 = vmul.f32 %v11287_v5, %v11241_v0 }
 0x53e   : > { %v3561_v53 = vpop.permute.xlu1 %3560 }
 0x53f   : > { %v3586_v42 = vsel %vm1493_vm5, %v3561_v53, %v9248_v56  ;;  %v3594_v37 = vsel %vm1493_vm5, %v9248_v56, %v3561_v53  ;;  %v3980_v35 = vadd.f32 %v3964_v55, %v3852_v44  ;;  %v3981_v14 = vadd.f32 %v3965_v4, %v3853_v1  ;;  %v11291_v4 = vld [vmem:[#allocation7_spill] sm:$0xff] }
 0x540   : > { %4148 = vrot.lane.b32.xlu1 %v8832_v58, %s11166_s14  ;;  %v9475_v23 = vpop.permute.xlu0 %3941  ;;  %v3609_v39 = vmul.f32 %v3586_v42, %v11244_v60 }
 0x541   : > { %11286 = vst [vmem:[#allocation76_spill] sm:$0xff] %v9475_v23  ;;  %v4108_v11 = vadd.f32 %v4092_v10, %v3980_v35  ;;  %v4109_v56 = vadd.f32 %v4093_v25, %v3981_v14  ;;  %v3400_v10 = vmul.f32 %v11292_v16, %v3352_v57 }
 0x542   : > { %v3201_v30 = vpop.permute.xlu1 %3200 }
 0x543   : > { %v3210_v44 = vsel %vm1090_vm2, %v3185_v26, %v3201_v30  ;;  %v3218_v8 = vsel %vm1090_vm2, %v3201_v30, %v3185_v26  ;;  %v9486_v58 = vadd.f32 %v4220_v36, %v4108_v11  ;;  %v9488_v1 = vadd.f32 %v4221_v51, %v4109_v56  ;;  %v11294_v26 = vld [vmem:[#allocation94_spill] sm:$0xff] }
 0x544   : > { %v3232_v12 = vmul.f32 %v3218_v8, %v11237_v59  ;;  %v3233_v55 = vmul.f32 %v3210_v44, %v11238_v45  ;;  %4213 = vperm.xlu1 %5030, %v11291_v4   ;;  %v9493_v53 = vpop.permute.xlu0 %3949  ;;  %v3401_v36 = vmul.f32 %v11292_v16, %v3353_v50  ;;  %v3608_v56 = vmul.f32 %v3594_v37, %v11243_v13  ;;  %v11295_v37 = vld [vmem:[#allocation29_spill] sm:$0xff] }
 0x545   : > { %11289 = vst [vmem:[#allocation27_spill] sm:$0xff] %v9486_v58  ;;  %11290 = vst [vmem:[#allocation19_spill] sm:$0xff] %v9488_v1  ;;  %v9497_v25 = vmul.f32 0.70710677, %v9486_v58  ;;  %v9500_v35 = vmul.f32 0.70710677, %v9488_v1 }
 0x546   : > { %v3288_v14 = vmul.f32 %v11294_v26, %v3232_v12  ;;  %v3449_v43 = vpop.permute.xlu1 %3448  ;;  %v3289_v51 = vmul.f32 %v11294_v26, %v3233_v55  ;;  %v11302_v1 = vld [vmem:[#allocation48_spill] sm:$0xff] }
 0x547   : > { %11293 = vst [vmem:[#allocation70_spill] sm:$0xff] %v9500_v35  ;;  %v3458_v5 = vsel %vm1356_vm4, %v3433_v61, %v3449_v43  ;;  %v3466_v11 = vsel %vm1356_vm4, %v3449_v43, %v3433_v61  ;;  %v9510_v57 = vand.u32 2147483647, %v9497_v25  ;;  %v9521_v61 = vand.u32 2147483647, %v9500_v35  ;;  %v11317_v35 = vld [vmem:[#allocation22_spill] sm:$0xff] }
 0x548   : > { %v3416_v30 = vadd.f32 %v3400_v10, %v3288_v14  ;;  %v3417_v44 = vadd.f32 %v3401_v36, %v3289_v51  ;;  %v3480_v8 = vmul.f32 %v3466_v11, %v11239_v47  ;;  %v3481_v50 = vmul.f32 %v3458_v5, %v11240_v6  ;;  %4008 = vrot.lane.b32.xlu1 %v8890_v9, %s11162_s18  ;;  %v9518_v12 = vpop.permute.xlu0 %4002  ;;  %v11296_v10 = vld [vmem:[#allocation44_spill] sm:$0xff] }
 0x549   : > { %v4316_v55 = vmul.f32 0.3275911, %v9510_v57  ;;  %v3656_v26 = vmul.f32 %v11296_v10, %v3608_v56  ;;  %v3657_v14 = vmul.f32 %v11296_v10, %v3609_v39  ;;  %v4317_v5 = vmul.f32 0.3275911, %v9521_v61 }
 0x54a   : > { %v3307_v4 = vpop.permute.xlu1 %3306  ;;  %v3528_v16 = vmul.f32 %v11295_v37, %v3480_v8  ;;  %v3529_v42 = vmul.f32 %v11295_v37, %v3481_v50  ;;  %v3235_v56 = vmul.f32 %v9235_v38, %v11238_v45 }
 0x54b   : > { %v4332_v11 = vadd.f32 1.0, %v4316_v55 }
 0x54c   : > { %v3544_v43 = vadd.f32 %v3528_v16, %v3416_v30  ;;  %v3545_v36 = vadd.f32 %v3529_v42, %v3417_v44  ;;  %4010 = vrot.lane.b32.xlu1 %v8913_v2, %s11162_s18  ;;  %v9530_v51 = vpop.permute.xlu0 %4018  ;;  %v3234_v44 = vmul.f32 %v9239_v41, %v11237_v59  ;;  %v3482_v16 = vmul.f32 %v9284_v52, %v11239_v47 }
 0x54d   : > { %v4031_v8 = vsel %vm1968_vm8, %v9518_v12, %v9530_v51  ;;  %v3483_v42 = vmul.f32 %v9280_v19, %v11240_v6  ;;  %5232 = vrcp.f32 %v4332_v11  ;;  %v11301_v19 = vld [vmem:[#allocation37_spill] sm:$0xff]  ;;  %v11305_v11 = vld [vmem:[#allocation127_spill] sm:$0xff] }
 0x54e   : > { %v3323_v50 = vpop.permute.xlu1 %3322  ;;  %v9539_v39 = vadd.f32 %v3656_v26, %v3544_v43  ;;  %v9541_v30 = vadd.f32 %v3657_v14, %v3545_v36  ;;  %v4050_v37 = vmul.f32 %v4031_v8, %v11282_v62  ;;  %v4333_v26 = vadd.f32 1.0, %v4317_v5  ;;  %v11299_v14 = vld [vmem:[#allocation28_spill] sm:$0xff] }
 0x54f   : > { %v3331_v55 = vsel %vm1219_vm3, %v3307_v4, %v3323_v50  ;;  %v3339_v38 = vsel %vm1219_vm3, %v3323_v50, %v3307_v4  ;;  %v11300_v8 = vld [vmem:[#allocation8_spill] sm:$0xff]  ;;  %v11303_v4 = vld [vmem:[#allocation73_spill] sm:$0xff] }
 0x550   : > { %11297 = vst [vmem:[#allocation83_spill] sm:$0xff] %v9539_v39  ;;  %11298 = vst [vmem:[#allocation71_spill] sm:$0xff] %v9541_v30  ;;  %v3355_v10 = vmul.f32 %v3331_v55, %v11242_v24  ;;  %4026 = vrot.lane.b32.xlu1 %v8932_v31, %s11162_s18  ;;  %v9557_v41 = vpop.permute.xlu0 %3892  ;;  %v4098_v43 = vmul.f32 %v11299_v14, %v4050_v37  ;;  %v3354_v36 = vmul.f32 %v3339_v38, %v11241_v0  ;;  %v11306_v37 = vld [vmem:[#allocation125_spill] sm:$0xff] }
 0x551   : > { %v3291_v33 = vmul.f32 %v11300_v8, %v3235_v56  ;;  %v3333_v50 = vsel %vm1219_vm3, %v11303_v4, %v11302_v1  ;;  %v3290_v55 = vmul.f32 %v11300_v8, %v3234_v44  ;;  %v3205_v38 = vsel %vm1090_vm2, %v11306_v37, %v11305_v11 }
 0x552   : > { %v3563_v52 = vpop.permute.xlu1 %3562  ;;  %v3403_v30 = vmul.f32 %v11301_v19, %v3355_v10  ;;  %v3402_v39 = vmul.f32 %v11301_v19, %v3354_v36  ;;  %v9570_v5 = vadd.f32 %v4098_v43, %v9223_v3  ;;  %v3325_v56 = vsel %vm1219_vm3, %v11302_v1, %v11303_v4  ;;  %v11307_v10 = vld [vmem:[#allocation92_spill] sm:$0xff] }
 0x553   : > { %v3531_v58 = vmul.f32 %v11307_v10, %v3483_v42  ;;  %v3213_v3 = vsel %vm1090_vm2, %v11305_v11, %v11306_v37  ;;  %v3530_v43 = vmul.f32 %v11307_v10, %v3482_v16  ;;  %5234 = vrcp.f32 %v4333_v26 }
 0x554   : > { %11304 = vst [vmem:[#allocation45_spill] sm:$0xff] %v9570_v5  ;;  %v3419_v23 = vadd.f32 %v3403_v30, %v3291_v33  ;;  %4138 = vrot.lane.b32.xlu1 %v8913_v2, %s11166_s14  ;;  %v9583_v44 = vpop.permute.xlu0 %3957  ;;  %v3418_v36 = vadd.f32 %v3402_v39, %v3290_v55  ;;  %v3342_v1 = vmul.f32 %v3333_v50, %v11241_v0  ;;  %v11311_v50 = vld [vmem:[#allocation49_spill] sm:$0xff]  ;;  %v11318_v5 = vld [vmem:[#allocation47_spill] sm:$0xff] }
 0x555   : > { %11308 = vst [vmem:[#allocation81_spill] sm:$0xff] %v9583_v44  ;;  %v3343_v42 = vmul.f32 %v3325_v56, %v11242_v24  ;;  %v3222_v16 = vmul.f32 %v3213_v3, %v11237_v59  ;;  %v3223_v39 = vmul.f32 %v3205_v38, %v11238_v45  ;;  %v11312_v3 = vld [vmem:[#allocation20_spill] sm:$0xff] }
 0x556   : > { %v3579_v8 = vpop.permute.xlu1 %3578  ;;  %v3547_v19 = vadd.f32 %v3531_v58, %v3419_v23  ;;  %v3546_v4 = vadd.f32 %v3530_v43, %v3418_v36  ;;  %v11309_v23 = vld [vmem:[#allocation14_spill] sm:$0xff]  ;;  %v11310_v58 = vld [vmem:[#allocation25_spill] sm:$0xff]  ;;  %v3390_v43 = vmul.f32 %v11312_v3, %v3342_v1  ;;  %v3581_v1 = vsel %vm1493_vm5, %v11318_v5, %v11317_v35 }
 0x557   : > { %v3587_v33 = vsel %vm1493_vm5, %v3563_v52, %v3579_v8  ;;  %v3595_v30 = vsel %vm1493_vm5, %v3579_v8, %v3563_v52  ;;  %v3453_v26 = vsel %vm1356_vm4, %v11310_v58, %v11309_v23  ;;  %v3461_v52 = vsel %vm1356_vm4, %v11309_v23, %v11310_v58  ;;  %v9614_v10 = vpop.eup %5232  ;;  %v11316_v58 = vld [vmem:[#allocation90_spill] sm:$0xff] }
 0x558   : > { %v3610_v44 = vmul.f32 %v3595_v30, %v11243_v13  ;;  %v3611_v11 = vmul.f32 %v3587_v33, %v11244_v60  ;;  %4154 = vrot.lane.b32.xlu1 %v8932_v31, %s11166_s14  ;;  %v3391_v36 = vmul.f32 %v11312_v3, %v3343_v42  ;;  %v11315_v30 = vld [vmem:[#allocation18_spill] sm:$0xff]  ;;  %v3279_v31 = vmul.f32 %v11316_v58, %v3223_v39  ;;  %v11320_v3 = vld [vmem:[#allocation52_spill] sm:$0xff]  ;;  %s4903_s14 = sshll.u32 %s5491_s10, 7  ;;  %s5406_s10 = smov [#allocation3]  }
 0x559   : > { %v9612_v56 = vpop.permute.xlu0 %4065  ;;  %v3718_v23 = vmul.f32 %v11315_v30, %v8855_v21  ;;  %s10436_s30 = scalar_lea.hbm %s10489_s11, %s4903_s14 }
 0x55a   : > { %v3658_v55 = vmul.f32 %v11311_v50, %v3610_v44  ;;  %v3659_v37 = vmul.f32 %v11311_v50, %v3611_v11  ;;  %v3751_v38 = vpop.permute.xlu1 %3750  ;;  %v3470_v44 = vmul.f32 %v3461_v52, %v11239_v47  ;;  %v3471_v11 = vmul.f32 %v3453_v26, %v11240_v6 }
 0x55b   : > { %v3278_v50 = vmul.f32 %v11316_v58, %v3222_v16  ;;  %v4364_v26 = vmul.f32 1.0614054, %v9614_v10 }
 0x55c   : > { %v9618_v8 = vadd.f32 %v3658_v55, %v3546_v4  ;;  %v9620_v33 = vadd.f32 %v3659_v37, %v3547_v19  ;;  %v3589_v19 = vsel %vm1493_vm5, %v11317_v35, %v11318_v5  ;;  %v3719_v4 = vmul.f32 %v11315_v30, %v8876_v54 }
 0x55d   : > { %v9636_v42 = vpop.permute.xlu0 %4069  ;;  %v9645_v52 = vpop.eup %5234  ;;  %v3406_v55 = vadd.f32 %v3390_v43, %v3278_v50  ;;  %v3407_v37 = vadd.f32 %v3391_v36, %v3279_v31  ;;  %v3518_v58 = vmul.f32 %v11320_v3, %v3470_v44  ;;  %v3519_v54 = vmul.f32 %v11320_v3, %v3471_v11 }
 0x55e   : > { %11313 = vst [vmem:[#allocation79_spill] sm:$0xff] %v9618_v8  ;;  %11314 = vst [vmem:[#allocation98_spill] sm:$0xff] %v9620_v33  ;;  %v3767_v21 = vpop.permute.xlu1 %3766  ;;  %v3598_v30 = vmul.f32 %v3589_v19, %v11243_v13  ;;  %v3599_v33 = vmul.f32 %v3581_v1, %v11244_v60  ;;  %v11321_v8 = vld [vmem:[#allocation23_spill] sm:$0xff]  ;;  %v4365_v36 = vmul.f32 1.0614054, %v9645_v52  ;;  %v11325_v1 = vld [vmem:[#allocation26_spill] sm:$0xff] }
 0x55f   : > { %11319 = vst [vmem:[#allocation101_spill] sm:$0xff] %v9636_v42  ;;  %v3777_v16 = vsel %vm1694_vm7, %v3751_v38, %v3767_v21  ;;  %v3785_v39 = vsel %vm1694_vm7, %v3767_v21, %v3751_v38  ;;  %v3734_v38 = vadd.f32 %v3718_v23, %v9412_v28  ;;  %v3735_v21 = vadd.f32 %v3719_v4, %v9414_v22  ;;  %v11327_v23 = vld [vmem:[#allocation97_spill] sm:$0xff] }
 0x560   : > { %v3798_v35 = vmul.f32 %v3777_v16, %v11247_v18  ;;  %v3799_v5 = vmul.f32 %v3785_v39, %v11248_v49  ;;  %v4380_v50 = vadd.f32 -1.4531521, %v4364_v26  ;;  %v3534_v44 = vadd.f32 %v3518_v58, %v3406_v55  ;;  %v11326_v39 = vld [vmem:[#allocation82_spill] sm:$0xff]  ;;  %v11328_v4 = vld [vmem:[#allocation89_spill] sm:$0xff]  ;;  %v11330_v55 = vld [vmem:[#allocation75_spill] sm:$0xff] }
 0x561   : > { %v9657_v43 = vpop.permute.xlu0 %4081  ;;  %v3535_v16 = vadd.f32 %v3519_v54, %v3407_v37  ;;  %v3710_v28 = vmul.f32 %v11326_v39, %v11325_v1  ;;  %v3711_v22 = vmul.f32 %v11326_v39, %v11327_v23  ;;  %v11331_v37 = vld [vmem:[#allocation50_spill] sm:$0xff]  ;;  %v11333_v54 = vld [vmem:[#allocation57_spill] sm:$0xff] }
 0x562   : > { %v3846_v42 = vmul.f32 %v11321_v8, %v3798_v35  ;;  %v3847_v31 = vmul.f32 %v11321_v8, %v3799_v5  ;;  %11322 = vst [vmem:[#allocation110_spill] sm:$0xff] %v9657_v43  ;;  %v9670_v8 = vmul.f32 %v11328_v4, %v8650_v27  ;;  %v11329_v35 = vld [vmem:[#allocation21_spill] sm:$0xff]  ;;  %v11332_v58 = vld [vmem:[#allocation54_spill] sm:$0xff]  ;;  %v11337_v43 = vld [vmem:[#allocation35_spill] sm:$0xff] }
 0x563   : > { %v3646_v5 = vmul.f32 %v11329_v35, %v3598_v30  ;;  %v3647_v26 = vmul.f32 %v11329_v35, %v3599_v33  ;;  %v3781_v27 = vsel %vm1694_vm7, %v11332_v58, %v11333_v54  ;;  %v4381_v30 = vadd.f32 -1.4531521, %v4365_v36 }
 0x564   : > { %v9660_v11 = vadd.f32 %v3846_v42, %v3734_v38  ;;  %v9662_v19 = vadd.f32 %v3847_v31, %v3735_v21  ;;  %v3334_v42 = vsel %vm1219_vm3, %v11331_v37, %v11330_v55  ;;  %v3773_v38 = vsel %vm1694_vm7, %v11333_v54, %v11332_v58  ;;  %v11334_v31 = vld [vmem:[#allocation30_spill] sm:$0xff]  ;;  %v11342_v58 = vld [vmem:[#allocation40_spill] sm:$0xff] }
 0x565   : > { %v9678_v3 = vpop.permute.xlu0 %4130  ;;  %v4396_v33 = vmul.f32 %v9614_v10, %v4380_v50  ;;  %v9691_v21 = vmul.f32 %v11328_v4, %v8669_v20  ;;  %v9695_v1 = vmul.f32 %v11334_v31, %v8890_v9  ;;  %v3662_v39 = vadd.f32 %v3646_v5, %v3534_v44  ;;  %v11339_v9 = vld [vmem:[#allocation39_spill] sm:$0xff] }
 0x566   : > { %11323 = vst [vmem:[#allocation111_spill] sm:$0xff] %v9660_v11  ;;  %11324 = vst [vmem:[#allocation102_spill] sm:$0xff] %v9662_v19  ;;  %v3663_v23 = vadd.f32 %v3647_v26, %v3535_v16  ;;  %v9699_v35 = vmul.f32 %v11334_v31, %v8901_v48  ;;  %v11338_v19 = vld [vmem:[#allocation62_spill] sm:$0xff]  ;;  %v3344_v50 = vmul.f32 %v3334_v42, %v11241_v0  ;;  %v11341_v26 = vld [vmem:[#allocation61_spill] sm:$0xff] }
 0x567   : > { %11335 = vst [vmem:[#allocation103_spill] sm:$0xff] %v9695_v1  ;;  %v4157_v36 = vsel %vm2105_vm9, %v11338_v19, %v11337_v43  ;;  %v4165_v20 = vsel %vm2105_vm9, %v11337_v43, %v11338_v19  ;;  %v9712_v44 = vmul.f32 %v11339_v9, %v8913_v2  ;;  %v3326_v48 = vsel %vm1219_vm3, %v11330_v55, %v11331_v37  ;;  %v11344_v11 = vld [vmem:[#allocation59_spill] sm:$0xff]  ;;  %v11352_v1 = vld [vmem:[#allocation56_spill] sm:$0xff] }
 0x568   : > { %11336 = vst [vmem:[#allocation118_spill] sm:$0xff] %v9699_v35  ;;  %v3790_v16 = vmul.f32 %v3773_v38, %v11247_v18  ;;  %v3791_v4 = vmul.f32 %v3781_v27, %v11248_v49  ;;  %v3901_v0 = vsel %vm1831_vm6, %v11342_v58, %v11341_v26  ;;  %v3909_v2 = vsel %vm1831_vm6, %v11341_v26, %v11342_v58  ;;  %v11343_v27 = vld [vmem:[#allocation87_spill] sm:$0xff]  ;;  %v11351_v35 = vld [vmem:[#allocation77_spill] sm:$0xff] }
 0x569   : > { %11340 = vst [vmem:[#allocation119_spill] sm:$0xff] %v9712_v44  ;;  %v9720_v5 = vpop.permute.xlu0 %4146  ;;  %v4397_v43 = vmul.f32 %v9645_v52, %v4381_v30  ;;  %v4412_v19 = vadd.f32 1.4214138, %v4396_v33  ;;  %v3726_v55 = vadd.f32 %v3710_v28, %v3662_v39  ;;  %v3727_v37 = vadd.f32 %v3711_v22, %v3663_v23  ;;  %v11345_v44 = vld [vmem:[#allocation66_spill] sm:$0xff]  ;;  %v11346_v33 = vld [vmem:[#allocation96_spill] sm:$0xff] }
 0x56a   : > { %v9732_v42 = vmul.f32 %v9453_v29, %v4157_v36  ;;  %v9735_v54 = vmul.f32 %v9459_v15, %v4165_v20  ;;  %v3345_v38 = vmul.f32 %v3326_v48, %v11242_v24  ;;  %v3392_v31 = vmul.f32 %v11343_v27, %v3344_v50  ;;  %v11348_v24 = vld [vmem:[#allocation53_spill] sm:$0xff] }
 0x56b   : > { %v3214_v26 = vsel %vm1090_vm2, %v11345_v44, %v11344_v11  ;;  %v4508_v30 = vsub.f32 0.0, %v9510_v57  ;;  %v3838_v28 = vmul.f32 %v11346_v33, %v3790_v16  ;;  %v3839_v22 = vmul.f32 %v11346_v33, %v3791_v4  ;;  %v11349_v20 = vld [vmem:[#allocation65_spill] sm:$0xff] }
 0x56c   : > { %v3918_v39 = vmul.f32 %v3901_v0, %v11249_v40  ;;  %v3919_v23 = vmul.f32 %v3909_v2, %v11250_v17  ;;  %v4029_v50 = vsel %vm1968_vm8, %v11349_v20, %v11348_v24  ;;  %v3206_v48 = vsel %vm1090_vm2, %v11344_v11, %v11345_v44 }
 0x56d   : > { %v9748_v36 = vpop.permute.xlu0 %3768  ;;  %v4413_v16 = vadd.f32 1.4214138, %v4397_v43  ;;  %v4428_v4 = vmul.f32 %v9614_v10, %v4412_v19  ;;  %v4037_v0 = vsel %vm1968_vm8, %v11348_v24, %v11349_v20  ;;  %v3224_v2 = vmul.f32 %v3214_v26, %v11237_v59  ;;  %v11353_v24 = vld [vmem:[#allocation43_spill] sm:$0xff] }
 0x56e   : > { %11347 = vst [vmem:[#allocation120_spill] sm:$0xff] %v9748_v36  ;;  %v3854_v33 = vadd.f32 %v3838_v28, %v3726_v55  ;;  %v3855_v36 = vadd.f32 %v3839_v22, %v3727_v37  ;;  %v3454_v9 = vsel %vm1356_vm4, %v11352_v1, %v11351_v35  ;;  %v3462_v11 = vsel %vm1356_vm4, %v11351_v35, %v11352_v1 }
 0x56f   : > { %v9758_v58 = vpop.permute.xlu1 %3833  ;;  %v4509_v44 = vsub.f32 0.0, %v9521_v61  ;;  %v4524_v43 = vmul.f32 %v4508_v30, %v9510_v57  ;;  %v3393_v19 = vmul.f32 %v11343_v27, %v3345_v38  ;;  %v3966_v59 = vmul.f32 %v11353_v24, %v3918_v39  ;;  %v11355_v39 = vld [vmem:[#allocation38_spill] sm:$0xff] }
 0x570   : > { %11350 = vst [vmem:[#allocation122_spill] sm:$0xff] %v9758_v58  ;;  %v3967_v55 = vmul.f32 %v11353_v24, %v3919_v23  ;;  %v3225_v37 = vmul.f32 %v3206_v48, %v11238_v45  ;;  %v4046_v28 = vmul.f32 %v4029_v50, %v11282_v62  ;;  %v4047_v22 = vmul.f32 %v4037_v0, %v11283_v63  ;;  %v11354_v58 = vld [vmem:[#allocation72_spill] sm:$0xff]  ;;  %v11359_v24 = vld [vmem:[#allocation91_spill] sm:$0xff] }
 0x571   : > { %v4005_v26 = vpop.permute.xlu0 %4004  ;;  %v4429_v1 = vmul.f32 %v9645_v52, %v4413_v16  ;;  %v4444_v35 = vadd.f32 -0.28449672, %v4428_v4  ;;  %v3280_v57 = vmul.f32 %v11354_v58, %v3224_v2  ;;  %v3472_v38 = vmul.f32 %v3462_v11, %v11239_v47  ;;  %v11356_v23 = vld [vmem:[#allocation64_spill] sm:$0xff]  ;;  %v11357_v47 = vld [vmem:[#allocation15_spill] sm:$0xff] }
 0x572   : > { %v3473_v27 = vmul.f32 %v3454_v9, %v11240_v6  ;;  %v3982_v30 = vadd.f32 %v3966_v59, %v3854_v33  ;;  %v3902_v45 = vsel %vm1831_vm6, %v11356_v23, %v11355_v39  ;;  %v4525_v50 = vmul.f32 %v4509_v44, %v9521_v61  ;;  %v11358_v2 = vld [vmem:[#allocation67_spill] sm:$0xff] }
 0x573   : > { %v9782_v20 = vpop.permute.xlu1 %4000  ;;  %v4540_v48 = vmul.f32 1.442695, %v4524_v43  ;;  %v3983_v0 = vadd.f32 %v3967_v55, %v3855_v36  ;;  %v3910_v16 = vsel %vm1831_vm6, %v11355_v39, %v11356_v23  ;;  %v3281_v4 = vmul.f32 %v11354_v58, %v3225_v37 }
 0x574   : > { %v3582_v6 = vsel %vm1493_vm5, %v11358_v2, %v11357_v47  ;;  %v3590_v9 = vsel %vm1493_vm5, %v11357_v47, %v11358_v2  ;;  %v4445_v58 = vadd.f32 -0.28449672, %v4429_v1  ;;  %v4460_v44 = vmul.f32 %v9614_v10, %v4444_v35 }
 0x575   : > { %v4021_v61 = vpop.permute.xlu0 %4020  ;;  %v3408_v43 = vadd.f32 %v3392_v31, %v3280_v57  ;;  %v3520_v59 = vmul.f32 %v11359_v24, %v3472_v38  ;;  %v3521_v55 = vmul.f32 %v11359_v24, %v3473_v27  ;;  %v9816_v37 = vmul.f32 %v3902_v45, %v11249_v40 }
 0x576   : > { %v4032_v36 = vsel %vm1968_vm8, %v4005_v26, %v4021_v61  ;;  %v4040_v33 = vsel %vm1968_vm8, %v4021_v61, %v4005_v26  ;;  %v3600_v39 = vmul.f32 %v3590_v9, %v11243_v13  ;;  %v3601_v23 = vmul.f32 %v3582_v6, %v11244_v60 }
 0x577   : > { %v9810_v11 = vpop.permute.xlu1 %4016  ;;  %5236 = vpow2.f32 %v4540_v48  ;;  %v4542_v47 = vmul.f32 1.442695, %v4525_v50  ;;  %v3409_v26 = vadd.f32 %v3393_v19, %v3281_v4  ;;  %v4094_v2 = vmul.f32 %v9612_v56, %v4046_v28  ;;  %v11361_v4 = vld [vmem:[#allocation74_spill] sm:$0xff] }
 0x578   : > { %v4052_v1 = vmul.f32 %v4032_v36, %v11282_v62  ;;  %v4053_v31 = vmul.f32 %v4040_v33, %v11283_v63  ;;  %v4039_v57 = vsel %vm1968_vm8, %v9530_v51, %v9518_v12  ;;  %v4095_v13 = vmul.f32 %v9612_v56, %v4047_v22  ;;  %v11362_v12 = vld [vmem:[#allocation63_spill] sm:$0xff]  ;;  %v11363_v51 = vld [vmem:[#allocation58_spill] sm:$0xff] }
 0x579   : > { %v9823_v35 = vpop.permute.xlu0 %4085  ;;  %v4461_v60 = vmul.f32 %v9645_v52, %v4445_v58  ;;  %v4476_v27 = vadd.f32 0.2548296, %v4460_v44  ;;  %v3536_v19 = vadd.f32 %v3520_v59, %v3408_v43  ;;  %v9832_v28 = vmul.f32 %v3910_v16, %v11250_v17 }
 0x57a   : > { %11360 = vst [vmem:[#allocation112_spill] sm:$0xff] %v9823_v35  ;;  %v3537_v48 = vadd.f32 %v3521_v55, %v3409_v26  ;;  %v3648_v6 = vmul.f32 %v11361_v4, %v3600_v39  ;;  %v3649_v9 = vmul.f32 %v11361_v4, %v3601_v23  ;;  %5238 = vpow2.f32 %v4542_v47 }
 0x57b   : > { %v4078_v38 = vpop.permute.xlu1 %4077  ;;  %v3774_v56 = vsel %vm1694_vm7, %v11363_v51, %v11362_v12  ;;  %v3782_v22 = vsel %vm1694_vm7, %v11362_v12, %v11363_v51  ;;  %v4051_v16 = vmul.f32 %v4039_v57, %v11283_v63  ;;  %v4110_v61 = vadd.f32 %v4094_v2, %v3982_v30 }
 0x57c   : > { %v9834_v45 = vmul.f32 %v4078_v38, %v4052_v1  ;;  %v9836_v50 = vmul.f32 %v4078_v38, %v4053_v31  ;;  %v4111_v36 = vadd.f32 %v4095_v13, %v3983_v0  ;;  %v4159_v33 = vsel %vm2105_vm9, %v9678_v3, %v9720_v5 }
 0x57d   : > { %v4477_v43 = vadd.f32 0.2548296, %v4461_v60  ;;  %v4492_v24 = vmul.f32 %v9614_v10, %v4476_v27  ;;  %v3664_v0 = vadd.f32 %v3648_v6, %v3536_v19  ;;  %v4167_v23 = vsel %vm2105_vm9, %v9720_v5, %v9678_v3 }
 0x57e   : > { %v4194_v58 = vpop.permute.xlu0 %4193  ;;  %v4099_v47 = vmul.f32 %v11299_v14, %v4051_v16  ;;  %v4179_v38 = vmul.f32 %v9459_v15, %v4167_v23  ;;  %v3793_v19 = vmul.f32 %v3782_v22, %v11248_v49  ;;  %v3665_v12 = vadd.f32 %v3649_v9, %v3537_v48  ;;  %v11365_v22 = vld [vmem:[#allocation45_spill] sm:$0xff] }
 0x57f   : > { %v3877_v44 = vpop.permute.xlu1 %3876  ;;  %v4222_v59 = vmul.f32 %v4194_v58, %v9732_v42  ;;  %v4223_v55 = vmul.f32 %v4194_v58, %v9735_v54  ;;  %v3792_v54 = vmul.f32 %v3774_v56, %v11247_v18  ;;  %v4493_v13 = vmul.f32 %v9645_v52, %v4477_v43 }
 0x580   : > { %v3904_v39 = vsel %vm1831_vm6, %v3877_v44, %v9557_v41  ;;  %v3912_v30 = vsel %vm1831_vm6, %v9557_v41, %v3877_v44  ;;  %v4178_v41 = vmul.f32 %v9453_v29, %v4159_v33  ;;  %vm4268_vm2 = vcmp.ge.f32.partialorder %v9497_v25, 0.0 }
 0x581   : > { %v3924_v10 = vmul.f32 %v3904_v39, %v11249_v40  ;;  %v3925_v42 = vmul.f32 %v3912_v30, %v11250_v17  ;;  %v9870_v26 = vadd.f32 %v4222_v59, %v4110_v61  ;;  %v9872_v2 = vadd.f32 %v4223_v55, %v4111_v36  ;;  %v5237_v1 = vpop.eup %5236  ;;  %v11364_v61 = vld [vmem:[#allocation34_spill] sm:$0xff] }
 0x582   : > { %v4202_v3 = vpop.permute.xlu0 %4201  ;;  %v4572_v27 = vmul.f32 %v5237_v1, %v4492_v24  ;;  %v3840_v36 = vmul.f32 %v11364_v61, %v3792_v54  ;;  %v4115_v33 = vadd.f32 %v4099_v47, %v9225_v32  ;;  %v3841_v24 = vmul.f32 %v11364_v61, %v3793_v19  ;;  %v11368_v47 = vld [vmem:[#allocation70_spill] sm:$0xff] }
 0x583   : > { %v3972_v31 = vmul.f32 %v9493_v53, %v3924_v10  ;;  %v3973_v57 = vmul.f32 %v9493_v53, %v3925_v42  ;;  %v9877_v5 = vpop.permute.xlu1 %3878  ;;  %v9882_v14 = vmul.f32 0.70710677, %v9870_v26  ;;  %v9885_v60 = vmul.f32 0.70710677, %v9872_v2 }
 0x584   : > { %v4226_v6 = vmul.f32 %v4202_v3, %v4178_v41  ;;  %v4227_v56 = vmul.f32 %v4202_v3, %v4179_v38  ;;  %v5239_v16 = vpop.eup %5238  ;;  %v4588_v43 = vsub.f32 1.0, %v4572_v27  ;;  %v3728_v59 = vadd.f32 %v9670_v8, %v3664_v0 }
 0x585   : > { %v3988_v4 = vadd.f32 %v3972_v31, %v9362_v46  ;;  %v9890_v53 = vadd.f32 %v3973_v57, %v9364_v34  ;;  %v4302_v52 = vand.u32 2147483647, %v9882_v14  ;;  %v4303_v51 = vand.u32 2147483647, %v9885_v60 }
 0x586   : > { %v9898_v58 = vadd.f32 %v4226_v6, %v11365_v22  ;;  %v9900_v46 = vpop.permute.xlu0 %4209  ;;  %v4573_v44 = vmul.f32 %v5239_v16, %v4493_v13  ;;  %v4030_v32 = vsel %vm1968_vm8, %v9782_v20, %v9810_v11  ;;  %v4038_v39 = vsel %vm1968_vm8, %v9810_v11, %v9782_v20  ;;  %v11370_v6 = vld [vmem:[#allocation123_spill] sm:$0xff] }
 0x587   : > { %v9902_v34 = vpop.permute.xlu1 %3894  ;;  %v4318_v48 = vmul.f32 0.3275911, %v4302_v52  ;;  %v4319_v9 = vmul.f32 0.3275911, %v4303_v51  ;;  %v9917_v10 = vadd.f32 %v4227_v56, %v4115_v33  ;;  %v11367_v42 = vmov -1.0  }
 0x588   : > { %11366 = vst [vmem:[#allocation114_spill] sm:$0xff] %v9898_v58  ;;  %v9911_v55 = vmul.f32 0.70710677, %v9898_v58  ;;  %v4284_v8 = vsel %vm4268_vm2, 1.0, %v11367_v42  ;;  %v3729_v0 = vadd.f32 %v9691_v21, %v3665_v12  ;;  %vm4269_vm3 = vcmp.ge.f32.partialorder %v11368_v47, 0.0  ;;  %v11369_v21 = vld [vmem:[#allocation76_spill] sm:$0xff] }
 0x589   : > { %v4334_v30 = vadd.f32 1.0, %v4318_v48  ;;  %v4335_v23 = vadd.f32 1.0, %v4319_v9  ;;  %v4510_v1 = vsub.f32 0.0, %v4302_v52  ;;  %v4589_v20 = vsub.f32 1.0, %v4573_v44  ;;  %v11371_v12 = vld [vmem:[#allocation39_spill] sm:$0xff] }
 0x58a   : > { %v9924_v54 = vand.u32 2147483647, %v9911_v55  ;;  %v4604_v11 = vmul.f32 %v4588_v43, %v4284_v8  ;;  %v4048_v31 = vmul.f32 %v4030_v32, %v11282_v62  ;;  %v4049_v57 = vmul.f32 %v4038_v39, %v11283_v63  ;;  %v9932_v3 = vpop.permute.xlu0 %3882  ;;  %v11372_v43 = vld [vmem:[#allocation101_spill] sm:$0xff]  ;;  %v11374_v8 = vld [vmem:[#allocation27_spill] sm:$0xff] }
 0x58b   : > { %5240 = vrcp.f32 %v4334_v30  ;;  %v9927_v41 = vpop.permute.xlu1 %3961  ;;  %v3968_v13 = vmul.f32 %v11369_v21, %v9816_v37  ;;  %v3969_v38 = vmul.f32 %v11369_v21, %v9832_v28  ;;  %v4511_v27 = vsub.f32 0.0, %v4303_v51  ;;  %v11381_v21 = vld [vmem:[#allocation79_spill] sm:$0xff] }
 0x58c   : > { %5242 = vrcp.f32 %v4335_v23  ;;  %v4322_v25 = vmul.f32 0.3275911, %v9924_v54  ;;  %v9939_v19 = vmul.f32 0.70710677, %v9917_v10  ;;  %v3723_v56 = vmul.f32 %v11371_v12, %v11370_v6 }
 0x58d   : > { %v3856_v16 = vadd.f32 %v3840_v36, %v3728_v59  ;;  %v4285_v33 = vsel %vm4269_vm3, 1.0, %v11367_v42  ;;  %v3857_v22 = vadd.f32 %v3841_v24, %v3729_v0  ;;  %v4526_v48 = vmul.f32 %v4510_v1, %v4302_v52  ;;  %v11375_v52 = vld [vmem:[#allocation83_spill] sm:$0xff] }
 0x58e   : > { %v4338_v61 = vadd.f32 1.0, %v4322_v25  ;;  %v4605_v37 = vmul.f32 %v4589_v20, %v4285_v33  ;;  %v4636_v44 = vadd.f32 1.0, %v4604_v11  ;;  %v4096_v28 = vmul.f32 %v11372_v43, %v4048_v31  ;;  %v9953_v24 = vpop.permute.xlu0 %3898  ;;  %v11376_v0 = vld [vmem:[#allocation103_spill] sm:$0xff] }
 0x58f   : > { %v4129_v9 = vpop.permute.xlu1 %4128  ;;  %v4097_v32 = vmul.f32 %v11372_v43, %v4049_v57  ;;  %v9949_v39 = vadd.f32 %v9834_v45, %v3988_v4  ;;  %v3984_v30 = vadd.f32 %v3968_v13, %v3856_v16  ;;  %v3985_v36 = vadd.f32 %v3969_v38, %v3857_v22  ;;  %v11377_v20 = vld [vmem:[#allocation19_spill] sm:$0xff]  ;;  %v11380_v57 = vld [vmem:[#allocation118_spill] sm:$0xff] }
 0x590   : > { %5244 = vrcp.f32 %v4338_v61  ;;  %v4527_v59 = vmul.f32 %v4511_v27, %v4303_v51  ;;  %v4307_v23 = vand.u32 2147483647, %v9939_v19  ;;  %v4620_v47 = vmul.f32 0.5, %v11374_v8  ;;  %v11379_v51 = vld [vmem:[#allocation71_spill] sm:$0xff]  ;;  %v11383_v27 = vld [vmem:[#allocation98_spill] sm:$0xff] }
 0x591   : > { %11373 = vst [vmem:[#allocation108_spill] sm:$0xff] %v9949_v39  ;;  %v9957_v1 = vadd.f32 %v11376_v0, %v11375_v52  ;;  %v9960_v11 = vmul.f32 0.5, %v11377_v20  ;;  %v9964_v45 = vadd.f32 %v9836_v50, %v9890_v53  ;;  %v4544_v4 = vmul.f32 1.442695, %v4526_v48  ;;  %v11382_v13 = vld [vmem:[#allocation119_spill] sm:$0xff] }
 0x592   : > { %v9968_v25 = vadd.f32 %v11380_v57, %v11379_v51  ;;  %v9972_v38 = vadd.f32 %v11382_v13, %v11381_v21  ;;  %v9975_v6 = vadd.f32 %v3723_v56, %v11383_v27  ;;  %v4112_v12 = vadd.f32 %v4096_v28, %v3984_v30 }
 0x593   : > { %11378 = vst [vmem:[#allocation93_spill] sm:$0xff] %v9964_v45  ;;  %v4145_v31 = vpop.permute.xlu1 %4144  ;;  %v4113_v16 = vadd.f32 %v4097_v32, %v3985_v36  ;;  %v9977_v61 = vadd.f32 1.0, %v4605_v37  ;;  %v9979_v33 = vmul.f32 %v4636_v44, %v4620_v47  ;;  %v4546_v53 = vmul.f32 1.442695, %v4527_v59  ;;  %v10003_v59 = vpop.permute.xlu0 %4134  ;;  %v11384_v47 = vld [vmem:[#allocation31_spill] sm:$0xff] }
 0x594   : > { %v4323_v22 = vmul.f32 0.3275911, %v4307_v23  ;;  %v4158_v48 = vsel %vm2105_vm9, %v4129_v9, %v4145_v31  ;;  %v4166_v43 = vsel %vm2105_vm9, %v4145_v31, %v4129_v9  ;;  %vm4270_vm4 = vcmp.ge.f32.partialorder %v9882_v14, 0.0 }
 0x595   : > { %v9981_v50 = vpop.eup %5240  ;;  %v4176_v37 = vmul.f32 %v9453_v29, %v4158_v48  ;;  %v4177_v44 = vmul.f32 %v9459_v15, %v4166_v43  ;;  %5246 = vpow2.f32 %v4544_v4  ;;  %v9994_v28 = vmul.f32 0.5, %v9870_v26 }
 0x596   : > { %v9987_v8 = vpop.eup %5242  ;;  %v4366_v56 = vmul.f32 1.0614054, %v9981_v50  ;;  %v4514_v32 = vsub.f32 0.0, %v9924_v54  ;;  %v4515_v30 = vsub.f32 0.0, %v4307_v23  ;;  %v3905_v14 = vsel %vm1831_vm6, %v9877_v5, %v9902_v34 }
 0x597   : > { %v9997_v36 = vpop.permute.xlu1 %4205  ;;  %v4224_v52 = vmul.f32 %v11384_v47, %v4176_v37  ;;  %v4225_v0 = vmul.f32 %v11384_v47, %v4177_v44  ;;  %v10008_v26 = vsel %vm4270_vm4, 1.0, %v11367_v42  ;;  %5248 = vpow2.f32 %v4546_v53 }
 0x598   : > { %v4382_v9 = vadd.f32 -1.4531521, %v4366_v56  ;;  %v4339_v20 = vadd.f32 1.0, %v4323_v22  ;;  %v4367_v4 = vmul.f32 1.0614054, %v9987_v8  ;;  %v3913_v57 = vsel %vm1831_vm6, %v9902_v34, %v9877_v5  ;;  %v11388_v5 = vld [vmem:[#allocation120_spill] sm:$0xff] }
 0x599   : > { %v10018_v21 = vadd.f32 %v4224_v52, %v4112_v12  ;;  %v10020_v13 = vadd.f32 %v4225_v0, %v4113_v16  ;;  %v4530_v53 = vmul.f32 %v4514_v32, %v9924_v54  ;;  %v4531_v22 = vmul.f32 %v4515_v30, %v4307_v23 }
 0x59a   : > { %v10011_v31 = vpop.eup %5244  ;;  %v4398_v51 = vmul.f32 %v9981_v50, %v4382_v9  ;;  %v3926_v48 = vmul.f32 %v3905_v14, %v11249_v40  ;;  %v4383_v16 = vadd.f32 -1.4531521, %v4367_v4  ;;  %5250 = vrcp.f32 %v4339_v20  ;;  %v4151_v14 = vpop.permute.xlu0 %4150 }
 0x59b   : > { %11385 = vst [vmem:[#allocation16_spill] sm:$0xff] %v10018_v21  ;;  %11386 = vst [vmem:[#allocation88_spill] sm:$0xff] %v10020_v13  ;;  %v4370_v27 = vmul.f32 1.0614054, %v10011_v31  ;;  %v3753_v43 = vpop.permute.xlu1 %3752  ;;  %v10026_v37 = vmul.f32 0.70710677, %v10018_v21  ;;  %v3927_v52 = vmul.f32 %v3913_v57, %v11250_v17  ;;  %v3907_v20 = vsel %vm1831_vm6, %v9932_v3, %v9953_v24 }
 0x59c   : > { %v4414_v56 = vadd.f32 1.4214138, %v4398_v51  ;;  %v10029_v44 = vmul.f32 0.70710677, %v10020_v13  ;;  %v3778_v34 = vsel %vm1694_vm7, %v3753_v43, %v11388_v5  ;;  %v3786_v54 = vsel %vm1694_vm7, %v11388_v5, %v3753_v43  ;;  %v11389_v51 = vld [vmem:[#allocation68_spill] sm:$0xff] }
 0x59d   : > { %11387 = vst [vmem:[#allocation33_spill] sm:$0xff] %v10026_v37  ;;  %v4386_v12 = vadd.f32 -1.4531521, %v4370_v27  ;;  %v3800_v23 = vmul.f32 %v3778_v34, %v11247_v18  ;;  %v10040_v30 = vand.u32 2147483647, %v10026_v37  ;;  %v3801_v0 = vmul.f32 %v3786_v54, %v11248_v49 }
 0x59e   : > { %v4430_v32 = vmul.f32 %v9981_v50, %v4414_v56  ;;  %v10043_v9 = vand.u32 2147483647, %v10029_v44  ;;  %v4552_v21 = vmul.f32 1.442695, %v4530_v53  ;;  %v3915_v57 = vsel %vm1831_vm6, %v9953_v24, %v9932_v3  ;;  %v11390_v53 = vld [vmem:[#allocation11_spill] sm:$0xff] }
 0x59f   : > { %v4402_v47 = vmul.f32 %v10011_v31, %v4386_v12  ;;  %v3848_v27 = vmul.f32 %v11389_v51, %v3800_v23  ;;  %v3755_v43 = vpop.permute.xlu1 %3754  ;;  %v4320_v56 = vmul.f32 0.3275911, %v10040_v30  ;;  %v5247_v34 = vpop.eup %5246  ;;  %v3849_v12 = vmul.f32 %v11389_v51, %v3801_v0 }
 0x5a0   : > { %v4446_v4 = vadd.f32 -0.28449672, %v4430_v32  ;;  %v4321_v5 = vmul.f32 0.3275911, %v10043_v9  ;;  %v4399_v54 = vmul.f32 %v9987_v8, %v4383_v16  ;;  %v3974_v39 = vmul.f32 %v11390_v53, %v3926_v48  ;;  %v10072_v16 = vpop.permute.xlu0 %4217 }
 0x5a1   : > { %v4336_v32 = vadd.f32 1.0, %v4320_v56  ;;  %v10063_v37 = vadd.f32 %v3848_v27, %v9957_v1  ;;  %v10065_v35 = vpop.eup %5248  ;;  %v4418_v45 = vadd.f32 1.4214138, %v4402_v47  ;;  %v3975_v13 = vmul.f32 %v11390_v53, %v3927_v52 }
 0x5a2   : > { %v4462_v23 = vmul.f32 %v9981_v50, %v4446_v4  ;;  %v4337_v58 = vadd.f32 1.0, %v4321_v5  ;;  %v10070_v3 = vadd.f32 %v3849_v12, %v9968_v25  ;;  %v3930_v47 = vmul.f32 %v3907_v20, %v11249_v40 }
 0x5a3   : > { %v3771_v24 = vpop.permute.xlu1 %3770  ;;  %5252 = vrcp.f32 %v4336_v32  ;;  %v3931_v48 = vmul.f32 %v3915_v57, %v11250_v17  ;;  %v4169_v25 = vsel %vm2105_vm9, %v4151_v14, %v10003_v59  ;;  %v4415_v56 = vadd.f32 1.4214138, %v4399_v54  ;;  %v11392_v32 = vld [vmem:[#allocation122_spill] sm:$0xff] }
 0x5a4   : > { %v4478_v0 = vadd.f32 0.2548296, %v4462_v23  ;;  %v3779_v51 = vsel %vm1694_vm7, %v3755_v43, %v3771_v24  ;;  %v3787_v1 = vsel %vm1694_vm7, %v3771_v24, %v3755_v43  ;;  %5254 = vrcp.f32 %v4337_v58  ;;  %v11391_v43 = vld [vmem:[#allocation111_spill] sm:$0xff]  ;;  %v10092_v57 = vpop.eup %5250  ;;  %v11393_v54 = vld [vmem:[#allocation102_spill] sm:$0xff] }
 0x5a5   : > { %v3802_v27 = vmul.f32 %v3779_v51, %v11247_v18  ;;  %v3803_v4 = vmul.f32 %v3787_v1, %v11248_v49  ;;  %5256 = vpow2.f32 %v4552_v21  ;;  %v10086_v5 = vmul.f32 1.442695, %v4531_v22 }
 0x5a6   : > { %v4494_v52 = vmul.f32 %v9981_v50, %v4478_v0  ;;  %v3990_v12 = vadd.f32 %v3974_v39, %v11391_v43  ;;  %v4161_v58 = vsel %vm2105_vm9, %v10003_v59, %v4151_v14  ;;  %v4434_v50 = vmul.f32 %v10011_v31, %v4418_v45 }
 0x5a7   : > { %v4007_v20 = vpop.permute.xlu1 %4006  ;;  %v3850_v18 = vmul.f32 %v11392_v32, %v3802_v27  ;;  %v3851_v49 = vmul.f32 %v11392_v32, %v3803_v4  ;;  %v3991_v21 = vadd.f32 %v3975_v13, %v11393_v54  ;;  %v3978_v22 = vmul.f32 %v9927_v41, %v3930_v47 }
 0x5a8   : > { %v4574_v23 = vmul.f32 %v5247_v34, %v4494_v52  ;;  %v4183_v39 = vmul.f32 %v9459_v15, %v4169_v25  ;;  %v4431_v53 = vmul.f32 %v9987_v8, %v4415_v56  ;;  %vm4271_vm5 = vcmp.ge.f32.partialorder %v9885_v60, 0.0  ;;  %v10103_v34 = vpop.permute.xlu0 %4024 }
 0x5a9   : > { %v3979_v14 = vmul.f32 %v9927_v41, %v3931_v48  ;;  %v3866_v45 = vadd.f32 %v3850_v18, %v9972_v38  ;;  %v3867_v24 = vadd.f32 %v3851_v49, %v9975_v6  ;;  %v4513_v0 = vsub.f32 0.0, %v10043_v9 }
 0x5aa   : > { %v4590_v59 = vsub.f32 1.0, %v4574_v23  ;;  %v4182_v13 = vmul.f32 %v9453_v29, %v4161_v58  ;;  %v4447_v1 = vadd.f32 -0.28449672, %v4431_v53  ;;  %v4371_v15 = vmul.f32 1.0614054, %v10092_v57  ;;  %v11394_v23 = vld [vmem:[#allocation110_spill] sm:$0xff] }
 0x5ab   : > { %v4023_v51 = vpop.permute.xlu1 %4022  ;;  %v4450_v25 = vadd.f32 -0.28449672, %v4434_v50  ;;  %v4231_v38 = vmul.f32 %v9900_v46, %v4183_v39  ;;  %v10123_v43 = vadd.f32 %v3979_v14, %v3867_v24  ;;  %5258 = vpow2.f32 %v10086_v5 }
 0x5ac   : > { %v4606_v47 = vmul.f32 %v4590_v59, %v10008_v26  ;;  %v4033_v41 = vsel %vm1968_vm8, %v4007_v20, %v4023_v51  ;;  %v4041_v48 = vsel %vm1968_vm8, %v4023_v51, %v4007_v20  ;;  %v4463_v29 = vmul.f32 %v9987_v8, %v4447_v1 }
 0x5ad   : > { %v4054_v6 = vmul.f32 %v4033_v41, %v11282_v62  ;;  %v4055_v52 = vmul.f32 %v4041_v48, %v11283_v63  ;;  %v10119_v27 = vpop.eup %5252  ;;  %v4387_v56 = vadd.f32 -1.4531521, %v4371_v15  ;;  %v10121_v26 = vadd.f32 %v3978_v22, %v3866_v45  ;;  %v4137_v22 = vpop.permute.xlu0 %4136 }
 0x5ae   : > { %v4638_v4 = vadd.f32 1.0, %v4606_v47  ;;  %v10125_v58 = vpop.eup %5254  ;;  %v4529_v20 = vmul.f32 %v4513_v0, %v10043_v9  ;;  %v4479_v49 = vadd.f32 0.2548296, %v4463_v29  ;;  %v4466_v39 = vmul.f32 %v10011_v31, %v4450_v25 }
 0x5af   : > { %v4102_v50 = vmul.f32 %v11394_v23, %v4054_v6  ;;  %v4103_v32 = vmul.f32 %v11394_v23, %v4055_v52  ;;  %v10130_v18 = vpop.permute.xlu1 %4089  ;;  %v4369_v53 = vmul.f32 1.0614054, %v10125_v58  ;;  %v4403_v59 = vmul.f32 %v10092_v57, %v4387_v56  ;;  %v5257_v14 = vpop.eup %5256 }
 0x5b0   : > { %v10133_v54 = vmul.f32 %v4638_v4, %v9994_v28  ;;  %v4512_v9 = vsub.f32 0.0, %v10040_v30  ;;  %v4495_v0 = vmul.f32 %v9987_v8, %v4479_v49  ;;  %v4230_v51 = vmul.f32 %v9900_v46, %v4182_v13 }
 0x5b1   : > { %v4118_v45 = vadd.f32 %v4102_v50, %v3990_v12  ;;  %v4119_v24 = vadd.f32 %v4103_v32, %v3991_v21  ;;  %v4385_v1 = vadd.f32 -1.4531521, %v4369_v53  ;;  %v4419_v15 = vadd.f32 1.4214138, %v4403_v59  ;;  %v4153_v29 = vpop.permute.xlu0 %4152 }
 0x5b2   : > { %v4669_v28 = vpack.c.bf16 %v10133_v54, %v9979_v33  ;;  %v4550_v47 = vmul.f32 1.442695, %v4529_v20  ;;  %v4575_v48 = vmul.f32 %v10065_v35, %v4495_v0  ;;  %v4368_v6 = vmul.f32 1.0614054, %v10119_v27 }
 0x5b3   : > { %v10143_v25 = vadd.f32 %v4231_v38, %v4119_v24  ;;  %v3881_v41 = vpop.permute.xlu1 %3880  ;;  %v4482_v52 = vadd.f32 0.2548296, %v4466_v39  ;;  %v10147_v12 = vadd.f32 %v4230_v51, %v4118_v45  ;;  %v4653_v8 = vmul.f32 %v9977_v61, %v9960_v11 }
 0x5b4   : > { %v4401_v46 = vmul.f32 %v10125_v58, %v4385_v1  ;;  %v4287_v21 = vsel %vm4271_vm5, 1.0, %v11367_v42  ;;  %v4623_v13 = vmul.f32 0.5, %v9872_v2  ;;  %v4528_v38 = vmul.f32 %v4512_v9, %v10040_v30 }
 0x5b5   : > { %v4435_v35 = vmul.f32 %v10092_v57, %v4419_v15  ;;  %v10160_v4 = vmul.f32 0.70710677, %v10143_v25  ;;  %v4591_v56 = vsub.f32 1.0, %v4575_v48  ;;  %vm4274_vm7 = vcmp.ge.f32.partialorder %v9911_v55, 0.0  ;;  %v10196_v55 = vld [vmem:[%s10481_s3 + $0x10] ss:$0 sm:$0xff] }
 0x5b6   : > { %v4417_v11 = vadd.f32 1.4214138, %v4401_v46  ;;  %vm4275_vm13 = vcmp.ge.f32.partialorder %v9939_v19, 0.0  ;;  %5260 = vpow2.f32 %v4550_v47  ;;  %v4384_v61 = vadd.f32 -1.4531521, %v4368_v6 }
 0x5b7   : > { %v3897_v60 = vpop.permute.xlu1 %3896  ;;  %v4498_v2 = vmul.f32 %v10011_v31, %v4482_v52  ;;  %v10166_v30 = vmul.f32 0.70710677, %v10147_v12  ;;  %v4607_v20 = vmul.f32 %v4591_v56, %v4287_v21  ;;  %v10170_v23 = vmul.f32 0.5, %v9917_v10 }
 0x5b8   : > { %v4433_v5 = vmul.f32 %v10125_v58, %v4417_v11  ;;  %v4548_v50 = vmul.f32 1.442695, %v4528_v38  ;;  %v4162_v32 = vsel %vm2105_vm9, %v4137_v22, %v4153_v29  ;;  %v4451_v49 = vadd.f32 -0.28449672, %v4435_v35 }
 0x5b9   : > { %v4170_v39 = vsel %vm2105_vm9, %v4153_v29, %v4137_v22  ;;  %v10177_v53 = vand.u32 2147483647, %v10160_v4  ;;  %v4639_v31 = vadd.f32 1.0, %v4607_v20  ;;  %v4290_v9 = vsel %vm4274_vm7, 1.0, %v11367_v42  ;;  %v5259_v29 = vpop.eup %5258 }
 0x5ba   : > { %v4449_v59 = vadd.f32 -0.28449672, %v4433_v5  ;;  %v10185_v10 = vsel %vm4275_vm13, 1.0, %v11367_v42  ;;  %vm4273_vm14 = vcmp.ge.f32.partialorder %v10029_v44, 0.0  ;;  %v4400_v24 = vmul.f32 %v10119_v27, %v4384_v61  ;;  %v10204_v44 = vld [vmem:[%s10481_s3 + $0x18] ss:$0 sm:$0xff] }
 0x5bb   : > { %v4133_v45 = vpop.permute.xlu1 %4132  ;;  %v4578_v22 = vmul.f32 %v5257_v14, %v4498_v2  ;;  %v10190_v0 = vand.u32 2147483647, %v10166_v30  ;;  %v4655_v51 = vmul.f32 %v4639_v31, %v4623_v13  ;;  %5262 = vpow2.f32 %v4548_v50 }
 0x5bc   : > { %v4465_v1 = vmul.f32 %v10125_v58, %v4449_v59  ;;  %v10199_v19 = vmul.f32 %v10196_v55, %v4162_v32  ;;  %v10207_v14 = vmul.f32 %v10204_v44, %v4170_v39  ;;  %v4467_v15 = vmul.f32 %v10092_v57, %v4451_v49 }
 0x5bd   : > { %v4327_v47 = vmul.f32 0.3275911, %v10177_v53  ;;  %v4670_v48 = vpack.c.bf16 %v4655_v51, %v4653_v8  ;;  %v3906_v6 = vsel %vm1831_vm6, %v3881_v41, %v3897_v60  ;;  %v4289_v52 = vsel %vm4273_vm14, 1.0, %v11367_v42 }
 0x5be   : > { %v3914_v46 = vsel %vm1831_vm6, %v3897_v60, %v3881_v41  ;;  %v4481_v13 = vadd.f32 0.2548296, %v4465_v1  ;;  %v4483_v38 = vadd.f32 0.2548296, %v4467_v15  ;;  %v4416_v35 = vadd.f32 1.4214138, %v4400_v24 }
 0x5bf   : > { %v4149_v21 = vpop.permute.xlu1 %4148  ;;  %v4594_v56 = vsub.f32 1.0, %v4578_v22  ;;  %v4326_v11 = vmul.f32 0.3275911, %v10190_v0  ;;  %4680 = vmatprep.subr.bf16.mxu0 %v4670_v48  ;;  %v4343_v50 = vadd.f32 1.0, %v4327_v47  ;;  %v3928_v32 = vmul.f32 %v3906_v6, %v11249_v40  ;;  %v11395_v22 = vld [vmem:[#allocation88_spill] sm:$0xff]  ;;  %v11397_v40 = vld [vmem:[#allocation93_spill] sm:$0xff] }
 0x5c0   : > { %v4160_v8 = vsel %vm2105_vm9, %v4133_v45, %v4149_v21  ;;  %v4168_v61 = vsel %vm2105_vm9, %v4149_v21, %v4133_v45  ;;  %v5261_v2 = vpop.eup %5260  ;;  %4681 = vmatpush1.bf16.msra.mxu0 %v4669_v28  ;;  %v4497_v20 = vmul.f32 %v10125_v58, %v4481_v13  ;;  %v4499_v5 = vmul.f32 %v10092_v57, %v4483_v38  ;;  %v11396_v57 = vld [vmem:[#allocation108_spill] sm:$0xff] }
 0x5c1   : > { %v4180_v41 = vmul.f32 %v10196_v55, %v4160_v8  ;;  %v4181_v60 = vmul.f32 %v10204_v44, %v4168_v61  ;;  %v3929_v49 = vmul.f32 %v3914_v46, %v11250_v17  ;;  %v4432_v39 = vmul.f32 %v10119_v27, %v4416_v35 }
 0x5c2   : > { %v4577_v28 = vmul.f32 %v5261_v2, %v4497_v20  ;;  %v4579_v59 = vmul.f32 %v5259_v29, %v4499_v5  ;;  %v4610_v45 = vmul.f32 %v4594_v56, %v4290_v9  ;;  %v4342_v24 = vadd.f32 1.0, %v4326_v11 }
 0x5c3   : > { %v4228_v31 = vmul.f32 %v9997_v36, %v4180_v41  ;;  %v4229_v33 = vmul.f32 %v9997_v36, %v4181_v60  ;;  %v4214_v54 = vpop.permute.xlu1 %4213  ;;  %v4625_v58 = vmul.f32 0.5, %v11395_v22  ;;  %v4448_v51 = vadd.f32 -0.28449672, %v4432_v39  ;;  %v11398_v36 = vld [vmem:[#allocation81_spill] sm:$0xff] }
 0x5c4   : > { %v4593_v17 = vsub.f32 1.0, %v4577_v28  ;;  %v4595_v47 = vsub.f32 1.0, %v4579_v59  ;;  %5264 = vrcp.f32 %v4343_v50  ;;  %v4518_v48 = vsub.f32 0.0, %v10190_v0 }
 0x5c5   : > { %v10235_v1 = vadd.f32 %v4228_v31, %v11396_v57  ;;  %v10238_v15 = vadd.f32 %v4229_v33, %v11397_v40  ;;  %v3976_v6 = vmul.f32 %v11398_v36, %v3928_v32  ;;  %v4464_v46 = vmul.f32 %v10119_v27, %v4448_v51  ;;  %v5263_v9 = vpop.eup %5262  ;;  %v11399_v31 = vld [vmem:[#allocation112_spill] sm:$0xff] }
 0x5c6   : > { %v3977_v21 = vmul.f32 %v11398_v36, %v3929_v49  ;;  %v4609_v29 = vmul.f32 %v4593_v17, %v4289_v52  ;;  %v4519_v56 = vsub.f32 0.0, %v10177_v53  ;;  %v4611_v61 = vmul.f32 %v4595_v47, %v10185_v10  ;;  %v11400_v36 = vld [vmem:[#allocation33_spill] sm:$0xff] }
 0x5c7   : > { %v10245_v13 = vmul.f32 0.70710677, %v10235_v1  ;;  %v10248_v38 = vmul.f32 0.70710677, %v10238_v15  ;;  %v4009_v35 = vpop.permute.xlu1 %4008  ;;  %5266 = vrcp.f32 %v4342_v24  ;;  %v4480_v50 = vadd.f32 0.2548296, %v4464_v46 }
 0x5c8   : > { %v4034_v11 = vsel %vm1968_vm8, %v4009_v35, %v10103_v34  ;;  %v4042_v8 = vsel %vm1968_vm8, %v10103_v34, %v4009_v35  ;;  %v4641_v20 = vadd.f32 1.0, %v4609_v29  ;;  %v4643_v5 = vadd.f32 1.0, %v4611_v61 }
 0x5c9   : > { %v4308_v2 = vand.u32 2147483647, %v10245_v13  ;;  %v10260_v41 = vand.u32 2147483647, %v10248_v38  ;;  %v4056_v52 = vmul.f32 %v4034_v11, %v11282_v62  ;;  %v4057_v60 = vmul.f32 %v4042_v8, %v11283_v63 }
 0x5ca   : > { %v3992_v32 = vadd.f32 %v3976_v6, %v10063_v37  ;;  %v3993_v49 = vadd.f32 %v3977_v21, %v10070_v3  ;;  %v4657_v59 = vmul.f32 %v4641_v20, %v4625_v58  ;;  %v4659_v24 = vmul.f32 %v4643_v5, %v10170_v23 }
 0x5cb   : > { %v4324_v34 = vmul.f32 0.3275911, %v4308_v2  ;;  %v4325_v10 = vmul.f32 0.3275911, %v10260_v41  ;;  %v4011_v39 = vpop.permute.xlu1 %4010  ;;  %v4104_v33 = vmul.f32 %v11399_v31, %v4056_v52  ;;  %v4105_v28 = vmul.f32 %v11399_v31, %v4057_v60 }
 0x5cc   : > { %v4232_v57 = vmul.f32 %v4214_v54, %v10199_v19  ;;  %v4233_v40 = vmul.f32 %v4214_v54, %v10207_v14  ;;  %v4672_v3 = vpack.c.bf16 %v4659_v24, %v4657_v59  ;;  %v4496_v47 = vmul.f32 %v10119_v27, %v4480_v50  ;;  %v11401_v54 = vld [vmem:[#allocation114_spill] sm:$0xff] }
 0x5cd   : > { %v4340_v22 = vadd.f32 1.0, %v4324_v34  ;;  %v4341_v51 = vadd.f32 1.0, %v4325_v10  ;;  %v4120_v37 = vadd.f32 %v4104_v33, %v3992_v32  ;;  %v4121_v17 = vadd.f32 %v4105_v28, %v3993_v49  ;;  %v11402_v34 = vld [vmem:[#allocation16_spill] sm:$0xff] }
 0x5ce   : > { %vm4272_vm6 = vcmp.ge.f32.partialorder %v11400_v36, 0.0  ;;  %v4534_v6 = vmul.f32 %v4518_v48, %v10190_v0  ;;  %v4535_v46 = vmul.f32 %v4519_v56, %v10177_v53  ;;  %v10276_v23 = vpop.eup %5264  ;;  %4682 = vmatprep.subr.bf16.mxu0 %v4672_v3  ;;  %v4576_v14 = vmul.f32 %v5263_v9, %v4496_v47 }
 0x5cf   : > { %5268 = vrcp.f32 %v4340_v22  ;;  %v4027_v58 = vpop.permute.xlu1 %4026  ;;  %v10278_v21 = vadd.f32 %v4232_v57, %v4120_v37  ;;  %v10280_v19 = vadd.f32 %v4233_v40, %v4121_v17  ;;  %v4626_v35 = vmul.f32 0.5, %v11401_v54 }
 0x5d0   : > { %5270 = vrcp.f32 %v4341_v51  ;;  %v4642_v27 = vadd.f32 1.0, %v4610_v45  ;;  %v4035_v29 = vsel %vm1968_vm8, %v4011_v39, %v4027_v58  ;;  %v4043_v53 = vsel %vm1968_vm8, %v4027_v58, %v4011_v39 }
 0x5d1   : > { %v4288_v0 = vsel %vm4272_vm6, 1.0, %v11367_v42  ;;  %v4516_v48 = vsub.f32 0.0, %v4308_v2  ;;  %v10289_v56 = vmul.f32 0.70710677, %v10278_v21  ;;  %v10292_v11 = vmul.f32 0.70710677, %v10280_v19  ;;  %v10294_v8 = vpop.eup %5266 }
 0x5d2   : > { %v4560_v9 = vmul.f32 1.442695, %v4534_v6  ;;  %v4592_v61 = vsub.f32 1.0, %v4576_v14  ;;  %v4058_v45 = vmul.f32 %v4035_v29, %v11282_v62  ;;  %v4375_v60 = vmul.f32 1.0614054, %v10276_v23 }
 0x5d3   : > { %v4139_v52 = vpop.permute.xlu1 %4138  ;;  %v4562_v20 = vmul.f32 1.442695, %v4535_v46  ;;  %v10299_v5 = vand.u32 2147483647, %v10289_v56  ;;  %v10302_v50 = vand.u32 2147483647, %v10292_v11  ;;  %v4059_v32 = vmul.f32 %v4043_v53, %v11283_v63 }
 0x5d4   : > { %v4658_v49 = vmul.f32 %v4642_v27, %v4626_v35  ;;  %v4624_v10 = vmul.f32 0.5, %v11402_v34  ;;  %v4608_v39 = vmul.f32 %v4592_v61, %v4288_v0  ;;  %v4391_v31 = vadd.f32 -1.4531521, %v4375_v60 }
 0x5d5   : > { %v4517_v33 = vsub.f32 0.0, %v10260_v41  ;;  %v4532_v62 = vmul.f32 %v4516_v48, %v4308_v2  ;;  %v4106_v28 = vmul.f32 %v10130_v18, %v4058_v45  ;;  %v10309_v59 = vmul.f32 0.5, %v10143_v25 }
 0x5d6   : > { %vm4278_vm8 = vcmp.ge.f32.partialorder %v10166_v30, 0.0  ;;  %5272 = vpow2.f32 %v4560_v9  ;;  %v4329_v24 = vmul.f32 0.3275911, %v10302_v50  ;;  %v4640_v22 = vadd.f32 1.0, %v4608_v39 }
 0x5d7   : > { %v4155_v63 = vpop.permute.xlu1 %4154  ;;  %v4407_v51 = vmul.f32 %v10276_v23, %v4391_v31  ;;  %5274 = vpow2.f32 %v4562_v20  ;;  %v4328_v57 = vmul.f32 0.3275911, %v10299_v5  ;;  %v4107_v40 = vmul.f32 %v10130_v18, %v4059_v32 }
 0x5d8   : > { %vm4279_vm15 = vcmp.ge.f32.partialorder %v10160_v4, 0.0  ;;  %v4656_v25 = vmul.f32 %v4640_v22, %v4624_v10  ;;  %v4163_v37 = vsel %vm2105_vm9, %v4139_v52, %v4155_v63  ;;  %v4171_v17 = vsel %vm2105_vm9, %v4155_v63, %v4139_v52 }
 0x5d9   : > { %v10317_v2 = vpop.eup %5268  ;;  %v4423_v3 = vadd.f32 1.4214138, %v4407_v51  ;;  %v4533_v36 = vmul.f32 %v4517_v33, %v10260_v41  ;;  %v4556_v6 = vmul.f32 1.442695, %v4532_v62  ;;  %v4122_v46 = vadd.f32 %v4106_v28, %v10121_v26 }
 0x5da   : > { %v10323_v47 = vpop.eup %5270  ;;  %v4186_v18 = vmul.f32 %v10196_v55, %v4163_v37  ;;  %v4345_v58 = vadd.f32 1.0, %v4329_v24  ;;  %v4671_v14 = vpack.c.bf16 %v4658_v49, %v4656_v25  ;;  %v4187_v54 = vmul.f32 %v10204_v44, %v4171_v17 }
 0x5db   : > { %v4373_v35 = vmul.f32 1.0614054, %v10323_v47  ;;  %v4344_v27 = vadd.f32 1.0, %v4328_v57  ;;  %v4439_v29 = vmul.f32 %v10276_v23, %v4423_v3  ;;  %v4372_v53 = vmul.f32 1.0614054, %v10317_v2 }
 0x5dc   : > { %v4234_v7 = vmul.f32 %v10072_v16, %v4186_v18  ;;  %4683 = vmatpush1.bf16.msra.mxu0 %v4671_v14  ;;  %v4123_v41 = vadd.f32 %v4107_v40, %v10123_v43  ;;  %v4235_v26 = vmul.f32 %v10072_v16, %v4187_v54  ;;  %v4374_v55 = vmul.f32 1.0614054, %v10294_v8 }
 0x5dd   : > { %v4389_v0 = vadd.f32 -1.4531521, %v4373_v35  ;;  %v4558_v48 = vmul.f32 1.442695, %v4533_v36  ;;  %v4455_v44 = vadd.f32 -0.28449672, %v4439_v29  ;;  %5276 = vrcp.f32 %v4345_v58 }
 0x5de   : > { %v10336_v9 = vadd.f32 %v4234_v7, %v4122_v46  ;;  %v4388_v61 = vadd.f32 -1.4531521, %v4372_v53  ;;  %v10338_v45 = vadd.f32 %v4235_v26, %v4123_v41  ;;  %v4390_v60 = vadd.f32 -1.4531521, %v4374_v55 }
 0x5df   : > { %v4405_v52 = vmul.f32 %v10323_v47, %v4389_v0  ;;  %5278 = vrcp.f32 %v4344_v27  ;;  %v4471_v16 = vmul.f32 %v10276_v23, %v4455_v44  ;;  %v4295_v34 = vsel %vm4279_vm15, 1.0, %v11367_v42 }
 0x5e0   : > { %v10342_v20 = vmul.f32 0.70710677, %v10336_v9  ;;  %v4404_v43 = vmul.f32 %v10317_v2, %v4388_v61  ;;  %v10346_v32 = vpop.eup %5272  ;;  %v10349_v49 = vmul.f32 0.70710677, %v10338_v45  ;;  %v4406_v39 = vmul.f32 %v10294_v8, %v4390_v60 }
 0x5e1   : > { %v4421_v10 = vadd.f32 1.4214138, %v4405_v52  ;;  %v5275_v31 = vpop.eup %5274  ;;  %5280 = vpow2.f32 %v4558_v48  ;;  %v4487_v62 = vadd.f32 0.2548296, %v4471_v16  ;;  %v10359_v28 = vsel %vm4278_vm8, 1.0, %v11367_v42 }
 0x5e2   : > { %v4314_v33 = vand.u32 2147483647, %v10342_v20  ;;  %5282 = vpow2.f32 %v4556_v6  ;;  %v4315_v24 = vand.u32 2147483647, %v10349_v49  ;;  %v4420_v4 = vadd.f32 1.4214138, %v4404_v43 }
 0x5e3   : > { %v4437_v22 = vmul.f32 %v10323_v47, %v4421_v10  ;;  %v4520_v63 = vsub.f32 0.0, %v10299_v5  ;;  %v4503_v57 = vmul.f32 %v10276_v23, %v4487_v62  ;;  %v4422_v40 = vadd.f32 1.4214138, %v4406_v39 }
 0x5e4   : > { %v4330_v51 = vmul.f32 0.3275911, %v4314_v33  ;;  %vm4276_vm9 = vcmp.ge.f32.partialorder %v10245_v13, 0.0  ;;  %v4331_v25 = vmul.f32 0.3275911, %v4315_v24  ;;  %v4436_v30 = vmul.f32 %v10317_v2, %v4420_v4 }
 0x5e5   : > { %v4453_v37 = vadd.f32 -0.28449672, %v4437_v22  ;;  %v4521_v17 = vsub.f32 0.0, %v10302_v50  ;;  %v4583_v36 = vmul.f32 %v5275_v31, %v4503_v57  ;;  %v4438_v6 = vmul.f32 %v10294_v8, %v4422_v40 }
 0x5e6   : > { %v4346_v3 = vadd.f32 1.0, %v4330_v51  ;;  %v4347_v46 = vadd.f32 1.0, %v4331_v25  ;;  %vm4277_vm0 = vcmp.ge.f32.partialorder %v10248_v38, 0.0  ;;  %v4452_v58 = vadd.f32 -0.28449672, %v4436_v30 }
 0x5e7   : > { %v4469_v18 = vmul.f32 %v10323_v47, %v4453_v37  ;;  %v4536_v23 = vmul.f32 %v4520_v63, %v10299_v5  ;;  %v4599_v14 = vsub.f32 1.0, %v4583_v36  ;;  %v4454_v54 = vadd.f32 -0.28449672, %v4438_v6  ;;  %v10372_v35 = vpop.eup %5276 }
 0x5e8   : > { %5284 = vrcp.f32 %v4346_v3  ;;  %v4522_v27 = vsub.f32 0.0, %v4314_v33  ;;  %v4468_v29 = vmul.f32 %v10317_v2, %v4452_v58  ;;  %v4628_v41 = vmul.f32 0.5, %v10235_v1 }
 0x5e9   : > { %5286 = vrcp.f32 %v4347_v46  ;;  %v4485_v7 = vadd.f32 0.2548296, %v4469_v18  ;;  %v10375_v53 = vpop.eup %5278  ;;  %v4537_v26 = vmul.f32 %v4521_v17, %v10302_v50  ;;  %v4523_v0 = vsub.f32 0.0, %v4315_v24 }
 0x5ea   : > { %v4470_v55 = vmul.f32 %v10294_v8, %v4454_v54  ;;  %v4292_v5 = vsel %vm4276_vm9, 1.0, %v11367_v42  ;;  %v4293_v48 = vsel %vm4277_vm0, 1.0, %v11367_v42  ;;  %v4484_v61 = vadd.f32 0.2548296, %v4468_v29 }
 0x5eb   : > { %v4501_v44 = vmul.f32 %v10323_v47, %v4485_v7  ;;  %v5281_v52 = vpop.eup %5280  ;;  %v4564_v60 = vmul.f32 1.442695, %v4536_v23  ;;  %v4615_v16 = vmul.f32 %v4599_v14, %v4295_v34  ;;  %v4377_v50 = vmul.f32 1.0614054, %v10372_v35 }
 0x5ec   : > { %v4486_v1 = vadd.f32 0.2548296, %v4470_v55  ;;  %v5283_v43 = vpop.eup %5282  ;;  %v4538_v10 = vmul.f32 %v4522_v27, %v4314_v33  ;;  %v4500_v31 = vmul.f32 %v10317_v2, %v4484_v61  ;;  %v4376_v13 = vmul.f32 1.0614054, %v10375_v53 }
 0x5ed   : > { %v4581_v39 = vmul.f32 %v5281_v52, %v4501_v44  ;;  %v4566_v62 = vmul.f32 1.442695, %v4537_v26  ;;  %v4539_v22 = vmul.f32 %v4523_v0, %v4315_v24  ;;  %v4393_v4 = vadd.f32 -1.4531521, %v4377_v50 }
 0x5ee   : > { %v4502_v38 = vmul.f32 %v10294_v8, %v4486_v1  ;;  %v4629_v63 = vmul.f32 0.5, %v10238_v15  ;;  %v4580_v51 = vmul.f32 %v5283_v43, %v4500_v31  ;;  %v4392_v34 = vadd.f32 -1.4531521, %v4376_v13 }
 0x5ef   : > { %v4597_v47 = vsub.f32 1.0, %v4581_v39  ;;  %5288 = vpow2.f32 %v4564_v60  ;;  %v4647_v57 = vadd.f32 1.0, %v4615_v16  ;;  %v4409_v33 = vmul.f32 %v10372_v35, %v4393_v4 }
 0x5f0   : > { %v4582_v40 = vmul.f32 %v10346_v32, %v4502_v38  ;;  %v4568_v25 = vmul.f32 1.442695, %v4538_v10  ;;  %v4596_v37 = vsub.f32 1.0, %v4580_v51  ;;  %v4408_v30 = vmul.f32 %v10375_v53, %v4392_v34 }
 0x5f1   : > { %v4613_v2 = vmul.f32 %v4597_v47, %v4293_v48  ;;  %5290 = vpow2.f32 %v4566_v62  ;;  %v4570_v8 = vmul.f32 1.442695, %v4539_v22  ;;  %v4425_v3 = vadd.f32 1.4214138, %v4409_v33 }
 0x5f2   : > { %v5285_v24 = vpop.eup %5284  ;;  %v4598_v17 = vsub.f32 1.0, %v4582_v40  ;;  %v4612_v6 = vmul.f32 %v4596_v37, %v4292_v5  ;;  %v4424_v18 = vadd.f32 1.4214138, %v4408_v30  ;;  %v4663_v58 = vmul.f32 %v4647_v57, %v10309_v59 }
 0x5f3   : > { %v5287_v36 = vpop.eup %5286  ;;  %v4645_v15 = vadd.f32 1.0, %v4613_v2  ;;  %v4378_v46 = vmul.f32 1.0614054, %v5285_v24  ;;  %v4441_v14 = vmul.f32 %v10372_v35, %v4425_v3  ;;  %v4630_v26 = vmul.f32 0.5, %v10147_v12 }
 0x5f4   : > { %v4614_v32 = vmul.f32 %v4598_v17, %v10359_v28  ;;  %v4379_v23 = vmul.f32 1.0614054, %v5287_v36  ;;  %v4644_v27 = vadd.f32 1.0, %v4612_v6  ;;  %v4440_v29 = vmul.f32 %v10375_v53, %v4424_v18 }
 0x5f5   : > { %v4661_v54 = vmul.f32 %v4645_v15, %v4629_v63  ;;  %v4394_v7 = vadd.f32 -1.4531521, %v4378_v46  ;;  %v4457_v48 = vadd.f32 -0.28449672, %v4441_v14  ;;  %5292 = vpow2.f32 %v4568_v25 }
 0x5f6   : > { %v4646_v0 = vadd.f32 1.0, %v4614_v32  ;;  %v4395_v55 = vadd.f32 -1.4531521, %v4379_v23  ;;  %v4660_v44 = vmul.f32 %v4644_v27, %v4628_v41  ;;  %v4456_v52 = vadd.f32 -0.28449672, %v4440_v29 }
 0x5f7   : > { %v4674_v5 = vpack.c.bf16 %v4663_v58, %v4661_v54  ;;  %v4410_v61 = vmul.f32 %v5285_v24, %v4394_v7  ;;  %v4473_v28 = vmul.f32 %v10372_v35, %v4457_v48  ;;  %5294 = vpow2.f32 %v4570_v8 }
 0x5f8   : > { %v4662_v59 = vmul.f32 %v4646_v0, %v4630_v26  ;;  %v4411_v60 = vmul.f32 %v5287_v36, %v4395_v55  ;;  %v4472_v1 = vmul.f32 %v10375_v53, %v4456_v52  ;;  %vm4280_vm1 = vcmp.ge.f32.partialorder %v10289_v56, 0.0  ;;  %v426_v52 = vld [vmem:[%s422_s12] sm:$0xff]  ;;  %s5328_s12 = sshll.u32 %s5406_s10, 4  ;;  %s5329_s12 = int_to_ptr.vmem [resolvable:$false] %s5328_s12 }
 0x5f9   : > { %4684 = vmatprep.subr.bf16.mxu0 %v4674_v5  ;;  %v4426_v16 = vadd.f32 1.4214138, %v4410_v61  ;;  %v5289_v50 = vpop.eup %5288  ;;  %v4489_v12 = vadd.f32 0.2548296, %v4473_v28  ;;  %vm4281_vm11 = vcmp.ge.f32.partialorder %v10292_v11, 0.0  ;;  %vm4282_vm12 = vcmp.ge.f32.partialorder %v10342_v20, 0.0 }
 0x5fa   : > { %v4673_v43 = vpack.c.bf16 %v4662_v59, %v4660_v44  ;;  %v4427_v10 = vadd.f32 1.4214138, %v4411_v60  ;;  %v4488_v31 = vadd.f32 0.2548296, %v4472_v1  ;;  %vm4283_vm2 = vcmp.ge.f32.partialorder %v10349_v49, 0.0  ;;  %v11404_v5 = vld [vmem:[#allocation6_spill] sm:$0xff] }
 0x5fb   : > { %v4442_v39 = vmul.f32 %v5285_v24, %v4426_v16  ;;  %v5291_v13 = vpop.eup %5290  ;;  %v4505_v62 = vmul.f32 %v10372_v35, %v4489_v12  ;;  %v4296_v35 = vsel %vm4280_vm1, 1.0, %v11367_v42  ;;  %v4298_v11 = vsel %vm4282_vm12, 1.0, %v11367_v42 }
 0x5fc   : > { %4685 = vmatpush1.bf16.msra.mxu0 %v4673_v43  ;;  %v4443_v41 = vmul.f32 %v5287_v36, %v4427_v10  ;;  %v4504_v38 = vmul.f32 %v10375_v53, %v4488_v31  ;;  %v4297_v53 = vsel %vm4281_vm11, 1.0, %v11367_v42  ;;  %v4632_v20 = vmul.f32 0.5, %v10278_v21  ;;  %v4668_v21 = vld [vmem:[%s10487_s9] sm:$0x3] }
 0x5fd   : > { %v4458_v22 = vadd.f32 -0.28449672, %v4442_v39  ;;  %v4585_v47 = vmul.f32 %v5291_v13, %v4505_v62  ;;  %v4634_v23 = vmul.f32 0.5, %v10336_v9  ;;  %v4633_v49 = vmul.f32 0.5, %v10280_v19  ;;  %v5323_v19 = vld [vmem:[%s5538_s23] sm:$0xff]  ;;  %s406_s23 = sand.u32 1, %s5378_s20  }
 0x5fe   : > { %v4459_v4 = vadd.f32 -0.28449672, %v4443_v41  ;;  %v4584_v51 = vmul.f32 %v5289_v50, %v4504_v38  ;;  %v4635_v54 = vmul.f32 0.5, %v10338_v45  ;;  %vm4729_vm3 = vcmask 1043456   ;;  %s4870_s18 = sshll.u32 %s406_s23, 3  ;;  %s4769_s26 = scalar_lea.sflag [#allocation4], %s406_s23 }
 0x5ff   : > { %v4474_v63 = vmul.f32 %v5285_v24, %v4458_v22  ;;  %v4601_v25 = vsub.f32 1.0, %v4585_v47  ;;  %v5293_v37 = vpop.eup %5292  ;;  %s408_s16 = scalar_lea.vmem [#allocation3], %s4870_s18 }
 0x600   : > { %v4475_v34 = vmul.f32 %v5287_v36, %v4459_v4  ;;  %v4600_v40 = vsub.f32 1.0, %v4584_v51  ;;  %s4783_s17 = sshll.u32 %s408_s16, 4  ;;  %s10438_s17 = int_to_ptr.vmem [resolvable:$true] %s4783_s17 }
 0x601   : > { %v4490_v57 = vadd.f32 0.2548296, %v4474_v63  ;;  %v5295_v8 = vpop.eup %5294  ;;  %v4617_v15 = vmul.f32 %v4601_v25, %v4297_v53  ;;  %v11407_v25 = vld [vmem:[#allocation10_spill] sm:$0xff]  ;;  %s5324_s0 = scalar_lea.vmem %s10438_s17, 128  ;;  %p5331_p0 = scmp.lt.s32.totalorder %s10438_s17, %s5329_s12 }
 0x602   : > { %v4491_v33 = vadd.f32 0.2548296, %v4475_v34  ;;  %v4616_v3 = vmul.f32 %v4600_v40, %v4296_v35  ;;  %v11405_v34 = vld [vmem:[#allocation12_spill] sm:$0xff]  ;;  %v11406_v40 = vld [vmem:[#allocation13_spill] sm:$0xff]  ;;  %v4759_v35 = vstv %s4748_s13  ;;  %p5325_p11 = scmp.ne.s32.totalorder %s10438_s17, %s5324_s0  ;;  %s5330_s13 = scalar_lea.vmem %s5329_s12, 256 }
 0x603   : > { %v4506_v2 = vmul.f32 %v5285_v24, %v4490_v57  ;;  %v4299_v24 = vsel %vm4283_vm2, 1.0, %v11367_v42  ;;  %v4649_v32 = vadd.f32 1.0, %v4617_v15  ;;  %p5332_p1 = scmp.lt.s32.totalorder %s5330_s13, %s5324_s0 }
 0x604   : > { %v4507_v30 = vmul.f32 %v5287_v36, %v4491_v33  ;;  %v4648_v18 = vadd.f32 1.0, %v4616_v3  ;;  %p5326_p12 = pnand %p5325_p11, %p5508_p5 }
 0x605   : > { %v4586_v17 = vmul.f32 %v5293_v37, %v4506_v2  ;;  %v4665_v26 = vmul.f32 %v4649_v32, %v4633_v49  ;;  %p5333_p2 = por %p5332_p1, %p5331_p0 }
 0x606   : > { %v4587_v56 = vmul.f32 %v5295_v8, %v4507_v30  ;;  %v4664_v7 = vmul.f32 %v4648_v18, %v4632_v20  ;;  %p5327_p13 = pneg %p5326_p12 }
 0x607   : > { %v4602_v6 = vsub.f32 1.0, %v4586_v17 }
 0x608   : > { %v4603_v46 = vsub.f32 1.0, %v4587_v56  ;;  %p5334_p3 = pnand %p5333_p2, %p5327_p13 }
 0x609   : > { %v4618_v36 = vmul.f32 %v4602_v6, %v4298_v11 }
 0x60a   : > { %v4619_v58 = vmul.f32 %v4603_v46, %v4299_v24 }
 0x60b   : > { %v4650_v14 = vadd.f32 1.0, %v4618_v36 }
 0x60c   : > { %v4651_v27 = vadd.f32 1.0, %v4619_v58 }
 0x60d   : > { %v4666_v29 = vmul.f32 %v4650_v14, %v4634_v23 }
 0x60e   : > { %v4667_v42 = vmul.f32 %v4651_v27, %v4635_v54 }
 0x60f   : > { %v4675_v0 = vpack.c.bf16 %v4666_v29, %v4664_v7 }
 0x610   : > { %v4676_v55 = vpack.c.bf16 %v4667_v42, %v4665_v26 }
 0x612   : > { %4686 = vmatprep.subr.bf16.mxu0 %v4676_v55 }
 0x613   : > { %4687 = vmatpush1.bf16.msra.mxu0 %v4675_v0 }
 0x616   : > { %4895 = vmatmul.mubr.msk.bf16.vlgmr.msra.gmra.mrb[16].mxu0 %vm2662_vm10, %v4668_v21 }
 0x6e9   : > { %v4714_v9 = vpop.f32.mrb[16].mxu0 }
 0x6ea   : > { %v4715_v45 = vadd.f32 %v5323_v19, %v4714_v9  ;;  %v4716_v48 = vpop.f32.mrb[17].mxu0 }
 0x6eb   : > { %v4717_v44 = vadd.f32 %v4716_v48, %v11404_v5  ;;  %v4718_v61 = vpop.f32.mrb[18].mxu0 }
 0x6ec   : > { %v4719_v59 = vpop.f32.mrb[19].mxu0 }
 0x6ed   : > { %v4723_v60 = vcombine.low %v4715_v45, %v4717_v44 }
 0x6ef   : > { %v4725_v28 = vmul.f32 %v4723_v60, %v426_v52 }
 0x6f1   : > { %v4727_v16 = vcombine.high %v4725_v28, %v4725_v28  ;;  %v4730_v1 = vsel %vm4729_vm3, %v4725_v28, 0.0 }
 0x6f2   : > { %v4731_v50 = vrot.slane %v4730_v1, 4 }
 0x6f3   : > { %v4737_v43 = vsel %vm4729_vm3, %v4727_v16, 0.0 }
 0x6f4   : > { %v4732_v10 = vadd.f32 %v4731_v50, %v4730_v1  ;;  %v4738_v12 = vrot.slane %v4737_v43, 4 }
 0x6f6   : > { %v4733_v39 = vrot.slane %v4732_v10, 2  ;;  %v4739_v31 = vadd.f32 %v4738_v12, %v4737_v43 }
 0x6f8   : > { %v4734_v13 = vadd.f32 %v4733_v39, %v4732_v10  ;;  %v4740_v41 = vrot.slane %v4739_v31, 2 }
 0x6fa   : > { %v4735_v62 = vrot.slane %v4734_v13, 1  ;;  %v4741_v22 = vadd.f32 %v4740_v41, %v4739_v31 }
 0x6fc   : > { %v4736_v38 = vadd.f32 %v4735_v62, %v4734_v13  ;;  %v4742_v4 = vrot.slane %v4741_v22, 1 }
 0x6fe   : > { %v4743_v47 = vadd.f32 %v4742_v4, %v4741_v22  ;;  %v4744_v63 = vmul.f32 0.5, %v4736_v38 }
 0x700   : > { %v4745_v51 = vmul.f32 0.5, %v4743_v47  ;;  %v4746_v57 = vsub.f32 %v4744_v63, %v11405_v34 }
 0x702   : > { %v4747_v33 = vsub.f32 %v4745_v51, %v11406_v40  ;;  %v4752_v2 = vrot.slane %v4746_v57, %v11407_v25 }
 0x704   : > { %v4756_v37 = vrot.slane %v4747_v33, %v11407_v25  ;;  %v4757_v30 = vmul.f32 %v4752_v2, %v4715_v45 }
 0x706   : > { %v4758_v8 = vmul.f32 %v4756_v37, %v4717_v44  ;;  %v4760_v53 = vmul.f32 %v4759_v35, %v4757_v30 }
 0x708   : > { %v4761_v17 = vmul.f32 %v4759_v35, %v4758_v8 }
 0x70a   : > { %v4764_v3 = vcombine.low %v4760_v53, %v4761_v17 }
 0x70c   : > { %v4766_v56 = vsub.f32 %v426_v52, %v4764_v3 }
 0x70e   : > { %4767 = vst [vmem:[%s408_s16] sm:$0xff] %v4766_v56 }
 0x70f   : > { %5337 = shalt.err (!%p5334_p3)
}
 0x710   : > { %s5338_s23 = scalar_lea.hbm %s10436_s30, 128  ;;  %s5342_s16 = scalar_lea.hbm %s10489_s11, 256 }
 0x711   : > { %p5339_p4 = scmp.ne.s32.totalorder %s10436_s30, %s5338_s23  ;;  %p5343_p9 = scmp.lt.u32.totalorder %s10436_s30, %s10489_s11 }
 0x712   : > { %p5344_p10 = scmp.lt.u32.totalorder %s5342_s16, %s5338_s23  ;;  %p5346_p12 = scmp.lt.u32.totalorder %s5338_s23, %s10436_s30 }
 0x713   : > { %p5340_p7 = pnand %p5339_p4, %p5508_p5 }
 0x714   : > { %p5345_p11 = por %p5344_p10, %p5343_p9 }
 0x715   : > { %p5341_p8 = pneg %p5340_p7 }
 0x716   : > { %p5347_p13 = por %p5346_p12, %p5345_p11 }
 0x718   : > { %p5348_p0 = pnand %p5347_p13, %p5341_p8 }
 0x71a   : > { %5351 = shalt.err (!%p5348_p0)
}
 0x71b   : > { %4904 = dma.vmem_to_hbm [thread:$0]  (%p5508_p5), %s10438_s17, 128, %s10436_s30, %s4769_s26  }
 0x71c PF: > { %p4910_p1 = scmp.ge.s32.totalorder %s5386_s22, 2  ;;  %s4795_s0 = sand.u32 1, %s5374_s19  }
 0x71d   : > { %s4796_s10 = scalar_lea.sflag [#allocation4], %s4795_s0 }
 0x71e   : > { %p4907_p2 = pnand %p4910_p1, %p5512_p6 }
 0x720   : > { %5369 = dma.done.wait (!%p4907_p2), %s4796_s10, 128  }
 0x721   : > { %5371 = vsyncadd (!%p4907_p2), %s4796_s10, 4294967168  ;;  %p22_p3 = scmp.ge.s32.totalorder %s5495_s24, 4   ;;  %s11408_s19 = smov %s5378_s20 }
 0x722   : > { %s11409_s20 = smov %s5382_s21  ;;  %s11410_s21 = smov %s5506_s27 }
 0x723   : > { %s11411_s22 = smov %s5495_s24  ;;  %24 = sbr.rel (!%p22_p3) target bundleno = 6 (0x6), region = 105 }
 0x72a   :  { %4801 = vsyncpa [#allocation4], 1 }
 0x72b   :  { %4803 = vsyncpa [#allocation4 + $0x1], 1 }

</bundles_post_ra>
